<compile_context>
chip_gen: v7x
topology: tpu7x:2x2x1
jax: 0.10.0
libtpu: 0.0.40
codegen_flags: <defaults>
</compile_context>

<pallas_src>
import functools
import math

import jax
import jax.numpy as jnp
from jax import lax
from jax.experimental import pallas as pl
from jax.experimental.pallas import tpu as pltpu


# ---------------------------------------------------------------------------
# Helpers
# ---------------------------------------------------------------------------

def _row_tile(n, max_tile=512):
    """Largest row tile (multiple of 8) that divides n and is <= max_tile, else n."""
    if n <= max_tile:
        return n
    for t in range(max_tile, 7, -8):
        if n % t == 0:
            return t
    return n


def _layernorm(x, w, b, eps=1e-5):
    # x: (M, C); w, b: (1, C). torch LayerNorm default eps=1e-5.
    mu = jnp.mean(x, axis=-1, keepdims=True)
    var = jnp.mean((x - mu) * (x - mu), axis=-1, keepdims=True)
    return (x - mu) * lax.rsqrt(var + eps) * w + b


# ---------------------------------------------------------------------------
# Fused attention kernel
#   grid = (batch, q-row tiles, kv tiles); kv axis is "arbitrary" (online softmax).
# ---------------------------------------------------------------------------

def _make_attn_kernel(num_heads, use_pe, use_residual, inv_sqrt_dh):
    def kernel(*refs):
        it = iter(refs)
        qx_ref = next(it)
        qpe_ref = next(it) if use_pe else None
        kx_ref = next(it)
        kpe_ref = next(it) if use_pe else None
        v_ref = next(it)
        res_ref = next(it) if use_residual else None
        wq_ref = next(it); bq_ref = next(it)
        wk_ref = next(it); bk_ref = next(it)
        wv_ref = next(it); bv_ref = next(it)
        wo_ref = next(it); bo_ref = next(it)
        lnw_ref = next(it); lnb_ref = next(it)
        o_ref = next(it)
        q_sc = next(it); m_sc = next(it); l_sc = next(it); acc_sc = next(it)

        f32 = jnp.float32
        bf16 = jnp.bfloat16
        kv = pl.program_id(2)
        di = q_sc.shape[1]
        dh = di // num_heads

        # ---- per-(batch, q-tile) init: project q once, fold in 1/sqrt(dh) ----
        @pl.when(kv == 0)
        def _init():
            q_in = qx_ref[0]
            if use_pe:
                q_in = q_in + qpe_ref[0]
            q = jnp.dot(q_in.astype(bf16), wq_ref[...],
                        preferred_element_type=f32) + bq_ref[...]
            q_sc[...] = q * inv_sqrt_dh
            m_sc[...] = jnp.full(m_sc.shape, -jnp.inf, f32)
            l_sc[...] = jnp.zeros(l_sc.shape, f32)
            acc_sc[...] = jnp.zeros(acc_sc.shape, f32)

        # ---- per-KV-tile: project k/v chunk and update online softmax ----
        k_in = kx_ref[0]
        if use_pe:
            k_in = k_in + kpe_ref[0]
        k = jnp.dot(k_in.astype(bf16), wk_ref[...],
                    preferred_element_type=f32) + bk_ref[...]        # (tk, Di)
        v = jnp.dot(v_ref[0].astype(bf16), wv_ref[...],
                    preferred_element_type=f32) + bv_ref[...]        # (tk, Di)

        qb = q_sc[...].astype(bf16)
        kb = k.astype(bf16)
        vb = v.astype(bf16)

        for h in range(num_heads):
            hs, he = h * dh, (h + 1) * dh
            # q @ k^T without materializing the transpose (contract on feature axis).
            s = lax.dot_general(qb[:, hs:he], kb[:, hs:he],
                                (((1,), (1,)), ((), ())),
                                preferred_element_type=f32)          # (tq, tk)
            m_prev = m_sc[h]                                         # (tq, 1)
            m_new = jnp.maximum(m_prev, jnp.max(s, axis=-1, keepdims=True))
            alpha = jnp.exp(m_prev - m_new)
            p = jnp.exp(s - m_new)
            l_sc[h] = alpha * l_sc[h] + jnp.sum(p, axis=-1, keepdims=True)
            acc_sc[:, hs:he] = alpha * acc_sc[:, hs:he] + jnp.dot(
                p.astype(bf16), vb[:, hs:he], preferred_element_type=f32)
            m_sc[h] = m_new

        # ---- finalize: normalize, one concatenated out-projection, residual, LN ----
        @pl.when(kv == pl.num_programs(2) - 1)
        def _fin():
            acc = acc_sc[...]                                        # (tq, Di) f32
            parts = []
            for h in range(num_heads):
                hs, he = h * dh, (h + 1) * dh
                inv_l = pl.reciprocal(l_sc[h], approx=True)
                parts.append(acc[:, hs:he] * inv_l)
            o_int = parts[0] if num_heads == 1 else jnp.concatenate(parts, axis=-1)
            attn_out = jnp.dot(o_int.astype(bf16), wo_ref[...],
                               preferred_element_type=f32) + bo_ref[...]   # (tq, C)
            x = attn_out
            if use_residual:
                x = res_ref[0] + attn_out
            o_ref[0] = _layernorm(x, lnw_ref[...], lnb_ref[...]).astype(o_ref.dtype)

    return kernel


def _mlp_res_ln_kernel(x_ref, w1_ref, b1_ref, w2_ref, b2_ref, lnw_ref, lnb_ref, o_ref):
    # Fused: Linear(C->mlp) -> ReLU -> Linear(mlp->C) -> residual add -> LayerNorm.
    f32 = jnp.float32
    bf16 = jnp.bfloat16
    x = x_ref[...]                                                           # (tm, C) f32
    h = jnp.dot(x.astype(bf16), w1_ref[...], preferred_element_type=f32) + b1_ref[...]
    h = jnp.maximum(h, 0.0)
    y = x + jnp.dot(h.astype(bf16), w2_ref[...], preferred_element_type=f32) + b2_ref[...]
    o_ref[...] = _layernorm(y, lnw_ref[...], lnb_ref[...]).astype(o_ref.dtype)


# ---------------------------------------------------------------------------
# Pallas wrappers
# ---------------------------------------------------------------------------

def fused_attn_ln(p, q_x, k_x, v, ln_w, ln_b, num_heads,
                  q_pe=None, k_pe=None, residual=None):
    """out = LayerNorm([residual +] Attention(q_x [+ q_pe], k_x [+ k_pe], v))."""
    use_pe = q_pe is not None
    use_residual = residual is not None

    b, nq, c = q_x.shape
    nk = k_x.shape[1]
    di = p["wq"].shape[1]
    dh = di // num_heads

    # Query tile: go wide when the KV side is tiny (image->token stage); else moderate.
    tq = _row_tile(nq, 1024 if nk <= 512 else 256)
    tk = _row_tile(nk, 512)
    grid = (b, nq // tq, nk // tk)

    kernel = _make_attn_kernel(num_heads, use_pe, use_residual,
                               1.0 / math.sqrt(float(dh)))

    bf16 = jnp.bfloat16
    f32 = jnp.float32

    q_spec = pl.BlockSpec((1, tq, c), lambda bi, qi, ki: (bi, qi, 0))
    kv_spec = pl.BlockSpec((1, tk, c), lambda bi, qi, ki: (bi, ki, 0))

    in_specs = [q_spec]
    inputs = [q_x]
    if use_pe:
        in_specs.append(q_spec)
        inputs.append(q_pe)
    in_specs.append(kv_spec)
    inputs.append(k_x)
    if use_pe:
        in_specs.append(kv_spec)
        inputs.append(k_pe)
    in_specs.append(kv_spec)
    inputs.append(v)
    if use_residual:
        in_specs.append(q_spec)
        inputs.append(residual)

    # Weights cast to bf16 once in the wrapper (half the weight DMA bytes, MXU-native);
    # biases / LayerNorm params stay f32 (added to f32 accumulators).
    in_specs += [
        pl.BlockSpec((c, di), lambda bi, qi, ki: (0, 0)),   # wq
        pl.BlockSpec((1, di), lambda bi, qi, ki: (0, 0)),   # bq
        pl.BlockSpec((c, di), lambda bi, qi, ki: (0, 0)),   # wk
        pl.BlockSpec((1, di), lambda bi, qi, ki: (0, 0)),   # bk
        pl.BlockSpec((c, di), lambda bi, qi, ki: (0, 0)),   # wv
        pl.BlockSpec((1, di), lambda bi, qi, ki: (0, 0)),   # bv
        pl.BlockSpec((di, c), lambda bi, qi, ki: (0, 0)),   # wo
        pl.BlockSpec((1, c), lambda bi, qi, ki: (0, 0)),    # bo
        pl.BlockSpec((1, c), lambda bi, qi, ki: (0, 0)),    # ln_w
        pl.BlockSpec((1, c), lambda bi, qi, ki: (0, 0)),    # ln_b
    ]
    inputs += [
        p["wq"].astype(bf16), p["bq"].reshape(1, di),
        p["wk"].astype(bf16), p["bk"].reshape(1, di),
        p["wv"].astype(bf16), p["bv"].reshape(1, di),
        p["wo"].astype(bf16), p["bo"].reshape(1, c),
        ln_w.reshape(1, c), ln_b.reshape(1, c),
    ]

    out = pl.pallas_call(
        kernel,
        out_shape=jax.ShapeDtypeStruct((b, nq, c), q_x.dtype),
        grid=grid,
        in_specs=in_specs,
        out_specs=pl.BlockSpec((1, tq, c), lambda bi, qi, ki: (bi, qi, 0)),
        scratch_shapes=[
            pltpu.VMEM((tq, di), f32),             # scaled q projection
            pltpu.VMEM((num_heads, tq, 1), f32),   # running max m
            pltpu.VMEM((num_heads, tq, 1), f32),   # running sum l
            pltpu.VMEM((tq, di), f32),             # per-head output accumulator
        ],
        compiler_params=pltpu.CompilerParams(
            dimension_semantics=("parallel", "parallel", "arbitrary")),
    )(*inputs)
    return out


def fused_mlp_ln(x, w1, b1, w2, b2, ln_w, ln_b):
    """out = LayerNorm(x + MLP(x))."""
    orig_shape = x.shape
    c = orig_shape[-1]
    hdim = w1.shape[1]
    x2 = x.reshape(-1, c)
    m = x2.shape[0]
    tm = _row_tile(m)
    bf16 = jnp.bfloat16

    out = pl.pallas_call(
        _mlp_res_ln_kernel,
        out_shape=jax.ShapeDtypeStruct((m, c), x.dtype),
        grid=(m // tm,),
        in_specs=[
            pl.BlockSpec((tm, c), lambda i: (i, 0)),
            pl.BlockSpec((c, hdim), lambda i: (0, 0)),
            pl.BlockSpec((1, hdim), lambda i: (0, 0)),
            pl.BlockSpec((hdim, c), lambda i: (0, 0)),
            pl.BlockSpec((1, c), lambda i: (0, 0)),
            pl.BlockSpec((1, c), lambda i: (0, 0)),
            pl.BlockSpec((1, c), lambda i: (0, 0)),
        ],
        out_specs=pl.BlockSpec((tm, c), lambda i: (i, 0)),
        compiler_params=pltpu.CompilerParams(dimension_semantics=("parallel",)),
    )(x2, w1.astype(bf16), b1.reshape(1, hdim), w2.astype(bf16), b2.reshape(1, c),
      ln_w.reshape(1, c), ln_b.reshape(1, c))
    return out.reshape(orig_shape)


# ---------------------------------------------------------------------------
# Parameter init (deterministic, synthetic)
# ---------------------------------------------------------------------------

def _init_linear(key, din, dout, scale=0.05):
    kw, kb = jax.random.split(key)
    w = jax.random.normal(kw, (din, dout), jnp.float32) * scale
    b = jax.random.normal(kb, (dout,), jnp.float32) * scale
    return w, b


def _init_attention(key, embed_dim, downsample_rate):
    internal = embed_dim // downsample_rate
    keys = jax.random.split(key, 4)
    wq, bq = _init_linear(keys[0], embed_dim, internal)
    wk, bk = _init_linear(keys[1], embed_dim, internal)
    wv, bv = _init_linear(keys[2], embed_dim, internal)
    wo, bo = _init_linear(keys[3], internal, embed_dim)
    return dict(wq=wq, bq=bq, wk=wk, bk=bk, wv=wv, bv=bv, wo=wo, bo=bo)


def _init_layernorm(key, dim):
    kw, kb = jax.random.split(key)
    w = 1.0 + 0.02 * jax.random.normal(kw, (dim,), jnp.float32)
    b = 0.02 * jax.random.normal(kb, (dim,), jnp.float32)
    return w, b


def _init_block(key, embed_dim, mlp_dim, downsample_rate):
    keys = jax.random.split(key, 8)
    p = {}
    p["self_attn"] = _init_attention(keys[0], embed_dim, 1)
    p["cross_t2i"] = _init_attention(keys[1], embed_dim, downsample_rate)
    p["cross_i2t"] = _init_attention(keys[2], embed_dim, downsample_rate)
    p["norm1_w"], p["norm1_b"] = _init_layernorm(keys[3], embed_dim)
    p["norm2_w"], p["norm2_b"] = _init_layernorm(keys[4], embed_dim)
    p["norm3_w"], p["norm3_b"] = _init_layernorm(keys[5], embed_dim)
    p["norm4_w"], p["norm4_b"] = _init_layernorm(keys[6], embed_dim)
    km1, km2 = jax.random.split(keys[7])
    p["mlp_w1"], p["mlp_b1"] = _init_linear(km1, embed_dim, mlp_dim)
    p["mlp_w2"], p["mlp_b2"] = _init_linear(km2, mlp_dim, embed_dim)
    return p


def init_two_way_transformer(key, depth, embed_dim, mlp_dim, downsample_rate):
    keys = jax.random.split(key, depth + 2)
    params = {
        "layers": [
            _init_block(keys[i], embed_dim, mlp_dim, downsample_rate)
            for i in range(depth)
        ]
    }
    params["final_attn"] = _init_attention(keys[depth], embed_dim, downsample_rate)
    params["norm_final_w"], params["norm_final_b"] = _init_layernorm(
        keys[depth + 1], embed_dim
    )
    return params


# ---------------------------------------------------------------------------
# Forward pass (4 fused pallas_calls per block + 1 final)
# ---------------------------------------------------------------------------

def two_way_block(p, queries, keys, query_pe, key_pe, num_heads, skip_first_layer_pe):
    # (1) self-attention of sparse inputs (+LN1 fused)
    if skip_first_layer_pe:
        # queries = LN1(self_attn(queries, queries, queries))  -- no PE, no residual
        queries = fused_attn_ln(
            p["self_attn"], queries, queries, queries,
            p["norm1_w"], p["norm1_b"], num_heads)
    else:
        # q = queries + query_pe; queries = LN1(queries + self_attn(q, q, queries))
        queries = fused_attn_ln(
            p["self_attn"], queries, queries, queries,
            p["norm1_w"], p["norm1_b"], num_heads,
            q_pe=query_pe, k_pe=query_pe, residual=queries)

    # (2) cross attention tokens -> image (+LN2 fused)
    queries = fused_attn_ln(
        p["cross_t2i"], queries, keys, keys,
        p["norm2_w"], p["norm2_b"], num_heads,
        q_pe=query_pe, k_pe=key_pe, residual=queries)

    # (3) MLP on sparse inputs (+residual +LN3 fused)
    queries = fused_mlp_ln(queries, p["mlp_w1"], p["mlp_b1"], p["mlp_w2"], p["mlp_b2"],
                           p["norm3_w"], p["norm3_b"])

    # (4) cross attention image -> tokens (+LN4 fused); residual/output are keys-shaped
    keys = fused_attn_ln(
        p["cross_i2t"], keys, queries, queries,
        p["norm4_w"], p["norm4_b"], num_heads,
        q_pe=key_pe, k_pe=query_pe, residual=keys)

    return queries, keys


def two_way_transformer(params, image_embedding, image_pe, point_embedding, num_heads):
    b, c, h, w = image_embedding.shape
    # flatten(2).permute(0, 2, 1)
    image_embedding = image_embedding.reshape(b, c, h * w).transpose(0, 2, 1)
    image_pe = image_pe.reshape(b, c, h * w).transpose(0, 2, 1)

    queries = point_embedding
    keys = image_embedding
    for i, lp in enumerate(params["layers"]):
        queries, keys = two_way_block(
            lp, queries, keys, point_embedding, image_pe, num_heads,
            skip_first_layer_pe=(i == 0),
        )

    # final attention token -> image (+norm_final fused)
    queries = fused_attn_ln(
        params["final_attn"], queries, keys, keys,
        params["norm_final_w"], params["norm_final_b"], num_heads,
        q_pe=point_embedding, k_pe=image_pe, residual=queries)
    return queries, keys


# ---------------------------------------------------------------------------
# Demo
# ---------------------------------------------------------------------------

if __name__ == "__main__":
    # Small, module-consistent shapes.
    depth = 2
    embedding_dim = 32
    num_heads = 2
    mlp_dim = 64
    attention_downsample_rate = 2
    B, H, W = 2, 8, 8
    N_points = 8

    root = jax.random.PRNGKey(0)
    k_params, k_img, k_pe, k_pts = jax.random.split(root, 4)

    params = init_two_way_transformer(
        k_params, depth, embedding_dim, mlp_dim, attention_downsample_rate
    )

    image_embedding = jax.random.normal(k_img, (B, embedding_dim, H, W), jnp.float32)
    image_pe = jax.random.normal(k_pe, (B, embedding_dim, H, W), jnp.float32)
    point_embedding = jax.random.normal(k_pts, (B, N_points, embedding_dim), jnp.float32)

    fwd = jax.jit(functools.partial(two_way_transformer, num_heads=num_heads))
    queries_out, keys_out = fwd(params, image_embedding, image_pe, point_embedding)
    jax.block_until_ready((queries_out, keys_out))

    assert queries_out.shape == (B, N_points, embedding_dim)
    assert keys_out.shape == (B, H * W, embedding_dim)
    assert jnp.all(jnp.isfinite(queries_out)) and jnp.all(jnp.isfinite(keys_out))
    print("KERNEL_OK")
</pallas_src>

<mosaic_0001>
module attributes {stable_mosaic.version = 11 : i64} {
  func.func @kernel(%arg0: i32, %arg1: i32, %arg2: i32, %arg3: memref<1x8x32xf32, #tpu.memory_space<vmem>>, %arg4: memref<1x8x32xf32, #tpu.memory_space<vmem>>, %arg5: memref<1x8x32xf32, #tpu.memory_space<vmem>>, %arg6: memref<32x32xbf16, #tpu.memory_space<vmem>>, %arg7: memref<1x32xf32, #tpu.memory_space<vmem>>, %arg8: memref<32x32xbf16, #tpu.memory_space<vmem>>, %arg9: memref<1x32xf32, #tpu.memory_space<vmem>>, %arg10: memref<32x32xbf16, #tpu.memory_space<vmem>>, %arg11: memref<1x32xf32, #tpu.memory_space<vmem>>, %arg12: memref<32x32xbf16, #tpu.memory_space<vmem>>, %arg13: memref<1x32xf32, #tpu.memory_space<vmem>>, %arg14: memref<1x32xf32, #tpu.memory_space<vmem>>, %arg15: memref<1x32xf32, #tpu.memory_space<vmem>>, %arg16: memref<1x8x32xf32, #tpu.memory_space<vmem>>, %arg17: memref<8x32xf32, #tpu.memory_space<vmem>>, %arg18: memref<2x8x1xf32, #tpu.memory_space<vmem>>, %arg19: memref<2x8x1xf32, #tpu.memory_space<vmem>>, %arg20: memref<8x32xf32, #tpu.memory_space<vmem>>) attributes {dimension_semantics = [#tpu.dimension_semantics<parallel>, #tpu.dimension_semantics<parallel>, #tpu.dimension_semantics<arbitrary>], iteration_bounds = array<i64: 2, 1, 1>, scalar_prefetch = 0 : i64, scratch_operands = 4 : i64, tpu.core_type = #tpu.core_type<tc>, window_params = [{transform_indices = @transform_0, window_bounds = array<i64: 1, 8, 32>}, {transform_indices = @transform_1, window_bounds = array<i64: 1, 8, 32>}, {transform_indices = @transform_2, window_bounds = array<i64: 1, 8, 32>}, {pipeline_mode = #tpu.pipeline_mode<synchronous>, transform_indices = @transform_3, window_bounds = array<i64: 32, 32>}, {pipeline_mode = #tpu.pipeline_mode<synchronous>, transform_indices = @transform_4, window_bounds = array<i64: 1, 32>}, {pipeline_mode = #tpu.pipeline_mode<synchronous>, transform_indices = @transform_5, window_bounds = array<i64: 32, 32>}, {pipeline_mode = #tpu.pipeline_mode<synchronous>, transform_indices = @transform_6, window_bounds = array<i64: 1, 32>}, {pipeline_mode = #tpu.pipeline_mode<synchronous>, transform_indices = @transform_7, window_bounds = array<i64: 32, 32>}, {pipeline_mode = #tpu.pipeline_mode<synchronous>, transform_indices = @transform_8, window_bounds = array<i64: 1, 32>}, {pipeline_mode = #tpu.pipeline_mode<synchronous>, transform_indices = @transform_9, window_bounds = array<i64: 32, 32>}, {pipeline_mode = #tpu.pipeline_mode<synchronous>, transform_indices = @transform_10, window_bounds = array<i64: 1, 32>}, {pipeline_mode = #tpu.pipeline_mode<synchronous>, transform_indices = @transform_11, window_bounds = array<i64: 1, 32>}, {pipeline_mode = #tpu.pipeline_mode<synchronous>, transform_indices = @transform_12, window_bounds = array<i64: 1, 32>}, {transform_indices = @transform_13, window_bounds = array<i64: 1, 8, 32>}]} {
    %c0_i32 = arith.constant 0 : i32
    %0 = arith.cmpi eq, %arg2, %c0_i32 : i32
    %1 = arith.extui %0 : i1 to i32
    %c0_i32_0 = arith.constant 0 : i32
    %2 = arith.cmpi ne, %1, %c0_i32_0 : i32
    scf.if %2 {
      %c0_57 = arith.constant 0 : index
      %c0_58 = arith.constant 0 : index
      %c0_59 = arith.constant 0 : index
      %92 = vector.load %arg3[%c0_57, %c0_58, %c0_59] : memref<1x8x32xf32, #tpu.memory_space<vmem>>, vector<1x8x32xf32>
      %93 = vector.shape_cast %92 : vector<1x8x32xf32> to vector<8x32xf32>
      %94 = arith.truncf %93 : vector<8x32xf32> to vector<8x32xbf16>
      %c0_60 = arith.constant 0 : index
      %c0_61 = arith.constant 0 : index
      %95 = vector.load %arg6[%c0_60, %c0_61] : memref<32x32xbf16, #tpu.memory_space<vmem>>, vector<32x32xbf16>
      %cst_62 = arith.constant dense<0.000000e+00> : vector<8x32xf32>
      %96 = tpu.matmul %94, %95, %cst_62 {dimension_numbers = #tpu.dot_dimension_numbers<[1], [0], [0], [1], [0, 0, 1, 1], [], []>} : vector<8x32xbf16>, vector<32x32xbf16>, vector<8x32xf32> -> vector<8x32xf32>
      %c0_63 = arith.constant 0 : index
      %c0_64 = arith.constant 0 : index
      %97 = vector.load %arg7[%c0_63, %c0_64] : memref<1x32xf32, #tpu.memory_space<vmem>>, vector<1x32xf32>
      %98 = vector.broadcast %97 : vector<1x32xf32> to vector<8x32xf32>
      %99 = arith.addf %96, %98 : vector<8x32xf32>
      %cst_65 = arith.constant 2.500000e-01 : f32
      %100 = vector.broadcast %cst_65 : f32 to vector<8x32xf32>
      %101 = arith.mulf %99, %100 : vector<8x32xf32>
      %c0_66 = arith.constant 0 : index
      %c0_67 = arith.constant 0 : index
      %102 = vector.load %arg17[%c0_66, %c0_67] : memref<8x32xf32, #tpu.memory_space<vmem>>, vector<8x32xf32>
      tpu.vector_store %arg17[%c0_66, %c0_67], %101 {strides = array<i32>} : memref<8x32xf32, #tpu.memory_space<vmem>>, vector<8x32xf32>,
      %cst_68 = arith.constant 0xFF800000 : f32
      %103 = vector.broadcast %cst_68 : f32 to vector<2x8x1xf32>
      %c0_69 = arith.constant 0 : index
      %c0_70 = arith.constant 0 : index
      %c0_71 = arith.constant 0 : index
      %104 = vector.load %arg18[%c0_69, %c0_70, %c0_71] : memref<2x8x1xf32, #tpu.memory_space<vmem>>, vector<2x8x1xf32>
      tpu.vector_store %arg18[%c0_69, %c0_70, %c0_71], %103 {strides = array<i32>} : memref<2x8x1xf32, #tpu.memory_space<vmem>>, vector<2x8x1xf32>,
      %cst_72 = arith.constant 0.000000e+00 : f32
      %105 = vector.broadcast %cst_72 : f32 to vector<2x8x1xf32>
      %c0_73 = arith.constant 0 : index
      %c0_74 = arith.constant 0 : index
      %c0_75 = arith.constant 0 : index
      %106 = vector.load %arg19[%c0_73, %c0_74, %c0_75] : memref<2x8x1xf32, #tpu.memory_space<vmem>>, vector<2x8x1xf32>
      tpu.vector_store %arg19[%c0_73, %c0_74, %c0_75], %105 {strides = array<i32>} : memref<2x8x1xf32, #tpu.memory_space<vmem>>, vector<2x8x1xf32>,
      %cst_76 = arith.constant 0.000000e+00 : f32
      %107 = vector.broadcast %cst_76 : f32 to vector<8x32xf32>
      %c0_77 = arith.constant 0 : index
      %c0_78 = arith.constant 0 : index
      %108 = vector.load %arg20[%c0_77, %c0_78] : memref<8x32xf32, #tpu.memory_space<vmem>>, vector<8x32xf32>
      tpu.vector_store %arg20[%c0_77, %c0_78], %107 {strides = array<i32>} : memref<8x32xf32, #tpu.memory_space<vmem>>, vector<8x32xf32>,
    } else {
    }
    %c0 = arith.constant 0 : index
    %c0_1 = arith.constant 0 : index
    %c0_2 = arith.constant 0 : index
    %3 = vector.load %arg4[%c0, %c0_1, %c0_2] : memref<1x8x32xf32, #tpu.memory_space<vmem>>, vector<1x8x32xf32>
    %4 = vector.shape_cast %3 : vector<1x8x32xf32> to vector<8x32xf32>
    %5 = arith.truncf %4 : vector<8x32xf32> to vector<8x32xbf16>
    %c0_3 = arith.constant 0 : index
    %c0_4 = arith.constant 0 : index
    %6 = vector.load %arg8[%c0_3, %c0_4] : memref<32x32xbf16, #tpu.memory_space<vmem>>, vector<32x32xbf16>
    %cst = arith.constant dense<0.000000e+00> : vector<8x32xf32>
    %7 = tpu.matmul %5, %6, %cst {dimension_numbers = #tpu.dot_dimension_numbers<[1], [0], [0], [1], [0, 0, 1, 1], [], []>} : vector<8x32xbf16>, vector<32x32xbf16>, vector<8x32xf32> -> vector<8x32xf32>
    %c0_5 = arith.constant 0 : index
    %c0_6 = arith.constant 0 : index
    %8 = vector.load %arg9[%c0_5, %c0_6] : memref<1x32xf32, #tpu.memory_space<vmem>>, vector<1x32xf32>
    %9 = vector.broadcast %8 : vector<1x32xf32> to vector<8x32xf32>
    %10 = arith.addf %7, %9 : vector<8x32xf32>
    %c0_7 = arith.constant 0 : index
    %c0_8 = arith.constant 0 : index
    %c0_9 = arith.constant 0 : index
    %11 = vector.load %arg5[%c0_7, %c0_8, %c0_9] : memref<1x8x32xf32, #tpu.memory_space<vmem>>, vector<1x8x32xf32>
    %12 = vector.shape_cast %11 : vector<1x8x32xf32> to vector<8x32xf32>
    %13 = arith.truncf %12 : vector<8x32xf32> to vector<8x32xbf16>
    %c0_10 = arith.constant 0 : index
    %c0_11 = arith.constant 0 : index
    %14 = vector.load %arg10[%c0_10, %c0_11] : memref<32x32xbf16, #tpu.memory_space<vmem>>, vector<32x32xbf16>
    %cst_12 = arith.constant dense<0.000000e+00> : vector<8x32xf32>
    %15 = tpu.matmul %13, %14, %cst_12 {dimension_numbers = #tpu.dot_dimension_numbers<[1], [0], [0], [1], [0, 0, 1, 1], [], []>} : vector<8x32xbf16>, vector<32x32xbf16>, vector<8x32xf32> -> vector<8x32xf32>
    %c0_13 = arith.constant 0 : index
    %c0_14 = arith.constant 0 : index
    %16 = vector.load %arg11[%c0_13, %c0_14] : memref<1x32xf32, #tpu.memory_space<vmem>>, vector<1x32xf32>
    %17 = vector.broadcast %16 : vector<1x32xf32> to vector<8x32xf32>
    %18 = arith.addf %15, %17 : vector<8x32xf32>
    %c0_15 = arith.constant 0 : index
    %c0_16 = arith.constant 0 : index
    %19 = vector.load %arg17[%c0_15, %c0_16] : memref<8x32xf32, #tpu.memory_space<vmem>>, vector<8x32xf32>
    %20 = arith.truncf %19 : vector<8x32xf32> to vector<8x32xbf16>
    %21 = arith.truncf %10 : vector<8x32xf32> to vector<8x32xbf16>
    %22 = arith.truncf %18 : vector<8x32xf32> to vector<8x32xbf16>
    %23 = vector.extract_strided_slice %20 {offsets = [0, 0], sizes = [8, 16], strides = [1, 1]} : vector<8x32xbf16> to vector<8x16xbf16>
    %24 = vector.extract_strided_slice %21 {offsets = [0, 0], sizes = [8, 16], strides = [1, 1]} : vector<8x32xbf16> to vector<8x16xbf16>
    %cst_17 = arith.constant dense<0.000000e+00> : vector<8x8xf32>
    %25 = tpu.matmul %23, %24, %cst_17 {dimension_numbers = #tpu.dot_dimension_numbers<[1], [1], [0], [0], [0, 0, 1, 0], [], []>} : vector<8x16xbf16>, vector<8x16xbf16>, vector<8x8xf32> -> vector<8x8xf32>
    %c0_18 = arith.constant 0 : index
    %c0_19 = arith.constant 0 : index
    %c0_20 = arith.constant 0 : index
    %26 = vector.load %arg18[%c0_18, %c0_19, %c0_20] : memref<2x8x1xf32, #tpu.memory_space<vmem>>, vector<1x8x1xf32>
    %27 = vector.shape_cast %26 : vector<1x8x1xf32> to vector<8x1xf32>
    %cst_21 = arith.constant dense<0xFF800000> : vector<8xf32>
    %28 = vector.multi_reduction <maximumf>, %25, %cst_21 [1] : vector<8x8xf32> to vector<8xf32>
    %29 = vector.shape_cast %28 : vector<8xf32> to vector<8x1xf32>
    %30 = arith.maximumf %27, %29 : vector<8x1xf32>
    %31 = arith.subf %27, %30 : vector<8x1xf32>
    %32 = math.exp %31 : vector<8x1xf32>
    %33 = vector.broadcast %30 : vector<8x1xf32> to vector<8x8xf32>
    %34 = arith.subf %25, %33 : vector<8x8xf32>
    %35 = math.exp %34 : vector<8x8xf32>
    %c0_22 = arith.constant 0 : index
    %c0_23 = arith.constant 0 : index
    %c0_24 = arith.constant 0 : index
    %36 = vector.load %arg19[%c0_22, %c0_23, %c0_24] : memref<2x8x1xf32, #tpu.memory_space<vmem>>, vector<1x8x1xf32>
    %37 = vector.shape_cast %36 : vector<1x8x1xf32> to vector<8x1xf32>
    %38 = arith.mulf %32, %37 : vector<8x1xf32>
    %cst_25 = arith.constant dense<0.000000e+00> : vector<8xf32>
    %39 = vector.multi_reduction <add>, %35, %cst_25 [1] : vector<8x8xf32> to vector<8xf32>
    %40 = vector.shape_cast %39 : vector<8xf32> to vector<8x1xf32>
    %41 = arith.addf %38, %40 : vector<8x1xf32>
    %c0_26 = arith.constant 0 : index
    %c0_27 = arith.constant 0 : index
    %c0_28 = arith.constant 0 : index
    %42 = vector.load %arg19[%c0_26, %c0_27, %c0_28] : memref<2x8x1xf32, #tpu.memory_space<vmem>>, vector<1x8x1xf32>
    %43 = vector.shape_cast %42 : vector<1x8x1xf32> to vector<8x1xf32>
    %44 = vector.shape_cast %41 : vector<8x1xf32> to vector<1x8x1xf32>
    tpu.vector_store %arg19[%c0_26, %c0_27, %c0_28], %44 {strides = array<i32>} : memref<2x8x1xf32, #tpu.memory_space<vmem>>, vector<1x8x1xf32>,
    %c0_29 = arith.constant 0 : index
    %c0_30 = arith.constant 0 : index
    %45 = vector.load %arg20[%c0_29, %c0_30] : memref<8x32xf32, #tpu.memory_space<vmem>>, vector<8x16xf32>
    %46 = vector.broadcast %32 : vector<8x1xf32> to vector<8x16xf32>
    %47 = arith.mulf %46, %45 : vector<8x16xf32>
    %48 = arith.truncf %35 : vector<8x8xf32> to vector<8x8xbf16>
    %49 = vector.extract_strided_slice %22 {offsets = [0, 0], sizes = [8, 16], strides = [1, 1]} : vector<8x32xbf16> to vector<8x16xbf16>
    %cst_31 = arith.constant dense<0.000000e+00> : vector<8x16xf32>
    %50 = tpu.matmul %48, %49, %cst_31 {dimension_numbers = #tpu.dot_dimension_numbers<[1], [0], [0], [1], [0, 0, 1, 1], [], []>} : vector<8x8xbf16>, vector<8x16xbf16>, vector<8x16xf32> -> vector<8x16xf32>
    %51 = arith.addf %47, %50 : vector<8x16xf32>
    %c0_32 = arith.constant 0 : index
    %c0_33 = arith.constant 0 : index
    %52 = vector.load %arg20[%c0_32, %c0_33] : memref<8x32xf32, #tpu.memory_space<vmem>>, vector<8x16xf32>
    tpu.vector_store %arg20[%c0_32, %c0_33], %51 {strides = array<i32>} : memref<8x32xf32, #tpu.memory_space<vmem>>, vector<8x16xf32>,
    %c0_34 = arith.constant 0 : index
    %c0_35 = arith.constant 0 : index
    %c0_36 = arith.constant 0 : index
    %53 = vector.load %arg18[%c0_34, %c0_35, %c0_36] : memref<2x8x1xf32, #tpu.memory_space<vmem>>, vector<1x8x1xf32>
    %54 = vector.shape_cast %53 : vector<1x8x1xf32> to vector<8x1xf32>
    %55 = vector.shape_cast %30 : vector<8x1xf32> to vector<1x8x1xf32>
    tpu.vector_store %arg18[%c0_34, %c0_35, %c0_36], %55 {strides = array<i32>} : memref<2x8x1xf32, #tpu.memory_space<vmem>>, vector<1x8x1xf32>,
    %56 = vector.extract_strided_slice %20 {offsets = [0, 16], sizes = [8, 16], strides = [1, 1]} : vector<8x32xbf16> to vector<8x16xbf16>
    %57 = vector.extract_strided_slice %21 {offsets = [0, 16], sizes = [8, 16], strides = [1, 1]} : vector<8x32xbf16> to vector<8x16xbf16>
    %cst_37 = arith.constant dense<0.000000e+00> : vector<8x8xf32>
    %58 = tpu.matmul %56, %57, %cst_37 {dimension_numbers = #tpu.dot_dimension_numbers<[1], [1], [0], [0], [0, 0, 1, 0], [], []>} : vector<8x16xbf16>, vector<8x16xbf16>, vector<8x8xf32> -> vector<8x8xf32>
    %c1 = arith.constant 1 : index
    %c0_38 = arith.constant 0 : index
    %c0_39 = arith.constant 0 : index
    %59 = vector.load %arg18[%c1, %c0_38, %c0_39] : memref<2x8x1xf32, #tpu.memory_space<vmem>>, vector<1x8x1xf32>
    %60 = vector.shape_cast %59 : vector<1x8x1xf32> to vector<8x1xf32>
    %cst_40 = arith.constant dense<0xFF800000> : vector<8xf32>
    %61 = vector.multi_reduction <maximumf>, %58, %cst_40 [1] : vector<8x8xf32> to vector<8xf32>
    %62 = vector.shape_cast %61 : vector<8xf32> to vector<8x1xf32>
    %63 = arith.maximumf %60, %62 : vector<8x1xf32>
    %64 = arith.subf %60, %63 : vector<8x1xf32>
    %65 = math.exp %64 : vector<8x1xf32>
    %66 = vector.broadcast %63 : vector<8x1xf32> to vector<8x8xf32>
    %67 = arith.subf %58, %66 : vector<8x8xf32>
    %68 = math.exp %67 : vector<8x8xf32>
    %c1_41 = arith.constant 1 : index
    %c0_42 = arith.constant 0 : index
    %c0_43 = arith.constant 0 : index
    %69 = vector.load %arg19[%c1_41, %c0_42, %c0_43] : memref<2x8x1xf32, #tpu.memory_space<vmem>>, vector<1x8x1xf32>
    %70 = vector.shape_cast %69 : vector<1x8x1xf32> to vector<8x1xf32>
    %71 = arith.mulf %65, %70 : vector<8x1xf32>
    %cst_44 = arith.constant dense<0.000000e+00> : vector<8xf32>
    %72 = vector.multi_reduction <add>, %68, %cst_44 [1] : vector<8x8xf32> to vector<8xf32>
    %73 = vector.shape_cast %72 : vector<8xf32> to vector<8x1xf32>
    %74 = arith.addf %71, %73 : vector<8x1xf32>
    %c1_45 = arith.constant 1 : index
    %c0_46 = arith.constant 0 : index
    %c0_47 = arith.constant 0 : index
    %75 = vector.load %arg19[%c1_45, %c0_46, %c0_47] : memref<2x8x1xf32, #tpu.memory_space<vmem>>, vector<1x8x1xf32>
    %76 = vector.shape_cast %75 : vector<1x8x1xf32> to vector<8x1xf32>
    %77 = vector.shape_cast %74 : vector<8x1xf32> to vector<1x8x1xf32>
    tpu.vector_store %arg19[%c1_45, %c0_46, %c0_47], %77 {strides = array<i32>} : memref<2x8x1xf32, #tpu.memory_space<vmem>>, vector<1x8x1xf32>,
    %c0_48 = arith.constant 0 : index
    %c16 = arith.constant 16 : index
    %78 = vector.load %arg20[%c0_48, %c16] : memref<8x32xf32, #tpu.memory_space<vmem>>, vector<8x16xf32>
    %79 = vector.broadcast %65 : vector<8x1xf32> to vector<8x16xf32>
    %80 = arith.mulf %79, %78 : vector<8x16xf32>
    %81 = arith.truncf %68 : vector<8x8xf32> to vector<8x8xbf16>
    %82 = vector.extract_strided_slice %22 {offsets = [0, 16], sizes = [8, 16], strides = [1, 1]} : vector<8x32xbf16> to vector<8x16xbf16>
    %cst_49 = arith.constant dense<0.000000e+00> : vector<8x16xf32>
    %83 = tpu.matmul %81, %82, %cst_49 {dimension_numbers = #tpu.dot_dimension_numbers<[1], [0], [0], [1], [0, 0, 1, 1], [], []>} : vector<8x8xbf16>, vector<8x16xbf16>, vector<8x16xf32> -> vector<8x16xf32>
    %84 = arith.addf %80, %83 : vector<8x16xf32>
    %c0_50 = arith.constant 0 : index
    %c16_51 = arith.constant 16 : index
    %85 = vector.load %arg20[%c0_50, %c16_51] : memref<8x32xf32, #tpu.memory_space<vmem>>, vector<8x16xf32>
    tpu.vector_store %arg20[%c0_50, %c16_51], %84 {strides = array<i32>} : memref<8x32xf32, #tpu.memory_space<vmem>>, vector<8x16xf32>,
    %c1_52 = arith.constant 1 : index
    %c0_53 = arith.constant 0 : index
    %c0_54 = arith.constant 0 : index
    %86 = vector.load %arg18[%c1_52, %c0_53, %c0_54] : memref<2x8x1xf32, #tpu.memory_space<vmem>>, vector<1x8x1xf32>
    %87 = vector.shape_cast %86 : vector<1x8x1xf32> to vector<8x1xf32>
    %88 = vector.shape_cast %63 : vector<8x1xf32> to vector<1x8x1xf32>
    tpu.vector_store %arg18[%c1_52, %c0_53, %c0_54], %88 {strides = array<i32>} : memref<2x8x1xf32, #tpu.memory_space<vmem>>, vector<1x8x1xf32>,
    %c0_i32_55 = arith.constant 0 : i32
    %89 = arith.cmpi eq, %arg2, %c0_i32_55 : i32
    %90 = arith.extui %89 : i1 to i32
    %c0_i32_56 = arith.constant 0 : i32
    %91 = arith.cmpi ne, %90, %c0_i32_56 : i32
    scf.if %91 {
      %c0_57 = arith.constant 0 : index
      %c0_58 = arith.constant 0 : index
      %92 = vector.load %arg20[%c0_57, %c0_58] : memref<8x32xf32, #tpu.memory_space<vmem>>, vector<8x32xf32>
      %c0_59 = arith.constant 0 : index
      %c0_60 = arith.constant 0 : index
      %c0_61 = arith.constant 0 : index
      %93 = vector.load %arg19[%c0_59, %c0_60, %c0_61] : memref<2x8x1xf32, #tpu.memory_space<vmem>>, vector<1x8x1xf32>
      %94 = vector.shape_cast %93 : vector<1x8x1xf32> to vector<8x1xf32>
      %95 = tpu.reciprocal %94 {approx = true} : vector<8x1xf32> -> vector<8x1xf32>
      %96 = vector.extract_strided_slice %92 {offsets = [0, 0], sizes = [8, 16], strides = [1, 1]} : vector<8x32xf32> to vector<8x16xf32>
      %97 = vector.broadcast %95 : vector<8x1xf32> to vector<8x16xf32>
      %98 = arith.mulf %96, %97 : vector<8x16xf32>
      %c1_62 = arith.constant 1 : index
      %c0_63 = arith.constant 0 : index
      %c0_64 = arith.constant 0 : index
      %99 = vector.load %arg19[%c1_62, %c0_63, %c0_64] : memref<2x8x1xf32, #tpu.memory_space<vmem>>, vector<1x8x1xf32>
      %100 = vector.shape_cast %99 : vector<1x8x1xf32> to vector<8x1xf32>
      %101 = tpu.reciprocal %100 {approx = true} : vector<8x1xf32> -> vector<8x1xf32>
      %102 = vector.extract_strided_slice %92 {offsets = [0, 16], sizes = [8, 16], strides = [1, 1]} : vector<8x32xf32> to vector<8x16xf32>
      %103 = vector.broadcast %101 : vector<8x1xf32> to vector<8x16xf32>
      %104 = arith.mulf %102, %103 : vector<8x16xf32>
      %105 = tpu.concatenate %98, %104 in 1 : vector<8x16xf32>, vector<8x16xf32> -> vector<8x32xf32>
      %106 = arith.truncf %105 : vector<8x32xf32> to vector<8x32xbf16>
      %c0_65 = arith.constant 0 : index
      %c0_66 = arith.constant 0 : index
      %107 = vector.load %arg12[%c0_65, %c0_66] : memref<32x32xbf16, #tpu.memory_space<vmem>>, vector<32x32xbf16>
      %cst_67 = arith.constant dense<0.000000e+00> : vector<8x32xf32>
      %108 = tpu.matmul %106, %107, %cst_67 {dimension_numbers = #tpu.dot_dimension_numbers<[1], [0], [0], [1], [0, 0, 1, 1], [], []>} : vector<8x32xbf16>, vector<32x32xbf16>, vector<8x32xf32> -> vector<8x32xf32>
      %c0_68 = arith.constant 0 : index
      %c0_69 = arith.constant 0 : index
      %109 = vector.load %arg13[%c0_68, %c0_69] : memref<1x32xf32, #tpu.memory_space<vmem>>, vector<1x32xf32>
      %110 = vector.broadcast %109 : vector<1x32xf32> to vector<8x32xf32>
      %111 = arith.addf %108, %110 : vector<8x32xf32>
      %c0_70 = arith.constant 0 : index
      %c0_71 = arith.constant 0 : index
      %112 = vector.load %arg14[%c0_70, %c0_71] : memref<1x32xf32, #tpu.memory_space<vmem>>, vector<1x32xf32>
      %c0_72 = arith.constant 0 : index
      %c0_73 = arith.constant 0 : index
      %113 = vector.load %arg15[%c0_72, %c0_73] : memref<1x32xf32, #tpu.memory_space<vmem>>, vector<1x32xf32>
      %cst_74 = arith.constant dense<0.000000e+00> : vector<8xf32>
      %114 = vector.multi_reduction <add>, %111, %cst_74 [1] : vector<8x32xf32> to vector<8xf32>
      %115 = vector.shape_cast %114 : vector<8xf32> to vector<8x1xf32>
      %cst_75 = arith.constant 3.200000e+01 : f32
      %116 = vector.broadcast %cst_75 : f32 to vector<8x1xf32>
      %117 = arith.divf %115, %116 : vector<8x1xf32>
      %118 = vector.broadcast %117 : vector<8x1xf32> to vector<8x32xf32>
      %119 = arith.subf %111, %118 : vector<8x32xf32>
      %120 = vector.broadcast %117 : vector<8x1xf32> to vector<8x32xf32>
      %121 = arith.subf %111, %120 : vector<8x32xf32>
      %122 = arith.mulf %119, %121 : vector<8x32xf32>
      %cst_76 = arith.constant dense<0.000000e+00> : vector<8xf32>
      %123 = vector.multi_reduction <add>, %122, %cst_76 [1] : vector<8x32xf32> to vector<8xf32>
      %124 = vector.shape_cast %123 : vector<8xf32> to vector<8x1xf32>
      %cst_77 = arith.constant 3.200000e+01 : f32
      %125 = vector.broadcast %cst_77 : f32 to vector<8x1xf32>
      %126 = arith.divf %124, %125 : vector<8x1xf32>
      %127 = vector.broadcast %117 : vector<8x1xf32> to vector<8x32xf32>
      %128 = arith.subf %111, %127 : vector<8x32xf32>
      %cst_78 = arith.constant 9.99999974E-6 : f32
      %129 = vector.broadcast %cst_78 : f32 to vector<8x1xf32>
      %130 = arith.addf %126, %129 : vector<8x1xf32>
      %131 = math.rsqrt %130 : vector<8x1xf32>
      %132 = vector.broadcast %131 : vector<8x1xf32> to vector<8x32xf32>
      %133 = arith.mulf %128, %132 : vector<8x32xf32>
      %134 = vector.broadcast %112 : vector<1x32xf32> to vector<8x32xf32>
      %135 = arith.mulf %133, %134 : vector<8x32xf32>
      %136 = vector.broadcast %113 : vector<1x32xf32> to vector<8x32xf32>
      %137 = arith.addf %135, %136 : vector<8x32xf32>
      %c0_79 = arith.constant 0 : index
      %c0_80 = arith.constant 0 : index
      %c0_81 = arith.constant 0 : index
      %138 = vector.load %arg16[%c0_79, %c0_80, %c0_81] : memref<1x8x32xf32, #tpu.memory_space<vmem>>, vector<1x8x32xf32>
      %139 = vector.shape_cast %138 : vector<1x8x32xf32> to vector<8x32xf32>
      %140 = vector.shape_cast %137 : vector<8x32xf32> to vector<1x8x32xf32>
      tpu.vector_store %arg16[%c0_79, %c0_80, %c0_81], %140 {strides = array<i32>} : memref<1x8x32xf32, #tpu.memory_space<vmem>>, vector<1x8x32xf32>,
    } else {
    }
    return
  }
  func.func @transform_0(%arg0: i32, %arg1: i32, %arg2: i32) -> (i32, i32, i32) {
    %c0_i32 = arith.constant 0 : i32
    %c0_i32_0 = arith.constant 0 : i32
    return %arg0, %arg1, %c0_i32 : i32, i32, i32
  }
  func.func @transform_1(%arg0: i32, %arg1: i32, %arg2: i32) -> (i32, i32, i32) {
    %c0_i32 = arith.constant 0 : i32
    %c0_i32_0 = arith.constant 0 : i32
    return %arg0, %arg2, %c0_i32 : i32, i32, i32
  }
  func.func @transform_2(%arg0: i32, %arg1: i32, %arg2: i32) -> (i32, i32, i32) {
    %c0_i32 = arith.constant 0 : i32
    %c0_i32_0 = arith.constant 0 : i32
    return %arg0, %arg2, %c0_i32 : i32, i32, i32
  }
  func.func @transform_3(%arg0: i32, %arg1: i32, %arg2: i32) -> (i32, i32) {
    %c0_i32 = arith.constant 0 : i32
    %c0_i32_0 = arith.constant 0 : i32
    %c0_i32_1 = arith.constant 0 : i32
    return %c0_i32, %c0_i32_0 : i32, i32
  }
  func.func @transform_4(%arg0: i32, %arg1: i32, %arg2: i32) -> (i32, i32) {
    %c0_i32 = arith.constant 0 : i32
    %c0_i32_0 = arith.constant 0 : i32
    %c0_i32_1 = arith.constant 0 : i32
    return %c0_i32, %c0_i32_0 : i32, i32
  }
  func.func @transform_5(%arg0: i32, %arg1: i32, %arg2: i32) -> (i32, i32) {
    %c0_i32 = arith.constant 0 : i32
    %c0_i32_0 = arith.constant 0 : i32
    %c0_i32_1 = arith.constant 0 : i32
    return %c0_i32, %c0_i32_0 : i32, i32
  }
  func.func @transform_6(%arg0: i32, %arg1: i32, %arg2: i32) -> (i32, i32) {
    %c0_i32 = arith.constant 0 : i32
    %c0_i32_0 = arith.constant 0 : i32
    %c0_i32_1 = arith.constant 0 : i32
    return %c0_i32, %c0_i32_0 : i32, i32
  }
  func.func @transform_7(%arg0: i32, %arg1: i32, %arg2: i32) -> (i32, i32) {
    %c0_i32 = arith.constant 0 : i32
    %c0_i32_0 = arith.constant 0 : i32
    %c0_i32_1 = arith.constant 0 : i32
    return %c0_i32, %c0_i32_0 : i32, i32
  }
  func.func @transform_8(%arg0: i32, %arg1: i32, %arg2: i32) -> (i32, i32) {
    %c0_i32 = arith.constant 0 : i32
    %c0_i32_0 = arith.constant 0 : i32
    %c0_i32_1 = arith.constant 0 : i32
    return %c0_i32, %c0_i32_0 : i32, i32
  }
  func.func @transform_9(%arg0: i32, %arg1: i32, %arg2: i32) -> (i32, i32) {
    %c0_i32 = arith.constant 0 : i32
    %c0_i32_0 = arith.constant 0 : i32
    %c0_i32_1 = arith.constant 0 : i32
    return %c0_i32, %c0_i32_0 : i32, i32
  }
  func.func @transform_10(%arg0: i32, %arg1: i32, %arg2: i32) -> (i32, i32) {
    %c0_i32 = arith.constant 0 : i32
    %c0_i32_0 = arith.constant 0 : i32
    %c0_i32_1 = arith.constant 0 : i32
    return %c0_i32, %c0_i32_0 : i32, i32
  }
  func.func @transform_11(%arg0: i32, %arg1: i32, %arg2: i32) -> (i32, i32) {
    %c0_i32 = arith.constant 0 : i32
    %c0_i32_0 = arith.constant 0 : i32
    %c0_i32_1 = arith.constant 0 : i32
    return %c0_i32, %c0_i32_0 : i32, i32
  }
  func.func @transform_12(%arg0: i32, %arg1: i32, %arg2: i32) -> (i32, i32) {
    %c0_i32 = arith.constant 0 : i32
    %c0_i32_0 = arith.constant 0 : i32
    %c0_i32_1 = arith.constant 0 : i32
    return %c0_i32, %c0_i32_0 : i32, i32
  }
  func.func @transform_13(%arg0: i32, %arg1: i32, %arg2: i32) -> (i32, i32, i32) {
    %c0_i32 = arith.constant 0 : i32
    %c0_i32_0 = arith.constant 0 : i32
    return %arg0, %arg1, %c0_i32 : i32, i32, i32
  }
}

module attributes {stable_mosaic.version = 11 : i64} {
  func.func @kernel(%arg0: i32, %arg1: i32, %arg2: i32, %arg3: memref<1x8x32xf32, #tpu.memory_space<vmem>>, %arg4: memref<1x8x32xf32, #tpu.memory_space<vmem>>, %arg5: memref<1x64x32xf32, #tpu.memory_space<vmem>>, %arg6: memref<1x64x32xf32, #tpu.memory_space<vmem>>, %arg7: memref<1x64x32xf32, #tpu.memory_space<vmem>>, %arg8: memref<1x8x32xf32, #tpu.memory_space<vmem>>, %arg9: memref<32x16xbf16, #tpu.memory_space<vmem>>, %arg10: memref<1x16xf32, #tpu.memory_space<vmem>>, %arg11: memref<32x16xbf16, #tpu.memory_space<vmem>>, %arg12: memref<1x16xf32, #tpu.memory_space<vmem>>, %arg13: memref<32x16xbf16, #tpu.memory_space<vmem>>, %arg14: memref<1x16xf32, #tpu.memory_space<vmem>>, %arg15: memref<16x32xbf16, #tpu.memory_space<vmem>>, %arg16: memref<1x32xf32, #tpu.memory_space<vmem>>, %arg17: memref<1x32xf32, #tpu.memory_space<vmem>>, %arg18: memref<1x32xf32, #tpu.memory_space<vmem>>, %arg19: memref<1x8x32xf32, #tpu.memory_space<vmem>>, %arg20: memref<8x16xf32, #tpu.memory_space<vmem>>, %arg21: memref<2x8x1xf32, #tpu.memory_space<vmem>>, %arg22: memref<2x8x1xf32, #tpu.memory_space<vmem>>, %arg23: memref<8x16xf32, #tpu.memory_space<vmem>>) attributes {dimension_semantics = [#tpu.dimension_semantics<parallel>, #tpu.dimension_semantics<parallel>, #tpu.dimension_semantics<arbitrary>], iteration_bounds = array<i64: 2, 1, 1>, scalar_prefetch = 0 : i64, scratch_operands = 4 : i64, tpu.core_type = #tpu.core_type<tc>, window_params = [{transform_indices = @transform_0, window_bounds = array<i64: 1, 8, 32>}, {transform_indices = @transform_1, window_bounds = array<i64: 1, 8, 32>}, {transform_indices = @transform_2, window_bounds = array<i64: 1, 64, 32>}, {transform_indices = @transform_3, window_bounds = array<i64: 1, 64, 32>}, {transform_indices = @transform_4, window_bounds = array<i64: 1, 64, 32>}, {transform_indices = @transform_5, window_bounds = array<i64: 1, 8, 32>}, {pipeline_mode = #tpu.pipeline_mode<synchronous>, transform_indices = @transform_6, window_bounds = array<i64: 32, 16>}, {pipeline_mode = #tpu.pipeline_mode<synchronous>, transform_indices = @transform_7, window_bounds = array<i64: 1, 16>}, {pipeline_mode = #tpu.pipeline_mode<synchronous>, transform_indices = @transform_8, window_bounds = array<i64: 32, 16>}, {pipeline_mode = #tpu.pipeline_mode<synchronous>, transform_indices = @transform_9, window_bounds = array<i64: 1, 16>}, {pipeline_mode = #tpu.pipeline_mode<synchronous>, transform_indices = @transform_10, window_bounds = array<i64: 32, 16>}, {pipeline_mode = #tpu.pipeline_mode<synchronous>, transform_indices = @transform_11, window_bounds = array<i64: 1, 16>}, {pipeline_mode = #tpu.pipeline_mode<synchronous>, transform_indices = @transform_12, window_bounds = array<i64: 16, 32>}, {pipeline_mode = #tpu.pipeline_mode<synchronous>, transform_indices = @transform_13, window_bounds = array<i64: 1, 32>}, {pipeline_mode = #tpu.pipeline_mode<synchronous>, transform_indices = @transform_14, window_bounds = array<i64: 1, 32>}, {pipeline_mode = #tpu.pipeline_mode<synchronous>, transform_indices = @transform_15, window_bounds = array<i64: 1, 32>}, {transform_indices = @transform_16, window_bounds = array<i64: 1, 8, 32>}]} {
    %c0_i32 = arith.constant 0 : i32
    %0 = arith.cmpi eq, %arg2, %c0_i32 : i32
    %1 = arith.extui %0 : i1 to i32
    %c0_i32_0 = arith.constant 0 : i32
    %2 = arith.cmpi ne, %1, %c0_i32_0 : i32
    scf.if %2 {
      %c0_60 = arith.constant 0 : index
      %c0_61 = arith.constant 0 : index
      %c0_62 = arith.constant 0 : index
      %95 = vector.load %arg3[%c0_60, %c0_61, %c0_62] : memref<1x8x32xf32, #tpu.memory_space<vmem>>, vector<1x8x32xf32>
      %96 = vector.shape_cast %95 : vector<1x8x32xf32> to vector<8x32xf32>
      %c0_63 = arith.constant 0 : index
      %c0_64 = arith.constant 0 : index
      %c0_65 = arith.constant 0 : index
      %97 = vector.load %arg4[%c0_63, %c0_64, %c0_65] : memref<1x8x32xf32, #tpu.memory_space<vmem>>, vector<1x8x32xf32>
      %98 = vector.shape_cast %97 : vector<1x8x32xf32> to vector<8x32xf32>
      %99 = arith.addf %96, %98 : vector<8x32xf32>
      %100 = arith.truncf %99 : vector<8x32xf32> to vector<8x32xbf16>
      %c0_66 = arith.constant 0 : index
      %c0_67 = arith.constant 0 : index
      %101 = vector.load %arg9[%c0_66, %c0_67] : memref<32x16xbf16, #tpu.memory_space<vmem>>, vector<32x16xbf16>
      %cst_68 = arith.constant dense<0.000000e+00> : vector<8x16xf32>
      %102 = tpu.matmul %100, %101, %cst_68 {dimension_numbers = #tpu.dot_dimension_numbers<[1], [0], [0], [1], [0, 0, 1, 1], [], []>} : vector<8x32xbf16>, vector<32x16xbf16>, vector<8x16xf32> -> vector<8x16xf32>
      %c0_69 = arith.constant 0 : index
      %c0_70 = arith.constant 0 : index
      %103 = vector.load %arg10[%c0_69, %c0_70] : memref<1x16xf32, #tpu.memory_space<vmem>>, vector<1x16xf32>
      %104 = vector.broadcast %103 : vector<1x16xf32> to vector<8x16xf32>
      %105 = arith.addf %102, %104 : vector<8x16xf32>
      %cst_71 = arith.constant 0.353553385 : f32
      %106 = vector.broadcast %cst_71 : f32 to vector<8x16xf32>
      %107 = arith.mulf %105, %106 : vector<8x16xf32>
      %c0_72 = arith.constant 0 : index
      %c0_73 = arith.constant 0 : index
      %108 = vector.load %arg20[%c0_72, %c0_73] : memref<8x16xf32, #tpu.memory_space<vmem>>, vector<8x16xf32>
      tpu.vector_store %arg20[%c0_72, %c0_73], %107 {strides = array<i32>} : memref<8x16xf32, #tpu.memory_space<vmem>>, vector<8x16xf32>,
      %cst_74 = arith.constant 0xFF800000 : f32
      %109 = vector.broadcast %cst_74 : f32 to vector<2x8x1xf32>
      %c0_75 = arith.constant 0 : index
      %c0_76 = arith.constant 0 : index
      %c0_77 = arith.constant 0 : index
      %110 = vector.load %arg21[%c0_75, %c0_76, %c0_77] : memref<2x8x1xf32, #tpu.memory_space<vmem>>, vector<2x8x1xf32>
      tpu.vector_store %arg21[%c0_75, %c0_76, %c0_77], %109 {strides = array<i32>} : memref<2x8x1xf32, #tpu.memory_space<vmem>>, vector<2x8x1xf32>,
      %cst_78 = arith.constant 0.000000e+00 : f32
      %111 = vector.broadcast %cst_78 : f32 to vector<2x8x1xf32>
      %c0_79 = arith.constant 0 : index
      %c0_80 = arith.constant 0 : index
      %c0_81 = arith.constant 0 : index
      %112 = vector.load %arg22[%c0_79, %c0_80, %c0_81] : memref<2x8x1xf32, #tpu.memory_space<vmem>>, vector<2x8x1xf32>
      tpu.vector_store %arg22[%c0_79, %c0_80, %c0_81], %111 {strides = array<i32>} : memref<2x8x1xf32, #tpu.memory_space<vmem>>, vector<2x8x1xf32>,
      %cst_82 = arith.constant 0.000000e+00 : f32
      %113 = vector.broadcast %cst_82 : f32 to vector<8x16xf32>
      %c0_83 = arith.constant 0 : index
      %c0_84 = arith.constant 0 : index
      %114 = vector.load %arg23[%c0_83, %c0_84] : memref<8x16xf32, #tpu.memory_space<vmem>>, vector<8x16xf32>
      tpu.vector_store %arg23[%c0_83, %c0_84], %113 {strides = array<i32>} : memref<8x16xf32, #tpu.memory_space<vmem>>, vector<8x16xf32>,
    } else {
    }
    %c0 = arith.constant 0 : index
    %c0_1 = arith.constant 0 : index
    %c0_2 = arith.constant 0 : index
    %3 = vector.load %arg5[%c0, %c0_1, %c0_2] : memref<1x64x32xf32, #tpu.memory_space<vmem>>, vector<1x64x32xf32>
    %4 = vector.shape_cast %3 : vector<1x64x32xf32> to vector<64x32xf32>
    %c0_3 = arith.constant 0 : index
    %c0_4 = arith.constant 0 : index
    %c0_5 = arith.constant 0 : index
    %5 = vector.load %arg6[%c0_3, %c0_4, %c0_5] : memref<1x64x32xf32, #tpu.memory_space<vmem>>, vector<1x64x32xf32>
    %6 = vector.shape_cast %5 : vector<1x64x32xf32> to vector<64x32xf32>
    %7 = arith.addf %4, %6 : vector<64x32xf32>
    %8 = arith.truncf %7 : vector<64x32xf32> to vector<64x32xbf16>
    %c0_6 = arith.constant 0 : index
    %c0_7 = arith.constant 0 : index
    %9 = vector.load %arg11[%c0_6, %c0_7] : memref<32x16xbf16, #tpu.memory_space<vmem>>, vector<32x16xbf16>
    %cst = arith.constant dense<0.000000e+00> : vector<64x16xf32>
    %10 = tpu.matmul %8, %9, %cst {dimension_numbers = #tpu.dot_dimension_numbers<[1], [0], [0], [1], [0, 0, 1, 1], [], []>} : vector<64x32xbf16>, vector<32x16xbf16>, vector<64x16xf32> -> vector<64x16xf32>
    %c0_8 = arith.constant 0 : index
    %c0_9 = arith.constant 0 : index
    %11 = vector.load %arg12[%c0_8, %c0_9] : memref<1x16xf32, #tpu.memory_space<vmem>>, vector<1x16xf32>
    %12 = vector.broadcast %11 : vector<1x16xf32> to vector<64x16xf32>
    %13 = arith.addf %10, %12 : vector<64x16xf32>
    %c0_10 = arith.constant 0 : index
    %c0_11 = arith.constant 0 : index
    %c0_12 = arith.constant 0 : index
    %14 = vector.load %arg7[%c0_10, %c0_11, %c0_12] : memref<1x64x32xf32, #tpu.memory_space<vmem>>, vector<1x64x32xf32>
    %15 = vector.shape_cast %14 : vector<1x64x32xf32> to vector<64x32xf32>
    %16 = arith.truncf %15 : vector<64x32xf32> to vector<64x32xbf16>
    %c0_13 = arith.constant 0 : index
    %c0_14 = arith.constant 0 : index
    %17 = vector.load %arg13[%c0_13, %c0_14] : memref<32x16xbf16, #tpu.memory_space<vmem>>, vector<32x16xbf16>
    %cst_15 = arith.constant dense<0.000000e+00> : vector<64x16xf32>
    %18 = tpu.matmul %16, %17, %cst_15 {dimension_numbers = #tpu.dot_dimension_numbers<[1], [0], [0], [1], [0, 0, 1, 1], [], []>} : vector<64x32xbf16>, vector<32x16xbf16>, vector<64x16xf32> -> vector<64x16xf32>
    %c0_16 = arith.constant 0 : index
    %c0_17 = arith.constant 0 : index
    %19 = vector.load %arg14[%c0_16, %c0_17] : memref<1x16xf32, #tpu.memory_space<vmem>>, vector<1x16xf32>
    %20 = vector.broadcast %19 : vector<1x16xf32> to vector<64x16xf32>
    %21 = arith.addf %18, %20 : vector<64x16xf32>
    %c0_18 = arith.constant 0 : index
    %c0_19 = arith.constant 0 : index
    %22 = vector.load %arg20[%c0_18, %c0_19] : memref<8x16xf32, #tpu.memory_space<vmem>>, vector<8x16xf32>
    %23 = arith.truncf %22 : vector<8x16xf32> to vector<8x16xbf16>
    %24 = arith.truncf %13 : vector<64x16xf32> to vector<64x16xbf16>
    %25 = arith.truncf %21 : vector<64x16xf32> to vector<64x16xbf16>
    %26 = vector.extract_strided_slice %23 {offsets = [0, 0], sizes = [8, 8], strides = [1, 1]} : vector<8x16xbf16> to vector<8x8xbf16>
    %27 = vector.extract_strided_slice %24 {offsets = [0, 0], sizes = [64, 8], strides = [1, 1]} : vector<64x16xbf16> to vector<64x8xbf16>
    %cst_20 = arith.constant dense<0.000000e+00> : vector<8x64xf32>
    %28 = tpu.matmul %26, %27, %cst_20 {dimension_numbers = #tpu.dot_dimension_numbers<[1], [1], [0], [0], [0, 0, 1, 0], [], []>} : vector<8x8xbf16>, vector<64x8xbf16>, vector<8x64xf32> -> vector<8x64xf32>
    %c0_21 = arith.constant 0 : index
    %c0_22 = arith.constant 0 : index
    %c0_23 = arith.constant 0 : index
    %29 = vector.load %arg21[%c0_21, %c0_22, %c0_23] : memref<2x8x1xf32, #tpu.memory_space<vmem>>, vector<1x8x1xf32>
    %30 = vector.shape_cast %29 : vector<1x8x1xf32> to vector<8x1xf32>
    %cst_24 = arith.constant dense<0xFF800000> : vector<8xf32>
    %31 = vector.multi_reduction <maximumf>, %28, %cst_24 [1] : vector<8x64xf32> to vector<8xf32>
    %32 = vector.shape_cast %31 : vector<8xf32> to vector<8x1xf32>
    %33 = arith.maximumf %30, %32 : vector<8x1xf32>
    %34 = arith.subf %30, %33 : vector<8x1xf32>
    %35 = math.exp %34 : vector<8x1xf32>
    %36 = vector.broadcast %33 : vector<8x1xf32> to vector<8x64xf32>
    %37 = arith.subf %28, %36 : vector<8x64xf32>
    %38 = math.exp %37 : vector<8x64xf32>
    %c0_25 = arith.constant 0 : index
    %c0_26 = arith.constant 0 : index
    %c0_27 = arith.constant 0 : index
    %39 = vector.load %arg22[%c0_25, %c0_26, %c0_27] : memref<2x8x1xf32, #tpu.memory_space<vmem>>, vector<1x8x1xf32>
    %40 = vector.shape_cast %39 : vector<1x8x1xf32> to vector<8x1xf32>
    %41 = arith.mulf %35, %40 : vector<8x1xf32>
    %cst_28 = arith.constant dense<0.000000e+00> : vector<8xf32>
    %42 = vector.multi_reduction <add>, %38, %cst_28 [1] : vector<8x64xf32> to vector<8xf32>
    %43 = vector.shape_cast %42 : vector<8xf32> to vector<8x1xf32>
    %44 = arith.addf %41, %43 : vector<8x1xf32>
    %c0_29 = arith.constant 0 : index
    %c0_30 = arith.constant 0 : index
    %c0_31 = arith.constant 0 : index
    %45 = vector.load %arg22[%c0_29, %c0_30, %c0_31] : memref<2x8x1xf32, #tpu.memory_space<vmem>>, vector<1x8x1xf32>
    %46 = vector.shape_cast %45 : vector<1x8x1xf32> to vector<8x1xf32>
    %47 = vector.shape_cast %44 : vector<8x1xf32> to vector<1x8x1xf32>
    tpu.vector_store %arg22[%c0_29, %c0_30, %c0_31], %47 {strides = array<i32>} : memref<2x8x1xf32, #tpu.memory_space<vmem>>, vector<1x8x1xf32>,
    %c0_32 = arith.constant 0 : index
    %c0_33 = arith.constant 0 : index
    %48 = vector.load %arg23[%c0_32, %c0_33] : memref<8x16xf32, #tpu.memory_space<vmem>>, vector<8x8xf32>
    %49 = vector.broadcast %35 : vector<8x1xf32> to vector<8x8xf32>
    %50 = arith.mulf %49, %48 : vector<8x8xf32>
    %51 = arith.truncf %38 : vector<8x64xf32> to vector<8x64xbf16>
    %52 = vector.extract_strided_slice %25 {offsets = [0, 0], sizes = [64, 8], strides = [1, 1]} : vector<64x16xbf16> to vector<64x8xbf16>
    %cst_34 = arith.constant dense<0.000000e+00> : vector<8x8xf32>
    %53 = tpu.matmul %51, %52, %cst_34 {dimension_numbers = #tpu.dot_dimension_numbers<[1], [0], [0], [1], [0, 0, 1, 1], [], []>} : vector<8x64xbf16>, vector<64x8xbf16>, vector<8x8xf32> -> vector<8x8xf32>
    %54 = arith.addf %50, %53 : vector<8x8xf32>
    %c0_35 = arith.constant 0 : index
    %c0_36 = arith.constant 0 : index
    %55 = vector.load %arg23[%c0_35, %c0_36] : memref<8x16xf32, #tpu.memory_space<vmem>>, vector<8x8xf32>
    tpu.vector_store %arg23[%c0_35, %c0_36], %54 {strides = array<i32>} : memref<8x16xf32, #tpu.memory_space<vmem>>, vector<8x8xf32>,
    %c0_37 = arith.constant 0 : index
    %c0_38 = arith.constant 0 : index
    %c0_39 = arith.constant 0 : index
    %56 = vector.load %arg21[%c0_37, %c0_38, %c0_39] : memref<2x8x1xf32, #tpu.memory_space<vmem>>, vector<1x8x1xf32>
    %57 = vector.shape_cast %56 : vector<1x8x1xf32> to vector<8x1xf32>
    %58 = vector.shape_cast %33 : vector<8x1xf32> to vector<1x8x1xf32>
    tpu.vector_store %arg21[%c0_37, %c0_38, %c0_39], %58 {strides = array<i32>} : memref<2x8x1xf32, #tpu.memory_space<vmem>>, vector<1x8x1xf32>,
    %59 = vector.extract_strided_slice %23 {offsets = [0, 8], sizes = [8, 8], strides = [1, 1]} : vector<8x16xbf16> to vector<8x8xbf16>
    %60 = vector.extract_strided_slice %24 {offsets = [0, 8], sizes = [64, 8], strides = [1, 1]} : vector<64x16xbf16> to vector<64x8xbf16>
    %cst_40 = arith.constant dense<0.000000e+00> : vector<8x64xf32>
    %61 = tpu.matmul %59, %60, %cst_40 {dimension_numbers = #tpu.dot_dimension_numbers<[1], [1], [0], [0], [0, 0, 1, 0], [], []>} : vector<8x8xbf16>, vector<64x8xbf16>, vector<8x64xf32> -> vector<8x64xf32>
    %c1 = arith.constant 1 : index
    %c0_41 = arith.constant 0 : index
    %c0_42 = arith.constant 0 : index
    %62 = vector.load %arg21[%c1, %c0_41, %c0_42] : memref<2x8x1xf32, #tpu.memory_space<vmem>>, vector<1x8x1xf32>
    %63 = vector.shape_cast %62 : vector<1x8x1xf32> to vector<8x1xf32>
    %cst_43 = arith.constant dense<0xFF800000> : vector<8xf32>
    %64 = vector.multi_reduction <maximumf>, %61, %cst_43 [1] : vector<8x64xf32> to vector<8xf32>
    %65 = vector.shape_cast %64 : vector<8xf32> to vector<8x1xf32>
    %66 = arith.maximumf %63, %65 : vector<8x1xf32>
    %67 = arith.subf %63, %66 : vector<8x1xf32>
    %68 = math.exp %67 : vector<8x1xf32>
    %69 = vector.broadcast %66 : vector<8x1xf32> to vector<8x64xf32>
    %70 = arith.subf %61, %69 : vector<8x64xf32>
    %71 = math.exp %70 : vector<8x64xf32>
    %c1_44 = arith.constant 1 : index
    %c0_45 = arith.constant 0 : index
    %c0_46 = arith.constant 0 : index
    %72 = vector.load %arg22[%c1_44, %c0_45, %c0_46] : memref<2x8x1xf32, #tpu.memory_space<vmem>>, vector<1x8x1xf32>
    %73 = vector.shape_cast %72 : vector<1x8x1xf32> to vector<8x1xf32>
    %74 = arith.mulf %68, %73 : vector<8x1xf32>
    %cst_47 = arith.constant dense<0.000000e+00> : vector<8xf32>
    %75 = vector.multi_reduction <add>, %71, %cst_47 [1] : vector<8x64xf32> to vector<8xf32>
    %76 = vector.shape_cast %75 : vector<8xf32> to vector<8x1xf32>
    %77 = arith.addf %74, %76 : vector<8x1xf32>
    %c1_48 = arith.constant 1 : index
    %c0_49 = arith.constant 0 : index
    %c0_50 = arith.constant 0 : index
    %78 = vector.load %arg22[%c1_48, %c0_49, %c0_50] : memref<2x8x1xf32, #tpu.memory_space<vmem>>, vector<1x8x1xf32>
    %79 = vector.shape_cast %78 : vector<1x8x1xf32> to vector<8x1xf32>
    %80 = vector.shape_cast %77 : vector<8x1xf32> to vector<1x8x1xf32>
    tpu.vector_store %arg22[%c1_48, %c0_49, %c0_50], %80 {strides = array<i32>} : memref<2x8x1xf32, #tpu.memory_space<vmem>>, vector<1x8x1xf32>,
    %c0_51 = arith.constant 0 : index
    %c8 = arith.constant 8 : index
    %81 = vector.load %arg23[%c0_51, %c8] : memref<8x16xf32, #tpu.memory_space<vmem>>, vector<8x8xf32>
    %82 = vector.broadcast %68 : vector<8x1xf32> to vector<8x8xf32>
    %83 = arith.mulf %82, %81 : vector<8x8xf32>
    %84 = arith.truncf %71 : vector<8x64xf32> to vector<8x64xbf16>
    %85 = vector.extract_strided_slice %25 {offsets = [0, 8], sizes = [64, 8], strides = [1, 1]} : vector<64x16xbf16> to vector<64x8xbf16>
    %cst_52 = arith.constant dense<0.000000e+00> : vector<8x8xf32>
    %86 = tpu.matmul %84, %85, %cst_52 {dimension_numbers = #tpu.dot_dimension_numbers<[1], [0], [0], [1], [0, 0, 1, 1], [], []>} : vector<8x64xbf16>, vector<64x8xbf16>, vector<8x8xf32> -> vector<8x8xf32>
    %87 = arith.addf %83, %86 : vector<8x8xf32>
    %c0_53 = arith.constant 0 : index
    %c8_54 = arith.constant 8 : index
    %88 = vector.load %arg23[%c0_53, %c8_54] : memref<8x16xf32, #tpu.memory_space<vmem>>, vector<8x8xf32>
    tpu.vector_store %arg23[%c0_53, %c8_54], %87 {strides = array<i32>} : memref<8x16xf32, #tpu.memory_space<vmem>>, vector<8x8xf32>,
    %c1_55 = arith.constant 1 : index
    %c0_56 = arith.constant 0 : index
    %c0_57 = arith.constant 0 : index
    %89 = vector.load %arg21[%c1_55, %c0_56, %c0_57] : memref<2x8x1xf32, #tpu.memory_space<vmem>>, vector<1x8x1xf32>
    %90 = vector.shape_cast %89 : vector<1x8x1xf32> to vector<8x1xf32>
    %91 = vector.shape_cast %66 : vector<8x1xf32> to vector<1x8x1xf32>
    tpu.vector_store %arg21[%c1_55, %c0_56, %c0_57], %91 {strides = array<i32>} : memref<2x8x1xf32, #tpu.memory_space<vmem>>, vector<1x8x1xf32>,
    %c0_i32_58 = arith.constant 0 : i32
    %92 = arith.cmpi eq, %arg2, %c0_i32_58 : i32
    %93 = arith.extui %92 : i1 to i32
    %c0_i32_59 = arith.constant 0 : i32
    %94 = arith.cmpi ne, %93, %c0_i32_59 : i32
    scf.if %94 {
      %c0_60 = arith.constant 0 : index
      %c0_61 = arith.constant 0 : index
      %95 = vector.load %arg23[%c0_60, %c0_61] : memref<8x16xf32, #tpu.memory_space<vmem>>, vector<8x16xf32>
      %c0_62 = arith.constant 0 : index
      %c0_63 = arith.constant 0 : index
      %c0_64 = arith.constant 0 : index
      %96 = vector.load %arg22[%c0_62, %c0_63, %c0_64] : memref<2x8x1xf32, #tpu.memory_space<vmem>>, vector<1x8x1xf32>
      %97 = vector.shape_cast %96 : vector<1x8x1xf32> to vector<8x1xf32>
      %98 = tpu.reciprocal %97 {approx = true} : vector<8x1xf32> -> vector<8x1xf32>
      %99 = vector.extract_strided_slice %95 {offsets = [0, 0], sizes = [8, 8], strides = [1, 1]} : vector<8x16xf32> to vector<8x8xf32>
      %100 = vector.broadcast %98 : vector<8x1xf32> to vector<8x8xf32>
      %101 = arith.mulf %99, %100 : vector<8x8xf32>
      %c1_65 = arith.constant 1 : index
      %c0_66 = arith.constant 0 : index
      %c0_67 = arith.constant 0 : index
      %102 = vector.load %arg22[%c1_65, %c0_66, %c0_67] : memref<2x8x1xf32, #tpu.memory_space<vmem>>, vector<1x8x1xf32>
      %103 = vector.shape_cast %102 : vector<1x8x1xf32> to vector<8x1xf32>
      %104 = tpu.reciprocal %103 {approx = true} : vector<8x1xf32> -> vector<8x1xf32>
      %105 = vector.extract_strided_slice %95 {offsets = [0, 8], sizes = [8, 8], strides = [1, 1]} : vector<8x16xf32> to vector<8x8xf32>
      %106 = vector.broadcast %104 : vector<8x1xf32> to vector<8x8xf32>
      %107 = arith.mulf %105, %106 : vector<8x8xf32>
      %108 = tpu.concatenate %101, %107 in 1 : vector<8x8xf32>, vector<8x8xf32> -> vector<8x16xf32>
      %109 = arith.truncf %108 : vector<8x16xf32> to vector<8x16xbf16>
      %c0_68 = arith.constant 0 : index
      %c0_69 = arith.constant 0 : index
      %110 = vector.load %arg15[%c0_68, %c0_69] : memref<16x32xbf16, #tpu.memory_space<vmem>>, vector<16x32xbf16>
      %cst_70 = arith.constant dense<0.000000e+00> : vector<8x32xf32>
      %111 = tpu.matmul %109, %110, %cst_70 {dimension_numbers = #tpu.dot_dimension_numbers<[1], [0], [0], [1], [0, 0, 1, 1], [], []>} : vector<8x16xbf16>, vector<16x32xbf16>, vector<8x32xf32> -> vector<8x32xf32>
      %c0_71 = arith.constant 0 : index
      %c0_72 = arith.constant 0 : index
      %112 = vector.load %arg16[%c0_71, %c0_72] : memref<1x32xf32, #tpu.memory_space<vmem>>, vector<1x32xf32>
      %113 = vector.broadcast %112 : vector<1x32xf32> to vector<8x32xf32>
      %114 = arith.addf %111, %113 : vector<8x32xf32>
      %c0_73 = arith.constant 0 : index
      %c0_74 = arith.constant 0 : index
      %c0_75 = arith.constant 0 : index
      %115 = vector.load %arg8[%c0_73, %c0_74, %c0_75] : memref<1x8x32xf32, #tpu.memory_space<vmem>>, vector<1x8x32xf32>
      %116 = vector.shape_cast %115 : vector<1x8x32xf32> to vector<8x32xf32>
      %117 = arith.addf %116, %114 : vector<8x32xf32>
      %c0_76 = arith.constant 0 : index
      %c0_77 = arith.constant 0 : index
      %118 = vector.load %arg17[%c0_76, %c0_77] : memref<1x32xf32, #tpu.memory_space<vmem>>, vector<1x32xf32>
      %c0_78 = arith.constant 0 : index
      %c0_79 = arith.constant 0 : index
      %119 = vector.load %arg18[%c0_78, %c0_79] : memref<1x32xf32, #tpu.memory_space<vmem>>, vector<1x32xf32>
      %cst_80 = arith.constant dense<0.000000e+00> : vector<8xf32>
      %120 = vector.multi_reduction <add>, %117, %cst_80 [1] : vector<8x32xf32> to vector<8xf32>
      %121 = vector.shape_cast %120 : vector<8xf32> to vector<8x1xf32>
      %cst_81 = arith.constant 3.200000e+01 : f32
      %122 = vector.broadcast %cst_81 : f32 to vector<8x1xf32>
      %123 = arith.divf %121, %122 : vector<8x1xf32>
      %124 = vector.broadcast %123 : vector<8x1xf32> to vector<8x32xf32>
      %125 = arith.subf %117, %124 : vector<8x32xf32>
      %126 = vector.broadcast %123 : vector<8x1xf32> to vector<8x32xf32>
      %127 = arith.subf %117, %126 : vector<8x32xf32>
      %128 = arith.mulf %125, %127 : vector<8x32xf32>
      %cst_82 = arith.constant dense<0.000000e+00> : vector<8xf32>
      %129 = vector.multi_reduction <add>, %128, %cst_82 [1] : vector<8x32xf32> to vector<8xf32>
      %130 = vector.shape_cast %129 : vector<8xf32> to vector<8x1xf32>
      %cst_83 = arith.constant 3.200000e+01 : f32
      %131 = vector.broadcast %cst_83 : f32 to vector<8x1xf32>
      %132 = arith.divf %130, %131 : vector<8x1xf32>
      %133 = vector.broadcast %123 : vector<8x1xf32> to vector<8x32xf32>
      %134 = arith.subf %117, %133 : vector<8x32xf32>
      %cst_84 = arith.constant 9.99999974E-6 : f32
      %135 = vector.broadcast %cst_84 : f32 to vector<8x1xf32>
      %136 = arith.addf %132, %135 : vector<8x1xf32>
      %137 = math.rsqrt %136 : vector<8x1xf32>
      %138 = vector.broadcast %137 : vector<8x1xf32> to vector<8x32xf32>
      %139 = arith.mulf %134, %138 : vector<8x32xf32>
      %140 = vector.broadcast %118 : vector<1x32xf32> to vector<8x32xf32>
      %141 = arith.mulf %139, %140 : vector<8x32xf32>
      %142 = vector.broadcast %119 : vector<1x32xf32> to vector<8x32xf32>
      %143 = arith.addf %141, %142 : vector<8x32xf32>
      %c0_85 = arith.constant 0 : index
      %c0_86 = arith.constant 0 : index
      %c0_87 = arith.constant 0 : index
      %144 = vector.load %arg19[%c0_85, %c0_86, %c0_87] : memref<1x8x32xf32, #tpu.memory_space<vmem>>, vector<1x8x32xf32>
      %145 = vector.shape_cast %144 : vector<1x8x32xf32> to vector<8x32xf32>
      %146 = vector.shape_cast %143 : vector<8x32xf32> to vector<1x8x32xf32>
      tpu.vector_store %arg19[%c0_85, %c0_86, %c0_87], %146 {strides = array<i32>} : memref<1x8x32xf32, #tpu.memory_space<vmem>>, vector<1x8x32xf32>,
    } else {
    }
    return
  }
  func.func @transform_0(%arg0: i32, %arg1: i32, %arg2: i32) -> (i32, i32, i32) {
    %c0_i32 = arith.constant 0 : i32
    %c0_i32_0 = arith.constant 0 : i32
    return %arg0, %arg1, %c0_i32 : i32, i32, i32
  }
  func.func @transform_1(%arg0: i32, %arg1: i32, %arg2: i32) -> (i32, i32, i32) {
    %c0_i32 = arith.constant 0 : i32
    %c0_i32_0 = arith.constant 0 : i32
    return %arg0, %arg1, %c0_i32 : i32, i32, i32
  }
  func.func @transform_2(%arg0: i32, %arg1: i32, %arg2: i32) -> (i32, i32, i32) {
    %c0_i32 = arith.constant 0 : i32
    %c0_i32_0 = arith.constant 0 : i32
    return %arg0, %arg2, %c0_i32 : i32, i32, i32
  }
  func.func @transform_3(%arg0: i32, %arg1: i32, %arg2: i32) -> (i32, i32, i32) {
    %c0_i32 = arith.constant 0 : i32
    %c0_i32_0 = arith.constant 0 : i32
    return %arg0, %arg2, %c0_i32 : i32, i32, i32
  }
  func.func @transform_4(%arg0: i32, %arg1: i32, %arg2: i32) -> (i32, i32, i32) {
    %c0_i32 = arith.constant 0 : i32
    %c0_i32_0 = arith.constant 0 : i32
    return %arg0, %arg2, %c0_i32 : i32, i32, i32
  }
  func.func @transform_5(%arg0: i32, %arg1: i32, %arg2: i32) -> (i32, i32, i32) {
    %c0_i32 = arith.constant 0 : i32
    %c0_i32_0 = arith.constant 0 : i32
    return %arg0, %arg1, %c0_i32 : i32, i32, i32
  }
  func.func @transform_6(%arg0: i32, %arg1: i32, %arg2: i32) -> (i32, i32) {
    %c0_i32 = arith.constant 0 : i32
    %c0_i32_0 = arith.constant 0 : i32
    %c0_i32_1 = arith.constant 0 : i32
    return %c0_i32, %c0_i32_0 : i32, i32
  }
  func.func @transform_7(%arg0: i32, %arg1: i32, %arg2: i32) -> (i32, i32) {
    %c0_i32 = arith.constant 0 : i32
    %c0_i32_0 = arith.constant 0 : i32
    %c0_i32_1 = arith.constant 0 : i32
    return %c0_i32, %c0_i32_0 : i32, i32
  }
  func.func @transform_8(%arg0: i32, %arg1: i32, %arg2: i32) -> (i32, i32) {
    %c0_i32 = arith.constant 0 : i32
    %c0_i32_0 = arith.constant 0 : i32
    %c0_i32_1 = arith.constant 0 : i32
    return %c0_i32, %c0_i32_0 : i32, i32
  }
  func.func @transform_9(%arg0: i32, %arg1: i32, %arg2: i32) -> (i32, i32) {
    %c0_i32 = arith.constant 0 : i32
    %c0_i32_0 = arith.constant 0 : i32
    %c0_i32_1 = arith.constant 0 : i32
    return %c0_i32, %c0_i32_0 : i32, i32
  }
  func.func @transform_10(%arg0: i32, %arg1: i32, %arg2: i32) -> (i32, i32) {
    %c0_i32 = arith.constant 0 : i32
    %c0_i32_0 = arith.constant 0 : i32
    %c0_i32_1 = arith.constant 0 : i32
    return %c0_i32, %c0_i32_0 : i32, i32
  }
  func.func @transform_11(%arg0: i32, %arg1: i32, %arg2: i32) -> (i32, i32) {
    %c0_i32 = arith.constant 0 : i32
    %c0_i32_0 = arith.constant 0 : i32
    %c0_i32_1 = arith.constant 0 : i32
    return %c0_i32, %c0_i32_0 : i32, i32
  }
  func.func @transform_12(%arg0: i32, %arg1: i32, %arg2: i32) -> (i32, i32) {
    %c0_i32 = arith.constant 0 : i32
    %c0_i32_0 = arith.constant 0 : i32
    %c0_i32_1 = arith.constant 0 : i32
    return %c0_i32, %c0_i32_0 : i32, i32
  }
  func.func @transform_13(%arg0: i32, %arg1: i32, %arg2: i32) -> (i32, i32) {
    %c0_i32 = arith.constant 0 : i32
    %c0_i32_0 = arith.constant 0 : i32
    %c0_i32_1 = arith.constant 0 : i32
    return %c0_i32, %c0_i32_0 : i32, i32
  }
  func.func @transform_14(%arg0: i32, %arg1: i32, %arg2: i32) -> (i32, i32) {
    %c0_i32 = arith.constant 0 : i32
    %c0_i32_0 = arith.constant 0 : i32
    %c0_i32_1 = arith.constant 0 : i32
    return %c0_i32, %c0_i32_0 : i32, i32
  }
  func.func @transform_15(%arg0: i32, %arg1: i32, %arg2: i32) -> (i32, i32) {
    %c0_i32 = arith.constant 0 : i32
    %c0_i32_0 = arith.constant 0 : i32
    %c0_i32_1 = arith.constant 0 : i32
    return %c0_i32, %c0_i32_0 : i32, i32
  }
  func.func @transform_16(%arg0: i32, %arg1: i32, %arg2: i32) -> (i32, i32, i32) {
    %c0_i32 = arith.constant 0 : i32
    %c0_i32_0 = arith.constant 0 : i32
    return %arg0, %arg1, %c0_i32 : i32, i32, i32
  }
}

module attributes {stable_mosaic.version = 11 : i64} {
  func.func @kernel(%arg0: i32, %arg1: i32, %arg2: i32, %arg3: memref<1x64x32xf32, #tpu.memory_space<vmem>>, %arg4: memref<1x64x32xf32, #tpu.memory_space<vmem>>, %arg5: memref<1x8x32xf32, #tpu.memory_space<vmem>>, %arg6: memref<1x8x32xf32, #tpu.memory_space<vmem>>, %arg7: memref<1x8x32xf32, #tpu.memory_space<vmem>>, %arg8: memref<1x64x32xf32, #tpu.memory_space<vmem>>, %arg9: memref<32x16xbf16, #tpu.memory_space<vmem>>, %arg10: memref<1x16xf32, #tpu.memory_space<vmem>>, %arg11: memref<32x16xbf16, #tpu.memory_space<vmem>>, %arg12: memref<1x16xf32, #tpu.memory_space<vmem>>, %arg13: memref<32x16xbf16, #tpu.memory_space<vmem>>, %arg14: memref<1x16xf32, #tpu.memory_space<vmem>>, %arg15: memref<16x32xbf16, #tpu.memory_space<vmem>>, %arg16: memref<1x32xf32, #tpu.memory_space<vmem>>, %arg17: memref<1x32xf32, #tpu.memory_space<vmem>>, %arg18: memref<1x32xf32, #tpu.memory_space<vmem>>, %arg19: memref<1x64x32xf32, #tpu.memory_space<vmem>>, %arg20: memref<64x16xf32, #tpu.memory_space<vmem>>, %arg21: memref<2x64x1xf32, #tpu.memory_space<vmem>>, %arg22: memref<2x64x1xf32, #tpu.memory_space<vmem>>, %arg23: memref<64x16xf32, #tpu.memory_space<vmem>>) attributes {dimension_semantics = [#tpu.dimension_semantics<parallel>, #tpu.dimension_semantics<parallel>, #tpu.dimension_semantics<arbitrary>], iteration_bounds = array<i64: 2, 1, 1>, scalar_prefetch = 0 : i64, scratch_operands = 4 : i64, tpu.core_type = #tpu.core_type<tc>, window_params = [{transform_indices = @transform_0, window_bounds = array<i64: 1, 64, 32>}, {transform_indices = @transform_1, window_bounds = array<i64: 1, 64, 32>}, {transform_indices = @transform_2, window_bounds = array<i64: 1, 8, 32>}, {transform_indices = @transform_3, window_bounds = array<i64: 1, 8, 32>}, {transform_indices = @transform_4, window_bounds = array<i64: 1, 8, 32>}, {transform_indices = @transform_5, window_bounds = array<i64: 1, 64, 32>}, {pipeline_mode = #tpu.pipeline_mode<synchronous>, transform_indices = @transform_6, window_bounds = array<i64: 32, 16>}, {pipeline_mode = #tpu.pipeline_mode<synchronous>, transform_indices = @transform_7, window_bounds = array<i64: 1, 16>}, {pipeline_mode = #tpu.pipeline_mode<synchronous>, transform_indices = @transform_8, window_bounds = array<i64: 32, 16>}, {pipeline_mode = #tpu.pipeline_mode<synchronous>, transform_indices = @transform_9, window_bounds = array<i64: 1, 16>}, {pipeline_mode = #tpu.pipeline_mode<synchronous>, transform_indices = @transform_10, window_bounds = array<i64: 32, 16>}, {pipeline_mode = #tpu.pipeline_mode<synchronous>, transform_indices = @transform_11, window_bounds = array<i64: 1, 16>}, {pipeline_mode = #tpu.pipeline_mode<synchronous>, transform_indices = @transform_12, window_bounds = array<i64: 16, 32>}, {pipeline_mode = #tpu.pipeline_mode<synchronous>, transform_indices = @transform_13, window_bounds = array<i64: 1, 32>}, {pipeline_mode = #tpu.pipeline_mode<synchronous>, transform_indices = @transform_14, window_bounds = array<i64: 1, 32>}, {pipeline_mode = #tpu.pipeline_mode<synchronous>, transform_indices = @transform_15, window_bounds = array<i64: 1, 32>}, {transform_indices = @transform_16, window_bounds = array<i64: 1, 64, 32>}]} {
    %c0_i32 = arith.constant 0 : i32
    %0 = arith.cmpi eq, %arg2, %c0_i32 : i32
    %1 = arith.extui %0 : i1 to i32
    %c0_i32_0 = arith.constant 0 : i32
    %2 = arith.cmpi ne, %1, %c0_i32_0 : i32
    scf.if %2 {
      %c0_60 = arith.constant 0 : index
      %c0_61 = arith.constant 0 : index
      %c0_62 = arith.constant 0 : index
      %95 = vector.load %arg3[%c0_60, %c0_61, %c0_62] : memref<1x64x32xf32, #tpu.memory_space<vmem>>, vector<1x64x32xf32>
      %96 = vector.shape_cast %95 : vector<1x64x32xf32> to vector<64x32xf32>
      %c0_63 = arith.constant 0 : index
      %c0_64 = arith.constant 0 : index
      %c0_65 = arith.constant 0 : index
      %97 = vector.load %arg4[%c0_63, %c0_64, %c0_65] : memref<1x64x32xf32, #tpu.memory_space<vmem>>, vector<1x64x32xf32>
      %98 = vector.shape_cast %97 : vector<1x64x32xf32> to vector<64x32xf32>
      %99 = arith.addf %96, %98 : vector<64x32xf32>
      %100 = arith.truncf %99 : vector<64x32xf32> to vector<64x32xbf16>
      %c0_66 = arith.constant 0 : index
      %c0_67 = arith.constant 0 : index
      %101 = vector.load %arg9[%c0_66, %c0_67] : memref<32x16xbf16, #tpu.memory_space<vmem>>, vector<32x16xbf16>
      %cst_68 = arith.constant dense<0.000000e+00> : vector<64x16xf32>
      %102 = tpu.matmul %100, %101, %cst_68 {dimension_numbers = #tpu.dot_dimension_numbers<[1], [0], [0], [1], [0, 0, 1, 1], [], []>} : vector<64x32xbf16>, vector<32x16xbf16>, vector<64x16xf32> -> vector<64x16xf32>
      %c0_69 = arith.constant 0 : index
      %c0_70 = arith.constant 0 : index
      %103 = vector.load %arg10[%c0_69, %c0_70] : memref<1x16xf32, #tpu.memory_space<vmem>>, vector<1x16xf32>
      %104 = vector.broadcast %103 : vector<1x16xf32> to vector<64x16xf32>
      %105 = arith.addf %102, %104 : vector<64x16xf32>
      %cst_71 = arith.constant 0.353553385 : f32
      %106 = vector.broadcast %cst_71 : f32 to vector<64x16xf32>
      %107 = arith.mulf %105, %106 : vector<64x16xf32>
      %c0_72 = arith.constant 0 : index
      %c0_73 = arith.constant 0 : index
      %108 = vector.load %arg20[%c0_72, %c0_73] : memref<64x16xf32, #tpu.memory_space<vmem>>, vector<64x16xf32>
      tpu.vector_store %arg20[%c0_72, %c0_73], %107 {strides = array<i32>} : memref<64x16xf32, #tpu.memory_space<vmem>>, vector<64x16xf32>,
      %cst_74 = arith.constant 0xFF800000 : f32
      %109 = vector.broadcast %cst_74 : f32 to vector<2x64x1xf32>
      %c0_75 = arith.constant 0 : index
      %c0_76 = arith.constant 0 : index
      %c0_77 = arith.constant 0 : index
      %110 = vector.load %arg21[%c0_75, %c0_76, %c0_77] : memref<2x64x1xf32, #tpu.memory_space<vmem>>, vector<2x64x1xf32>
      tpu.vector_store %arg21[%c0_75, %c0_76, %c0_77], %109 {strides = array<i32>} : memref<2x64x1xf32, #tpu.memory_space<vmem>>, vector<2x64x1xf32>,
      %cst_78 = arith.constant 0.000000e+00 : f32
      %111 = vector.broadcast %cst_78 : f32 to vector<2x64x1xf32>
      %c0_79 = arith.constant 0 : index
      %c0_80 = arith.constant 0 : index
      %c0_81 = arith.constant 0 : index
      %112 = vector.load %arg22[%c0_79, %c0_80, %c0_81] : memref<2x64x1xf32, #tpu.memory_space<vmem>>, vector<2x64x1xf32>
      tpu.vector_store %arg22[%c0_79, %c0_80, %c0_81], %111 {strides = array<i32>} : memref<2x64x1xf32, #tpu.memory_space<vmem>>, vector<2x64x1xf32>,
      %cst_82 = arith.constant 0.000000e+00 : f32
      %113 = vector.broadcast %cst_82 : f32 to vector<64x16xf32>
      %c0_83 = arith.constant 0 : index
      %c0_84 = arith.constant 0 : index
      %114 = vector.load %arg23[%c0_83, %c0_84] : memref<64x16xf32, #tpu.memory_space<vmem>>, vector<64x16xf32>
      tpu.vector_store %arg23[%c0_83, %c0_84], %113 {strides = array<i32>} : memref<64x16xf32, #tpu.memory_space<vmem>>, vector<64x16xf32>,
    } else {
    }
    %c0 = arith.constant 0 : index
    %c0_1 = arith.constant 0 : index
    %c0_2 = arith.constant 0 : index
    %3 = vector.load %arg5[%c0, %c0_1, %c0_2] : memref<1x8x32xf32, #tpu.memory_space<vmem>>, vector<1x8x32xf32>
    %4 = vector.shape_cast %3 : vector<1x8x32xf32> to vector<8x32xf32>
    %c0_3 = arith.constant 0 : index
    %c0_4 = arith.constant 0 : index
    %c0_5 = arith.constant 0 : index
    %5 = vector.load %arg6[%c0_3, %c0_4, %c0_5] : memref<1x8x32xf32, #tpu.memory_space<vmem>>, vector<1x8x32xf32>
    %6 = vector.shape_cast %5 : vector<1x8x32xf32> to vector<8x32xf32>
    %7 = arith.addf %4, %6 : vector<8x32xf32>
    %8 = arith.truncf %7 : vector<8x32xf32> to vector<8x32xbf16>
    %c0_6 = arith.constant 0 : index
    %c0_7 = arith.constant 0 : index
    %9 = vector.load %arg11[%c0_6, %c0_7] : memref<32x16xbf16, #tpu.memory_space<vmem>>, vector<32x16xbf16>
    %cst = arith.constant dense<0.000000e+00> : vector<8x16xf32>
    %10 = tpu.matmul %8, %9, %cst {dimension_numbers = #tpu.dot_dimension_numbers<[1], [0], [0], [1], [0, 0, 1, 1], [], []>} : vector<8x32xbf16>, vector<32x16xbf16>, vector<8x16xf32> -> vector<8x16xf32>
    %c0_8 = arith.constant 0 : index
    %c0_9 = arith.constant 0 : index
    %11 = vector.load %arg12[%c0_8, %c0_9] : memref<1x16xf32, #tpu.memory_space<vmem>>, vector<1x16xf32>
    %12 = vector.broadcast %11 : vector<1x16xf32> to vector<8x16xf32>
    %13 = arith.addf %10, %12 : vector<8x16xf32>
    %c0_10 = arith.constant 0 : index
    %c0_11 = arith.constant 0 : index
    %c0_12 = arith.constant 0 : index
    %14 = vector.load %arg7[%c0_10, %c0_11, %c0_12] : memref<1x8x32xf32, #tpu.memory_space<vmem>>, vector<1x8x32xf32>
    %15 = vector.shape_cast %14 : vector<1x8x32xf32> to vector<8x32xf32>
    %16 = arith.truncf %15 : vector<8x32xf32> to vector<8x32xbf16>
    %c0_13 = arith.constant 0 : index
    %c0_14 = arith.constant 0 : index
    %17 = vector.load %arg13[%c0_13, %c0_14] : memref<32x16xbf16, #tpu.memory_space<vmem>>, vector<32x16xbf16>
    %cst_15 = arith.constant dense<0.000000e+00> : vector<8x16xf32>
    %18 = tpu.matmul %16, %17, %cst_15 {dimension_numbers = #tpu.dot_dimension_numbers<[1], [0], [0], [1], [0, 0, 1, 1], [], []>} : vector<8x32xbf16>, vector<32x16xbf16>, vector<8x16xf32> -> vector<8x16xf32>
    %c0_16 = arith.constant 0 : index
    %c0_17 = arith.constant 0 : index
    %19 = vector.load %arg14[%c0_16, %c0_17] : memref<1x16xf32, #tpu.memory_space<vmem>>, vector<1x16xf32>
    %20 = vector.broadcast %19 : vector<1x16xf32> to vector<8x16xf32>
    %21 = arith.addf %18, %20 : vector<8x16xf32>
    %c0_18 = arith.constant 0 : index
    %c0_19 = arith.constant 0 : index
    %22 = vector.load %arg20[%c0_18, %c0_19] : memref<64x16xf32, #tpu.memory_space<vmem>>, vector<64x16xf32>
    %23 = arith.truncf %22 : vector<64x16xf32> to vector<64x16xbf16>
    %24 = arith.truncf %13 : vector<8x16xf32> to vector<8x16xbf16>
    %25 = arith.truncf %21 : vector<8x16xf32> to vector<8x16xbf16>
    %26 = vector.extract_strided_slice %23 {offsets = [0, 0], sizes = [64, 8], strides = [1, 1]} : vector<64x16xbf16> to vector<64x8xbf16>
    %27 = vector.extract_strided_slice %24 {offsets = [0, 0], sizes = [8, 8], strides = [1, 1]} : vector<8x16xbf16> to vector<8x8xbf16>
    %cst_20 = arith.constant dense<0.000000e+00> : vector<64x8xf32>
    %28 = tpu.matmul %26, %27, %cst_20 {dimension_numbers = #tpu.dot_dimension_numbers<[1], [1], [0], [0], [0, 0, 1, 0], [], []>} : vector<64x8xbf16>, vector<8x8xbf16>, vector<64x8xf32> -> vector<64x8xf32>
    %c0_21 = arith.constant 0 : index
    %c0_22 = arith.constant 0 : index
    %c0_23 = arith.constant 0 : index
    %29 = vector.load %arg21[%c0_21, %c0_22, %c0_23] : memref<2x64x1xf32, #tpu.memory_space<vmem>>, vector<1x64x1xf32>
    %30 = vector.shape_cast %29 : vector<1x64x1xf32> to vector<64x1xf32>
    %cst_24 = arith.constant dense<0xFF800000> : vector<64xf32>
    %31 = vector.multi_reduction <maximumf>, %28, %cst_24 [1] : vector<64x8xf32> to vector<64xf32>
    %32 = vector.shape_cast %31 : vector<64xf32> to vector<64x1xf32>
    %33 = arith.maximumf %30, %32 : vector<64x1xf32>
    %34 = arith.subf %30, %33 : vector<64x1xf32>
    %35 = math.exp %34 : vector<64x1xf32>
    %36 = vector.broadcast %33 : vector<64x1xf32> to vector<64x8xf32>
    %37 = arith.subf %28, %36 : vector<64x8xf32>
    %38 = math.exp %37 : vector<64x8xf32>
    %c0_25 = arith.constant 0 : index
    %c0_26 = arith.constant 0 : index
    %c0_27 = arith.constant 0 : index
    %39 = vector.load %arg22[%c0_25, %c0_26, %c0_27] : memref<2x64x1xf32, #tpu.memory_space<vmem>>, vector<1x64x1xf32>
    %40 = vector.shape_cast %39 : vector<1x64x1xf32> to vector<64x1xf32>
    %41 = arith.mulf %35, %40 : vector<64x1xf32>
    %cst_28 = arith.constant dense<0.000000e+00> : vector<64xf32>
    %42 = vector.multi_reduction <add>, %38, %cst_28 [1] : vector<64x8xf32> to vector<64xf32>
    %43 = vector.shape_cast %42 : vector<64xf32> to vector<64x1xf32>
    %44 = arith.addf %41, %43 : vector<64x1xf32>
    %c0_29 = arith.constant 0 : index
    %c0_30 = arith.constant 0 : index
    %c0_31 = arith.constant 0 : index
    %45 = vector.load %arg22[%c0_29, %c0_30, %c0_31] : memref<2x64x1xf32, #tpu.memory_space<vmem>>, vector<1x64x1xf32>
    %46 = vector.shape_cast %45 : vector<1x64x1xf32> to vector<64x1xf32>
    %47 = vector.shape_cast %44 : vector<64x1xf32> to vector<1x64x1xf32>
    tpu.vector_store %arg22[%c0_29, %c0_30, %c0_31], %47 {strides = array<i32>} : memref<2x64x1xf32, #tpu.memory_space<vmem>>, vector<1x64x1xf32>,
    %c0_32 = arith.constant 0 : index
    %c0_33 = arith.constant 0 : index
    %48 = vector.load %arg23[%c0_32, %c0_33] : memref<64x16xf32, #tpu.memory_space<vmem>>, vector<64x8xf32>
    %49 = vector.broadcast %35 : vector<64x1xf32> to vector<64x8xf32>
    %50 = arith.mulf %49, %48 : vector<64x8xf32>
    %51 = arith.truncf %38 : vector<64x8xf32> to vector<64x8xbf16>
    %52 = vector.extract_strided_slice %25 {offsets = [0, 0], sizes = [8, 8], strides = [1, 1]} : vector<8x16xbf16> to vector<8x8xbf16>
    %cst_34 = arith.constant dense<0.000000e+00> : vector<64x8xf32>
    %53 = tpu.matmul %51, %52, %cst_34 {dimension_numbers = #tpu.dot_dimension_numbers<[1], [0], [0], [1], [0, 0, 1, 1], [], []>} : vector<64x8xbf16>, vector<8x8xbf16>, vector<64x8xf32> -> vector<64x8xf32>
    %54 = arith.addf %50, %53 : vector<64x8xf32>
    %c0_35 = arith.constant 0 : index
    %c0_36 = arith.constant 0 : index
    %55 = vector.load %arg23[%c0_35, %c0_36] : memref<64x16xf32, #tpu.memory_space<vmem>>, vector<64x8xf32>
    tpu.vector_store %arg23[%c0_35, %c0_36], %54 {strides = array<i32>} : memref<64x16xf32, #tpu.memory_space<vmem>>, vector<64x8xf32>,
    %c0_37 = arith.constant 0 : index
    %c0_38 = arith.constant 0 : index
    %c0_39 = arith.constant 0 : index
    %56 = vector.load %arg21[%c0_37, %c0_38, %c0_39] : memref<2x64x1xf32, #tpu.memory_space<vmem>>, vector<1x64x1xf32>
    %57 = vector.shape_cast %56 : vector<1x64x1xf32> to vector<64x1xf32>
    %58 = vector.shape_cast %33 : vector<64x1xf32> to vector<1x64x1xf32>
    tpu.vector_store %arg21[%c0_37, %c0_38, %c0_39], %58 {strides = array<i32>} : memref<2x64x1xf32, #tpu.memory_space<vmem>>, vector<1x64x1xf32>,
    %59 = vector.extract_strided_slice %23 {offsets = [0, 8], sizes = [64, 8], strides = [1, 1]} : vector<64x16xbf16> to vector<64x8xbf16>
    %60 = vector.extract_strided_slice %24 {offsets = [0, 8], sizes = [8, 8], strides = [1, 1]} : vector<8x16xbf16> to vector<8x8xbf16>
    %cst_40 = arith.constant dense<0.000000e+00> : vector<64x8xf32>
    %61 = tpu.matmul %59, %60, %cst_40 {dimension_numbers = #tpu.dot_dimension_numbers<[1], [1], [0], [0], [0, 0, 1, 0], [], []>} : vector<64x8xbf16>, vector<8x8xbf16>, vector<64x8xf32> -> vector<64x8xf32>
    %c1 = arith.constant 1 : index
    %c0_41 = arith.constant 0 : index
    %c0_42 = arith.constant 0 : index
    %62 = vector.load %arg21[%c1, %c0_41, %c0_42] : memref<2x64x1xf32, #tpu.memory_space<vmem>>, vector<1x64x1xf32>
    %63 = vector.shape_cast %62 : vector<1x64x1xf32> to vector<64x1xf32>
    %cst_43 = arith.constant dense<0xFF800000> : vector<64xf32>
    %64 = vector.multi_reduction <maximumf>, %61, %cst_43 [1] : vector<64x8xf32> to vector<64xf32>
    %65 = vector.shape_cast %64 : vector<64xf32> to vector<64x1xf32>
    %66 = arith.maximumf %63, %65 : vector<64x1xf32>
    %67 = arith.subf %63, %66 : vector<64x1xf32>
    %68 = math.exp %67 : vector<64x1xf32>
    %69 = vector.broadcast %66 : vector<64x1xf32> to vector<64x8xf32>
    %70 = arith.subf %61, %69 : vector<64x8xf32>
    %71 = math.exp %70 : vector<64x8xf32>
    %c1_44 = arith.constant 1 : index
    %c0_45 = arith.constant 0 : index
    %c0_46 = arith.constant 0 : index
    %72 = vector.load %arg22[%c1_44, %c0_45, %c0_46] : memref<2x64x1xf32, #tpu.memory_space<vmem>>, vector<1x64x1xf32>
    %73 = vector.shape_cast %72 : vector<1x64x1xf32> to vector<64x1xf32>
    %74 = arith.mulf %68, %73 : vector<64x1xf32>
    %cst_47 = arith.constant dense<0.000000e+00> : vector<64xf32>
    %75 = vector.multi_reduction <add>, %71, %cst_47 [1] : vector<64x8xf32> to vector<64xf32>
    %76 = vector.shape_cast %75 : vector<64xf32> to vector<64x1xf32>
    %77 = arith.addf %74, %76 : vector<64x1xf32>
    %c1_48 = arith.constant 1 : index
    %c0_49 = arith.constant 0 : index
    %c0_50 = arith.constant 0 : index
    %78 = vector.load %arg22[%c1_48, %c0_49, %c0_50] : memref<2x64x1xf32, #tpu.memory_space<vmem>>, vector<1x64x1xf32>
    %79 = vector.shape_cast %78 : vector<1x64x1xf32> to vector<64x1xf32>
    %80 = vector.shape_cast %77 : vector<64x1xf32> to vector<1x64x1xf32>
    tpu.vector_store %arg22[%c1_48, %c0_49, %c0_50], %80 {strides = array<i32>} : memref<2x64x1xf32, #tpu.memory_space<vmem>>, vector<1x64x1xf32>,
    %c0_51 = arith.constant 0 : index
    %c8 = arith.constant 8 : index
    %81 = vector.load %arg23[%c0_51, %c8] : memref<64x16xf32, #tpu.memory_space<vmem>>, vector<64x8xf32>
    %82 = vector.broadcast %68 : vector<64x1xf32> to vector<64x8xf32>
    %83 = arith.mulf %82, %81 : vector<64x8xf32>
    %84 = arith.truncf %71 : vector<64x8xf32> to vector<64x8xbf16>
    %85 = vector.extract_strided_slice %25 {offsets = [0, 8], sizes = [8, 8], strides = [1, 1]} : vector<8x16xbf16> to vector<8x8xbf16>
    %cst_52 = arith.constant dense<0.000000e+00> : vector<64x8xf32>
    %86 = tpu.matmul %84, %85, %cst_52 {dimension_numbers = #tpu.dot_dimension_numbers<[1], [0], [0], [1], [0, 0, 1, 1], [], []>} : vector<64x8xbf16>, vector<8x8xbf16>, vector<64x8xf32> -> vector<64x8xf32>
    %87 = arith.addf %83, %86 : vector<64x8xf32>
    %c0_53 = arith.constant 0 : index
    %c8_54 = arith.constant 8 : index
    %88 = vector.load %arg23[%c0_53, %c8_54] : memref<64x16xf32, #tpu.memory_space<vmem>>, vector<64x8xf32>
    tpu.vector_store %arg23[%c0_53, %c8_54], %87 {strides = array<i32>} : memref<64x16xf32, #tpu.memory_space<vmem>>, vector<64x8xf32>,
    %c1_55 = arith.constant 1 : index
    %c0_56 = arith.constant 0 : index
    %c0_57 = arith.constant 0 : index
    %89 = vector.load %arg21[%c1_55, %c0_56, %c0_57] : memref<2x64x1xf32, #tpu.memory_space<vmem>>, vector<1x64x1xf32>
    %90 = vector.shape_cast %89 : vector<1x64x1xf32> to vector<64x1xf32>
    %91 = vector.shape_cast %66 : vector<64x1xf32> to vector<1x64x1xf32>
    tpu.vector_store %arg21[%c1_55, %c0_56, %c0_57], %91 {strides = array<i32>} : memref<2x64x1xf32, #tpu.memory_space<vmem>>, vector<1x64x1xf32>,
    %c0_i32_58 = arith.constant 0 : i32
    %92 = arith.cmpi eq, %arg2, %c0_i32_58 : i32
    %93 = arith.extui %92 : i1 to i32
    %c0_i32_59 = arith.constant 0 : i32
    %94 = arith.cmpi ne, %93, %c0_i32_59 : i32
    scf.if %94 {
      %c0_60 = arith.constant 0 : index
      %c0_61 = arith.constant 0 : index
      %95 = vector.load %arg23[%c0_60, %c0_61] : memref<64x16xf32, #tpu.memory_space<vmem>>, vector<64x16xf32>
      %c0_62 = arith.constant 0 : index
      %c0_63 = arith.constant 0 : index
      %c0_64 = arith.constant 0 : index
      %96 = vector.load %arg22[%c0_62, %c0_63, %c0_64] : memref<2x64x1xf32, #tpu.memory_space<vmem>>, vector<1x64x1xf32>
      %97 = vector.shape_cast %96 : vector<1x64x1xf32> to vector<64x1xf32>
      %98 = tpu.reciprocal %97 {approx = true} : vector<64x1xf32> -> vector<64x1xf32>
      %99 = vector.extract_strided_slice %95 {offsets = [0, 0], sizes = [64, 8], strides = [1, 1]} : vector<64x16xf32> to vector<64x8xf32>
      %100 = vector.broadcast %98 : vector<64x1xf32> to vector<64x8xf32>
      %101 = arith.mulf %99, %100 : vector<64x8xf32>
      %c1_65 = arith.constant 1 : index
      %c0_66 = arith.constant 0 : index
      %c0_67 = arith.constant 0 : index
      %102 = vector.load %arg22[%c1_65, %c0_66, %c0_67] : memref<2x64x1xf32, #tpu.memory_space<vmem>>, vector<1x64x1xf32>
      %103 = vector.shape_cast %102 : vector<1x64x1xf32> to vector<64x1xf32>
      %104 = tpu.reciprocal %103 {approx = true} : vector<64x1xf32> -> vector<64x1xf32>
      %105 = vector.extract_strided_slice %95 {offsets = [0, 8], sizes = [64, 8], strides = [1, 1]} : vector<64x16xf32> to vector<64x8xf32>
      %106 = vector.broadcast %104 : vector<64x1xf32> to vector<64x8xf32>
      %107 = arith.mulf %105, %106 : vector<64x8xf32>
      %108 = tpu.concatenate %101, %107 in 1 : vector<64x8xf32>, vector<64x8xf32> -> vector<64x16xf32>
      %109 = arith.truncf %108 : vector<64x16xf32> to vector<64x16xbf16>
      %c0_68 = arith.constant 0 : index
      %c0_69 = arith.constant 0 : index
      %110 = vector.load %arg15[%c0_68, %c0_69] : memref<16x32xbf16, #tpu.memory_space<vmem>>, vector<16x32xbf16>
      %cst_70 = arith.constant dense<0.000000e+00> : vector<64x32xf32>
      %111 = tpu.matmul %109, %110, %cst_70 {dimension_numbers = #tpu.dot_dimension_numbers<[1], [0], [0], [1], [0, 0, 1, 1], [], []>} : vector<64x16xbf16>, vector<16x32xbf16>, vector<64x32xf32> -> vector<64x32xf32>
      %c0_71 = arith.constant 0 : index
      %c0_72 = arith.constant 0 : index
      %112 = vector.load %arg16[%c0_71, %c0_72] : memref<1x32xf32, #tpu.memory_space<vmem>>, vector<1x32xf32>
      %113 = vector.broadcast %112 : vector<1x32xf32> to vector<64x32xf32>
      %114 = arith.addf %111, %113 : vector<64x32xf32>
      %c0_73 = arith.constant 0 : index
      %c0_74 = arith.constant 0 : index
      %c0_75 = arith.constant 0 : index
      %115 = vector.load %arg8[%c0_73, %c0_74, %c0_75] : memref<1x64x32xf32, #tpu.memory_space<vmem>>, vector<1x64x32xf32>
      %116 = vector.shape_cast %115 : vector<1x64x32xf32> to vector<64x32xf32>
      %117 = arith.addf %116, %114 : vector<64x32xf32>
      %c0_76 = arith.constant 0 : index
      %c0_77 = arith.constant 0 : index
      %118 = vector.load %arg17[%c0_76, %c0_77] : memref<1x32xf32, #tpu.memory_space<vmem>>, vector<1x32xf32>
      %c0_78 = arith.constant 0 : index
      %c0_79 = arith.constant 0 : index
      %119 = vector.load %arg18[%c0_78, %c0_79] : memref<1x32xf32, #tpu.memory_space<vmem>>, vector<1x32xf32>
      %cst_80 = arith.constant dense<0.000000e+00> : vector<64xf32>
      %120 = vector.multi_reduction <add>, %117, %cst_80 [1] : vector<64x32xf32> to vector<64xf32>
      %121 = vector.shape_cast %120 : vector<64xf32> to vector<64x1xf32>
      %cst_81 = arith.constant 3.200000e+01 : f32
      %122 = vector.broadcast %cst_81 : f32 to vector<64x1xf32>
      %123 = arith.divf %121, %122 : vector<64x1xf32>
      %124 = vector.broadcast %123 : vector<64x1xf32> to vector<64x32xf32>
      %125 = arith.subf %117, %124 : vector<64x32xf32>
      %126 = vector.broadcast %123 : vector<64x1xf32> to vector<64x32xf32>
      %127 = arith.subf %117, %126 : vector<64x32xf32>
      %128 = arith.mulf %125, %127 : vector<64x32xf32>
      %cst_82 = arith.constant dense<0.000000e+00> : vector<64xf32>
      %129 = vector.multi_reduction <add>, %128, %cst_82 [1] : vector<64x32xf32> to vector<64xf32>
      %130 = vector.shape_cast %129 : vector<64xf32> to vector<64x1xf32>
      %cst_83 = arith.constant 3.200000e+01 : f32
      %131 = vector.broadcast %cst_83 : f32 to vector<64x1xf32>
      %132 = arith.divf %130, %131 : vector<64x1xf32>
      %133 = vector.broadcast %123 : vector<64x1xf32> to vector<64x32xf32>
      %134 = arith.subf %117, %133 : vector<64x32xf32>
      %cst_84 = arith.constant 9.99999974E-6 : f32
      %135 = vector.broadcast %cst_84 : f32 to vector<64x1xf32>
      %136 = arith.addf %132, %135 : vector<64x1xf32>
      %137 = math.rsqrt %136 : vector<64x1xf32>
      %138 = vector.broadcast %137 : vector<64x1xf32> to vector<64x32xf32>
      %139 = arith.mulf %134, %138 : vector<64x32xf32>
      %140 = vector.broadcast %118 : vector<1x32xf32> to vector<64x32xf32>
      %141 = arith.mulf %139, %140 : vector<64x32xf32>
      %142 = vector.broadcast %119 : vector<1x32xf32> to vector<64x32xf32>
      %143 = arith.addf %141, %142 : vector<64x32xf32>
      %c0_85 = arith.constant 0 : index
      %c0_86 = arith.constant 0 : index
      %c0_87 = arith.constant 0 : index
      %144 = vector.load %arg19[%c0_85, %c0_86, %c0_87] : memref<1x64x32xf32, #tpu.memory_space<vmem>>, vector<1x64x32xf32>
      %145 = vector.shape_cast %144 : vector<1x64x32xf32> to vector<64x32xf32>
      %146 = vector.shape_cast %143 : vector<64x32xf32> to vector<1x64x32xf32>
      tpu.vector_store %arg19[%c0_85, %c0_86, %c0_87], %146 {strides = array<i32>} : memref<1x64x32xf32, #tpu.memory_space<vmem>>, vector<1x64x32xf32>,
    } else {
    }
    return
  }
  func.func @transform_0(%arg0: i32, %arg1: i32, %arg2: i32) -> (i32, i32, i32) {
    %c0_i32 = arith.constant 0 : i32
    %c0_i32_0 = arith.constant 0 : i32
    return %arg0, %arg1, %c0_i32 : i32, i32, i32
  }
  func.func @transform_1(%arg0: i32, %arg1: i32, %arg2: i32) -> (i32, i32, i32) {
    %c0_i32 = arith.constant 0 : i32
    %c0_i32_0 = arith.constant 0 : i32
    return %arg0, %arg1, %c0_i32 : i32, i32, i32
  }
  func.func @transform_2(%arg0: i32, %arg1: i32, %arg2: i32) -> (i32, i32, i32) {
    %c0_i32 = arith.constant 0 : i32
    %c0_i32_0 = arith.constant 0 : i32
    return %arg0, %arg2, %c0_i32 : i32, i32, i32
  }
  func.func @transform_3(%arg0: i32, %arg1: i32, %arg2: i32) -> (i32, i32, i32) {
    %c0_i32 = arith.constant 0 : i32
    %c0_i32_0 = arith.constant 0 : i32
    return %arg0, %arg2, %c0_i32 : i32, i32, i32
  }
  func.func @transform_4(%arg0: i32, %arg1: i32, %arg2: i32) -> (i32, i32, i32) {
    %c0_i32 = arith.constant 0 : i32
    %c0_i32_0 = arith.constant 0 : i32
    return %arg0, %arg2, %c0_i32 : i32, i32, i32
  }
  func.func @transform_5(%arg0: i32, %arg1: i32, %arg2: i32) -> (i32, i32, i32) {
    %c0_i32 = arith.constant 0 : i32
    %c0_i32_0 = arith.constant 0 : i32
    return %arg0, %arg1, %c0_i32 : i32, i32, i32
  }
  func.func @transform_6(%arg0: i32, %arg1: i32, %arg2: i32) -> (i32, i32) {
    %c0_i32 = arith.constant 0 : i32
    %c0_i32_0 = arith.constant 0 : i32
    %c0_i32_1 = arith.constant 0 : i32
    return %c0_i32, %c0_i32_0 : i32, i32
  }
  func.func @transform_7(%arg0: i32, %arg1: i32, %arg2: i32) -> (i32, i32) {
    %c0_i32 = arith.constant 0 : i32
    %c0_i32_0 = arith.constant 0 : i32
    %c0_i32_1 = arith.constant 0 : i32
    return %c0_i32, %c0_i32_0 : i32, i32
  }
  func.func @transform_8(%arg0: i32, %arg1: i32, %arg2: i32) -> (i32, i32) {
    %c0_i32 = arith.constant 0 : i32
    %c0_i32_0 = arith.constant 0 : i32
    %c0_i32_1 = arith.constant 0 : i32
    return %c0_i32, %c0_i32_0 : i32, i32
  }
  func.func @transform_9(%arg0: i32, %arg1: i32, %arg2: i32) -> (i32, i32) {
    %c0_i32 = arith.constant 0 : i32
    %c0_i32_0 = arith.constant 0 : i32
    %c0_i32_1 = arith.constant 0 : i32
    return %c0_i32, %c0_i32_0 : i32, i32
  }
  func.func @transform_10(%arg0: i32, %arg1: i32, %arg2: i32) -> (i32, i32) {
    %c0_i32 = arith.constant 0 : i32
    %c0_i32_0 = arith.constant 0 : i32
    %c0_i32_1 = arith.constant 0 : i32
    return %c0_i32, %c0_i32_0 : i32, i32
  }
  func.func @transform_11(%arg0: i32, %arg1: i32, %arg2: i32) -> (i32, i32) {
    %c0_i32 = arith.constant 0 : i32
    %c0_i32_0 = arith.constant 0 : i32
    %c0_i32_1 = arith.constant 0 : i32
    return %c0_i32, %c0_i32_0 : i32, i32
  }
  func.func @transform_12(%arg0: i32, %arg1: i32, %arg2: i32) -> (i32, i32) {
    %c0_i32 = arith.constant 0 : i32
    %c0_i32_0 = arith.constant 0 : i32
    %c0_i32_1 = arith.constant 0 : i32
    return %c0_i32, %c0_i32_0 : i32, i32
  }
  func.func @transform_13(%arg0: i32, %arg1: i32, %arg2: i32) -> (i32, i32) {
    %c0_i32 = arith.constant 0 : i32
    %c0_i32_0 = arith.constant 0 : i32
    %c0_i32_1 = arith.constant 0 : i32
    return %c0_i32, %c0_i32_0 : i32, i32
  }
  func.func @transform_14(%arg0: i32, %arg1: i32, %arg2: i32) -> (i32, i32) {
    %c0_i32 = arith.constant 0 : i32
    %c0_i32_0 = arith.constant 0 : i32
    %c0_i32_1 = arith.constant 0 : i32
    return %c0_i32, %c0_i32_0 : i32, i32
  }
  func.func @transform_15(%arg0: i32, %arg1: i32, %arg2: i32) -> (i32, i32) {
    %c0_i32 = arith.constant 0 : i32
    %c0_i32_0 = arith.constant 0 : i32
    %c0_i32_1 = arith.constant 0 : i32
    return %c0_i32, %c0_i32_0 : i32, i32
  }
  func.func @transform_16(%arg0: i32, %arg1: i32, %arg2: i32) -> (i32, i32, i32) {
    %c0_i32 = arith.constant 0 : i32
    %c0_i32_0 = arith.constant 0 : i32
    return %arg0, %arg1, %c0_i32 : i32, i32, i32
  }
}

module attributes {stable_mosaic.version = 11 : i64} {
  func.func @_mlp_res_ln_kernel(%arg0: i32, %arg1: memref<16x32xf32, #tpu.memory_space<vmem>>, %arg2: memref<32x64xbf16, #tpu.memory_space<vmem>>, %arg3: memref<1x64xf32, #tpu.memory_space<vmem>>, %arg4: memref<64x32xbf16, #tpu.memory_space<vmem>>, %arg5: memref<1x32xf32, #tpu.memory_space<vmem>>, %arg6: memref<1x32xf32, #tpu.memory_space<vmem>>, %arg7: memref<1x32xf32, #tpu.memory_space<vmem>>, %arg8: memref<16x32xf32, #tpu.memory_space<vmem>>) attributes {dimension_semantics = [#tpu.dimension_semantics<parallel>], iteration_bounds = array<i64: 1>, scalar_prefetch = 0 : i64, scratch_operands = 0 : i64, tpu.core_type = #tpu.core_type<tc>, window_params = [{transform_indices = @transform_0, window_bounds = array<i64: 16, 32>}, {pipeline_mode = #tpu.pipeline_mode<synchronous>, transform_indices = @transform_1, window_bounds = array<i64: 32, 64>}, {pipeline_mode = #tpu.pipeline_mode<synchronous>, transform_indices = @transform_2, window_bounds = array<i64: 1, 64>}, {pipeline_mode = #tpu.pipeline_mode<synchronous>, transform_indices = @transform_3, window_bounds = array<i64: 64, 32>}, {pipeline_mode = #tpu.pipeline_mode<synchronous>, transform_indices = @transform_4, window_bounds = array<i64: 1, 32>}, {pipeline_mode = #tpu.pipeline_mode<synchronous>, transform_indices = @transform_5, window_bounds = array<i64: 1, 32>}, {pipeline_mode = #tpu.pipeline_mode<synchronous>, transform_indices = @transform_6, window_bounds = array<i64: 1, 32>}, {transform_indices = @transform_7, window_bounds = array<i64: 16, 32>}]} {
    %c0 = arith.constant 0 : index
    %c0_0 = arith.constant 0 : index
    %0 = vector.load %arg1[%c0, %c0_0] : memref<16x32xf32, #tpu.memory_space<vmem>>, vector<16x32xf32>
    %1 = arith.truncf %0 : vector<16x32xf32> to vector<16x32xbf16>
    %c0_1 = arith.constant 0 : index
    %c0_2 = arith.constant 0 : index
    %2 = vector.load %arg2[%c0_1, %c0_2] : memref<32x64xbf16, #tpu.memory_space<vmem>>, vector<32x64xbf16>
    %cst = arith.constant dense<0.000000e+00> : vector<16x64xf32>
    %3 = tpu.matmul %1, %2, %cst {dimension_numbers = #tpu.dot_dimension_numbers<[1], [0], [0], [1], [0, 0, 1, 1], [], []>} : vector<16x32xbf16>, vector<32x64xbf16>, vector<16x64xf32> -> vector<16x64xf32>
    %c0_3 = arith.constant 0 : index
    %c0_4 = arith.constant 0 : index
    %4 = vector.load %arg3[%c0_3, %c0_4] : memref<1x64xf32, #tpu.memory_space<vmem>>, vector<1x64xf32>
    %5 = vector.broadcast %4 : vector<1x64xf32> to vector<16x64xf32>
    %6 = arith.addf %3, %5 : vector<16x64xf32>
    %cst_5 = arith.constant 0.000000e+00 : f32
    %7 = vector.broadcast %cst_5 : f32 to vector<16x64xf32>
    %8 = arith.maximumf %6, %7 : vector<16x64xf32>
    %9 = arith.truncf %8 : vector<16x64xf32> to vector<16x64xbf16>
    %c0_6 = arith.constant 0 : index
    %c0_7 = arith.constant 0 : index
    %10 = vector.load %arg4[%c0_6, %c0_7] : memref<64x32xbf16, #tpu.memory_space<vmem>>, vector<64x32xbf16>
    %cst_8 = arith.constant dense<0.000000e+00> : vector<16x32xf32>
    %11 = tpu.matmul %9, %10, %cst_8 {dimension_numbers = #tpu.dot_dimension_numbers<[1], [0], [0], [1], [0, 0, 1, 1], [], []>} : vector<16x64xbf16>, vector<64x32xbf16>, vector<16x32xf32> -> vector<16x32xf32>
    %12 = arith.addf %0, %11 : vector<16x32xf32>
    %c0_9 = arith.constant 0 : index
    %c0_10 = arith.constant 0 : index
    %13 = vector.load %arg5[%c0_9, %c0_10] : memref<1x32xf32, #tpu.memory_space<vmem>>, vector<1x32xf32>
    %14 = vector.broadcast %13 : vector<1x32xf32> to vector<16x32xf32>
    %15 = arith.addf %12, %14 : vector<16x32xf32>
    %c0_11 = arith.constant 0 : index
    %c0_12 = arith.constant 0 : index
    %16 = vector.load %arg6[%c0_11, %c0_12] : memref<1x32xf32, #tpu.memory_space<vmem>>, vector<1x32xf32>
    %c0_13 = arith.constant 0 : index
    %c0_14 = arith.constant 0 : index
    %17 = vector.load %arg7[%c0_13, %c0_14] : memref<1x32xf32, #tpu.memory_space<vmem>>, vector<1x32xf32>
    %cst_15 = arith.constant dense<0.000000e+00> : vector<16xf32>
    %18 = vector.multi_reduction <add>, %15, %cst_15 [1] : vector<16x32xf32> to vector<16xf32>
    %19 = vector.shape_cast %18 : vector<16xf32> to vector<16x1xf32>
    %cst_16 = arith.constant 3.200000e+01 : f32
    %20 = vector.broadcast %cst_16 : f32 to vector<16x1xf32>
    %21 = arith.divf %19, %20 : vector<16x1xf32>
    %22 = vector.broadcast %21 : vector<16x1xf32> to vector<16x32xf32>
    %23 = arith.subf %15, %22 : vector<16x32xf32>
    %24 = vector.broadcast %21 : vector<16x1xf32> to vector<16x32xf32>
    %25 = arith.subf %15, %24 : vector<16x32xf32>
    %26 = arith.mulf %23, %25 : vector<16x32xf32>
    %cst_17 = arith.constant dense<0.000000e+00> : vector<16xf32>
    %27 = vector.multi_reduction <add>, %26, %cst_17 [1] : vector<16x32xf32> to vector<16xf32>
    %28 = vector.shape_cast %27 : vector<16xf32> to vector<16x1xf32>
    %cst_18 = arith.constant 3.200000e+01 : f32
    %29 = vector.broadcast %cst_18 : f32 to vector<16x1xf32>
    %30 = arith.divf %28, %29 : vector<16x1xf32>
    %31 = vector.broadcast %21 : vector<16x1xf32> to vector<16x32xf32>
    %32 = arith.subf %15, %31 : vector<16x32xf32>
    %cst_19 = arith.constant 9.99999974E-6 : f32
    %33 = vector.broadcast %cst_19 : f32 to vector<16x1xf32>
    %34 = arith.addf %30, %33 : vector<16x1xf32>
    %35 = math.rsqrt %34 : vector<16x1xf32>
    %36 = vector.broadcast %35 : vector<16x1xf32> to vector<16x32xf32>
    %37 = arith.mulf %32, %36 : vector<16x32xf32>
    %38 = vector.broadcast %16 : vector<1x32xf32> to vector<16x32xf32>
    %39 = arith.mulf %37, %38 : vector<16x32xf32>
    %40 = vector.broadcast %17 : vector<1x32xf32> to vector<16x32xf32>
    %41 = arith.addf %39, %40 : vector<16x32xf32>
    %c0_20 = arith.constant 0 : index
    %c0_21 = arith.constant 0 : index
    %42 = vector.load %arg8[%c0_20, %c0_21] : memref<16x32xf32, #tpu.memory_space<vmem>>, vector<16x32xf32>
    tpu.vector_store %arg8[%c0_20, %c0_21], %41 {strides = array<i32>} : memref<16x32xf32, #tpu.memory_space<vmem>>, vector<16x32xf32>,
    return
  }
  func.func @transform_0(%arg0: i32) -> (i32, i32) {
    %c0_i32 = arith.constant 0 : i32
    %c0_i32_0 = arith.constant 0 : i32
    return %arg0, %c0_i32 : i32, i32
  }
  func.func @transform_1(%arg0: i32) -> (i32, i32) {
    %c0_i32 = arith.constant 0 : i32
    %c0_i32_0 = arith.constant 0 : i32
    %c0_i32_1 = arith.constant 0 : i32
    return %c0_i32, %c0_i32_0 : i32, i32
  }
  func.func @transform_2(%arg0: i32) -> (i32, i32) {
    %c0_i32 = arith.constant 0 : i32
    %c0_i32_0 = arith.constant 0 : i32
    %c0_i32_1 = arith.constant 0 : i32
    return %c0_i32, %c0_i32_0 : i32, i32
  }
  func.func @transform_3(%arg0: i32) -> (i32, i32) {
    %c0_i32 = arith.constant 0 : i32
    %c0_i32_0 = arith.constant 0 : i32
    %c0_i32_1 = arith.constant 0 : i32
    return %c0_i32, %c0_i32_0 : i32, i32
  }
  func.func @transform_4(%arg0: i32) -> (i32, i32) {
    %c0_i32 = arith.constant 0 : i32
    %c0_i32_0 = arith.constant 0 : i32
    %c0_i32_1 = arith.constant 0 : i32
    return %c0_i32, %c0_i32_0 : i32, i32
  }
  func.func @transform_5(%arg0: i32) -> (i32, i32) {
    %c0_i32 = arith.constant 0 : i32
    %c0_i32_0 = arith.constant 0 : i32
    %c0_i32_1 = arith.constant 0 : i32
    return %c0_i32, %c0_i32_0 : i32, i32
  }
  func.func @transform_6(%arg0: i32) -> (i32, i32) {
    %c0_i32 = arith.constant 0 : i32
    %c0_i32_0 = arith.constant 0 : i32
    %c0_i32_1 = arith.constant 0 : i32
    return %c0_i32, %c0_i32_0 : i32, i32
  }
  func.func @transform_7(%arg0: i32) -> (i32, i32) {
    %c0_i32 = arith.constant 0 : i32
    %c0_i32_0 = arith.constant 0 : i32
    return %arg0, %c0_i32 : i32, i32
  }
}

module attributes {stable_mosaic.version = 11 : i64} {
  func.func @kernel(%arg0: i32, %arg1: i32, %arg2: i32, %arg3: memref<1x8x32xf32, #tpu.memory_space<vmem>>, %arg4: memref<1x8x32xf32, #tpu.memory_space<vmem>>, %arg5: memref<1x8x32xf32, #tpu.memory_space<vmem>>, %arg6: memref<1x8x32xf32, #tpu.memory_space<vmem>>, %arg7: memref<1x8x32xf32, #tpu.memory_space<vmem>>, %arg8: memref<1x8x32xf32, #tpu.memory_space<vmem>>, %arg9: memref<32x32xbf16, #tpu.memory_space<vmem>>, %arg10: memref<1x32xf32, #tpu.memory_space<vmem>>, %arg11: memref<32x32xbf16, #tpu.memory_space<vmem>>, %arg12: memref<1x32xf32, #tpu.memory_space<vmem>>, %arg13: memref<32x32xbf16, #tpu.memory_space<vmem>>, %arg14: memref<1x32xf32, #tpu.memory_space<vmem>>, %arg15: memref<32x32xbf16, #tpu.memory_space<vmem>>, %arg16: memref<1x32xf32, #tpu.memory_space<vmem>>, %arg17: memref<1x32xf32, #tpu.memory_space<vmem>>, %arg18: memref<1x32xf32, #tpu.memory_space<vmem>>, %arg19: memref<1x8x32xf32, #tpu.memory_space<vmem>>, %arg20: memref<8x32xf32, #tpu.memory_space<vmem>>, %arg21: memref<2x8x1xf32, #tpu.memory_space<vmem>>, %arg22: memref<2x8x1xf32, #tpu.memory_space<vmem>>, %arg23: memref<8x32xf32, #tpu.memory_space<vmem>>) attributes {dimension_semantics = [#tpu.dimension_semantics<parallel>, #tpu.dimension_semantics<parallel>, #tpu.dimension_semantics<arbitrary>], iteration_bounds = array<i64: 2, 1, 1>, scalar_prefetch = 0 : i64, scratch_operands = 4 : i64, tpu.core_type = #tpu.core_type<tc>, window_params = [{transform_indices = @transform_0, window_bounds = array<i64: 1, 8, 32>}, {transform_indices = @transform_1, window_bounds = array<i64: 1, 8, 32>}, {transform_indices = @transform_2, window_bounds = array<i64: 1, 8, 32>}, {transform_indices = @transform_3, window_bounds = array<i64: 1, 8, 32>}, {transform_indices = @transform_4, window_bounds = array<i64: 1, 8, 32>}, {transform_indices = @transform_5, window_bounds = array<i64: 1, 8, 32>}, {pipeline_mode = #tpu.pipeline_mode<synchronous>, transform_indices = @transform_6, window_bounds = array<i64: 32, 32>}, {pipeline_mode = #tpu.pipeline_mode<synchronous>, transform_indices = @transform_7, window_bounds = array<i64: 1, 32>}, {pipeline_mode = #tpu.pipeline_mode<synchronous>, transform_indices = @transform_8, window_bounds = array<i64: 32, 32>}, {pipeline_mode = #tpu.pipeline_mode<synchronous>, transform_indices = @transform_9, window_bounds = array<i64: 1, 32>}, {pipeline_mode = #tpu.pipeline_mode<synchronous>, transform_indices = @transform_10, window_bounds = array<i64: 32, 32>}, {pipeline_mode = #tpu.pipeline_mode<synchronous>, transform_indices = @transform_11, window_bounds = array<i64: 1, 32>}, {pipeline_mode = #tpu.pipeline_mode<synchronous>, transform_indices = @transform_12, window_bounds = array<i64: 32, 32>}, {pipeline_mode = #tpu.pipeline_mode<synchronous>, transform_indices = @transform_13, window_bounds = array<i64: 1, 32>}, {pipeline_mode = #tpu.pipeline_mode<synchronous>, transform_indices = @transform_14, window_bounds = array<i64: 1, 32>}, {pipeline_mode = #tpu.pipeline_mode<synchronous>, transform_indices = @transform_15, window_bounds = array<i64: 1, 32>}, {transform_indices = @transform_16, window_bounds = array<i64: 1, 8, 32>}]} {
    %c0_i32 = arith.constant 0 : i32
    %0 = arith.cmpi eq, %arg2, %c0_i32 : i32
    %1 = arith.extui %0 : i1 to i32
    %c0_i32_0 = arith.constant 0 : i32
    %2 = arith.cmpi ne, %1, %c0_i32_0 : i32
    scf.if %2 {
      %c0_60 = arith.constant 0 : index
      %c0_61 = arith.constant 0 : index
      %c0_62 = arith.constant 0 : index
      %95 = vector.load %arg3[%c0_60, %c0_61, %c0_62] : memref<1x8x32xf32, #tpu.memory_space<vmem>>, vector<1x8x32xf32>
      %96 = vector.shape_cast %95 : vector<1x8x32xf32> to vector<8x32xf32>
      %c0_63 = arith.constant 0 : index
      %c0_64 = arith.constant 0 : index
      %c0_65 = arith.constant 0 : index
      %97 = vector.load %arg4[%c0_63, %c0_64, %c0_65] : memref<1x8x32xf32, #tpu.memory_space<vmem>>, vector<1x8x32xf32>
      %98 = vector.shape_cast %97 : vector<1x8x32xf32> to vector<8x32xf32>
      %99 = arith.addf %96, %98 : vector<8x32xf32>
      %100 = arith.truncf %99 : vector<8x32xf32> to vector<8x32xbf16>
      %c0_66 = arith.constant 0 : index
      %c0_67 = arith.constant 0 : index
      %101 = vector.load %arg9[%c0_66, %c0_67] : memref<32x32xbf16, #tpu.memory_space<vmem>>, vector<32x32xbf16>
      %cst_68 = arith.constant dense<0.000000e+00> : vector<8x32xf32>
      %102 = tpu.matmul %100, %101, %cst_68 {dimension_numbers = #tpu.dot_dimension_numbers<[1], [0], [0], [1], [0, 0, 1, 1], [], []>} : vector<8x32xbf16>, vector<32x32xbf16>, vector<8x32xf32> -> vector<8x32xf32>
      %c0_69 = arith.constant 0 : index
      %c0_70 = arith.constant 0 : index
      %103 = vector.load %arg10[%c0_69, %c0_70] : memref<1x32xf32, #tpu.memory_space<vmem>>, vector<1x32xf32>
      %104 = vector.broadcast %103 : vector<1x32xf32> to vector<8x32xf32>
      %105 = arith.addf %102, %104 : vector<8x32xf32>
      %cst_71 = arith.constant 2.500000e-01 : f32
      %106 = vector.broadcast %cst_71 : f32 to vector<8x32xf32>
      %107 = arith.mulf %105, %106 : vector<8x32xf32>
      %c0_72 = arith.constant 0 : index
      %c0_73 = arith.constant 0 : index
      %108 = vector.load %arg20[%c0_72, %c0_73] : memref<8x32xf32, #tpu.memory_space<vmem>>, vector<8x32xf32>
      tpu.vector_store %arg20[%c0_72, %c0_73], %107 {strides = array<i32>} : memref<8x32xf32, #tpu.memory_space<vmem>>, vector<8x32xf32>,
      %cst_74 = arith.constant 0xFF800000 : f32
      %109 = vector.broadcast %cst_74 : f32 to vector<2x8x1xf32>
      %c0_75 = arith.constant 0 : index
      %c0_76 = arith.constant 0 : index
      %c0_77 = arith.constant 0 : index
      %110 = vector.load %arg21[%c0_75, %c0_76, %c0_77] : memref<2x8x1xf32, #tpu.memory_space<vmem>>, vector<2x8x1xf32>
      tpu.vector_store %arg21[%c0_75, %c0_76, %c0_77], %109 {strides = array<i32>} : memref<2x8x1xf32, #tpu.memory_space<vmem>>, vector<2x8x1xf32>,
      %cst_78 = arith.constant 0.000000e+00 : f32
      %111 = vector.broadcast %cst_78 : f32 to vector<2x8x1xf32>
      %c0_79 = arith.constant 0 : index
      %c0_80 = arith.constant 0 : index
      %c0_81 = arith.constant 0 : index
      %112 = vector.load %arg22[%c0_79, %c0_80, %c0_81] : memref<2x8x1xf32, #tpu.memory_space<vmem>>, vector<2x8x1xf32>
      tpu.vector_store %arg22[%c0_79, %c0_80, %c0_81], %111 {strides = array<i32>} : memref<2x8x1xf32, #tpu.memory_space<vmem>>, vector<2x8x1xf32>,
      %cst_82 = arith.constant 0.000000e+00 : f32
      %113 = vector.broadcast %cst_82 : f32 to vector<8x32xf32>
      %c0_83 = arith.constant 0 : index
      %c0_84 = arith.constant 0 : index
      %114 = vector.load %arg23[%c0_83, %c0_84] : memref<8x32xf32, #tpu.memory_space<vmem>>, vector<8x32xf32>
      tpu.vector_store %arg23[%c0_83, %c0_84], %113 {strides = array<i32>} : memref<8x32xf32, #tpu.memory_space<vmem>>, vector<8x32xf32>,
    } else {
    }
    %c0 = arith.constant 0 : index
    %c0_1 = arith.constant 0 : index
    %c0_2 = arith.constant 0 : index
    %3 = vector.load %arg5[%c0, %c0_1, %c0_2] : memref<1x8x32xf32, #tpu.memory_space<vmem>>, vector<1x8x32xf32>
    %4 = vector.shape_cast %3 : vector<1x8x32xf32> to vector<8x32xf32>
    %c0_3 = arith.constant 0 : index
    %c0_4 = arith.constant 0 : index
    %c0_5 = arith.constant 0 : index
    %5 = vector.load %arg6[%c0_3, %c0_4, %c0_5] : memref<1x8x32xf32, #tpu.memory_space<vmem>>, vector<1x8x32xf32>
    %6 = vector.shape_cast %5 : vector<1x8x32xf32> to vector<8x32xf32>
    %7 = arith.addf %4, %6 : vector<8x32xf32>
    %8 = arith.truncf %7 : vector<8x32xf32> to vector<8x32xbf16>
    %c0_6 = arith.constant 0 : index
    %c0_7 = arith.constant 0 : index
    %9 = vector.load %arg11[%c0_6, %c0_7] : memref<32x32xbf16, #tpu.memory_space<vmem>>, vector<32x32xbf16>
    %cst = arith.constant dense<0.000000e+00> : vector<8x32xf32>
    %10 = tpu.matmul %8, %9, %cst {dimension_numbers = #tpu.dot_dimension_numbers<[1], [0], [0], [1], [0, 0, 1, 1], [], []>} : vector<8x32xbf16>, vector<32x32xbf16>, vector<8x32xf32> -> vector<8x32xf32>
    %c0_8 = arith.constant 0 : index
    %c0_9 = arith.constant 0 : index
    %11 = vector.load %arg12[%c0_8, %c0_9] : memref<1x32xf32, #tpu.memory_space<vmem>>, vector<1x32xf32>
    %12 = vector.broadcast %11 : vector<1x32xf32> to vector<8x32xf32>
    %13 = arith.addf %10, %12 : vector<8x32xf32>
    %c0_10 = arith.constant 0 : index
    %c0_11 = arith.constant 0 : index
    %c0_12 = arith.constant 0 : index
    %14 = vector.load %arg7[%c0_10, %c0_11, %c0_12] : memref<1x8x32xf32, #tpu.memory_space<vmem>>, vector<1x8x32xf32>
    %15 = vector.shape_cast %14 : vector<1x8x32xf32> to vector<8x32xf32>
    %16 = arith.truncf %15 : vector<8x32xf32> to vector<8x32xbf16>
    %c0_13 = arith.constant 0 : index
    %c0_14 = arith.constant 0 : index
    %17 = vector.load %arg13[%c0_13, %c0_14] : memref<32x32xbf16, #tpu.memory_space<vmem>>, vector<32x32xbf16>
    %cst_15 = arith.constant dense<0.000000e+00> : vector<8x32xf32>
    %18 = tpu.matmul %16, %17, %cst_15 {dimension_numbers = #tpu.dot_dimension_numbers<[1], [0], [0], [1], [0, 0, 1, 1], [], []>} : vector<8x32xbf16>, vector<32x32xbf16>, vector<8x32xf32> -> vector<8x32xf32>
    %c0_16 = arith.constant 0 : index
    %c0_17 = arith.constant 0 : index
    %19 = vector.load %arg14[%c0_16, %c0_17] : memref<1x32xf32, #tpu.memory_space<vmem>>, vector<1x32xf32>
    %20 = vector.broadcast %19 : vector<1x32xf32> to vector<8x32xf32>
    %21 = arith.addf %18, %20 : vector<8x32xf32>
    %c0_18 = arith.constant 0 : index
    %c0_19 = arith.constant 0 : index
    %22 = vector.load %arg20[%c0_18, %c0_19] : memref<8x32xf32, #tpu.memory_space<vmem>>, vector<8x32xf32>
    %23 = arith.truncf %22 : vector<8x32xf32> to vector<8x32xbf16>
    %24 = arith.truncf %13 : vector<8x32xf32> to vector<8x32xbf16>
    %25 = arith.truncf %21 : vector<8x32xf32> to vector<8x32xbf16>
    %26 = vector.extract_strided_slice %23 {offsets = [0, 0], sizes = [8, 16], strides = [1, 1]} : vector<8x32xbf16> to vector<8x16xbf16>
    %27 = vector.extract_strided_slice %24 {offsets = [0, 0], sizes = [8, 16], strides = [1, 1]} : vector<8x32xbf16> to vector<8x16xbf16>
    %cst_20 = arith.constant dense<0.000000e+00> : vector<8x8xf32>
    %28 = tpu.matmul %26, %27, %cst_20 {dimension_numbers = #tpu.dot_dimension_numbers<[1], [1], [0], [0], [0, 0, 1, 0], [], []>} : vector<8x16xbf16>, vector<8x16xbf16>, vector<8x8xf32> -> vector<8x8xf32>
    %c0_21 = arith.constant 0 : index
    %c0_22 = arith.constant 0 : index
    %c0_23 = arith.constant 0 : index
    %29 = vector.load %arg21[%c0_21, %c0_22, %c0_23] : memref<2x8x1xf32, #tpu.memory_space<vmem>>, vector<1x8x1xf32>
    %30 = vector.shape_cast %29 : vector<1x8x1xf32> to vector<8x1xf32>
    %cst_24 = arith.constant dense<0xFF800000> : vector<8xf32>
    %31 = vector.multi_reduction <maximumf>, %28, %cst_24 [1] : vector<8x8xf32> to vector<8xf32>
    %32 = vector.shape_cast %31 : vector<8xf32> to vector<8x1xf32>
    %33 = arith.maximumf %30, %32 : vector<8x1xf32>
    %34 = arith.subf %30, %33 : vector<8x1xf32>
    %35 = math.exp %34 : vector<8x1xf32>
    %36 = vector.broadcast %33 : vector<8x1xf32> to vector<8x8xf32>
    %37 = arith.subf %28, %36 : vector<8x8xf32>
    %38 = math.exp %37 : vector<8x8xf32>
    %c0_25 = arith.constant 0 : index
    %c0_26 = arith.constant 0 : index
    %c0_27 = arith.constant 0 : index
    %39 = vector.load %arg22[%c0_25, %c0_26, %c0_27] : memref<2x8x1xf32, #tpu.memory_space<vmem>>, vector<1x8x1xf32>
    %40 = vector.shape_cast %39 : vector<1x8x1xf32> to vector<8x1xf32>
    %41 = arith.mulf %35, %40 : vector<8x1xf32>
    %cst_28 = arith.constant dense<0.000000e+00> : vector<8xf32>
    %42 = vector.multi_reduction <add>, %38, %cst_28 [1] : vector<8x8xf32> to vector<8xf32>
    %43 = vector.shape_cast %42 : vector<8xf32> to vector<8x1xf32>
    %44 = arith.addf %41, %43 : vector<8x1xf32>
    %c0_29 = arith.constant 0 : index
    %c0_30 = arith.constant 0 : index
    %c0_31 = arith.constant 0 : index
    %45 = vector.load %arg22[%c0_29, %c0_30, %c0_31] : memref<2x8x1xf32, #tpu.memory_space<vmem>>, vector<1x8x1xf32>
    %46 = vector.shape_cast %45 : vector<1x8x1xf32> to vector<8x1xf32>
    %47 = vector.shape_cast %44 : vector<8x1xf32> to vector<1x8x1xf32>
    tpu.vector_store %arg22[%c0_29, %c0_30, %c0_31], %47 {strides = array<i32>} : memref<2x8x1xf32, #tpu.memory_space<vmem>>, vector<1x8x1xf32>,
    %c0_32 = arith.constant 0 : index
    %c0_33 = arith.constant 0 : index
    %48 = vector.load %arg23[%c0_32, %c0_33] : memref<8x32xf32, #tpu.memory_space<vmem>>, vector<8x16xf32>
    %49 = vector.broadcast %35 : vector<8x1xf32> to vector<8x16xf32>
    %50 = arith.mulf %49, %48 : vector<8x16xf32>
    %51 = arith.truncf %38 : vector<8x8xf32> to vector<8x8xbf16>
    %52 = vector.extract_strided_slice %25 {offsets = [0, 0], sizes = [8, 16], strides = [1, 1]} : vector<8x32xbf16> to vector<8x16xbf16>
    %cst_34 = arith.constant dense<0.000000e+00> : vector<8x16xf32>
    %53 = tpu.matmul %51, %52, %cst_34 {dimension_numbers = #tpu.dot_dimension_numbers<[1], [0], [0], [1], [0, 0, 1, 1], [], []>} : vector<8x8xbf16>, vector<8x16xbf16>, vector<8x16xf32> -> vector<8x16xf32>
    %54 = arith.addf %50, %53 : vector<8x16xf32>
    %c0_35 = arith.constant 0 : index
    %c0_36 = arith.constant 0 : index
    %55 = vector.load %arg23[%c0_35, %c0_36] : memref<8x32xf32, #tpu.memory_space<vmem>>, vector<8x16xf32>
    tpu.vector_store %arg23[%c0_35, %c0_36], %54 {strides = array<i32>} : memref<8x32xf32, #tpu.memory_space<vmem>>, vector<8x16xf32>,
    %c0_37 = arith.constant 0 : index
    %c0_38 = arith.constant 0 : index
    %c0_39 = arith.constant 0 : index
    %56 = vector.load %arg21[%c0_37, %c0_38, %c0_39] : memref<2x8x1xf32, #tpu.memory_space<vmem>>, vector<1x8x1xf32>
    %57 = vector.shape_cast %56 : vector<1x8x1xf32> to vector<8x1xf32>
    %58 = vector.shape_cast %33 : vector<8x1xf32> to vector<1x8x1xf32>
    tpu.vector_store %arg21[%c0_37, %c0_38, %c0_39], %58 {strides = array<i32>} : memref<2x8x1xf32, #tpu.memory_space<vmem>>, vector<1x8x1xf32>,
    %59 = vector.extract_strided_slice %23 {offsets = [0, 16], sizes = [8, 16], strides = [1, 1]} : vector<8x32xbf16> to vector<8x16xbf16>
    %60 = vector.extract_strided_slice %24 {offsets = [0, 16], sizes = [8, 16], strides = [1, 1]} : vector<8x32xbf16> to vector<8x16xbf16>
    %cst_40 = arith.constant dense<0.000000e+00> : vector<8x8xf32>
    %61 = tpu.matmul %59, %60, %cst_40 {dimension_numbers = #tpu.dot_dimension_numbers<[1], [1], [0], [0], [0, 0, 1, 0], [], []>} : vector<8x16xbf16>, vector<8x16xbf16>, vector<8x8xf32> -> vector<8x8xf32>
    %c1 = arith.constant 1 : index
    %c0_41 = arith.constant 0 : index
    %c0_42 = arith.constant 0 : index
    %62 = vector.load %arg21[%c1, %c0_41, %c0_42] : memref<2x8x1xf32, #tpu.memory_space<vmem>>, vector<1x8x1xf32>
    %63 = vector.shape_cast %62 : vector<1x8x1xf32> to vector<8x1xf32>
    %cst_43 = arith.constant dense<0xFF800000> : vector<8xf32>
    %64 = vector.multi_reduction <maximumf>, %61, %cst_43 [1] : vector<8x8xf32> to vector<8xf32>
    %65 = vector.shape_cast %64 : vector<8xf32> to vector<8x1xf32>
    %66 = arith.maximumf %63, %65 : vector<8x1xf32>
    %67 = arith.subf %63, %66 : vector<8x1xf32>
    %68 = math.exp %67 : vector<8x1xf32>
    %69 = vector.broadcast %66 : vector<8x1xf32> to vector<8x8xf32>
    %70 = arith.subf %61, %69 : vector<8x8xf32>
    %71 = math.exp %70 : vector<8x8xf32>
    %c1_44 = arith.constant 1 : index
    %c0_45 = arith.constant 0 : index
    %c0_46 = arith.constant 0 : index
    %72 = vector.load %arg22[%c1_44, %c0_45, %c0_46] : memref<2x8x1xf32, #tpu.memory_space<vmem>>, vector<1x8x1xf32>
    %73 = vector.shape_cast %72 : vector<1x8x1xf32> to vector<8x1xf32>
    %74 = arith.mulf %68, %73 : vector<8x1xf32>
    %cst_47 = arith.constant dense<0.000000e+00> : vector<8xf32>
    %75 = vector.multi_reduction <add>, %71, %cst_47 [1] : vector<8x8xf32> to vector<8xf32>
    %76 = vector.shape_cast %75 : vector<8xf32> to vector<8x1xf32>
    %77 = arith.addf %74, %76 : vector<8x1xf32>
    %c1_48 = arith.constant 1 : index
    %c0_49 = arith.constant 0 : index
    %c0_50 = arith.constant 0 : index
    %78 = vector.load %arg22[%c1_48, %c0_49, %c0_50] : memref<2x8x1xf32, #tpu.memory_space<vmem>>, vector<1x8x1xf32>
    %79 = vector.shape_cast %78 : vector<1x8x1xf32> to vector<8x1xf32>
    %80 = vector.shape_cast %77 : vector<8x1xf32> to vector<1x8x1xf32>
    tpu.vector_store %arg22[%c1_48, %c0_49, %c0_50], %80 {strides = array<i32>} : memref<2x8x1xf32, #tpu.memory_space<vmem>>, vector<1x8x1xf32>,
    %c0_51 = arith.constant 0 : index
    %c16 = arith.constant 16 : index
    %81 = vector.load %arg23[%c0_51, %c16] : memref<8x32xf32, #tpu.memory_space<vmem>>, vector<8x16xf32>
    %82 = vector.broadcast %68 : vector<8x1xf32> to vector<8x16xf32>
    %83 = arith.mulf %82, %81 : vector<8x16xf32>
    %84 = arith.truncf %71 : vector<8x8xf32> to vector<8x8xbf16>
    %85 = vector.extract_strided_slice %25 {offsets = [0, 16], sizes = [8, 16], strides = [1, 1]} : vector<8x32xbf16> to vector<8x16xbf16>
    %cst_52 = arith.constant dense<0.000000e+00> : vector<8x16xf32>
    %86 = tpu.matmul %84, %85, %cst_52 {dimension_numbers = #tpu.dot_dimension_numbers<[1], [0], [0], [1], [0, 0, 1, 1], [], []>} : vector<8x8xbf16>, vector<8x16xbf16>, vector<8x16xf32> -> vector<8x16xf32>
    %87 = arith.addf %83, %86 : vector<8x16xf32>
    %c0_53 = arith.constant 0 : index
    %c16_54 = arith.constant 16 : index
    %88 = vector.load %arg23[%c0_53, %c16_54] : memref<8x32xf32, #tpu.memory_space<vmem>>, vector<8x16xf32>
    tpu.vector_store %arg23[%c0_53, %c16_54], %87 {strides = array<i32>} : memref<8x32xf32, #tpu.memory_space<vmem>>, vector<8x16xf32>,
    %c1_55 = arith.constant 1 : index
    %c0_56 = arith.constant 0 : index
    %c0_57 = arith.constant 0 : index
    %89 = vector.load %arg21[%c1_55, %c0_56, %c0_57] : memref<2x8x1xf32, #tpu.memory_space<vmem>>, vector<1x8x1xf32>
    %90 = vector.shape_cast %89 : vector<1x8x1xf32> to vector<8x1xf32>
    %91 = vector.shape_cast %66 : vector<8x1xf32> to vector<1x8x1xf32>
    tpu.vector_store %arg21[%c1_55, %c0_56, %c0_57], %91 {strides = array<i32>} : memref<2x8x1xf32, #tpu.memory_space<vmem>>, vector<1x8x1xf32>,
    %c0_i32_58 = arith.constant 0 : i32
    %92 = arith.cmpi eq, %arg2, %c0_i32_58 : i32
    %93 = arith.extui %92 : i1 to i32
    %c0_i32_59 = arith.constant 0 : i32
    %94 = arith.cmpi ne, %93, %c0_i32_59 : i32
    scf.if %94 {
      %c0_60 = arith.constant 0 : index
      %c0_61 = arith.constant 0 : index
      %95 = vector.load %arg23[%c0_60, %c0_61] : memref<8x32xf32, #tpu.memory_space<vmem>>, vector<8x32xf32>
      %c0_62 = arith.constant 0 : index
      %c0_63 = arith.constant 0 : index
      %c0_64 = arith.constant 0 : index
      %96 = vector.load %arg22[%c0_62, %c0_63, %c0_64] : memref<2x8x1xf32, #tpu.memory_space<vmem>>, vector<1x8x1xf32>
      %97 = vector.shape_cast %96 : vector<1x8x1xf32> to vector<8x1xf32>
      %98 = tpu.reciprocal %97 {approx = true} : vector<8x1xf32> -> vector<8x1xf32>
      %99 = vector.extract_strided_slice %95 {offsets = [0, 0], sizes = [8, 16], strides = [1, 1]} : vector<8x32xf32> to vector<8x16xf32>
      %100 = vector.broadcast %98 : vector<8x1xf32> to vector<8x16xf32>
      %101 = arith.mulf %99, %100 : vector<8x16xf32>
      %c1_65 = arith.constant 1 : index
      %c0_66 = arith.constant 0 : index
      %c0_67 = arith.constant 0 : index
      %102 = vector.load %arg22[%c1_65, %c0_66, %c0_67] : memref<2x8x1xf32, #tpu.memory_space<vmem>>, vector<1x8x1xf32>
      %103 = vector.shape_cast %102 : vector<1x8x1xf32> to vector<8x1xf32>
      %104 = tpu.reciprocal %103 {approx = true} : vector<8x1xf32> -> vector<8x1xf32>
      %105 = vector.extract_strided_slice %95 {offsets = [0, 16], sizes = [8, 16], strides = [1, 1]} : vector<8x32xf32> to vector<8x16xf32>
      %106 = vector.broadcast %104 : vector<8x1xf32> to vector<8x16xf32>
      %107 = arith.mulf %105, %106 : vector<8x16xf32>
      %108 = tpu.concatenate %101, %107 in 1 : vector<8x16xf32>, vector<8x16xf32> -> vector<8x32xf32>
      %109 = arith.truncf %108 : vector<8x32xf32> to vector<8x32xbf16>
      %c0_68 = arith.constant 0 : index
      %c0_69 = arith.constant 0 : index
      %110 = vector.load %arg15[%c0_68, %c0_69] : memref<32x32xbf16, #tpu.memory_space<vmem>>, vector<32x32xbf16>
      %cst_70 = arith.constant dense<0.000000e+00> : vector<8x32xf32>
      %111 = tpu.matmul %109, %110, %cst_70 {dimension_numbers = #tpu.dot_dimension_numbers<[1], [0], [0], [1], [0, 0, 1, 1], [], []>} : vector<8x32xbf16>, vector<32x32xbf16>, vector<8x32xf32> -> vector<8x32xf32>
      %c0_71 = arith.constant 0 : index
      %c0_72 = arith.constant 0 : index
      %112 = vector.load %arg16[%c0_71, %c0_72] : memref<1x32xf32, #tpu.memory_space<vmem>>, vector<1x32xf32>
      %113 = vector.broadcast %112 : vector<1x32xf32> to vector<8x32xf32>
      %114 = arith.addf %111, %113 : vector<8x32xf32>
      %c0_73 = arith.constant 0 : index
      %c0_74 = arith.constant 0 : index
      %c0_75 = arith.constant 0 : index
      %115 = vector.load %arg8[%c0_73, %c0_74, %c0_75] : memref<1x8x32xf32, #tpu.memory_space<vmem>>, vector<1x8x32xf32>
      %116 = vector.shape_cast %115 : vector<1x8x32xf32> to vector<8x32xf32>
      %117 = arith.addf %116, %114 : vector<8x32xf32>
      %c0_76 = arith.constant 0 : index
      %c0_77 = arith.constant 0 : index
      %118 = vector.load %arg17[%c0_76, %c0_77] : memref<1x32xf32, #tpu.memory_space<vmem>>, vector<1x32xf32>
      %c0_78 = arith.constant 0 : index
      %c0_79 = arith.constant 0 : index
      %119 = vector.load %arg18[%c0_78, %c0_79] : memref<1x32xf32, #tpu.memory_space<vmem>>, vector<1x32xf32>
      %cst_80 = arith.constant dense<0.000000e+00> : vector<8xf32>
      %120 = vector.multi_reduction <add>, %117, %cst_80 [1] : vector<8x32xf32> to vector<8xf32>
      %121 = vector.shape_cast %120 : vector<8xf32> to vector<8x1xf32>
      %cst_81 = arith.constant 3.200000e+01 : f32
      %122 = vector.broadcast %cst_81 : f32 to vector<8x1xf32>
      %123 = arith.divf %121, %122 : vector<8x1xf32>
      %124 = vector.broadcast %123 : vector<8x1xf32> to vector<8x32xf32>
      %125 = arith.subf %117, %124 : vector<8x32xf32>
      %126 = vector.broadcast %123 : vector<8x1xf32> to vector<8x32xf32>
      %127 = arith.subf %117, %126 : vector<8x32xf32>
      %128 = arith.mulf %125, %127 : vector<8x32xf32>
      %cst_82 = arith.constant dense<0.000000e+00> : vector<8xf32>
      %129 = vector.multi_reduction <add>, %128, %cst_82 [1] : vector<8x32xf32> to vector<8xf32>
      %130 = vector.shape_cast %129 : vector<8xf32> to vector<8x1xf32>
      %cst_83 = arith.constant 3.200000e+01 : f32
      %131 = vector.broadcast %cst_83 : f32 to vector<8x1xf32>
      %132 = arith.divf %130, %131 : vector<8x1xf32>
      %133 = vector.broadcast %123 : vector<8x1xf32> to vector<8x32xf32>
      %134 = arith.subf %117, %133 : vector<8x32xf32>
      %cst_84 = arith.constant 9.99999974E-6 : f32
      %135 = vector.broadcast %cst_84 : f32 to vector<8x1xf32>
      %136 = arith.addf %132, %135 : vector<8x1xf32>
      %137 = math.rsqrt %136 : vector<8x1xf32>
      %138 = vector.broadcast %137 : vector<8x1xf32> to vector<8x32xf32>
      %139 = arith.mulf %134, %138 : vector<8x32xf32>
      %140 = vector.broadcast %118 : vector<1x32xf32> to vector<8x32xf32>
      %141 = arith.mulf %139, %140 : vector<8x32xf32>
      %142 = vector.broadcast %119 : vector<1x32xf32> to vector<8x32xf32>
      %143 = arith.addf %141, %142 : vector<8x32xf32>
      %c0_85 = arith.constant 0 : index
      %c0_86 = arith.constant 0 : index
      %c0_87 = arith.constant 0 : index
      %144 = vector.load %arg19[%c0_85, %c0_86, %c0_87] : memref<1x8x32xf32, #tpu.memory_space<vmem>>, vector<1x8x32xf32>
      %145 = vector.shape_cast %144 : vector<1x8x32xf32> to vector<8x32xf32>
      %146 = vector.shape_cast %143 : vector<8x32xf32> to vector<1x8x32xf32>
      tpu.vector_store %arg19[%c0_85, %c0_86, %c0_87], %146 {strides = array<i32>} : memref<1x8x32xf32, #tpu.memory_space<vmem>>, vector<1x8x32xf32>,
    } else {
    }
    return
  }
  func.func @transform_0(%arg0: i32, %arg1: i32, %arg2: i32) -> (i32, i32, i32) {
    %c0_i32 = arith.constant 0 : i32
    %c0_i32_0 = arith.constant 0 : i32
    return %arg0, %arg1, %c0_i32 : i32, i32, i32
  }
  func.func @transform_1(%arg0: i32, %arg1: i32, %arg2: i32) -> (i32, i32, i32) {
    %c0_i32 = arith.constant 0 : i32
    %c0_i32_0 = arith.constant 0 : i32
    return %arg0, %arg1, %c0_i32 : i32, i32, i32
  }
  func.func @transform_2(%arg0: i32, %arg1: i32, %arg2: i32) -> (i32, i32, i32) {
    %c0_i32 = arith.constant 0 : i32
    %c0_i32_0 = arith.constant 0 : i32
    return %arg0, %arg2, %c0_i32 : i32, i32, i32
  }
  func.func @transform_3(%arg0: i32, %arg1: i32, %arg2: i32) -> (i32, i32, i32) {
    %c0_i32 = arith.constant 0 : i32
    %c0_i32_0 = arith.constant 0 : i32
    return %arg0, %arg2, %c0_i32 : i32, i32, i32
  }
  func.func @transform_4(%arg0: i32, %arg1: i32, %arg2: i32) -> (i32, i32, i32) {
    %c0_i32 = arith.constant 0 : i32
    %c0_i32_0 = arith.constant 0 : i32
    return %arg0, %arg2, %c0_i32 : i32, i32, i32
  }
  func.func @transform_5(%arg0: i32, %arg1: i32, %arg2: i32) -> (i32, i32, i32) {
    %c0_i32 = arith.constant 0 : i32
    %c0_i32_0 = arith.constant 0 : i32
    return %arg0, %arg1, %c0_i32 : i32, i32, i32
  }
  func.func @transform_6(%arg0: i32, %arg1: i32, %arg2: i32) -> (i32, i32) {
    %c0_i32 = arith.constant 0 : i32
    %c0_i32_0 = arith.constant 0 : i32
    %c0_i32_1 = arith.constant 0 : i32
    return %c0_i32, %c0_i32_0 : i32, i32
  }
  func.func @transform_7(%arg0: i32, %arg1: i32, %arg2: i32) -> (i32, i32) {
    %c0_i32 = arith.constant 0 : i32
    %c0_i32_0 = arith.constant 0 : i32
    %c0_i32_1 = arith.constant 0 : i32
    return %c0_i32, %c0_i32_0 : i32, i32
  }
  func.func @transform_8(%arg0: i32, %arg1: i32, %arg2: i32) -> (i32, i32) {
    %c0_i32 = arith.constant 0 : i32
    %c0_i32_0 = arith.constant 0 : i32
    %c0_i32_1 = arith.constant 0 : i32
    return %c0_i32, %c0_i32_0 : i32, i32
  }
  func.func @transform_9(%arg0: i32, %arg1: i32, %arg2: i32) -> (i32, i32) {
    %c0_i32 = arith.constant 0 : i32
    %c0_i32_0 = arith.constant 0 : i32
    %c0_i32_1 = arith.constant 0 : i32
    return %c0_i32, %c0_i32_0 : i32, i32
  }
  func.func @transform_10(%arg0: i32, %arg1: i32, %arg2: i32) -> (i32, i32) {
    %c0_i32 = arith.constant 0 : i32
    %c0_i32_0 = arith.constant 0 : i32
    %c0_i32_1 = arith.constant 0 : i32
    return %c0_i32, %c0_i32_0 : i32, i32
  }
  func.func @transform_11(%arg0: i32, %arg1: i32, %arg2: i32) -> (i32, i32) {
    %c0_i32 = arith.constant 0 : i32
    %c0_i32_0 = arith.constant 0 : i32
    %c0_i32_1 = arith.constant 0 : i32
    return %c0_i32, %c0_i32_0 : i32, i32
  }
  func.func @transform_12(%arg0: i32, %arg1: i32, %arg2: i32) -> (i32, i32) {
    %c0_i32 = arith.constant 0 : i32
    %c0_i32_0 = arith.constant 0 : i32
    %c0_i32_1 = arith.constant 0 : i32
    return %c0_i32, %c0_i32_0 : i32, i32
  }
  func.func @transform_13(%arg0: i32, %arg1: i32, %arg2: i32) -> (i32, i32) {
    %c0_i32 = arith.constant 0 : i32
    %c0_i32_0 = arith.constant 0 : i32
    %c0_i32_1 = arith.constant 0 : i32
    return %c0_i32, %c0_i32_0 : i32, i32
  }
  func.func @transform_14(%arg0: i32, %arg1: i32, %arg2: i32) -> (i32, i32) {
    %c0_i32 = arith.constant 0 : i32
    %c0_i32_0 = arith.constant 0 : i32
    %c0_i32_1 = arith.constant 0 : i32
    return %c0_i32, %c0_i32_0 : i32, i32
  }
  func.func @transform_15(%arg0: i32, %arg1: i32, %arg2: i32) -> (i32, i32) {
    %c0_i32 = arith.constant 0 : i32
    %c0_i32_0 = arith.constant 0 : i32
    %c0_i32_1 = arith.constant 0 : i32
    return %c0_i32, %c0_i32_0 : i32, i32
  }
  func.func @transform_16(%arg0: i32, %arg1: i32, %arg2: i32) -> (i32, i32, i32) {
    %c0_i32 = arith.constant 0 : i32
    %c0_i32_0 = arith.constant 0 : i32
    return %arg0, %arg1, %c0_i32 : i32, i32, i32
  }
}

module attributes {stable_mosaic.version = 11 : i64} {
  func.func @kernel(%arg0: i32, %arg1: i32, %arg2: i32, %arg3: memref<1x8x32xf32, #tpu.memory_space<vmem>>, %arg4: memref<1x8x32xf32, #tpu.memory_space<vmem>>, %arg5: memref<1x64x32xf32, #tpu.memory_space<vmem>>, %arg6: memref<1x64x32xf32, #tpu.memory_space<vmem>>, %arg7: memref<1x64x32xf32, #tpu.memory_space<vmem>>, %arg8: memref<1x8x32xf32, #tpu.memory_space<vmem>>, %arg9: memref<32x16xbf16, #tpu.memory_space<vmem>>, %arg10: memref<1x16xf32, #tpu.memory_space<vmem>>, %arg11: memref<32x16xbf16, #tpu.memory_space<vmem>>, %arg12: memref<1x16xf32, #tpu.memory_space<vmem>>, %arg13: memref<32x16xbf16, #tpu.memory_space<vmem>>, %arg14: memref<1x16xf32, #tpu.memory_space<vmem>>, %arg15: memref<16x32xbf16, #tpu.memory_space<vmem>>, %arg16: memref<1x32xf32, #tpu.memory_space<vmem>>, %arg17: memref<1x32xf32, #tpu.memory_space<vmem>>, %arg18: memref<1x32xf32, #tpu.memory_space<vmem>>, %arg19: memref<1x8x32xf32, #tpu.memory_space<vmem>>, %arg20: memref<8x16xf32, #tpu.memory_space<vmem>>, %arg21: memref<2x8x1xf32, #tpu.memory_space<vmem>>, %arg22: memref<2x8x1xf32, #tpu.memory_space<vmem>>, %arg23: memref<8x16xf32, #tpu.memory_space<vmem>>) attributes {dimension_semantics = [#tpu.dimension_semantics<parallel>, #tpu.dimension_semantics<parallel>, #tpu.dimension_semantics<arbitrary>], iteration_bounds = array<i64: 2, 1, 1>, scalar_prefetch = 0 : i64, scratch_operands = 4 : i64, tpu.core_type = #tpu.core_type<tc>, window_params = [{transform_indices = @transform_0, window_bounds = array<i64: 1, 8, 32>}, {transform_indices = @transform_1, window_bounds = array<i64: 1, 8, 32>}, {transform_indices = @transform_2, window_bounds = array<i64: 1, 64, 32>}, {transform_indices = @transform_3, window_bounds = array<i64: 1, 64, 32>}, {transform_indices = @transform_4, window_bounds = array<i64: 1, 64, 32>}, {transform_indices = @transform_5, window_bounds = array<i64: 1, 8, 32>}, {pipeline_mode = #tpu.pipeline_mode<synchronous>, transform_indices = @transform_6, window_bounds = array<i64: 32, 16>}, {pipeline_mode = #tpu.pipeline_mode<synchronous>, transform_indices = @transform_7, window_bounds = array<i64: 1, 16>}, {pipeline_mode = #tpu.pipeline_mode<synchronous>, transform_indices = @transform_8, window_bounds = array<i64: 32, 16>}, {pipeline_mode = #tpu.pipeline_mode<synchronous>, transform_indices = @transform_9, window_bounds = array<i64: 1, 16>}, {pipeline_mode = #tpu.pipeline_mode<synchronous>, transform_indices = @transform_10, window_bounds = array<i64: 32, 16>}, {pipeline_mode = #tpu.pipeline_mode<synchronous>, transform_indices = @transform_11, window_bounds = array<i64: 1, 16>}, {pipeline_mode = #tpu.pipeline_mode<synchronous>, transform_indices = @transform_12, window_bounds = array<i64: 16, 32>}, {pipeline_mode = #tpu.pipeline_mode<synchronous>, transform_indices = @transform_13, window_bounds = array<i64: 1, 32>}, {pipeline_mode = #tpu.pipeline_mode<synchronous>, transform_indices = @transform_14, window_bounds = array<i64: 1, 32>}, {pipeline_mode = #tpu.pipeline_mode<synchronous>, transform_indices = @transform_15, window_bounds = array<i64: 1, 32>}, {transform_indices = @transform_16, window_bounds = array<i64: 1, 8, 32>}]} {
    %c0_i32 = arith.constant 0 : i32
    %0 = arith.cmpi eq, %arg2, %c0_i32 : i32
    %1 = arith.extui %0 : i1 to i32
    %c0_i32_0 = arith.constant 0 : i32
    %2 = arith.cmpi ne, %1, %c0_i32_0 : i32
    scf.if %2 {
      %c0_60 = arith.constant 0 : index
      %c0_61 = arith.constant 0 : index
      %c0_62 = arith.constant 0 : index
      %95 = vector.load %arg3[%c0_60, %c0_61, %c0_62] : memref<1x8x32xf32, #tpu.memory_space<vmem>>, vector<1x8x32xf32>
      %96 = vector.shape_cast %95 : vector<1x8x32xf32> to vector<8x32xf32>
      %c0_63 = arith.constant 0 : index
      %c0_64 = arith.constant 0 : index
      %c0_65 = arith.constant 0 : index
      %97 = vector.load %arg4[%c0_63, %c0_64, %c0_65] : memref<1x8x32xf32, #tpu.memory_space<vmem>>, vector<1x8x32xf32>
      %98 = vector.shape_cast %97 : vector<1x8x32xf32> to vector<8x32xf32>
      %99 = arith.addf %96, %98 : vector<8x32xf32>
      %100 = arith.truncf %99 : vector<8x32xf32> to vector<8x32xbf16>
      %c0_66 = arith.constant 0 : index
      %c0_67 = arith.constant 0 : index
      %101 = vector.load %arg9[%c0_66, %c0_67] : memref<32x16xbf16, #tpu.memory_space<vmem>>, vector<32x16xbf16>
      %cst_68 = arith.constant dense<0.000000e+00> : vector<8x16xf32>
      %102 = tpu.matmul %100, %101, %cst_68 {dimension_numbers = #tpu.dot_dimension_numbers<[1], [0], [0], [1], [0, 0, 1, 1], [], []>} : vector<8x32xbf16>, vector<32x16xbf16>, vector<8x16xf32> -> vector<8x16xf32>
      %c0_69 = arith.constant 0 : index
      %c0_70 = arith.constant 0 : index
      %103 = vector.load %arg10[%c0_69, %c0_70] : memref<1x16xf32, #tpu.memory_space<vmem>>, vector<1x16xf32>
      %104 = vector.broadcast %103 : vector<1x16xf32> to vector<8x16xf32>
      %105 = arith.addf %102, %104 : vector<8x16xf32>
      %cst_71 = arith.constant 0.353553385 : f32
      %106 = vector.broadcast %cst_71 : f32 to vector<8x16xf32>
      %107 = arith.mulf %105, %106 : vector<8x16xf32>
      %c0_72 = arith.constant 0 : index
      %c0_73 = arith.constant 0 : index
      %108 = vector.load %arg20[%c0_72, %c0_73] : memref<8x16xf32, #tpu.memory_space<vmem>>, vector<8x16xf32>
      tpu.vector_store %arg20[%c0_72, %c0_73], %107 {strides = array<i32>} : memref<8x16xf32, #tpu.memory_space<vmem>>, vector<8x16xf32>,
      %cst_74 = arith.constant 0xFF800000 : f32
      %109 = vector.broadcast %cst_74 : f32 to vector<2x8x1xf32>
      %c0_75 = arith.constant 0 : index
      %c0_76 = arith.constant 0 : index
      %c0_77 = arith.constant 0 : index
      %110 = vector.load %arg21[%c0_75, %c0_76, %c0_77] : memref<2x8x1xf32, #tpu.memory_space<vmem>>, vector<2x8x1xf32>
      tpu.vector_store %arg21[%c0_75, %c0_76, %c0_77], %109 {strides = array<i32>} : memref<2x8x1xf32, #tpu.memory_space<vmem>>, vector<2x8x1xf32>,
      %cst_78 = arith.constant 0.000000e+00 : f32
      %111 = vector.broadcast %cst_78 : f32 to vector<2x8x1xf32>
      %c0_79 = arith.constant 0 : index
      %c0_80 = arith.constant 0 : index
      %c0_81 = arith.constant 0 : index
      %112 = vector.load %arg22[%c0_79, %c0_80, %c0_81] : memref<2x8x1xf32, #tpu.memory_space<vmem>>, vector<2x8x1xf32>
      tpu.vector_store %arg22[%c0_79, %c0_80, %c0_81], %111 {strides = array<i32>} : memref<2x8x1xf32, #tpu.memory_space<vmem>>, vector<2x8x1xf32>,
      %cst_82 = arith.constant 0.000000e+00 : f32
      %113 = vector.broadcast %cst_82 : f32 to vector<8x16xf32>
      %c0_83 = arith.constant 0 : index
      %c0_84 = arith.constant 0 : index
      %114 = vector.load %arg23[%c0_83, %c0_84] : memref<8x16xf32, #tpu.memory_space<vmem>>, vector<8x16xf32>
      tpu.vector_store %arg23[%c0_83, %c0_84], %113 {strides = array<i32>} : memref<8x16xf32, #tpu.memory_space<vmem>>, vector<8x16xf32>,
    } else {
    }
    %c0 = arith.constant 0 : index
    %c0_1 = arith.constant 0 : index
    %c0_2 = arith.constant 0 : index
    %3 = vector.load %arg5[%c0, %c0_1, %c0_2] : memref<1x64x32xf32, #tpu.memory_space<vmem>>, vector<1x64x32xf32>
    %4 = vector.shape_cast %3 : vector<1x64x32xf32> to vector<64x32xf32>
    %c0_3 = arith.constant 0 : index
    %c0_4 = arith.constant 0 : index
    %c0_5 = arith.constant 0 : index
    %5 = vector.load %arg6[%c0_3, %c0_4, %c0_5] : memref<1x64x32xf32, #tpu.memory_space<vmem>>, vector<1x64x32xf32>
    %6 = vector.shape_cast %5 : vector<1x64x32xf32> to vector<64x32xf32>
    %7 = arith.addf %4, %6 : vector<64x32xf32>
    %8 = arith.truncf %7 : vector<64x32xf32> to vector<64x32xbf16>
    %c0_6 = arith.constant 0 : index
    %c0_7 = arith.constant 0 : index
    %9 = vector.load %arg11[%c0_6, %c0_7] : memref<32x16xbf16, #tpu.memory_space<vmem>>, vector<32x16xbf16>
    %cst = arith.constant dense<0.000000e+00> : vector<64x16xf32>
    %10 = tpu.matmul %8, %9, %cst {dimension_numbers = #tpu.dot_dimension_numbers<[1], [0], [0], [1], [0, 0, 1, 1], [], []>} : vector<64x32xbf16>, vector<32x16xbf16>, vector<64x16xf32> -> vector<64x16xf32>
    %c0_8 = arith.constant 0 : index
    %c0_9 = arith.constant 0 : index
    %11 = vector.load %arg12[%c0_8, %c0_9] : memref<1x16xf32, #tpu.memory_space<vmem>>, vector<1x16xf32>
    %12 = vector.broadcast %11 : vector<1x16xf32> to vector<64x16xf32>
    %13 = arith.addf %10, %12 : vector<64x16xf32>
    %c0_10 = arith.constant 0 : index
    %c0_11 = arith.constant 0 : index
    %c0_12 = arith.constant 0 : index
    %14 = vector.load %arg7[%c0_10, %c0_11, %c0_12] : memref<1x64x32xf32, #tpu.memory_space<vmem>>, vector<1x64x32xf32>
    %15 = vector.shape_cast %14 : vector<1x64x32xf32> to vector<64x32xf32>
    %16 = arith.truncf %15 : vector<64x32xf32> to vector<64x32xbf16>
    %c0_13 = arith.constant 0 : index
    %c0_14 = arith.constant 0 : index
    %17 = vector.load %arg13[%c0_13, %c0_14] : memref<32x16xbf16, #tpu.memory_space<vmem>>, vector<32x16xbf16>
    %cst_15 = arith.constant dense<0.000000e+00> : vector<64x16xf32>
    %18 = tpu.matmul %16, %17, %cst_15 {dimension_numbers = #tpu.dot_dimension_numbers<[1], [0], [0], [1], [0, 0, 1, 1], [], []>} : vector<64x32xbf16>, vector<32x16xbf16>, vector<64x16xf32> -> vector<64x16xf32>
    %c0_16 = arith.constant 0 : index
    %c0_17 = arith.constant 0 : index
    %19 = vector.load %arg14[%c0_16, %c0_17] : memref<1x16xf32, #tpu.memory_space<vmem>>, vector<1x16xf32>
    %20 = vector.broadcast %19 : vector<1x16xf32> to vector<64x16xf32>
    %21 = arith.addf %18, %20 : vector<64x16xf32>
    %c0_18 = arith.constant 0 : index
    %c0_19 = arith.constant 0 : index
    %22 = vector.load %arg20[%c0_18, %c0_19] : memref<8x16xf32, #tpu.memory_space<vmem>>, vector<8x16xf32>
    %23 = arith.truncf %22 : vector<8x16xf32> to vector<8x16xbf16>
    %24 = arith.truncf %13 : vector<64x16xf32> to vector<64x16xbf16>
    %25 = arith.truncf %21 : vector<64x16xf32> to vector<64x16xbf16>
    %26 = vector.extract_strided_slice %23 {offsets = [0, 0], sizes = [8, 8], strides = [1, 1]} : vector<8x16xbf16> to vector<8x8xbf16>
    %27 = vector.extract_strided_slice %24 {offsets = [0, 0], sizes = [64, 8], strides = [1, 1]} : vector<64x16xbf16> to vector<64x8xbf16>
    %cst_20 = arith.constant dense<0.000000e+00> : vector<8x64xf32>
    %28 = tpu.matmul %26, %27, %cst_20 {dimension_numbers = #tpu.dot_dimension_numbers<[1], [1], [0], [0], [0, 0, 1, 0], [], []>} : vector<8x8xbf16>, vector<64x8xbf16>, vector<8x64xf32> -> vector<8x64xf32>
    %c0_21 = arith.constant 0 : index
    %c0_22 = arith.constant 0 : index
    %c0_23 = arith.constant 0 : index
    %29 = vector.load %arg21[%c0_21, %c0_22, %c0_23] : memref<2x8x1xf32, #tpu.memory_space<vmem>>, vector<1x8x1xf32>
    %30 = vector.shape_cast %29 : vector<1x8x1xf32> to vector<8x1xf32>
    %cst_24 = arith.constant dense<0xFF800000> : vector<8xf32>
    %31 = vector.multi_reduction <maximumf>, %28, %cst_24 [1] : vector<8x64xf32> to vector<8xf32>
    %32 = vector.shape_cast %31 : vector<8xf32> to vector<8x1xf32>
    %33 = arith.maximumf %30, %32 : vector<8x1xf32>
    %34 = arith.subf %30, %33 : vector<8x1xf32>
    %35 = math.exp %34 : vector<8x1xf32>
    %36 = vector.broadcast %33 : vector<8x1xf32> to vector<8x64xf32>
    %37 = arith.subf %28, %36 : vector<8x64xf32>
    %38 = math.exp %37 : vector<8x64xf32>
    %c0_25 = arith.constant 0 : index
    %c0_26 = arith.constant 0 : index
    %c0_27 = arith.constant 0 : index
    %39 = vector.load %arg22[%c0_25, %c0_26, %c0_27] : memref<2x8x1xf32, #tpu.memory_space<vmem>>, vector<1x8x1xf32>
    %40 = vector.shape_cast %39 : vector<1x8x1xf32> to vector<8x1xf32>
    %41 = arith.mulf %35, %40 : vector<8x1xf32>
    %cst_28 = arith.constant dense<0.000000e+00> : vector<8xf32>
    %42 = vector.multi_reduction <add>, %38, %cst_28 [1] : vector<8x64xf32> to vector<8xf32>
    %43 = vector.shape_cast %42 : vector<8xf32> to vector<8x1xf32>
    %44 = arith.addf %41, %43 : vector<8x1xf32>
    %c0_29 = arith.constant 0 : index
    %c0_30 = arith.constant 0 : index
    %c0_31 = arith.constant 0 : index
    %45 = vector.load %arg22[%c0_29, %c0_30, %c0_31] : memref<2x8x1xf32, #tpu.memory_space<vmem>>, vector<1x8x1xf32>
    %46 = vector.shape_cast %45 : vector<1x8x1xf32> to vector<8x1xf32>
    %47 = vector.shape_cast %44 : vector<8x1xf32> to vector<1x8x1xf32>
    tpu.vector_store %arg22[%c0_29, %c0_30, %c0_31], %47 {strides = array<i32>} : memref<2x8x1xf32, #tpu.memory_space<vmem>>, vector<1x8x1xf32>,
    %c0_32 = arith.constant 0 : index
    %c0_33 = arith.constant 0 : index
    %48 = vector.load %arg23[%c0_32, %c0_33] : memref<8x16xf32, #tpu.memory_space<vmem>>, vector<8x8xf32>
    %49 = vector.broadcast %35 : vector<8x1xf32> to vector<8x8xf32>
    %50 = arith.mulf %49, %48 : vector<8x8xf32>
    %51 = arith.truncf %38 : vector<8x64xf32> to vector<8x64xbf16>
    %52 = vector.extract_strided_slice %25 {offsets = [0, 0], sizes = [64, 8], strides = [1, 1]} : vector<64x16xbf16> to vector<64x8xbf16>
    %cst_34 = arith.constant dense<0.000000e+00> : vector<8x8xf32>
    %53 = tpu.matmul %51, %52, %cst_34 {dimension_numbers = #tpu.dot_dimension_numbers<[1], [0], [0], [1], [0, 0, 1, 1], [], []>} : vector<8x64xbf16>, vector<64x8xbf16>, vector<8x8xf32> -> vector<8x8xf32>
    %54 = arith.addf %50, %53 : vector<8x8xf32>
    %c0_35 = arith.constant 0 : index
    %c0_36 = arith.constant 0 : index
    %55 = vector.load %arg23[%c0_35, %c0_36] : memref<8x16xf32, #tpu.memory_space<vmem>>, vector<8x8xf32>
    tpu.vector_store %arg23[%c0_35, %c0_36], %54 {strides = array<i32>} : memref<8x16xf32, #tpu.memory_space<vmem>>, vector<8x8xf32>,
    %c0_37 = arith.constant 0 : index
    %c0_38 = arith.constant 0 : index
    %c0_39 = arith.constant 0 : index
    %56 = vector.load %arg21[%c0_37, %c0_38, %c0_39] : memref<2x8x1xf32, #tpu.memory_space<vmem>>, vector<1x8x1xf32>
    %57 = vector.shape_cast %56 : vector<1x8x1xf32> to vector<8x1xf32>
    %58 = vector.shape_cast %33 : vector<8x1xf32> to vector<1x8x1xf32>
    tpu.vector_store %arg21[%c0_37, %c0_38, %c0_39], %58 {strides = array<i32>} : memref<2x8x1xf32, #tpu.memory_space<vmem>>, vector<1x8x1xf32>,
    %59 = vector.extract_strided_slice %23 {offsets = [0, 8], sizes = [8, 8], strides = [1, 1]} : vector<8x16xbf16> to vector<8x8xbf16>
    %60 = vector.extract_strided_slice %24 {offsets = [0, 8], sizes = [64, 8], strides = [1, 1]} : vector<64x16xbf16> to vector<64x8xbf16>
    %cst_40 = arith.constant dense<0.000000e+00> : vector<8x64xf32>
    %61 = tpu.matmul %59, %60, %cst_40 {dimension_numbers = #tpu.dot_dimension_numbers<[1], [1], [0], [0], [0, 0, 1, 0], [], []>} : vector<8x8xbf16>, vector<64x8xbf16>, vector<8x64xf32> -> vector<8x64xf32>
    %c1 = arith.constant 1 : index
    %c0_41 = arith.constant 0 : index
    %c0_42 = arith.constant 0 : index
    %62 = vector.load %arg21[%c1, %c0_41, %c0_42] : memref<2x8x1xf32, #tpu.memory_space<vmem>>, vector<1x8x1xf32>
    %63 = vector.shape_cast %62 : vector<1x8x1xf32> to vector<8x1xf32>
    %cst_43 = arith.constant dense<0xFF800000> : vector<8xf32>
    %64 = vector.multi_reduction <maximumf>, %61, %cst_43 [1] : vector<8x64xf32> to vector<8xf32>
    %65 = vector.shape_cast %64 : vector<8xf32> to vector<8x1xf32>
    %66 = arith.maximumf %63, %65 : vector<8x1xf32>
    %67 = arith.subf %63, %66 : vector<8x1xf32>
    %68 = math.exp %67 : vector<8x1xf32>
    %69 = vector.broadcast %66 : vector<8x1xf32> to vector<8x64xf32>
    %70 = arith.subf %61, %69 : vector<8x64xf32>
    %71 = math.exp %70 : vector<8x64xf32>
    %c1_44 = arith.constant 1 : index
    %c0_45 = arith.constant 0 : index
    %c0_46 = arith.constant 0 : index
    %72 = vector.load %arg22[%c1_44, %c0_45, %c0_46] : memref<2x8x1xf32, #tpu.memory_space<vmem>>, vector<1x8x1xf32>
    %73 = vector.shape_cast %72 : vector<1x8x1xf32> to vector<8x1xf32>
    %74 = arith.mulf %68, %73 : vector<8x1xf32>
    %cst_47 = arith.constant dense<0.000000e+00> : vector<8xf32>
    %75 = vector.multi_reduction <add>, %71, %cst_47 [1] : vector<8x64xf32> to vector<8xf32>
    %76 = vector.shape_cast %75 : vector<8xf32> to vector<8x1xf32>
    %77 = arith.addf %74, %76 : vector<8x1xf32>
    %c1_48 = arith.constant 1 : index
    %c0_49 = arith.constant 0 : index
    %c0_50 = arith.constant 0 : index
    %78 = vector.load %arg22[%c1_48, %c0_49, %c0_50] : memref<2x8x1xf32, #tpu.memory_space<vmem>>, vector<1x8x1xf32>
    %79 = vector.shape_cast %78 : vector<1x8x1xf32> to vector<8x1xf32>
    %80 = vector.shape_cast %77 : vector<8x1xf32> to vector<1x8x1xf32>
    tpu.vector_store %arg22[%c1_48, %c0_49, %c0_50], %80 {strides = array<i32>} : memref<2x8x1xf32, #tpu.memory_space<vmem>>, vector<1x8x1xf32>,
    %c0_51 = arith.constant 0 : index
    %c8 = arith.constant 8 : index
    %81 = vector.load %arg23[%c0_51, %c8] : memref<8x16xf32, #tpu.memory_space<vmem>>, vector<8x8xf32>
    %82 = vector.broadcast %68 : vector<8x1xf32> to vector<8x8xf32>
    %83 = arith.mulf %82, %81 : vector<8x8xf32>
    %84 = arith.truncf %71 : vector<8x64xf32> to vector<8x64xbf16>
    %85 = vector.extract_strided_slice %25 {offsets = [0, 8], sizes = [64, 8], strides = [1, 1]} : vector<64x16xbf16> to vector<64x8xbf16>
    %cst_52 = arith.constant dense<0.000000e+00> : vector<8x8xf32>
    %86 = tpu.matmul %84, %85, %cst_52 {dimension_numbers = #tpu.dot_dimension_numbers<[1], [0], [0], [1], [0, 0, 1, 1], [], []>} : vector<8x64xbf16>, vector<64x8xbf16>, vector<8x8xf32> -> vector<8x8xf32>
    %87 = arith.addf %83, %86 : vector<8x8xf32>
    %c0_53 = arith.constant 0 : index
    %c8_54 = arith.constant 8 : index
    %88 = vector.load %arg23[%c0_53, %c8_54] : memref<8x16xf32, #tpu.memory_space<vmem>>, vector<8x8xf32>
    tpu.vector_store %arg23[%c0_53, %c8_54], %87 {strides = array<i32>} : memref<8x16xf32, #tpu.memory_space<vmem>>, vector<8x8xf32>,
    %c1_55 = arith.constant 1 : index
    %c0_56 = arith.constant 0 : index
    %c0_57 = arith.constant 0 : index
    %89 = vector.load %arg21[%c1_55, %c0_56, %c0_57] : memref<2x8x1xf32, #tpu.memory_space<vmem>>, vector<1x8x1xf32>
    %90 = vector.shape_cast %89 : vector<1x8x1xf32> to vector<8x1xf32>
    %91 = vector.shape_cast %66 : vector<8x1xf32> to vector<1x8x1xf32>
    tpu.vector_store %arg21[%c1_55, %c0_56, %c0_57], %91 {strides = array<i32>} : memref<2x8x1xf32, #tpu.memory_space<vmem>>, vector<1x8x1xf32>,
    %c0_i32_58 = arith.constant 0 : i32
    %92 = arith.cmpi eq, %arg2, %c0_i32_58 : i32
    %93 = arith.extui %92 : i1 to i32
    %c0_i32_59 = arith.constant 0 : i32
    %94 = arith.cmpi ne, %93, %c0_i32_59 : i32
    scf.if %94 {
      %c0_60 = arith.constant 0 : index
      %c0_61 = arith.constant 0 : index
      %95 = vector.load %arg23[%c0_60, %c0_61] : memref<8x16xf32, #tpu.memory_space<vmem>>, vector<8x16xf32>
      %c0_62 = arith.constant 0 : index
      %c0_63 = arith.constant 0 : index
      %c0_64 = arith.constant 0 : index
      %96 = vector.load %arg22[%c0_62, %c0_63, %c0_64] : memref<2x8x1xf32, #tpu.memory_space<vmem>>, vector<1x8x1xf32>
      %97 = vector.shape_cast %96 : vector<1x8x1xf32> to vector<8x1xf32>
      %98 = tpu.reciprocal %97 {approx = true} : vector<8x1xf32> -> vector<8x1xf32>
      %99 = vector.extract_strided_slice %95 {offsets = [0, 0], sizes = [8, 8], strides = [1, 1]} : vector<8x16xf32> to vector<8x8xf32>
      %100 = vector.broadcast %98 : vector<8x1xf32> to vector<8x8xf32>
      %101 = arith.mulf %99, %100 : vector<8x8xf32>
      %c1_65 = arith.constant 1 : index
      %c0_66 = arith.constant 0 : index
      %c0_67 = arith.constant 0 : index
      %102 = vector.load %arg22[%c1_65, %c0_66, %c0_67] : memref<2x8x1xf32, #tpu.memory_space<vmem>>, vector<1x8x1xf32>
      %103 = vector.shape_cast %102 : vector<1x8x1xf32> to vector<8x1xf32>
      %104 = tpu.reciprocal %103 {approx = true} : vector<8x1xf32> -> vector<8x1xf32>
      %105 = vector.extract_strided_slice %95 {offsets = [0, 8], sizes = [8, 8], strides = [1, 1]} : vector<8x16xf32> to vector<8x8xf32>
      %106 = vector.broadcast %104 : vector<8x1xf32> to vector<8x8xf32>
      %107 = arith.mulf %105, %106 : vector<8x8xf32>
      %108 = tpu.concatenate %101, %107 in 1 : vector<8x8xf32>, vector<8x8xf32> -> vector<8x16xf32>
      %109 = arith.truncf %108 : vector<8x16xf32> to vector<8x16xbf16>
      %c0_68 = arith.constant 0 : index
      %c0_69 = arith.constant 0 : index
      %110 = vector.load %arg15[%c0_68, %c0_69] : memref<16x32xbf16, #tpu.memory_space<vmem>>, vector<16x32xbf16>
      %cst_70 = arith.constant dense<0.000000e+00> : vector<8x32xf32>
      %111 = tpu.matmul %109, %110, %cst_70 {dimension_numbers = #tpu.dot_dimension_numbers<[1], [0], [0], [1], [0, 0, 1, 1], [], []>} : vector<8x16xbf16>, vector<16x32xbf16>, vector<8x32xf32> -> vector<8x32xf32>
      %c0_71 = arith.constant 0 : index
      %c0_72 = arith.constant 0 : index
      %112 = vector.load %arg16[%c0_71, %c0_72] : memref<1x32xf32, #tpu.memory_space<vmem>>, vector<1x32xf32>
      %113 = vector.broadcast %112 : vector<1x32xf32> to vector<8x32xf32>
      %114 = arith.addf %111, %113 : vector<8x32xf32>
      %c0_73 = arith.constant 0 : index
      %c0_74 = arith.constant 0 : index
      %c0_75 = arith.constant 0 : index
      %115 = vector.load %arg8[%c0_73, %c0_74, %c0_75] : memref<1x8x32xf32, #tpu.memory_space<vmem>>, vector<1x8x32xf32>
      %116 = vector.shape_cast %115 : vector<1x8x32xf32> to vector<8x32xf32>
      %117 = arith.addf %116, %114 : vector<8x32xf32>
      %c0_76 = arith.constant 0 : index
      %c0_77 = arith.constant 0 : index
      %118 = vector.load %arg17[%c0_76, %c0_77] : memref<1x32xf32, #tpu.memory_space<vmem>>, vector<1x32xf32>
      %c0_78 = arith.constant 0 : index
      %c0_79 = arith.constant 0 : index
      %119 = vector.load %arg18[%c0_78, %c0_79] : memref<1x32xf32, #tpu.memory_space<vmem>>, vector<1x32xf32>
      %cst_80 = arith.constant dense<0.000000e+00> : vector<8xf32>
      %120 = vector.multi_reduction <add>, %117, %cst_80 [1] : vector<8x32xf32> to vector<8xf32>
      %121 = vector.shape_cast %120 : vector<8xf32> to vector<8x1xf32>
      %cst_81 = arith.constant 3.200000e+01 : f32
      %122 = vector.broadcast %cst_81 : f32 to vector<8x1xf32>
      %123 = arith.divf %121, %122 : vector<8x1xf32>
      %124 = vector.broadcast %123 : vector<8x1xf32> to vector<8x32xf32>
      %125 = arith.subf %117, %124 : vector<8x32xf32>
      %126 = vector.broadcast %123 : vector<8x1xf32> to vector<8x32xf32>
      %127 = arith.subf %117, %126 : vector<8x32xf32>
      %128 = arith.mulf %125, %127 : vector<8x32xf32>
      %cst_82 = arith.constant dense<0.000000e+00> : vector<8xf32>
      %129 = vector.multi_reduction <add>, %128, %cst_82 [1] : vector<8x32xf32> to vector<8xf32>
      %130 = vector.shape_cast %129 : vector<8xf32> to vector<8x1xf32>
      %cst_83 = arith.constant 3.200000e+01 : f32
      %131 = vector.broadcast %cst_83 : f32 to vector<8x1xf32>
      %132 = arith.divf %130, %131 : vector<8x1xf32>
      %133 = vector.broadcast %123 : vector<8x1xf32> to vector<8x32xf32>
      %134 = arith.subf %117, %133 : vector<8x32xf32>
      %cst_84 = arith.constant 9.99999974E-6 : f32
      %135 = vector.broadcast %cst_84 : f32 to vector<8x1xf32>
      %136 = arith.addf %132, %135 : vector<8x1xf32>
      %137 = math.rsqrt %136 : vector<8x1xf32>
      %138 = vector.broadcast %137 : vector<8x1xf32> to vector<8x32xf32>
      %139 = arith.mulf %134, %138 : vector<8x32xf32>
      %140 = vector.broadcast %118 : vector<1x32xf32> to vector<8x32xf32>
      %141 = arith.mulf %139, %140 : vector<8x32xf32>
      %142 = vector.broadcast %119 : vector<1x32xf32> to vector<8x32xf32>
      %143 = arith.addf %141, %142 : vector<8x32xf32>
      %c0_85 = arith.constant 0 : index
      %c0_86 = arith.constant 0 : index
      %c0_87 = arith.constant 0 : index
      %144 = vector.load %arg19[%c0_85, %c0_86, %c0_87] : memref<1x8x32xf32, #tpu.memory_space<vmem>>, vector<1x8x32xf32>
      %145 = vector.shape_cast %144 : vector<1x8x32xf32> to vector<8x32xf32>
      %146 = vector.shape_cast %143 : vector<8x32xf32> to vector<1x8x32xf32>
      tpu.vector_store %arg19[%c0_85, %c0_86, %c0_87], %146 {strides = array<i32>} : memref<1x8x32xf32, #tpu.memory_space<vmem>>, vector<1x8x32xf32>,
    } else {
    }
    return
  }
  func.func @transform_0(%arg0: i32, %arg1: i32, %arg2: i32) -> (i32, i32, i32) {
    %c0_i32 = arith.constant 0 : i32
    %c0_i32_0 = arith.constant 0 : i32
    return %arg0, %arg1, %c0_i32 : i32, i32, i32
  }
  func.func @transform_1(%arg0: i32, %arg1: i32, %arg2: i32) -> (i32, i32, i32) {
    %c0_i32 = arith.constant 0 : i32
    %c0_i32_0 = arith.constant 0 : i32
    return %arg0, %arg1, %c0_i32 : i32, i32, i32
  }
  func.func @transform_2(%arg0: i32, %arg1: i32, %arg2: i32) -> (i32, i32, i32) {
    %c0_i32 = arith.constant 0 : i32
    %c0_i32_0 = arith.constant 0 : i32
    return %arg0, %arg2, %c0_i32 : i32, i32, i32
  }
  func.func @transform_3(%arg0: i32, %arg1: i32, %arg2: i32) -> (i32, i32, i32) {
    %c0_i32 = arith.constant 0 : i32
    %c0_i32_0 = arith.constant 0 : i32
    return %arg0, %arg2, %c0_i32 : i32, i32, i32
  }
  func.func @transform_4(%arg0: i32, %arg1: i32, %arg2: i32) -> (i32, i32, i32) {
    %c0_i32 = arith.constant 0 : i32
    %c0_i32_0 = arith.constant 0 : i32
    return %arg0, %arg2, %c0_i32 : i32, i32, i32
  }
  func.func @transform_5(%arg0: i32, %arg1: i32, %arg2: i32) -> (i32, i32, i32) {
    %c0_i32 = arith.constant 0 : i32
    %c0_i32_0 = arith.constant 0 : i32
    return %arg0, %arg1, %c0_i32 : i32, i32, i32
  }
  func.func @transform_6(%arg0: i32, %arg1: i32, %arg2: i32) -> (i32, i32) {
    %c0_i32 = arith.constant 0 : i32
    %c0_i32_0 = arith.constant 0 : i32
    %c0_i32_1 = arith.constant 0 : i32
    return %c0_i32, %c0_i32_0 : i32, i32
  }
  func.func @transform_7(%arg0: i32, %arg1: i32, %arg2: i32) -> (i32, i32) {
    %c0_i32 = arith.constant 0 : i32
    %c0_i32_0 = arith.constant 0 : i32
    %c0_i32_1 = arith.constant 0 : i32
    return %c0_i32, %c0_i32_0 : i32, i32
  }
  func.func @transform_8(%arg0: i32, %arg1: i32, %arg2: i32) -> (i32, i32) {
    %c0_i32 = arith.constant 0 : i32
    %c0_i32_0 = arith.constant 0 : i32
    %c0_i32_1 = arith.constant 0 : i32
    return %c0_i32, %c0_i32_0 : i32, i32
  }
  func.func @transform_9(%arg0: i32, %arg1: i32, %arg2: i32) -> (i32, i32) {
    %c0_i32 = arith.constant 0 : i32
    %c0_i32_0 = arith.constant 0 : i32
    %c0_i32_1 = arith.constant 0 : i32
    return %c0_i32, %c0_i32_0 : i32, i32
  }
  func.func @transform_10(%arg0: i32, %arg1: i32, %arg2: i32) -> (i32, i32) {
    %c0_i32 = arith.constant 0 : i32
    %c0_i32_0 = arith.constant 0 : i32
    %c0_i32_1 = arith.constant 0 : i32
    return %c0_i32, %c0_i32_0 : i32, i32
  }
  func.func @transform_11(%arg0: i32, %arg1: i32, %arg2: i32) -> (i32, i32) {
    %c0_i32 = arith.constant 0 : i32
    %c0_i32_0 = arith.constant 0 : i32
    %c0_i32_1 = arith.constant 0 : i32
    return %c0_i32, %c0_i32_0 : i32, i32
  }
  func.func @transform_12(%arg0: i32, %arg1: i32, %arg2: i32) -> (i32, i32) {
    %c0_i32 = arith.constant 0 : i32
    %c0_i32_0 = arith.constant 0 : i32
    %c0_i32_1 = arith.constant 0 : i32
    return %c0_i32, %c0_i32_0 : i32, i32
  }
  func.func @transform_13(%arg0: i32, %arg1: i32, %arg2: i32) -> (i32, i32) {
    %c0_i32 = arith.constant 0 : i32
    %c0_i32_0 = arith.constant 0 : i32
    %c0_i32_1 = arith.constant 0 : i32
    return %c0_i32, %c0_i32_0 : i32, i32
  }
  func.func @transform_14(%arg0: i32, %arg1: i32, %arg2: i32) -> (i32, i32) {
    %c0_i32 = arith.constant 0 : i32
    %c0_i32_0 = arith.constant 0 : i32
    %c0_i32_1 = arith.constant 0 : i32
    return %c0_i32, %c0_i32_0 : i32, i32
  }
  func.func @transform_15(%arg0: i32, %arg1: i32, %arg2: i32) -> (i32, i32) {
    %c0_i32 = arith.constant 0 : i32
    %c0_i32_0 = arith.constant 0 : i32
    %c0_i32_1 = arith.constant 0 : i32
    return %c0_i32, %c0_i32_0 : i32, i32
  }
  func.func @transform_16(%arg0: i32, %arg1: i32, %arg2: i32) -> (i32, i32, i32) {
    %c0_i32 = arith.constant 0 : i32
    %c0_i32_0 = arith.constant 0 : i32
    return %arg0, %arg1, %c0_i32 : i32, i32, i32
  }
}

</mosaic_0001>

<bundles_post_ra>
// kernel: two_way_transformer.11
= control target key start
LH: loop header
LB: loop body
LE: loop exit
PB: predicated region body
PF: predicated region fallthrough
CT: control target
= control target key end

     0   :  { %v292_v0 = vmov 0.0   ;;  %vm293_vm0 = vmmov 0   ;;  %vm53_vm1 = vcmask 261120   ;;  %vm133_vm2 = vcmask 523264   ;;  %s383_s1 = inlined_call_operand.vmem [shape: bf16[32,64], index: 1, kind: input, shape index: {}]   ;;  %s384_s0 = inlined_call_operand.vmem [shape: f32[16,32], index: 0, kind: input, shape index: {}]   ;;  %s385_s3 = inlined_call_operand.vmem [shape: bf16[64,32], index: 3, kind: input, shape index: {}]   ;;  %s386_s2 = inlined_call_operand.vmem [shape: f32[1,64], index: 2, kind: input, shape index: {}]   ;;  %s387_s4 = inlined_call_operand.vmem [shape: f32[1,32], index: 4, kind: input, shape index: {}]   ;;  %s388_s5 = inlined_call_operand.vmem [shape: f32[1,32], index: 5, kind: input, shape index: {}]   ;;  %s389_s6 = inlined_call_operand.vmem [shape: f32[1,32], index: 6, kind: input, shape index: {}]   ;;  %s390_s7 = inlined_call_operand.vmem [shape: f32[16,32], index: 7, kind: output, shape index: {}]  }
   0x1   :  { %260 = vmatprep.subr.bf16.mxu0 %v292_v0  ;;  %v282_v1 = vld [vmem:[%s383_s1] sm:$0xff]   ;;  %264 = vmatprep.mubr.msk.bf16.mxu0 %vm293_vm0, %v292_v0  ;;  %v283_v2 = vld [vmem:[%s383_s1 + $0x8] sm:$0xff]   ;;  %v286_v8 = vld [vmem:[%s385_s3 + $0x10] sm:$0xff]  }
   0x2   :  { %268 = vmatprep.subr.bf16.mxu1 %v292_v0  ;;  %276 = vmatprep.mubr.msk.bf16.mxu1 %vm293_vm0, %v292_v0  ;;  %v27_v3 = vld [vmem:[%s384_s0] sm:$0xff]  ;;  %v28_v4 = vld [vmem:[%s384_s0 + $0x8] sm:$0xff]  ;;  %v287_v9 = vld [vmem:[%s385_s3 + $0x18] sm:$0xff]  }
   0x3   :  { %261 = vmatpush3.bf16.msra.mxu0 %v282_v1  ;;  %v284_v5 = vld [vmem:[%s385_s3] sm:$0xff]   ;;  %v285_v6 = vld [vmem:[%s385_s3 + $0x8] sm:$0xff]   ;;  %v29_v7 = vpack.c.bf16 %v28_v4, %v27_v3 }
   0x4   :  { %262 = vmatprep.subr.bf16.mxu0 %v292_v0  ;;  %269 = vmatpush3.bf16.msra.mxu1 %v284_v5  ;;  %v240_v10 = vld [vmem:[%s386_s2] ss:$0 sm:$0xff] }
   0x5   :  { %270 = vmatprep.subr.bf16.mxu1 %v292_v0  ;;  %v249_v21 = vld [vmem:[%s387_s4] ss:$0 sm:$0xff] }
   0x6   :  { %v250_v48 = vld [vmem:[%s388_s5] ss:$0 sm:$0xff] }
   0x7   :  { %263 = vmatpush3.bf16.msra.mxu0 %v283_v2  ;;  %v251_v50 = vld [vmem:[%s389_s6] ss:$0 sm:$0xff] }
   0x8   :  { %271 = vmatpush3.bf16.msra.mxu1 %v285_v6 }
   0x9   :  { %272 = vmatprep.subr.bf16.mxu1 %v292_v0 }
   0xa   :  { %265 = vmatmul.mubr.msk.bf16.vlgmr.msra.gmra.mrb[0].mxu0 %vm53_vm1, %v29_v7 }
   0xc   :  { %273 = vmatpush3.bf16.msra.mxu1 %v286_v8 }
   0xd   :  { %274 = vmatprep.subr.bf16.mxu1 %v292_v0 }
  0x10   :  { %275 = vmatpush3.bf16.msra.mxu1 %v287_v9 }
  0xdd   :  { %v91_v11 = vpop.f32.mrb[0].mxu0 }
  0xde   :  { %v92_v12 = vadd.f32 %v240_v10, %v91_v11  ;;  %v266_v13 = vpop.f32.mrb[1].mxu0 }
  0xdf   :  { %v94_v14 = vpop.f32.mrb[2].mxu0 }
  0xe0   :  { %v95_v15 = vadd.f32 %v240_v10, %v94_v14  ;;  %v267_v16 = vpop.f32.mrb[3].mxu0  ;;  %v98_v17 = vmax.f32 %v92_v12, 0.0 }
  0xe2   :  { %v99_v18 = vmax.f32 %v95_v15, 0.0 }
  0xe4   :  { %v100_v19 = vpack.c.bf16 %v99_v18, %v98_v17 }
  0xe6   :  { %277 = vmatmul.mubr.msk.bf16.vlgmr.msra.gmra.mrb[0].mxu1 %vm133_vm2, %v100_v19 }
 0x1b9   :  { %v171_v20 = vpop.f32.mrb[0].mxu1 }
 0x1ba   :  { %v178_v22 = vadd.f32 %v171_v20, %v27_v3  ;;  %v278_v23 = vpop.f32.mrb[1].mxu1 }
 0x1bb   :  { %v174_v24 = vpop.f32.mrb[2].mxu1 }
 0x1bc   :  { %v179_v25 = vadd.f32 %v174_v24, %v28_v4  ;;  %v279_v26 = vpop.f32.mrb[3].mxu1  ;;  %v187_v27 = vadd.f32 %v249_v21, %v178_v22 }
 0x1be   :  { %v191_v28 = vsel %vm53_vm1, %v187_v27, 0.0  ;;  %v188_v29 = vadd.f32 %v249_v21, %v179_v25 }
 0x1bf   :  { %192 = vadd.xlane.f32.xlu0 %v191_v28 }
 0x1c0   :  { %v194_v30 = vsel %vm53_vm1, %v188_v29, 0.0 }
 0x1c3   :  { %195 = vadd.xlane.f32.xlu0 %v194_v30 }
 0x24c   :  { %v193_v31 = vpop.xlane.xlu0 %192 }
 0x24d   :  { %v198_v32 = vmul.f32 0.03125, %v193_v31 }
 0x24f   :  { %v200_v33 = vsub.f32 %v187_v27, %v198_v32 }
 0x250   :  { %v196_v34 = vpop.xlane.xlu0 %195 }
 0x251   :  { %v199_v35 = vmul.f32 0.03125, %v196_v34  ;;  %v202_v36 = vmul.f32 %v200_v33, %v200_v33 }
 0x253   :  { %v201_v37 = vsub.f32 %v188_v29, %v199_v35  ;;  %v204_v38 = vsel %vm53_vm1, %v202_v36, 0.0 }
 0x254   :  { %205 = vadd.xlane.f32.xlu1 %v204_v38 }
 0x255   :  { %v203_v39 = vmul.f32 %v201_v37, %v201_v37 }
 0x257   :  { %v207_v40 = vsel %vm53_vm1, %v203_v39, 0.0 }
 0x258   :  { %208 = vadd.xlane.f32.xlu1 %v207_v40 }
 0x2e1   :  { %v206_v41 = vpop.xlane.xlu1 %205 }
 0x2e2   :  { %v210_v42 = vmul.f32 0.03125, %v206_v41 }
 0x2e4   :  { %v212_v43 = vadd.f32 1e-05, %v210_v42 }
 0x2e5   :  { %v209_v44 = vpop.xlane.xlu1 %208 }
 0x2e6   :  { %288 = vrsqrt.f32 %v212_v43  ;;  %v211_v45 = vmul.f32 0.03125, %v209_v44 }
 0x2e8   :  { %v213_v46 = vadd.f32 1e-05, %v211_v45 }
 0x2ea   :  { %290 = vrsqrt.f32 %v213_v46 }
 0x2f0   :  { %v289_v47 = vpop.eup %288 }
 0x2f1   :  { %v216_v49 = vmul.f32 %v289_v47, %v200_v33 }
 0x2f3   :  { %v224_v51 = vmul.f32 %v250_v48, %v216_v49 }
 0x2f4   :  { %v291_v52 = vpop.eup %290 }
 0x2f5   :  { %v232_v53 = vadd.f32 %v251_v50, %v224_v51  ;;  %v217_v54 = vmul.f32 %v291_v52, %v201_v37 }
 0x2f7   :  { %234 = vst.msk [vmem:[%s390_s7] sm:$0xff] %vm53_vm1, %v232_v53  ;;  %v225_v55 = vmul.f32 %v250_v48, %v217_v54 }
 0x2f9   :  { %v233_v56 = vadd.f32 %v251_v50, %v225_v55 }
 0x2fb   :  { %235 = vst.msk [vmem:[%s390_s7 + $0x8] sm:$0xff] %vm53_vm1, %v233_v56 }

// kernel: two_way_transformer.9
= control target key start
LH: loop header
LB: loop body
LE: loop exit
PB: predicated region body
PF: predicated region fallthrough
CT: control target
= control target key end

     0   :  { %s1514_s25 = smov 0   ;;  %s1516_s26 = smov 0   ;;  %s1666_s0 = inlined_call_operand.vmem [shape: f32[2,8,32], index: 0, kind: input, shape index: {}, may-alias: {0,1,2}]   ;;  %s1667_s1 = inlined_call_operand.vmem [shape: f32[2,8,32], index: 1, kind: input, shape index: {}, may-alias: {0,1,2}]   ;;  %s1668_s2 = inlined_call_operand.vmem [shape: f32[2,8,32], index: 2, kind: input, shape index: {}, may-alias: {0,1,2}]   ;;  %s1669_s3 = inlined_call_operand.vmem [shape: bf16[32,32], index: 3, kind: input, shape index: {}]   ;;  %s1670_s4 = inlined_call_operand.vmem [shape: f32[1,32], index: 4, kind: input, shape index: {}]   ;;  %s1671_s5 = inlined_call_operand.vmem [shape: bf16[32,32], index: 5, kind: input, shape index: {}]   ;;  %s1672_s6 = inlined_call_operand.vmem [shape: f32[1,32], index: 6, kind: input, shape index: {}]   ;;  %s1673_s7 = inlined_call_operand.vmem [shape: bf16[32,32], index: 7, kind: input, shape index: {}]   ;;  %s1674_s8 = inlined_call_operand.vmem [shape: f32[1,32], index: 8, kind: input, shape index: {}]   ;;  %s1675_s9 = inlined_call_operand.vmem [shape: bf16[32,32], index: 9, kind: input, shape index: {}]   ;;  %s1676_s10 = inlined_call_operand.vmem [shape: f32[1,32], index: 10, kind: input, shape index: {}]   ;;  %s1677_s11 = inlined_call_operand.vmem [shape: f32[1,32], index: 11, kind: input, shape index: {}]   ;;  %s1678_s12 = inlined_call_operand.vmem [shape: f32[1,32], index: 12, kind: input, shape index: {}]   ;;  %s1679_s13 = inlined_call_operand.vmem [shape: f32[2,8,32], index: 13, kind: output, shape index: {}]  }
   0x1   :  { %s1518_s27 = smov 0  }
   0x2 LB: > { %s42_s28 = sadd.s32 1, %s1432_s26  ;;  %p1255_p0 = scmp.ge.s32.totalorder %s1436_s27, 1  ;;  %s1436_s27 = sphi %s1518_s27, %s23_s27   ;;  %s1432_s26 = sphi %s1516_s26, %s1681_s26   ;;  %s1428_s25 = sphi %s1514_s25, %s1680_s25  }
   0x3   : > { %p44_p1 = scmp.ge.s32.totalorder %s42_s28, 2  ;;  %p440_p2 = scmp.lt.s32.totalorder %s1436_s27, 3 }
   0x5   : > { %s1683_s28 = smov (%p44_p1, %s42_s28), 0  ;;  %p441_p3 = pnand %p1255_p0, %p440_p2 }
   0x6   : > { %v1392_v0 = vld [vmem:[%s1669_s3] sm:$0xff] (!%p441_p3)   ;;  %v1438_v1 = vmov (!%p441_p3), 0.0   ;;  %v1394_v3 = vld [vmem:[%s1669_s3 + $0x8] sm:$0xff] (!%p441_p3)   ;;  %vm1439_vm0 = vmmov (!%p441_p3), 0   ;;  %p502_p4 = scmp.lt.s32.totalorder (!%p441_p3), %s1428_s25, 1  ;;  %vm560_vm1 = vcmask (!%p441_p3), 261120  }
   0x7   : > { %444 = sbr.rel (%p441_p3) target bundleno = 1740 (0x6cc), region = 72  ;;  %1304 = vmatprep.subr.bf16.mxu0 (!%p441_p3), %v1438_v1  ;;  %1312 = vmatprep.subr.bf16.mxu1 (!%p441_p3), %v1438_v1  ;;  %v1393_v2 = vld [vmem:[%s1671_s5] sm:$0xff] (!%p441_p3)   ;;  %v1395_v4 = vld [vmem:[%s1671_s5 + $0x8] sm:$0xff] (!%p441_p3)   ;;  %611 = vst.msk [vmem:[#allocation5] sm:$0xff] (!%p441_p3), %vm560_vm1, %v1438_v1  ;;  %vm753_vm2 = vcmask (!%p441_p3), 130048   ;;  %s1440_s17 = smov (!%p441_p3), 112  }
   0x8   : > { %1305 = vmatpush3.bf16.msra.mxu0 (!%p441_p3), %v1392_v0  ;;  %1308 = vmatprep.mubr.msk.bf16.mxu0 (!%p441_p3), %vm1439_vm0, %v1438_v1  ;;  %v1260_v9 = vld [vmem:[%s1670_s4] ss:$0 sm:$0xff] (!%p441_p3)  ;;  %v1397_v27 = vld [vmem:[%s1673_s7 + $0x8] sm:$0xff] (!%p441_p3)   ;;  %vm606_vm3 = vcmask (!%p441_p3), 7168   ;;  %v1441_v33 = vmov (!%p441_p3), -inf   ;;  %vm801_vm4 = vcmask (!%p441_p3), 64512  }
   0x9   : > { %1313 = vmatpush3.bf16.msra.mxu1 (!%p441_p3), %v1393_v2  ;;  %1306 = vmatprep.subr.bf16.mxu0 (!%p441_p3), %v1438_v1  ;;  %v1264_v10 = vld [vmem:[%s1672_s6] ss:$0 sm:$0xff] (!%p441_p3)  ;;  %607 = vst.msk [vmem:[#allocation3] sm:$0xff] (!%p441_p3), %vm606_vm3, %v1441_v33  ;;  %608 = vst.msk [vmem:[#allocation3 + $0x8] sm:$0xff] (!%p441_p3), %vm606_vm3, %v1441_v33  ;;  %v1442_v39 = vmov (!%p441_p3), 0   ;;  %vm836_vm5 = vcmask (!%p441_p3), 1043456  }
   0xa   : > { %1314 = vmatprep.subr.bf16.mxu1 (!%p441_p3), %v1438_v1  ;;  %1316 = vmatprep.mubr.msk.bf16.mxu1 (!%p441_p3), %vm1439_vm0, %v1438_v1  ;;  %v1396_v26 = vld [vmem:[%s1673_s7] sm:$0xff] (!%p441_p3)   ;;  %609 = vst.msk [vmem:[#allocation4] sm:$0xff] (!%p441_p3), %vm606_vm3, %v1438_v1  ;;  %610 = vst.msk [vmem:[#allocation4 + $0x8] sm:$0xff] (!%p441_p3), %vm606_vm3, %v1438_v1  ;;  %s1443_s16 = smov (!%p441_p3), 16   ;;  %vm1022_vm6 = vcmask (!%p441_p3), 261248  }
   0xb   : > { %1390 = vset.pattern.permute.xlu0 (!%p441_p3), %v1442_v39  ;;  %1391 = vset.pattern.permute.xlu1 (!%p441_p3), %v1442_v39  ;;  %v1268_v40 = vld [vmem:[%s1674_s8] ss:$0 sm:$0xff] (!%p441_p3) }
   0xc   : > { %1307 = vmatpush3.bf16.msra.mxu0 (!%p441_p3), %v1394_v3 }
   0xd   : > { %1315 = vmatpush3.bf16.msra.mxu1 (!%p441_p3), %v1395_v4  ;;  %1320 = vmatprep.subr.bf16.mxu0 (!%p441_p3), %v1438_v1 }
   0xe   : > { %s1685_s25 = smov (!%p502_p4, %s1428_s25), 1  ;;  %1328 = vmatprep.subr.bf16.mxu1 %v1438_v1 }
   0xf   : > { %s1554_s20 = sshll.u32 %s1685_s25, 3 }
  0x10   : > { %s508_s23 = scalar_lea.vmem %s1666_s0, %s1554_s20  ;;  %s515_s30 = scalar_lea.vmem %s1667_s1, %s1554_s20  ;;  %v800_v53 = vld [vmem:[#allocation3] sm:$0xff]  ;;  %v936_v57 = vld [vmem:[#allocation3 + $0x8] sm:$0xff] }
  0x11   : > { %v535_v5 = vld [vmem:[%s508_s23] sm:$0xff]  ;;  %s522_s23 = scalar_lea.vmem %s1668_s2, %s1554_s20  ;;  %s529_s14 = scalar_lea.vmem %s1679_s13, %s1554_s20 }
  0x12   : > { %v536_v6 = vpack.c.bf16 %v535_v5, %v535_v5  ;;  %v612_v7 = vld [vmem:[%s515_s30] sm:$0xff] }
  0x13   : > { %v613_v8 = vpack.c.bf16 %v612_v7, %v612_v7  ;;  %v681_v28 = vld [vmem:[%s522_s23] sm:$0xff] }
  0x14   : > { %1309 = vmatmul.mubr.msk.bf16.vlgmr.msra.gmra.mrb[0].mxu0 %vm560_vm1, %v536_v6  ;;  %v682_v29 = vpack.c.bf16 %v681_v28, %v681_v28  ;;  %v953_v28 = vld [vmem:[#allocation4 + $0x8] sm:$0xff] }
  0x15   : > { %1317 = vmatmul.mubr.msk.bf16.vlgmr.msra.gmra.mrb[0].mxu1 %vm560_vm1, %v613_v8  ;;  %1324 = vmatprep.mubr.msk.bf16.mxu0 %vm1439_vm0, %v1438_v1 }
  0x16   : > { %1330 = vmatprep.mubr.msk.bf16.mxu1 %vm1439_vm0, %v1438_v1  ;;  %1321 = vmatpush3.bf16.msra.mxu0 %v1396_v26 }
  0x17   : > { %1322 = vmatprep.subr.bf16.mxu0 %v1438_v1 }
  0x1a   : > { %1323 = vmatpush3.bf16.msra.mxu0 %v1397_v27 }
  0x1b   : > { %1334 = vmatprep.subr.bf16.mxu0 %v1438_v1 }
  0x1d   : > { %1325 = vmatmul.mubr.msk.bf16.vlgmr.msra.gmra.mrb[4].mxu0 %vm560_vm1, %v682_v29 }
  0x1e   : > { %1336 = vmatprep.mubr.msk.bf16.mxu0 %vm1439_vm0, %v1438_v1 }
  0xe7   : > { %v598_v11 = vpop.f32.mrb[0].mxu0 }
  0xe8   : > { %v599_v12 = vadd.f32 %v1260_v9, %v598_v11  ;;  %v675_v13 = vpop.f32.mrb[0].mxu1  ;;  %v1310_v14 = vpop.f32.mrb[1].mxu0 }
  0xe9   : > { %v676_v15 = vadd.f32 %v1264_v10, %v675_v13  ;;  %v1318_v16 = vpop.f32.mrb[1].mxu1  ;;  %v601_v17 = vpop.f32.mrb[2].mxu0 }
  0xea   : > { %v604_v18 = vmul.f32 0.25, %v599_v12  ;;  %v678_v19 = vpop.f32.mrb[2].mxu1  ;;  %v1311_v20 = vpop.f32.mrb[3].mxu0  ;;  %v817_v16 = vld [vmem:[#allocation4] sm:$0xff] }
  0xeb   : > { %v751_v21 = vpack.c.bf16 %v676_v15, %v676_v15  ;;  %v1319_v22 = vpop.f32.mrb[3].mxu1  ;;  %v825_v20 = vld [vmem:[#allocation5] sm:$0xff] }
  0xec   : > { %605 = vst.msk [vmem:[#allocation2] sm:$0xff] %vm560_vm1, %v604_v18 }
  0xed   : > { %v758_v23 = vsel %vm753_vm2, %v751_v21, 0  ;;  %887 = vrot.lane.b32.xlu0 %v751_v21, %s1440_s17 }
  0xee   : > { %1329 = vmatpush3.bf16.xpose.msra.mxu1 %v758_v23 }
  0xef   : > { %1340 = vmatprep.subr.bf16.mxu1 %v1438_v1 }
  0xf0   : > { %v743_v41 = vpop.f32.mrb[4].mxu0 }
  0xf1   : > { %v744_v42 = vadd.f32 %v1268_v40, %v743_v41  ;;  %v1326_v43 = vpop.f32.mrb[5].mxu0  ;;  %v1399_v41 = vld [vmem:[%s1675_s9 + $0x8] sm:$0xff]  }
  0xf2   : > { %v746_v44 = vpop.f32.mrb[6].mxu0 }
  0xf3   : > { %v749_v24 = vld [vmem:[#allocation2] sm:$0xff]  ;;  %v752_v45 = vpack.c.bf16 %v744_v42, %v744_v42  ;;  %v1327_v46 = vpop.f32.mrb[7].mxu0 }
  0xf4   : > { %v750_v25 = vpack.c.bf16 %v749_v24, %v749_v24 }
  0xf5   : > { %v838_v47 = vsel %vm836_vm5, %v752_v45, 0 }
  0xf6   : > { %884 = vrot.lane.b32.xlu0 %v750_v25, %s1440_s17  ;;  %1331 = vmatmul.mubr.msk.bf16.vlgmr.msra.gmra.mrb[4].mxu1 %vm753_vm2, %v750_v25 }
  0xf7   : > { %1342 = vmatprep.mubr.msk.bf16.mxu1 %vm1439_vm0, %v1438_v1  ;;  %1335 = vmatpush3.bf16.msra.mxu0 %v838_v47 }
  0xf8   : > { %1346 = vmatprep.subr.bf16.mxu0 %v1438_v1 }
 0x15f   : > { %v888_v30 = vpop.permute.xlu0 %887 }
 0x160   : > { %v893_v31 = vsel %vm753_vm2, %v888_v30, 0 }
 0x161   : > { %1341 = vmatpush3.bf16.xpose.msra.mxu1 %v893_v31 }
 0x162   : > { %1352 = vmatprep.subr.bf16.mxu1 %v1438_v1 }
 0x168   : > { %v885_v32 = vpop.permute.xlu0 %884 }
 0x169   : > { %1343 = vmatmul.mubr.msk.bf16.vlgmr.msra.gmra.mrb[8].mxu1 %vm753_vm2, %v885_v32 }
 0x16a   : > { %1356 = vmatprep.mubr.msk.bf16.mxu1 %vm1439_vm0, %v1438_v1 }
 0x1c9   : > { %v794_v34 = vpop.f32.mrb[4].mxu1 }
 0x1ca   : > { %v1332_v35 = vpop.f32.mrb[5].mxu1  ;;  %v802_v36 = vsel %vm801_vm4, %v794_v34, -inf }
 0x1cb   : > { %803 = vmax.xlane.f32.xlu1 %v802_v36  ;;  %v797_v37 = vpop.f32.mrb[6].mxu1 }
 0x1cc   : > { %v1333_v38 = vpop.f32.mrb[7].mxu1 }
 0x23c   : > { %v929_v48 = vpop.f32.mrb[8].mxu1 }
 0x23d   : > { %v1344_v49 = vpop.f32.mrb[9].mxu1  ;;  %v937_v50 = vsel %vm801_vm4, %v929_v48, -inf }
 0x23e   : > { %938 = vmax.xlane.f32.xlu1 %v937_v50  ;;  %v932_v51 = vpop.f32.mrb[10].mxu1 }
 0x23f   : > { %v1345_v52 = vpop.f32.mrb[11].mxu1 }
 0x258   : > { %v804_v54 = vpop.xlane.xlu1 %803 }
 0x259   : > { %v805_v55 = vmax.f32 %v800_v53, %v804_v54 }
 0x25b   : > { %v806_v56 = vsub.f32 %v800_v53, %v805_v55  ;;  %882 = vst.msk [vmem:[#allocation3] sm:$0xff] %vm606_vm3, %v805_v55  ;;  %811 = vperm.xlu0 %1390, %v805_v55   ;;  %v1276_v53 = vld [vmem:[%s1676_s10] ss:$0 sm:$0xff] }
 0x25d   : > { %v807_v6 = vmul.f32 1.442695, %v806_v56 }
 0x25f   : > { %969 = vrot.lane.b32.xlu0 %v752_v45, %s1440_s17 }
 0x2cb   : > { %v939_v58 = vpop.xlane.xlu1 %938 }
 0x2cc   : > { %v940_v59 = vmax.f32 %v936_v57, %v939_v58 }
 0x2ce   : > { %v941_v60 = vsub.f32 %v936_v57, %v940_v59  ;;  %1024 = vst.msk [vmem:[#allocation3 + $0x8] sm:$0xff] %vm606_vm3, %v940_v59  ;;  %946 = vperm.xlu1 %1391, %v940_v59  }
 0x2d0   : > { %v942_v14 = vmul.f32 1.442695, %v941_v60 }
 0x2da   : > { %v812_v61 = vpop.permute.xlu0 %811 }
 0x2db   : > { %v814_v62 = vsub.f32 %v794_v34, %v812_v61  ;;  %v1398_v34 = vld [vmem:[%s1675_s9] sm:$0xff]  }
 0x2dc   : > { %1353 = vmatpush3.bf16.msra.mxu1 %v1398_v34 }
 0x2dd   : > { %v815_v63 = vmul.f32 1.442695, %v814_v62  ;;  %1354 = vmatprep.subr.bf16.mxu1 %v1438_v1 }
 0x2de   : > { %v970_v0 = vpop.permute.xlu0 %969 }
 0x2df   : > { %1400 = vpow2.f32 %v815_v63  ;;  %v975_v5 = vsel %vm836_vm5, %v970_v0, 0 }
 0x2e0   : > { %1402 = vpow2.f32 %v807_v6  ;;  %1355 = vmatpush3.bf16.msra.mxu1 %v1399_v41  ;;  %v1280_v6 = vld [vmem:[%s1677_s11] ss:$0 sm:$0xff] }
 0x2e9   : > { %v1401_v2 = vpop.eup %1400 }
 0x2ea   : > { %v819_v3 = vsel %vm801_vm4, %v1401_v2, 0.0  ;;  %v832_v4 = vpack.c.bf16 %v1401_v2, %v1401_v2  ;;  %v1403_v7 = vpop.eup %1402 }
 0x2eb   : > { %820 = vadd.xlane.f32.xlu0 %v819_v3  ;;  %v818_v17 = vmul.f32 %v1403_v7, %v817_v16 }
 0x2ec   : > { %1337 = vmatmul.mubr.msk.bf16.vlgmr.msra.gmra.mrb[8].mxu0 %vm801_vm4, %v832_v4 }
 0x2ed   : > { %1347 = vmatpush3.bf16.msra.mxu0 %v975_v5  ;;  %1348 = vmatprep.mubr.msk.bf16.mxu0 %vm1439_vm0, %v1438_v1 }
 0x301   : > { %828 = vperm.xlu0 %1390, %v1403_v7  }
 0x34d   : > { %v947_v8 = vpop.permute.xlu1 %946 }
 0x34e   : > { %v949_v9 = vsub.f32 %v929_v48, %v947_v8  ;;  %v1281_v8 = vld [vmem:[%s1678_s12] ss:$0 sm:$0xff] }
 0x350   : > { %v950_v10 = vmul.f32 1.442695, %v949_v9 }
 0x352   : > { %1404 = vpow2.f32 %v950_v10 }
 0x353   : > { %1406 = vpow2.f32 %v942_v14 }
 0x35c   : > { %v1405_v11 = vpop.eup %1404 }
 0x35d   : > { %v955_v12 = vsel %vm801_vm4, %v1405_v11, 0.0  ;;  %v967_v13 = vpack.c.bf16 %v1405_v11, %v1405_v11  ;;  %v1407_v15 = vpop.eup %1406 }
 0x35e   : > { %956 = vadd.xlane.f32.xlu1 %v955_v12  ;;  %v954_v29 = vmul.f32 %v1407_v15, %v953_v28 }
 0x35f   : > { %1349 = vmatmul.mubr.msk.bf16.vlgmr.msra.gmra.mrb[12].mxu0 %vm801_vm4, %v967_v13 }
 0x36f   : > { %963 = vperm.xlu1 %1391, %v1407_v15  }
 0x378   : > { %v821_v18 = vpop.xlane.xlu0 %820 }
 0x379   : > { %v822_v19 = vadd.f32 %v821_v18, %v818_v17 }
 0x37b   : > { %824 = vst.msk [vmem:[#allocation4] sm:$0xff] %vm606_vm3, %v822_v19 }
 0x380   : > { %v829_v21 = vpop.permute.xlu0 %828 }
 0x381   : > { %v831_v22 = vmul.f32 %v829_v21, %v825_v20 }
 0x382   : > { %v1029_v35 = vld [vmem:[#allocation4] sm:$0xff] }
 0x3bf   : > { %v874_v23 = vpop.f32.mrb[8].mxu0 }
 0x3c0   : > { %v880_v24 = vadd.f32 %v874_v23, %v831_v22  ;;  %v1338_v25 = vpop.f32.mrb[9].mxu0 }
 0x3c1   : > { %v877_v26 = vpop.f32.mrb[10].mxu0 }
 0x3c2   : > { %881 = vst.msk [vmem:[#allocation5] sm:$0xff] %vm753_vm2, %v880_v24  ;;  %v1339_v27 = vpop.f32.mrb[11].mxu0 }
 0x3c9   : > { %v960_v43 = vld [vmem:[#allocation5] sm:$0xff] }
 0x3eb   : > { %v957_v30 = vpop.xlane.xlu1 %956 }
 0x3ec   : > { %v958_v31 = vadd.f32 %v957_v30, %v954_v29 }
 0x3ee   : > { %959 = vst.msk [vmem:[#allocation4 + $0x8] sm:$0xff] %vm606_vm3, %v958_v31 }
 0x3ef   : > { %v964_v42 = vpop.permute.xlu1 %963 }
 0x3f0   : > { %v966_v44 = vmul.f32 %v964_v42, %v960_v43 }
 0x3f5   : > { %v1037_v32 = vld [vmem:[#allocation4 + $0x8] sm:$0xff] }
 0x3f6   : > { %1408 = vrcp.f32 %v1037_v32 }
 0x3f7   : > { %1410 = vrcp.f32 %v1029_v35 }
 0x400   : > { %v1409_v33 = vpop.eup %1408 }
 0x401   : > { %1041 = vperm.xlu1 %1391, %v1409_v33   ;;  %v1411_v40 = vpop.eup %1410 }
 0x432   : > { %v1011_v36 = vpop.f32.mrb[12].mxu0 }
 0x433   : > { %1018 = vrot.lane.b32.xlu0 %v1011_v36, %s1443_s16  ;;  %v1350_v37 = vpop.f32.mrb[13].mxu0 }
 0x434   : > { %v1014_v38 = vpop.f32.mrb[14].mxu0 }
 0x435   : > { %v1351_v39 = vpop.f32.mrb[15].mxu0 }
 0x437   : > { %1033 = vperm.xlu0 %1390, %v1411_v40  }
 0x480   : > { %v1042_v47 = vpop.permute.xlu1 %1041 }
 0x4a5   : > { %v1019_v45 = vpop.permute.xlu0 %1018 }
 0x4a6   : > { %v1021_v1 = vadd.f32 %v1019_v45, %v966_v44 }
 0x4a8   : > { %1023 = vst.msk [vmem:[#allocation5] sm:$0xff] %vm1022_vm6, %v1021_v1 }
 0x4af   : > { %v1028_v46 = vld [vmem:[#allocation5] sm:$0xff] }
 0x4b0   : > { %v1044_v49 = vmul.f32 %v1042_v47, %v1028_v46 }
 0x4b6   : > { %v1034_v48 = vpop.permute.xlu0 %1033 }
 0x4b7   : > { %v1036_v50 = vmul.f32 %v1034_v48, %v1028_v46 }
 0x4b9   : > { %v1045_v51 = vsel %vm753_vm2, %v1036_v50, %v1044_v49 }
 0x4ba   : > { %v1046_v52 = vpack.c.bf16 %v1045_v51, %v1045_v51 }
 0x4bc   : > { %1357 = vmatmul.mubr.msk.bf16.vlgmr.msra.gmra.mrb[12].mxu1 %vm560_vm1, %v1046_v52 }
 0x58f   : > { %v1107_v54 = vpop.f32.mrb[12].mxu1 }
 0x590   : > { %v1108_v55 = vadd.f32 %v1276_v53, %v1107_v54  ;;  %v1358_v56 = vpop.f32.mrb[13].mxu1 }
 0x591   : > { %v1110_v57 = vpop.f32.mrb[14].mxu1 }
 0x592   : > { %v1359_v58 = vpop.f32.mrb[15].mxu1  ;;  %v1115_v59 = vsel %vm560_vm1, %v1108_v55, 0.0 }
 0x593   : > { %1116 = vadd.xlane.f32.xlu0 %v1115_v59 }
 0x620   : > { %v1117_v60 = vpop.xlane.xlu0 %1116 }
 0x621   : > { %v1119_v61 = vmul.f32 0.03125, %v1117_v60 }
 0x623   : > { %v1120_v62 = vsub.f32 %v1108_v55, %v1119_v61 }
 0x625   : > { %v1121_v63 = vmul.f32 %v1120_v62, %v1120_v62 }
 0x627   : > { %v1122_v0 = vsel %vm560_vm1, %v1121_v63, 0.0 }
 0x628   : > { %1123 = vadd.xlane.f32.xlu1 %v1122_v0 }
 0x6b5   : > { %v1124_v2 = vpop.xlane.xlu1 %1123 }
 0x6b6   : > { %v1125_v3 = vmul.f32 0.03125, %v1124_v2 }
 0x6b8   : > { %v1126_v4 = vadd.f32 1e-05, %v1125_v3 }
 0x6ba   : > { %1412 = vrsqrt.f32 %v1126_v4 }
 0x6c4   : > { %v1413_v5 = vpop.eup %1412 }
 0x6c5   : > { %v1128_v7 = vmul.f32 %v1413_v5, %v1120_v62 }
 0x6c7   : > { %v1135_v9 = vmul.f32 %v1280_v6, %v1128_v7 }
 0x6c9   : > { %v1142_v10 = vadd.f32 %v1281_v8, %v1135_v9 }
 0x6cb   : > { %1143 = vst.msk [vmem:[%s529_s14] sm:$0xff] %vm560_vm1, %v1142_v10 }
 0x6cc PF: > { %s23_s27 = sadd.s32 1, %s1436_s27   ;;  %s1680_s25 = smov %s1432_s26 }
 0x6cd   : > { %p20_p5 = scmp.ge.s32.totalorder %s23_s27, 4   ;;  %s1681_s26 = smov %s1683_s28 }
 0x6cf   :  { %22 = sbr.rel (!%p20_p5) target bundleno = 2 (0x2), region = 118 }

// kernel: two_way_transformer.10
= control target key start
LH: loop header
LB: loop body
LE: loop exit
PB: predicated region body
PF: predicated region fallthrough
CT: control target
= control target key end

     0   :  { %s1973_s21 = smov 0   ;;  %s1975_s22 = smov 0   ;;  %s2173_s0 = inlined_call_operand.vmem [shape: f32[2,8,32], index: 0, kind: input, shape index: {}, may-alias: {0,5}]   ;;  %s2174_s1 = inlined_call_operand.vmem [shape: f32[2,8,32], index: 1, kind: input, shape index: {}]   ;;  %s2175_s2 = inlined_call_operand.vmem [shape: f32[2,64,32], index: 2, kind: input, shape index: {}, may-alias: {2,4}]   ;;  %s2176_s3 = inlined_call_operand.vmem [shape: f32[2,64,32], index: 3, kind: input, shape index: {}]   ;;  %s2177_s4 = inlined_call_operand.vmem [shape: f32[2,64,32], index: 4, kind: input, shape index: {}, may-alias: {2,4}]   ;;  %s2178_s5 = inlined_call_operand.vmem [shape: f32[2,8,32], index: 5, kind: input, shape index: {}, may-alias: {0,5}]   ;;  %s2179_s6 = inlined_call_operand.vmem [shape: bf16[32,16], index: 6, kind: input, shape index: {}]   ;;  %s2180_s7 = inlined_call_operand.vmem [shape: f32[1,16], index: 7, kind: input, shape index: {}]   ;;  %s2181_s8 = inlined_call_operand.vmem [shape: bf16[32,16], index: 8, kind: input, shape index: {}]   ;;  %s2182_s9 = inlined_call_operand.vmem [shape: f32[1,16], index: 9, kind: input, shape index: {}]   ;;  %s2183_s10 = inlined_call_operand.vmem [shape: bf16[32,16], index: 10, kind: input, shape index: {}]   ;;  %s2184_s11 = inlined_call_operand.vmem [shape: f32[1,16], index: 11, kind: input, shape index: {}]   ;;  %s2185_s12 = inlined_call_operand.vmem [shape: bf16[16,32], index: 12, kind: input, shape index: {}]   ;;  %s2186_s13 = inlined_call_operand.vmem [shape: f32[1,32], index: 13, kind: input, shape index: {}]   ;;  %s2187_s14 = inlined_call_operand.vmem [shape: f32[1,32], index: 14, kind: input, shape index: {}]   ;;  %s2188_s15 = inlined_call_operand.vmem [shape: f32[1,32], index: 15, kind: input, shape index: {}]   ;;  %s2189_s16 = inlined_call_operand.vmem [shape: f32[2,8,32], index: 16, kind: output, shape index: {}]  }
   0x1   :  { %2190 = sst [smem:[#allocation6_spill]] %s2173_s0  ;;  %s1977_s23 = smov 0  }
   0x2 LB: > { %s45_s24 = sadd.s32 1, %s1876_s22  ;;  %p1639_p0 = scmp.ge.s32.totalorder %s1880_s23, 1  ;;  %s1880_s23 = sphi %s1977_s23, %s26_s23   ;;  %s1876_s22 = sphi %s1975_s22, %s2193_s22   ;;  %s1872_s21 = sphi %s1973_s21, %s2192_s21  }
   0x3   : > { %p47_p1 = scmp.ge.s32.totalorder %s45_s24, 2  ;;  %p566_p2 = scmp.lt.s32.totalorder %s1880_s23, 3 }
   0x5   : > { %s2195_s24 = smov (%p47_p1, %s45_s24), 0  ;;  %p567_p3 = pnand %p1639_p0, %p566_p2 }
   0x6   : > { %v1837_v0 = vld [vmem:[%s2181_s8] sm:$0xff] (!%p567_p3)   ;;  %p661_p4 = scmp.lt.s32.totalorder (!%p567_p3), %s1872_s21, 1  ;;  %v1838_v1 = vld [vmem:[%s2181_s8 + $0x8] sm:$0xff] (!%p567_p3)   ;;  %v1882_v2 = vmov (!%p567_p3), 0.0   ;;  %vm1883_vm0 = vmmov (!%p567_p3), 0   ;;  %s2191_s17 = sld [smem:[#allocation6_spill]] (!%p567_p3) }
   0x7   : > { %570 = sbr.rel (%p567_p3) target bundleno = 2192 (0x890), region = 84  ;;  %1727 = vmatprep.subr.bf16.mxu1 (!%p567_p3), %v1837_v0  ;;  %1719 = vmatprep.subr.bf16.mxu0 (!%p567_p3), %v1882_v2  ;;  %v1839_v3 = vld [vmem:[%s2179_s6] sm:$0xff] (!%p567_p3)   ;;  %v1840_v4 = vld [vmem:[%s2179_s6 + $0x8] sm:$0xff] (!%p567_p3)   ;;  %vm751_vm1 = vcmask (!%p567_p3), 261120   ;;  %vm796_vm2 = vcmask (!%p567_p3), 130048   ;;  %vm1055_vm3 = vcmask (!%p567_p3), 64512  }
   0x8   : > { %1728 = vmatpush3.bf16.msra.mxu1 (!%p567_p3), %v1837_v0  ;;  %1723 = vmatprep.mubr.msk.bf16.mxu0 (!%p567_p3), %vm1883_vm0, %v1882_v2  ;;  %803 = vst.msk [vmem:[#allocation5] sm:$0xff] (!%p567_p3), %vm796_vm2, %v1882_v2  ;;  %v1654_v38 = vld [vmem:[%s2182_s9] ss:$0 sm:$0xff] (!%p567_p3)  ;;  %s1884_s30 = smov (!%p567_p3), 120   ;;  %vm798_vm4 = vcmask (!%p567_p3), 7168   ;;  %vm1112_vm5 = vcmask (!%p567_p3), 523264  }
   0x9   : > { %1729 = vmatprep.subr.bf16.mxu1 (!%p567_p3), %v1838_v1  ;;  %1720 = vmatpush3.bf16.msra.mxu0 (!%p567_p3), %v1839_v3  ;;  %v1650_v40 = vld [vmem:[%s2180_s7] ss:$0 sm:$0xff] (!%p567_p3)  ;;  %801 = vst.msk [vmem:[#allocation4] sm:$0xff] (!%p567_p3), %vm798_vm4, %v1882_v2  ;;  %802 = vst.msk [vmem:[#allocation4 + $0x8] sm:$0xff] (!%p567_p3), %vm798_vm4, %v1882_v2  ;;  %vm1357_vm6 = vcmask (!%p567_p3), 130112  }
   0xa   : > { %1721 = vmatprep.subr.bf16.mxu0 (!%p567_p3), %v1882_v2 }
   0xc   : > { %1730 = vmatpush3.bf16.msra.mxu1 (!%p567_p3), %v1838_v1 }
   0xd   : > { %1751 = vmatprep.subr.bf16.mxu1 (!%p567_p3), %v1882_v2  ;;  %1722 = vmatpush3.bf16.msra.mxu0 (!%p567_p3), %v1840_v4 }
   0xe   : > { %s2197_s21 = smov (!%p661_p4, %s1872_s21), 1 }
   0xf   : > { %s2001_s0 = sshll.u32 %s2197_s21, 6  ;;  %s2008_s19 = sshll.u32 %s2197_s21, 3 }
  0x10   : > { %s683_s26 = scalar_lea.vmem %s2175_s2, %s2001_s0  ;;  %s2018_s29 = scalar_lea.vmem %s2176_s3, %s2001_s0 }
  0x11   : > { %v804_v5 = vld [vmem:[%s683_s26] sm:$0xff]  ;;  %v805_v6 = vld [vmem:[%s683_s26 + $0x8] sm:$0xff]  ;;  %v806_v10 = vld [vmem:[%s683_s26 + $0x10] sm:$0xff]  ;;  %s667_s18 = scalar_lea.vmem %s2191_s17, %s2008_s19  ;;  %s674_s27 = scalar_lea.vmem %s2174_s1, %s2008_s19 }
  0x12   : > { %v812_v7 = vld [vmem:[%s2018_s29] sm:$0xff]  ;;  %v813_v8 = vld [vmem:[%s2018_s29 + $0x8] sm:$0xff]  ;;  %v807_v11 = vld [vmem:[%s683_s26 + $0x18] sm:$0xff]  ;;  %s703_s28 = scalar_lea.vmem %s2177_s4, %s2001_s0  ;;  %s1887_s17 = smov 8  }
  0x13   : > { %v820_v9 = vadd.f32 %v812_v7, %v804_v5  ;;  %v821_v12 = vadd.f32 %v813_v8, %v805_v6  ;;  %v814_v13 = vld [vmem:[%s2018_s29 + $0x10] sm:$0xff]  ;;  %v815_v14 = vld [vmem:[%s2018_s29 + $0x18] sm:$0xff]  ;;  %v808_v15 = vld [vmem:[%s683_s26 + $0x20] sm:$0xff]  ;;  %s711_s25 = scalar_lea.vmem %s2178_s5, %s2008_s19 }
  0x14   : > { %v822_v16 = vadd.f32 %v814_v13, %v806_v10  ;;  %v823_v17 = vadd.f32 %v815_v14, %v807_v11  ;;  %v809_v18 = vld [vmem:[%s683_s26 + $0x28] sm:$0xff]  ;;  %v816_v19 = vld [vmem:[%s2018_s29 + $0x20] sm:$0xff]  ;;  %v810_v24 = vld [vmem:[%s683_s26 + $0x30] sm:$0xff] }
  0x15   : > { %v817_v20 = vld [vmem:[%s2018_s29 + $0x28] sm:$0xff]  ;;  %v828_v21 = vpack.c.bf16 %v821_v12, %v820_v9  ;;  %v824_v22 = vadd.f32 %v816_v19, %v808_v15  ;;  %v811_v25 = vld [vmem:[%s683_s26 + $0x38] sm:$0xff]  ;;  %v818_v26 = vld [vmem:[%s2018_s29 + $0x30] sm:$0xff]  ;;  %v1885_v12 = vmov -inf  }
  0x16   : > { %v825_v23 = vadd.f32 %v817_v20, %v809_v18  ;;  %v829_v27 = vpack.c.bf16 %v823_v17, %v822_v16  ;;  %v819_v28 = vld [vmem:[%s2018_s29 + $0x38] sm:$0xff]  ;;  %v724_v29 = vld [vmem:[%s667_s18] sm:$0xff]  ;;  %v826_v33 = vadd.f32 %v818_v26, %v810_v24  ;;  %v1842_v9 = vld [vmem:[%s2183_s10 + $0x8] sm:$0xff]   ;;  %799 = vst.msk [vmem:[#allocation3] sm:$0xff] %vm798_vm4, %v1885_v12  ;;  %s718_s18 = scalar_lea.vmem %s2189_s16, %s2008_s19 }
  0x17   : > { %v725_v30 = vld [vmem:[%s674_s27] sm:$0xff]  ;;  %1731 = vmatprep.mubr.msk.bf16.mxu1 %vm751_vm1, %v828_v21  ;;  %v827_v34 = vadd.f32 %v819_v28, %v811_v25  ;;  %v934_v11 = vld [vmem:[%s703_s28 + $0x8] sm:$0xff]  ;;  %800 = vst.msk [vmem:[#allocation3 + $0x8] sm:$0xff] %vm798_vm4, %v1885_v12  ;;  %v935_v14 = vld [vmem:[%s703_s28 + $0x10] sm:$0xff]  ;;  %v1886_v28 = vmov 0  }
  0x18   : > { %v830_v31 = vpack.c.bf16 %v825_v23, %v824_v22  ;;  %v726_v32 = vadd.f32 %v725_v30, %v724_v29  ;;  %1732 = vmatmul.mubr.msk.bf16.vlgmr.msra.gmra.mrb[0].mxu1 %vm751_vm1, %v829_v27  ;;  %v1841_v8 = vld [vmem:[%s2183_s10] sm:$0xff]   ;;  %v936_v15 = vld [vmem:[%s703_s28 + $0x18] sm:$0xff]  ;;  %v938_v17 = vld [vmem:[%s703_s28 + $0x28] sm:$0xff]  ;;  %1835 = vset.pattern.permute.xlu0 %v1886_v28 }
  0x19   : > { %v831_v36 = vpack.c.bf16 %v827_v34, %v826_v33  ;;  %v933_v10 = vld [vmem:[%s703_s28] sm:$0xff]  ;;  %1739 = vmatprep.subr.bf16.mxu0 %v1841_v8  ;;  %v942_v18 = vpack.c.bf16 %v936_v15, %v935_v14  ;;  %v939_v20 = vld [vmem:[%s703_s28 + $0x30] sm:$0xff]  ;;  %v940_v21 = vld [vmem:[%s703_s28 + $0x38] sm:$0xff]  ;;  %1836 = vset.pattern.permute.xlu1 %v1886_v28 }
  0x1a   : > { %1735 = vmatprep.mubr.msk.bf16.mxu1 %vm751_vm1, %v830_v31  ;;  %v727_v35 = vpack.c.bf16 %v726_v32, %v726_v32  ;;  %v941_v13 = vpack.c.bf16 %v934_v11, %v933_v10  ;;  %v937_v16 = vld [vmem:[%s703_s28 + $0x20] sm:$0xff]  ;;  %v944_v22 = vpack.c.bf16 %v940_v21, %v939_v20 }
  0x1b   : > { %v943_v19 = vpack.c.bf16 %v938_v17, %v937_v16  ;;  %v1661_v29 = vld [vmem:[%s2184_s11] ss:$0 sm:$0xff] }
  0x1c   : > { %1724 = vmatmul.mubr.msk.bf16.vlgmr.msra.gmra.mrb[0].mxu0 %vm751_vm1, %v727_v35 }
  0x1d   : > { %1740 = vmatpush3.bf16.msra.mxu0 %v1841_v8  ;;  %1743 = vmatprep.mubr.msk.bf16.mxu0 %vm751_vm1, %v941_v13 }
  0x1e   : > { %1741 = vmatprep.subr.bf16.mxu0 %v1842_v9  ;;  %v1261_v14 = vld [vmem:[#allocation3 + $0x8] sm:$0xff] }
  0x20   : > { %1736 = vmatmul.mubr.msk.bf16.gmra.mrb[4].mxu1 %vm751_vm1, %v831_v36 }
  0x21   : > { %1759 = vmatprep.mubr.msk.bf16.mxu1 %vm1883_vm0, %v1882_v2  ;;  %1742 = vmatpush3.bf16.msra.mxu0 %v1842_v9 }
  0x22   : > { %1763 = vmatprep.subr.bf16.mxu0 %v1882_v2 }
  0x24   : > { %1744 = vmatmul.mubr.msk.bf16.vlgmr.msra.gmra.mrb[4].mxu0 %vm751_vm1, %v942_v18 }
  0x25   : > { %1747 = vmatprep.mubr.msk.bf16.mxu0 %vm751_vm1, %v943_v19 }
  0x2c   : > { %1748 = vmatmul.mubr.msk.bf16.gmra.mrb[8].mxu0 %vm751_vm1, %v944_v22 }
  0x2d   : > { %1771 = vmatprep.mubr.msk.bf16.mxu0 %vm1883_vm0, %v1882_v2 }
  0xeb   : > { %v1733_v37 = vpop.f32.mrb[0].mxu1 }
  0xec   : > { %v902_v39 = vpop.f32.mrb[1].mxu1  ;;  %v911_v42 = vadd.f32 %v1733_v37, %v1654_v38 }
  0xed   : > { %v1734_v41 = vpop.f32.mrb[2].mxu1  ;;  %v903_v46 = vadd.f32 %v1654_v38, %v902_v39 }
  0xee   : > { %v914_v43 = vadd.f32 %v1734_v41, %v1654_v38  ;;  %v905_v44 = vpop.f32.mrb[3].mxu1 }
  0xef   : > { %v789_v45 = vpop.f32.mrb[0].mxu0  ;;  %v906_v47 = vadd.f32 %v1654_v38, %v905_v44 }
  0xf0   : > { %v790_v48 = vadd.f32 %v1650_v40, %v789_v45  ;;  %v1725_v49 = vpop.f32.mrb[1].mxu0  ;;  %v1048_v50 = vpack.c.bf16 %v914_v43, %v911_v42 }
  0xf1   : > { %v792_v51 = vpop.f32.mrb[2].mxu0  ;;  %v1047_v52 = vpack.c.bf16 %v906_v47, %v903_v46 }
  0xf2   : > { %v795_v53 = vmul.f32 0.35355338, %v790_v48  ;;  %v1726_v54 = vpop.f32.mrb[3].mxu0  ;;  %v1063_v3 = vsel %vm1055_vm3, %v1048_v50, 0 }
  0xf3   : > { %1197 = vrot.lane.b32.xlu1 %v1047_v52, %s1884_s30  ;;  %v1737_v55 = vpop.f32.mrb[4].mxu1  ;;  %v1060_v56 = vsel %vm1055_vm3, %v1047_v52, 0 }
  0xf4   : > { %797 = vst.msk [vmem:[#allocation2] sm:$0xff] %vm796_vm2, %v795_v53  ;;  %v927_v57 = vadd.f32 %v1737_v55, %v1654_v38  ;;  %1752 = vmatpush3.bf16.xpose.msra.mxu1 %v1060_v56  ;;  %v918_v58 = vpop.f32.mrb[5].mxu1 }
  0xf5   : > { %v919_v59 = vadd.f32 %v1654_v38, %v918_v58  ;;  %v1738_v60 = vpop.f32.mrb[6].mxu1  ;;  %1753 = vmatprep.subr.bf16.mxu1 %v1882_v2 }
  0xf6   : > { %v930_v61 = vadd.f32 %v1738_v60, %v1654_v38  ;;  %v921_v62 = vpop.f32.mrb[7].mxu1 }
  0xf7   : > { %v922_v63 = vadd.f32 %v1654_v38, %v921_v62  ;;  %1199 = vrot.lane.b32.xlu1 %v1048_v50, %s1884_s30  ;;  %v1745_v30 = vpop.f32.mrb[4].mxu0  ;;  %v1111_v50 = vld [vmem:[#allocation3] sm:$0xff] }
  0xf8   : > { %v1050_v0 = vpack.c.bf16 %v930_v61, %v927_v57  ;;  %v1023_v31 = vadd.f32 %v1745_v30, %v1661_v29  ;;  %v1014_v32 = vpop.f32.mrb[5].mxu0 }
  0xf9   : > { %v1049_v1 = vpack.c.bf16 %v922_v63, %v919_v59  ;;  %v1015_v33 = vadd.f32 %v1661_v29, %v1014_v32  ;;  %v1746_v34 = vpop.f32.mrb[6].mxu0 }
  0xfa   : > { %v1069_v7 = vsel %vm1055_vm3, %v1050_v0, 0  ;;  %v1026_v35 = vadd.f32 %v1746_v34, %v1661_v29  ;;  %v1017_v36 = vpop.f32.mrb[7].mxu0 }
  0xfb   : > { %1201 = vrot.lane.b32.xlu1 %v1049_v1, %s1884_s30  ;;  %v1045_v4 = vld [vmem:[#allocation2] sm:$0xff]  ;;  %v1066_v6 = vsel %vm1055_vm3, %v1049_v1, 0  ;;  %v1018_v37 = vadd.f32 %v1661_v29, %v1017_v36 }
  0xfc   : > { %1754 = vmatpush3.bf16.xpose.msra.mxu1 %v1063_v3  ;;  %v1046_v5 = vpack.c.bf16 %v1045_v4, %v1045_v4  ;;  %v2097_v38 = vpack.c.bf16 %v1026_v35, %v1023_v31 }
  0xfd   : > { %1755 = vmatprep.subr.bf16.mxu1 %v1882_v2  ;;  %v2099_v39 = vpack.c.bf16 %v1018_v37, %v1015_v33  ;;  %v1128_v33 = vld [vmem:[#allocation4] sm:$0xff]  ;;  %v1136_v37 = vld [vmem:[#allocation5] sm:$0xff] }
  0xff   : > { %1203 = vrot.lane.b32.xlu1 %v1050_v0, %s1884_s30  ;;  %v1749_v40 = vpop.f32.mrb[8].mxu0  ;;  %1764 = vmatpush3.bf16.msra.mxu0 %v2099_v39 }
 0x100   : > { %v1039_v41 = vadd.f32 %v1749_v40, %v1661_v29  ;;  %v1030_v42 = vpop.f32.mrb[9].mxu0  ;;  %1765 = vmatprep.subr.bf16.mxu0 %v1882_v2 }
 0x101   : > { %v1031_v43 = vadd.f32 %v1661_v29, %v1030_v42  ;;  %v1750_v44 = vpop.f32.mrb[10].mxu0 }
 0x102   : > { %v1042_v45 = vadd.f32 %v1750_v44, %v1661_v29  ;;  %v1033_v46 = vpop.f32.mrb[11].mxu0 }
 0x103   : > { %1191 = vrot.lane.b32.xlu1 %v1046_v5, %s1884_s30  ;;  %v1034_v47 = vadd.f32 %v1661_v29, %v1033_v46  ;;  %1766 = vmatpush3.bf16.msra.mxu0 %v2097_v38  ;;  %v1843_v46 = vld [vmem:[%s2185_s12] sm:$0xff]  }
 0x104   : > { %1756 = vmatpush3.bf16.xpose.msra.mxu1 %v1066_v6  ;;  %v1054_v48 = vpack.c.bf16 %v1042_v45, %v1039_v41  ;;  %1767 = vmatprep.subr.bf16.mxu0 %v1882_v2 }
 0x105   : > { %1757 = vmatprep.subr.bf16.mxu1 %v1882_v2  ;;  %v1053_v49 = vpack.c.bf16 %v1034_v47, %v1031_v43 }
 0x107   : > { %1768 = vmatpush3.bf16.msra.mxu0 %v1053_v49 }
 0x108   : > { %1769 = vmatprep.subr.bf16.mxu0 %v1882_v2 }
 0x10b   : > { %1770 = vmatpush3.bf16.msra.mxu0 %v1054_v48 }
 0x10c   : > { %1758 = vmatpush3.bf16.xpose.msra.mxu1 %v1069_v7  ;;  %1775 = vmatprep.subr.bf16.mxu0 %v1882_v2 }
 0x10d   : > { %1787 = vmatprep.subr.bf16.mxu1 %v1882_v2 }
 0x113   : > { %1760 = vmatmul.mubr.msk.bf16.vlgmr.msra.gmra.mrb[8].mxu1 %vm1055_vm3, %v1046_v5 }
 0x114   : > { %1795 = vmatprep.mubr.msk.bf16.mxu1 %vm1883_vm0, %v1882_v2 }
 0x165   : > { %v1198_v58 = vpop.permute.xlu1 %1197 }
 0x166   : > { %v1209_v60 = vsel %vm1055_vm3, %v1198_v58, 0 }
 0x169   : > { %v1200_v61 = vpop.permute.xlu1 %1199 }
 0x16a   : > { %v1212_v62 = vsel %vm1055_vm3, %v1200_v61, 0 }
 0x16d   : > { %v1202_v63 = vpop.permute.xlu1 %1201 }
 0x16e   : > { %v1215_v0 = vsel %vm1055_vm3, %v1202_v63, 0 }
 0x171   : > { %v1204_v1 = vpop.permute.xlu1 %1203 }
 0x172   : > { %v1218_v3 = vsel %vm1055_vm3, %v1204_v1, 0  ;;  %v1672_v1 = vld [vmem:[%s2186_s13] ss:$0 sm:$0xff] }
 0x175   : > { %v1192_v4 = vpop.permute.xlu1 %1191 }
 0x1e6   : > { %v1105_v23 = vpop.f32.mrb[8].mxu1 }
 0x1e7   : > { %v1761_v24 = vpop.f32.mrb[9].mxu1  ;;  %v1113_v25 = vsel %vm1112_vm5, %v1105_v23, -inf }
 0x1e8   : > { %1114 = vmax.xlane.f32.xlu0 %v1113_v25  ;;  %v1108_v26 = vpop.f32.mrb[10].mxu1 }
 0x1e9   : > { %v1762_v27 = vpop.f32.mrb[11].mxu1 }
 0x275   : > { %v1115_v51 = vpop.xlane.xlu0 %1114 }
 0x276   : > { %v1116_v52 = vmax.f32 %v1111_v50, %v1115_v51 }
 0x278   : > { %v1117_v53 = vsub.f32 %v1111_v50, %v1116_v52  ;;  %1189 = vst.msk [vmem:[#allocation3] sm:$0xff] %vm798_vm4, %v1116_v52  ;;  %1122 = vperm.xlu0 %1835, %v1116_v52  }
 0x27a   : > { %v1118_v19 = vmul.f32 1.442695, %v1117_v53 }
 0x2f7   : > { %v1123_v54 = vpop.permute.xlu0 %1122 }
 0x2f8   : > { %v1125_v55 = vsub.f32 %v1105_v23, %v1123_v54 }
 0x2fa   : > { %v1126_v56 = vmul.f32 1.442695, %v1125_v55 }
 0x2fc   : > { %1844 = vpow2.f32 %v1126_v56 }
 0x2fd   : > { %1846 = vpow2.f32 %v1118_v19 }
 0x306   : > { %v1845_v57 = vpop.eup %1844 }
 0x307   : > { %v1143_v59 = vpack.c.bf16 %v1845_v57, %v1845_v57  ;;  %v1130_v18 = vsel %vm1112_vm5, %v1845_v57, 0.0  ;;  %v1847_v20 = vpop.eup %1846 }
 0x308   : > { %v1129_v34 = vmul.f32 %v1847_v20, %v1128_v33 }
 0x309   : > { %1772 = vmatmul.mubr.msk.bf16.vlgmr.msra.gmra.mrb[12].mxu0 %vm1112_vm5, %v1143_v59 }
 0x30a   : > { %1776 = vmatpush3.bf16.xpose.msra.mxu0 %v1209_v60  ;;  %1783 = vmatprep.mubr.msk.bf16.mxu0 %vm1883_vm0, %v1882_v2 }
 0x30b   : > { %1777 = vmatprep.subr.bf16.mxu0 %v1882_v2 }
 0x312   : > { %1778 = vmatpush3.bf16.xpose.msra.mxu0 %v1212_v62 }
 0x313   : > { %1779 = vmatprep.subr.bf16.mxu0 %v1882_v2 }
 0x31a   : > { %1780 = vmatpush3.bf16.xpose.msra.mxu0 %v1215_v0 }
 0x31b   : > { %1781 = vmatprep.subr.bf16.mxu0 %v1882_v2 }
 0x322   : > { %1782 = vmatpush3.bf16.xpose.msra.mxu0 %v1218_v3 }
 0x329   : > { %1784 = vmatmul.mubr.msk.bf16.vlgmr.msra.gmra.mrb[16].mxu0 %vm1055_vm3, %v1192_v4  ;;  %v1441_v4 = vld [vmem:[%s711_s25] sm:$0xff] }
 0x3dc   : > { %v1181_v5 = vpop.f32.mrb[12].mxu0 }
 0x3dd   : > { %v1773_v6 = vpop.f32.mrb[13].mxu0 }
 0x3de   : > { %v1184_v7 = vpop.f32.mrb[14].mxu0 }
 0x3df   : > { %v1774_v8 = vpop.f32.mrb[15].mxu0 }
 0x3fc   : > { %v1254_v9 = vpop.f32.mrb[16].mxu0 }
 0x3fd   : > { %v1785_v10 = vpop.f32.mrb[17].mxu0  ;;  %v1262_v11 = vsel %vm1112_vm5, %v1254_v9, -inf }
 0x3fe   : > { %1263 = vmax.xlane.f32.xlu1 %v1262_v11  ;;  %v1257_v12 = vpop.f32.mrb[18].mxu0 }
 0x3ff   : > { %v1786_v13 = vpop.f32.mrb[19].mxu0 }
 0x40f   : > { %1301 = vrot.lane.b32.xlu1 %v1053_v49, %s1884_s30 }
 0x48b   : > { %v1264_v15 = vpop.xlane.xlu1 %1263 }
 0x48c   : > { %v1265_v16 = vmax.f32 %v1261_v14, %v1264_v15 }
 0x48e   : > { %v1266_v17 = vsub.f32 %v1261_v14, %v1265_v16  ;;  %1359 = vst.msk [vmem:[#allocation3 + $0x8] sm:$0xff] %vm798_vm4, %v1265_v16  ;;  %1271 = vperm.xlu0 %1835, %v1265_v16  }
 0x48f   : > { %v1302_v26 = vpop.permute.xlu1 %1301 }
 0x490   : > { %v1267_v31 = vmul.f32 1.442695, %v1266_v17 }
 0x492   : > { %1297 = vrot.lane.b32.xlu0 %v2099_v39, %s1884_s30 }
 0x496   : > { %1299 = vrot.lane.b32.xlu0 %v2097_v38, %s1884_s30 }
 0x49a   : > { %1303 = vrot.lane.b32.xlu0 %v1054_v48, %s1884_s30 }
 0x4b9   : > { %1131 = vadd.xlane.f32.xlu0 %v1130_v18 }
 0x4cf   : > { %1139 = vperm.xlu0 %1835, %v1847_v20   ;;  %v1675_v20 = vld [vmem:[%s2187_s14] ss:$0 sm:$0xff] }
 0x50d   : > { %v1272_v21 = vpop.permute.xlu0 %1271 }
 0x50e   : > { %v1274_v22 = vsub.f32 %v1254_v9, %v1272_v21 }
 0x510   : > { %v1275_v23 = vmul.f32 1.442695, %v1274_v22  ;;  %v1676_v22 = vld [vmem:[%s2188_s15] ss:$0 sm:$0xff] }
 0x511   : > { %v1298_v24 = vpop.permute.xlu0 %1297 }
 0x512   : > { %1848 = vpow2.f32 %v1275_v23  ;;  %1788 = vmatpush3.bf16.msra.mxu1 %v1298_v24 }
 0x513   : > { %1789 = vmatprep.subr.bf16.mxu1 %v1882_v2  ;;  %1850 = vpow2.f32 %v1267_v31 }
 0x515   : > { %v1300_v25 = vpop.permute.xlu0 %1299 }
 0x516   : > { %1790 = vmatpush3.bf16.msra.mxu1 %v1300_v25 }
 0x517   : > { %1791 = vmatprep.subr.bf16.mxu1 %v1882_v2 }
 0x519   : > { %v1304_v28 = vpop.permute.xlu0 %1303 }
 0x51a   : > { %1792 = vmatpush3.bf16.msra.mxu1 %v1302_v26 }
 0x51b   : > { %1793 = vmatprep.subr.bf16.mxu1 %v1882_v2 }
 0x51c   : > { %v1849_v27 = vpop.eup %1848 }
 0x51d   : > { %v1280_v29 = vsel %vm1112_vm5, %v1849_v27, 0.0  ;;  %v1292_v30 = vpack.c.bf16 %v1849_v27, %v1849_v27  ;;  %v1851_v32 = vpop.eup %1850 }
 0x51e   : > { %1281 = vadd.xlane.f32.xlu1 %v1280_v29  ;;  %1794 = vmatpush3.bf16.msra.mxu1 %v1304_v28 }
 0x51f   : > { %1799 = vmatprep.subr.bf16.mxu1 %v1882_v2 }
 0x521   : > { %1796 = vmatmul.mubr.msk.bf16.vlgmr.msra.gmra.mrb[12].mxu1 %vm1112_vm5, %v1292_v30 }
 0x522   : > { %1801 = vmatprep.mubr.msk.bf16.mxu1 %vm1883_vm0, %v1882_v2  ;;  %v1278_v2 = vld [vmem:[#allocation4 + $0x8] sm:$0xff]  ;;  %1800 = vmatpush3.bf16.msra.mxu1 %v1843_v46 }
 0x523   : > { %v1279_v43 = vmul.f32 %v1851_v32, %v1278_v2 }
 0x52f   : > { %1288 = vperm.xlu1 %1836, %v1851_v32  }
 0x546   : > { %v1132_v35 = vpop.xlane.xlu0 %1131 }
 0x547   : > { %v1133_v36 = vadd.f32 %v1132_v35, %v1129_v34 }
 0x549   : > { %1135 = vst.msk [vmem:[#allocation4] sm:$0xff] %vm798_vm4, %v1133_v36 }
 0x54e   : > { %v1140_v38 = vpop.permute.xlu0 %1139 }
 0x54f   : > { %v1142_v39 = vmul.f32 %v1140_v38, %v1136_v37 }
 0x550   : > { %v1364_v40 = vld [vmem:[#allocation4] sm:$0xff] }
 0x551   : > { %v1187_v41 = vadd.f32 %v1181_v5, %v1142_v39  ;;  %1852 = vrcp.f32 %v1364_v40 }
 0x553   : > { %1188 = vst.msk [vmem:[#allocation5] sm:$0xff] %vm1055_vm3, %v1187_v41 }
 0x55a   : > { %v1285_v55 = vld [vmem:[#allocation5] sm:$0xff] }
 0x55b   : > { %v1853_v42 = vpop.eup %1852 }
 0x55c   : > { %1368 = vperm.xlu0 %1835, %v1853_v42  }
 0x5ab   : > { %v1282_v44 = vpop.xlane.xlu1 %1281 }
 0x5ac   : > { %v1283_v45 = vadd.f32 %v1282_v44, %v1279_v43 }
 0x5ae   : > { %1284 = vst.msk [vmem:[#allocation4 + $0x8] sm:$0xff] %vm798_vm4, %v1283_v45 }
 0x5af   : > { %v1289_v53 = vpop.permute.xlu1 %1288 }
 0x5b0   : > { %v1291_v56 = vmul.f32 %v1289_v53, %v1285_v55 }
 0x5b5   : > { %v1372_v47 = vld [vmem:[#allocation4 + $0x8] sm:$0xff] }
 0x5b6   : > { %1854 = vrcp.f32 %v1372_v47 }
 0x5c0   : > { %v1855_v52 = vpop.eup %1854 }
 0x5db   : > { %v1369_v54 = vpop.permute.xlu0 %1368 }
 0x5f4   : > { %v1346_v48 = vpop.f32.mrb[12].mxu1 }
 0x5f5   : > { %1353 = vrot.lane.b32.xlu0 %v1346_v48, %s1887_s17  ;;  %v1797_v49 = vpop.f32.mrb[13].mxu1 }
 0x5f6   : > { %v1349_v50 = vpop.f32.mrb[14].mxu1 }
 0x5f7   : > { %v1798_v51 = vpop.f32.mrb[15].mxu1 }
 0x5f9   : > { %1376 = vperm.xlu0 %1835, %v1855_v52  }
 0x667   : > { %v1354_v57 = vpop.permute.xlu0 %1353 }
 0x668   : > { %v1356_v58 = vadd.f32 %v1354_v57, %v1291_v56 }
 0x66a   : > { %1358 = vst.msk [vmem:[#allocation5] sm:$0xff] %vm1357_vm6, %v1356_v58 }
 0x671   : > { %v1363_v59 = vld [vmem:[#allocation5] sm:$0xff] }
 0x672   : > { %v1371_v61 = vmul.f32 %v1369_v54, %v1363_v59 }
 0x678   : > { %v1377_v60 = vpop.permute.xlu0 %1376 }
 0x679   : > { %v1379_v62 = vmul.f32 %v1377_v60, %v1363_v59 }
 0x67b   : > { %v1380_v63 = vsel %vm1055_vm3, %v1371_v61, %v1379_v62 }
 0x67c   : > { %v1381_v0 = vpack.c.bf16 %v1380_v63, %v1380_v63 }
 0x67e   : > { %1802 = vmatmul.mubr.msk.bf16.vlgmr.msra.gmra.mrb[16].mxu1 %vm796_vm2, %v1381_v0 }
 0x751   : > { %v1435_v3 = vpop.f32.mrb[16].mxu1 }
 0x752   : > { %v1436_v5 = vadd.f32 %v1672_v1, %v1435_v3  ;;  %v1803_v6 = vpop.f32.mrb[17].mxu1 }
 0x753   : > { %v1438_v7 = vpop.f32.mrb[18].mxu1 }
 0x754   : > { %v1804_v8 = vpop.f32.mrb[19].mxu1  ;;  %v1442_v9 = vadd.f32 %v1441_v4, %v1436_v5 }
 0x756   : > { %v1445_v10 = vsel %vm751_vm1, %v1442_v9, 0.0 }
 0x757   : > { %1446 = vadd.xlane.f32.xlu1 %v1445_v10 }
 0x7e4   : > { %v1447_v11 = vpop.xlane.xlu1 %1446 }
 0x7e5   : > { %v1449_v12 = vmul.f32 0.03125, %v1447_v11 }
 0x7e7   : > { %v1450_v13 = vsub.f32 %v1442_v9, %v1449_v12 }
 0x7e9   : > { %v1451_v14 = vmul.f32 %v1450_v13, %v1450_v13 }
 0x7eb   : > { %v1452_v15 = vsel %vm751_vm1, %v1451_v14, 0.0 }
 0x7ec   : > { %1453 = vadd.xlane.f32.xlu0 %v1452_v15 }
 0x879   : > { %v1454_v16 = vpop.xlane.xlu0 %1453 }
 0x87a   : > { %v1455_v17 = vmul.f32 0.03125, %v1454_v16 }
 0x87c   : > { %v1456_v18 = vadd.f32 1e-05, %v1455_v17 }
 0x87e   : > { %1856 = vrsqrt.f32 %v1456_v18 }
 0x888   : > { %v1857_v19 = vpop.eup %1856 }
 0x889   : > { %v1458_v21 = vmul.f32 %v1857_v19, %v1450_v13 }
 0x88b   : > { %v1465_v23 = vmul.f32 %v1675_v20, %v1458_v21 }
 0x88d   : > { %v1472_v24 = vadd.f32 %v1676_v22, %v1465_v23 }
 0x88f   : > { %1473 = vst.msk [vmem:[%s718_s18] sm:$0xff] %vm751_vm1, %v1472_v24 }
 0x890 PF: > { %s26_s23 = sadd.s32 1, %s1880_s23   ;;  %s2192_s21 = smov %s1876_s22 }
 0x891   : > { %p23_p5 = scmp.ge.s32.totalorder %s26_s23, 4   ;;  %s2193_s22 = smov %s2195_s24 }
 0x893   :  { %25 = sbr.rel (!%p23_p5) target bundleno = 2 (0x2), region = 139 }

// kernel: two_way_transformer.12
= control target key start
LH: loop header
LB: loop body
LE: loop exit
PB: predicated region body
PF: predicated region fallthrough
CT: control target
= control target key end

     0   :  { %s3005_s21 = smov 0   ;;  %s3007_s22 = smov 0   ;;  %s3759_s0 = inlined_call_operand.vmem [shape: f32[2,64,32], index: 0, kind: input, shape index: {}, may-alias: {0,5}]   ;;  %s3760_s1 = inlined_call_operand.vmem [shape: f32[2,64,32], index: 1, kind: input, shape index: {}]   ;;  %s3761_s2 = inlined_call_operand.vmem [shape: f32[2,8,32], index: 2, kind: input, shape index: {}, may-alias: {2,4}]   ;;  %s3762_s3 = inlined_call_operand.vmem [shape: f32[2,8,32], index: 3, kind: input, shape index: {}]   ;;  %s3763_s4 = inlined_call_operand.vmem [shape: f32[2,8,32], index: 4, kind: input, shape index: {}, may-alias: {2,4}]   ;;  %s3764_s5 = inlined_call_operand.vmem [shape: f32[2,64,32], index: 5, kind: input, shape index: {}, may-alias: {0,5}]   ;;  %s3765_s6 = inlined_call_operand.vmem [shape: bf16[32,16], index: 6, kind: input, shape index: {}]   ;;  %s3766_s7 = inlined_call_operand.vmem [shape: f32[1,16], index: 7, kind: input, shape index: {}]   ;;  %s3767_s8 = inlined_call_operand.vmem [shape: bf16[32,16], index: 8, kind: input, shape index: {}]   ;;  %s3768_s9 = inlined_call_operand.vmem [shape: f32[1,16], index: 9, kind: input, shape index: {}]   ;;  %s3769_s10 = inlined_call_operand.vmem [shape: bf16[32,16], index: 10, kind: input, shape index: {}]   ;;  %s3770_s11 = inlined_call_operand.vmem [shape: f32[1,16], index: 11, kind: input, shape index: {}]   ;;  %s3771_s12 = inlined_call_operand.vmem [shape: bf16[16,32], index: 12, kind: input, shape index: {}]   ;;  %s3772_s13 = inlined_call_operand.vmem [shape: f32[1,32], index: 13, kind: input, shape index: {}]   ;;  %s3773_s14 = inlined_call_operand.vmem [shape: f32[1,32], index: 14, kind: input, shape index: {}]   ;;  %s3774_s15 = inlined_call_operand.vmem [shape: f32[1,32], index: 15, kind: input, shape index: {}]   ;;  %s3775_s16 = inlined_call_operand.vmem [shape: f32[2,64,32], index: 16, kind: output, shape index: {}]  }
   0x1   :  { %3776 = sst [smem:[#allocation6_spill]] %s3759_s0  ;;  %s3009_s23 = smov 0  }
   0x2 LB: > { %s45_s24 = sadd.s32 1, %s2908_s22  ;;  %p2559_p0 = scmp.ge.s32.totalorder %s2912_s23, 1  ;;  %s2912_s23 = sphi %s3009_s23, %s26_s23   ;;  %s2908_s22 = sphi %s3007_s22, %s3780_s22   ;;  %s2904_s21 = sphi %s3005_s21, %s3779_s21  }
   0x3   : > { %p47_p1 = scmp.ge.s32.totalorder %s45_s24, 2  ;;  %p566_p2 = scmp.lt.s32.totalorder %s2912_s23, 3 }
   0x5   : > { %s3782_s24 = smov (%p47_p1, %s45_s24), 0  ;;  %p567_p3 = pnand %p2559_p0, %p566_p2 }
   0x6   : > { %v2771_v0 = vld [vmem:[%s3765_s6] sm:$0xff] (!%p567_p3)   ;;  %p664_p4 = scmp.lt.s32.totalorder (!%p567_p3), %s2904_s21, 1  ;;  %v2772_v1 = vld [vmem:[%s3765_s6 + $0x8] sm:$0xff] (!%p567_p3)   ;;  %s3777_s17 = sld [smem:[#allocation6_spill]] (!%p567_p3)  ;;  %v2914_v13 = vmov (!%p567_p3), 0.0   ;;  %vm780_vm0 = vcmask (!%p567_p3), 261120  }
   0x7   : > { %570 = sbr.rel (%p567_p3) target bundleno = 1786 (0x6fa), region = 84  ;;  %2653 = vmatprep.subr.bf16.mxu0 (!%p567_p3), %v2771_v0  ;;  %2731 = vmatprep.subr.bf16.mxu1 (!%p567_p3), %v2771_v0  ;;  %v2773_v30 = vld [vmem:[%s3767_s8] sm:$0xff] (!%p567_p3)   ;;  %v2774_v35 = vld [vmem:[%s3767_s8 + $0x8] sm:$0xff] (!%p567_p3)   ;;  %vm2915_vm1 = vmmov (!%p567_p3), 0   ;;  %vm866_vm2 = vcmask (!%p567_p3), 130048   ;;  %vm1069_vm3 = vcmask (!%p567_p3), 64512  }
   0x8   : > { %2654 = vmatpush3.bf16.msra.mxu0 (!%p567_p3), %v2771_v0  ;;  %2733 = vmatpush3.bf16.msra.mxu1 (!%p567_p3), %v2771_v0  ;;  %908 = vst.msk [vmem:[#allocation5] sm:$0xff] (!%p567_p3), %vm866_vm2, %v2914_v13  ;;  %909 = vst.msk [vmem:[#allocation5 + $0x8] sm:$0xff] (!%p567_p3), %vm866_vm2, %v2914_v13  ;;  %v2571_v38 = vld [vmem:[%s3766_s7] ss:$0 sm:$0xff] (!%p567_p3)  ;;  %s2916_s0 = smov (!%p567_p3), 120   ;;  %vm875_vm4 = vcmask (!%p567_p3), 7168  }
   0x9   : > { %2655 = vmatprep.subr.bf16.mxu0 (!%p567_p3), %v2772_v1  ;;  %2732 = vmatprep.subr.bf16.mxu1 (!%p567_p3), %v2772_v1  ;;  %910 = vst.msk [vmem:[#allocation5 + $0x10] sm:$0xff] (!%p567_p3), %vm866_vm2, %v2914_v13  ;;  %911 = vst.msk [vmem:[#allocation5 + $0x18] sm:$0xff] (!%p567_p3), %vm866_vm2, %v2914_v13  ;;  %v2578_v62 = vld [vmem:[%s3768_s9] ss:$0 sm:$0xff] (!%p567_p3)  ;;  %vm1407_vm5 = vcmask (!%p567_p3), 1043456   ;;  %s2919_s30 = smov (!%p567_p3), 8  }
   0xa   : > { %912 = vst.msk [vmem:[#allocation5 + $0x20] sm:$0xff] (!%p567_p3), %vm866_vm2, %v2914_v13  ;;  %913 = vst.msk [vmem:[#allocation5 + $0x28] sm:$0xff] (!%p567_p3), %vm866_vm2, %v2914_v13  ;;  %vm1964_vm6 = vcmask (!%p567_p3), 130112  }
   0xb   : > { %914 = vst.msk [vmem:[#allocation5 + $0x30] sm:$0xff] (!%p567_p3), %vm866_vm2, %v2914_v13  ;;  %915 = vst.msk [vmem:[#allocation5 + $0x38] sm:$0xff] (!%p567_p3), %vm866_vm2, %v2914_v13 }
   0xc   : > { %2656 = vmatpush3.bf16.msra.mxu0 (!%p567_p3), %v2772_v1  ;;  %2734 = vmatpush3.bf16.msra.mxu1 (!%p567_p3), %v2772_v1  ;;  %892 = vst.msk [vmem:[#allocation4] sm:$0xff] (!%p567_p3), %vm875_vm4, %v2914_v13  ;;  %893 = vst.msk [vmem:[#allocation4 + $0x8] sm:$0xff] (!%p567_p3), %vm875_vm4, %v2914_v13 }
   0xd   : > { %2665 = vmatprep.subr.bf16.mxu1 (!%p567_p3), %v2914_v13  ;;  %894 = vst.msk [vmem:[#allocation4 + $0x10] sm:$0xff] (!%p567_p3), %vm875_vm4, %v2914_v13  ;;  %895 = vst.msk [vmem:[#allocation4 + $0x18] sm:$0xff] (!%p567_p3), %vm875_vm4, %v2914_v13 }
   0xe   : > { %s3784_s21 = smov (!%p664_p4, %s2904_s21), 1  ;;  %896 = vst.msk [vmem:[#allocation4 + $0x20] sm:$0xff] %vm875_vm4, %v2914_v13  ;;  %897 = vst.msk [vmem:[#allocation4 + $0x28] sm:$0xff] %vm875_vm4, %v2914_v13 }
   0xf   : > { %s3029_s29 = sshll.u32 %s3784_s21, 6  ;;  %s3043_s26 = sshll.u32 %s3784_s21, 3  ;;  %898 = vst.msk [vmem:[#allocation4 + $0x30] sm:$0xff] %vm875_vm4, %v2914_v13  ;;  %899 = vst.msk [vmem:[#allocation4 + $0x38] sm:$0xff] %vm875_vm4, %v2914_v13 }
  0x10   : > { %s671_s18 = scalar_lea.vmem %s3777_s17, %s3029_s29  ;;  %s3039_s25 = scalar_lea.vmem %s3760_s1, %s3029_s29  ;;  %900 = vst.msk [vmem:[#allocation4 + $0x40] sm:$0xff] %vm875_vm4, %v2914_v13  ;;  %901 = vst.msk [vmem:[#allocation4 + $0x48] sm:$0xff] %vm875_vm4, %v2914_v13 }
  0x11   : > { %v729_v2 = vld [vmem:[%s671_s18] sm:$0xff]  ;;  %v730_v3 = vld [vmem:[%s671_s18 + $0x8] sm:$0xff]  ;;  %v731_v12 = vld [vmem:[%s671_s18 + $0x10] sm:$0xff]  ;;  %s689_s28 = scalar_lea.vmem %s3761_s2, %s3043_s26  ;;  %s696_s17 = scalar_lea.vmem %s3762_s3, %s3043_s26  ;;  %902 = vst.msk [vmem:[#allocation4 + $0x50] sm:$0xff] %vm875_vm4, %v2914_v13 }
  0x12   : > { %v737_v4 = vld [vmem:[%s3039_s25] sm:$0xff]  ;;  %v738_v5 = vld [vmem:[%s3039_s25 + $0x8] sm:$0xff]  ;;  %v732_v16 = vld [vmem:[%s671_s18 + $0x18] sm:$0xff]  ;;  %903 = vst.msk [vmem:[#allocation4 + $0x58] sm:$0xff] %vm875_vm4, %v2914_v13  ;;  %s3653_s20 = scalar_lea.vmem %s3764_s5, %s3029_s29  ;;  %s3725_s19 = scalar_lea.vmem %s3775_s16, %s3029_s29 }
  0x13   : > { %v745_v6 = vadd.f32 %v737_v4, %v729_v2  ;;  %v733_v7 = vld [vmem:[%s671_s18 + $0x20] sm:$0xff]  ;;  %v734_v8 = vld [vmem:[%s671_s18 + $0x28] sm:$0xff]  ;;  %v746_v9 = vadd.f32 %v738_v5, %v730_v3  ;;  %v739_v17 = vld [vmem:[%s3039_s25 + $0x10] sm:$0xff]  ;;  %904 = vst.msk [vmem:[#allocation4 + $0x60] sm:$0xff] %vm875_vm4, %v2914_v13 }
  0x14   : > { %v741_v10 = vld [vmem:[%s3039_s25 + $0x20] sm:$0xff]  ;;  %v742_v11 = vld [vmem:[%s3039_s25 + $0x28] sm:$0xff]  ;;  %v740_v18 = vld [vmem:[%s3039_s25 + $0x18] sm:$0xff]  ;;  %v747_v20 = vadd.f32 %v739_v17, %v731_v12  ;;  %905 = vst.msk [vmem:[#allocation4 + $0x68] sm:$0xff] %vm875_vm4, %v2914_v13 }
  0x15   : > { %v749_v14 = vadd.f32 %v741_v10, %v733_v7  ;;  %v750_v15 = vadd.f32 %v742_v11, %v734_v8  ;;  %v753_v19 = vpack.c.bf16 %v746_v9, %v745_v6  ;;  %v748_v21 = vadd.f32 %v740_v18, %v732_v16  ;;  %v735_v22 = vld [vmem:[%s671_s18 + $0x30] sm:$0xff]  ;;  %v736_v23 = vld [vmem:[%s671_s18 + $0x38] sm:$0xff]  ;;  %v916_v31 = vld [vmem:[%s689_s28] sm:$0xff]  ;;  %906 = vst.msk [vmem:[#allocation4 + $0x70] sm:$0xff] %vm875_vm4, %v2914_v13 }
  0x16   : > { %v743_v24 = vld [vmem:[%s3039_s25 + $0x30] sm:$0xff]  ;;  %v744_v26 = vld [vmem:[%s3039_s25 + $0x38] sm:$0xff]  ;;  %v917_v32 = vld [vmem:[%s696_s17] sm:$0xff]  ;;  %s703_s25 = scalar_lea.vmem %s3763_s4, %s3043_s26  ;;  %907 = vst.msk [vmem:[#allocation4 + $0x78] sm:$0xff] %vm875_vm4, %v2914_v13 }
  0x17   : > { %v755_v25 = vpack.c.bf16 %v750_v15, %v749_v14  ;;  %v751_v27 = vadd.f32 %v743_v24, %v735_v22  ;;  %2657 = vmatprep.mubr.msk.bf16.mxu0 %vm780_vm0, %v753_v19  ;;  %v754_v28 = vpack.c.bf16 %v748_v21, %v747_v20  ;;  %v752_v29 = vadd.f32 %v744_v26, %v736_v23  ;;  %v2775_v19 = vld [vmem:[%s3769_s10] sm:$0xff]   ;;  %v2776_v20 = vld [vmem:[%s3769_s10 + $0x8] sm:$0xff]  }
  0x18   : > { %v918_v34 = vadd.f32 %v917_v32, %v916_v31  ;;  %v987_v21 = vld [vmem:[%s703_s25] sm:$0xff] }
  0x19   : > { %2661 = vmatprep.mubr.msk.bf16.mxu1 %vm780_vm0, %v755_v25  ;;  %2658 = vmatmul.mubr.msk.bf16.vlgmr.msra.gmra.mrb[0].mxu0 %vm780_vm0, %v754_v28  ;;  %v756_v33 = vpack.c.bf16 %v752_v29, %v751_v27  ;;  %v988_v22 = vpack.c.bf16 %v987_v21, %v987_v21 }
  0x1a   : > { %v919_v36 = vpack.c.bf16 %v918_v34, %v918_v34 }
  0x1b   : > { %2662 = vmatmul.mubr.msk.bf16.vlgmr.msra.gmra.mrb[0].mxu1 %vm780_vm0, %v756_v33 }
  0x1c   : > { %2666 = vmatpush3.bf16.msra.mxu1 %v2773_v30  ;;  %2669 = vmatprep.mubr.msk.bf16.mxu1 %vm2915_vm1, %v2914_v13 }
  0x1d   : > { %2667 = vmatprep.subr.bf16.mxu1 %v2914_v13 }
  0x20   : > { %2668 = vmatpush3.bf16.msra.mxu1 %v2774_v35  ;;  %v2917_v35 = vmov -inf  }
  0x21   : > { %2673 = vmatprep.subr.bf16.mxu1 %v2914_v13  ;;  %876 = vst.msk [vmem:[#allocation3] sm:$0xff] %vm875_vm4, %v2917_v35  ;;  %877 = vst.msk [vmem:[#allocation3 + $0x8] sm:$0xff] %vm875_vm4, %v2917_v35 }
  0x22   : > { %878 = vst.msk [vmem:[#allocation3 + $0x10] sm:$0xff] %vm875_vm4, %v2917_v35  ;;  %879 = vst.msk [vmem:[#allocation3 + $0x18] sm:$0xff] %vm875_vm4, %v2917_v35 }
  0x23   : > { %2670 = vmatmul.mubr.msk.bf16.vlgmr.msra.gmra.mrb[4].mxu1 %vm780_vm0, %v919_v36  ;;  %880 = vst.msk [vmem:[#allocation3 + $0x20] sm:$0xff] %vm875_vm4, %v2917_v35  ;;  %881 = vst.msk [vmem:[#allocation3 + $0x28] sm:$0xff] %vm875_vm4, %v2917_v35 }
  0x24   : > { %2677 = vmatprep.mubr.msk.bf16.mxu1 %vm2915_vm1, %v2914_v13  ;;  %2674 = vmatpush3.bf16.msra.mxu1 %v2775_v19  ;;  %882 = vst.msk [vmem:[#allocation3 + $0x30] sm:$0xff] %vm875_vm4, %v2917_v35  ;;  %883 = vst.msk [vmem:[#allocation3 + $0x38] sm:$0xff] %vm875_vm4, %v2917_v35 }
  0x25   : > { %2675 = vmatprep.subr.bf16.mxu1 %v2914_v13  ;;  %884 = vst.msk [vmem:[#allocation3 + $0x40] sm:$0xff] %vm875_vm4, %v2917_v35  ;;  %885 = vst.msk [vmem:[#allocation3 + $0x48] sm:$0xff] %vm875_vm4, %v2917_v35 }
  0x26   : > { %886 = vst.msk [vmem:[#allocation3 + $0x50] sm:$0xff] %vm875_vm4, %v2917_v35  ;;  %887 = vst.msk [vmem:[#allocation3 + $0x58] sm:$0xff] %vm875_vm4, %v2917_v35 }
  0x27   : > { %888 = vst.msk [vmem:[#allocation3 + $0x60] sm:$0xff] %vm875_vm4, %v2917_v35  ;;  %889 = vst.msk [vmem:[#allocation3 + $0x68] sm:$0xff] %vm875_vm4, %v2917_v35 }
  0x28   : > { %2676 = vmatpush3.bf16.msra.mxu1 %v2776_v20  ;;  %890 = vst.msk [vmem:[#allocation3 + $0x70] sm:$0xff] %vm875_vm4, %v2917_v35  ;;  %891 = vst.msk [vmem:[#allocation3 + $0x78] sm:$0xff] %vm875_vm4, %v2917_v35 }
  0x2a   : > { %v3281_v19 = vld [vmem:[#allocation3 + $0x20] sm:$0xff] }
  0x2b   : > { %2678 = vmatmul.mubr.msk.bf16.vlgmr.msra.gmra.mrb[8].mxu1 %vm780_vm0, %v988_v22 }
  0xec   : > { %v2659_v37 = vpop.f32.mrb[0].mxu0 }
  0xed   : > { %v836_v39 = vadd.f32 %v2659_v37, %v2571_v38  ;;  %v827_v40 = vpop.f32.mrb[1].mxu0 }
  0xee   : > { %v2663_v41 = vpop.f32.mrb[0].mxu1  ;;  %v828_v42 = vadd.f32 %v2571_v38, %v827_v40  ;;  %v2660_v43 = vpop.f32.mrb[2].mxu0 }
  0xef   : > { %v860_v44 = vmul.f32 0.35355338, %v836_v39  ;;  %v852_v45 = vadd.f32 %v2663_v41, %v2571_v38  ;;  %v843_v46 = vpop.f32.mrb[1].mxu1  ;;  %v839_v47 = vadd.f32 %v2660_v43, %v2571_v38  ;;  %v830_v48 = vpop.f32.mrb[3].mxu0 }
  0xf0   : > { %v858_v49 = vmul.f32 0.35355338, %v828_v42  ;;  %v844_v50 = vadd.f32 %v2571_v38, %v843_v46  ;;  %v2664_v51 = vpop.f32.mrb[2].mxu1  ;;  %v831_v52 = vadd.f32 %v2571_v38, %v830_v48 }
  0xf1   : > { %869 = vst.msk [vmem:[#allocation2 + $0x10] sm:$0xff] %vm866_vm2, %v860_v44  ;;  %v864_v53 = vmul.f32 0.35355338, %v852_v45  ;;  %v861_v54 = vmul.f32 0.35355338, %v839_v47  ;;  %v855_v55 = vadd.f32 %v2664_v51, %v2571_v38  ;;  %v846_v56 = vpop.f32.mrb[3].mxu1 }
  0xf2   : > { %867 = vst.msk [vmem:[#allocation2] sm:$0xff] %vm866_vm2, %v858_v49  ;;  %v862_v57 = vmul.f32 0.35355338, %v844_v50  ;;  %v859_v58 = vmul.f32 0.35355338, %v831_v52  ;;  %v847_v59 = vadd.f32 %v2571_v38, %v846_v56  ;;  %v2918_v45 = vmov 0  }
  0xf3   : > { %873 = vst.msk [vmem:[#allocation2 + $0x30] sm:$0xff] %vm866_vm2, %v864_v53  ;;  %870 = vst.msk [vmem:[#allocation2 + $0x18] sm:$0xff] %vm866_vm2, %v861_v54  ;;  %v865_v60 = vmul.f32 0.35355338, %v855_v55  ;;  %2769 = vset.pattern.permute.xlu0 %v2918_v45  ;;  %2770 = vset.pattern.permute.xlu1 %v2918_v45 }
  0xf4   : > { %871 = vst.msk [vmem:[#allocation2 + $0x20] sm:$0xff] %vm866_vm2, %v862_v57  ;;  %868 = vst.msk [vmem:[#allocation2 + $0x8] sm:$0xff] %vm866_vm2, %v859_v58  ;;  %v863_v61 = vmul.f32 0.35355338, %v847_v59 }
  0xf5   : > { %874 = vst.msk [vmem:[#allocation2 + $0x38] sm:$0xff] %vm866_vm2, %v865_v60 }
  0xf6   : > { %872 = vst.msk [vmem:[#allocation2 + $0x28] sm:$0xff] %vm866_vm2, %v863_v61  ;;  %v981_v63 = vpop.f32.mrb[4].mxu1 }
  0xf7   : > { %v982_v0 = vadd.f32 %v2578_v62, %v981_v63  ;;  %v2671_v1 = vpop.f32.mrb[5].mxu1  ;;  %v3246_v62 = vld [vmem:[#allocation3] sm:$0xff] }
  0xf8   : > { %v984_v2 = vpop.f32.mrb[6].mxu1  ;;  %v1057_v3 = vld [vmem:[#allocation2 + $0x10] sm:$0xff] }
  0xf9   : > { %v1067_v4 = vpack.c.bf16 %v982_v0, %v982_v0  ;;  %v2672_v5 = vpop.f32.mrb[7].mxu1  ;;  %v1055_v6 = vld [vmem:[#allocation2] sm:$0xff]  ;;  %v3248_v0 = vld [vmem:[#allocation3 + $0x8] sm:$0xff] }
  0xfa   : > { %v1058_v7 = vld [vmem:[#allocation2 + $0x18] sm:$0xff]  ;;  %v1061_v17 = vld [vmem:[#allocation2 + $0x30] sm:$0xff] }
  0xfb   : > { %1513 = vrot.lane.b32.xlu0 %v1067_v4, %s2916_s0  ;;  %2735 = vmatprep.subr.msk.bf16.mxu0 %vm1069_vm3, %v1067_v4  ;;  %v1083_v8 = vsel %vm1069_vm3, %v1067_v4, 0  ;;  %v1064_v9 = vpack.c.bf16 %v1058_v7, %v1057_v3  ;;  %v1056_v10 = vld [vmem:[#allocation2 + $0x8] sm:$0xff]  ;;  %v1059_v14 = vld [vmem:[#allocation2 + $0x20] sm:$0xff]  ;;  %v3253_v4 = vld [vmem:[#allocation3 + $0x18] sm:$0xff] }
  0xfc   : > { %2682 = vmatpush3.bf16.xpose.msra.mxu0 %v1083_v8  ;;  %v1063_v11 = vpack.c.bf16 %v1056_v10, %v1055_v6  ;;  %v1062_v15 = vld [vmem:[#allocation2 + $0x38] sm:$0xff]  ;;  %v3262_v10 = vld [vmem:[#allocation3 + $0x10] sm:$0xff] }
  0xfd   : > { %1506 = vrot.lane.b32.xlu1 %v1064_v9, %s2916_s0  ;;  %v1060_v12 = vld [vmem:[#allocation2 + $0x28] sm:$0xff]  ;;  %v1066_v18 = vpack.c.bf16 %v1062_v15, %v1061_v17 }
  0xfe   : > { %2683 = vmatprep.mubr.msk.bf16.mxu0 %vm1069_vm3, %v1063_v11  ;;  %v1065_v16 = vpack.c.bf16 %v1060_v12, %v1059_v14  ;;  %v1049_v2 = vpop.f32.mrb[8].mxu1 }
  0xff   : > { %1504 = vrot.lane.b32.xlu0 %v1063_v11, %s2916_s0  ;;  %v2679_v5 = vpop.f32.mrb[9].mxu1 }
 0x100   : > { %v1052_v8 = vpop.f32.mrb[10].mxu1 }
 0x101   : > { %1508 = vrot.lane.b32.xlu1 %v1065_v16, %s2916_s0  ;;  %v2680_v11 = vpop.f32.mrb[11].mxu1 }
 0x102   : > { %v3364_v11 = vld [vmem:[#allocation3 + $0x60] sm:$0xff] }
 0x103   : > { %2684 = vmatmul.mubr.msk.bf16.vlgmr.msra.gmra.mrb[4].mxu0 %vm1069_vm3, %v1064_v9  ;;  %1510 = vrot.lane.b32.xlu0 %v1066_v18, %s2916_s0 }
 0x104   : > { %2687 = vmatprep.mubr.msk.bf16.mxu0 %vm1069_vm3, %v1065_v16 }
 0x10b   : > { %2688 = vmatmul.mubr.msk.bf16.gmra.mrb[8].mxu0 %vm1069_vm3, %v1066_v18  ;;  %v3278_v18 = vld [vmem:[#allocation3 + $0x38] sm:$0xff] }
 0x16d   : > { %v1514_v23 = vpop.permute.xlu0 %1513 }
 0x16e   : > { %2737 = vmatprep.subr.msk.bf16.mxu0 %vm1069_vm3, %v1514_v23  ;;  %v1528_v24 = vsel %vm1069_vm3, %v1514_v23, 0 }
 0x16f   : > { %2702 = vmatpush3.bf16.xpose.msra.mxu0 %v1528_v24  ;;  %v1507_v25 = vpop.permute.xlu1 %1506 }
 0x171   : > { %v1505_v26 = vpop.permute.xlu0 %1504 }
 0x172   : > { %2703 = vmatprep.mubr.msk.bf16.mxu0 %vm1069_vm3, %v1505_v26 }
 0x173   : > { %v1509_v27 = vpop.permute.xlu1 %1508 }
 0x175   : > { %v1511_v28 = vpop.permute.xlu0 %1510 }
 0x176   : > { %2704 = vmatmul.mubr.msk.bf16.vlgmr.msra.gmra.mrb[12].mxu0 %vm1069_vm3, %v1507_v25  ;;  %v3294_v25 = vld [vmem:[#allocation3 + $0x28] sm:$0xff] }
 0x177   : > { %2707 = vmatprep.mubr.msk.bf16.mxu0 %vm1069_vm3, %v1509_v27  ;;  %v3300_v27 = vld [vmem:[#allocation3 + $0x30] sm:$0xff] }
 0x17e   : > { %2708 = vmatmul.mubr.msk.bf16.gmra.mrb[16].mxu0 %vm1069_vm3, %v1511_v28 }
 0x1d6   : > { %v3134_v29 = vpop.f32.mrb[4].mxu0 }
 0x1d7   : > { %v3136_v30 = vpop.f32.mrb[5].mxu0  ;;  %v1164_v38 = vsel %vm1069_vm3, %v3134_v29, -inf }
 0x1d8   : > { %v3138_v31 = vpop.f32.mrb[6].mxu0  ;;  %v1158_v32 = vsel %vm1069_vm3, %v3136_v30, -inf }
 0x1d9   : > { %1159 = vmax.xlane.f32.xlu1 %v1158_v32  ;;  %v3142_v33 = vpop.f32.mrb[7].mxu0  ;;  %v1167_v36 = vsel %vm1069_vm3, %v3138_v31, -inf }
 0x1da   : > { %v1161_v34 = vsel %vm1069_vm3, %v3142_v33, -inf }
 0x1db   : > { %1162 = vmax.xlane.f32.xlu0 %v1161_v34 }
 0x1dd   : > { %1168 = vmax.xlane.f32.xlu1 %v1167_v36 }
 0x1de   : > { %v3196_v37 = vpop.f32.mrb[8].mxu0 }
 0x1df   : > { %1165 = vmax.xlane.f32.xlu0 %v1164_v38  ;;  %v3200_v39 = vpop.f32.mrb[9].mxu0  ;;  %v1176_v44 = vsel %vm1069_vm3, %v3196_v37, -inf }
 0x1e0   : > { %v3202_v40 = vpop.f32.mrb[10].mxu0  ;;  %v1170_v42 = vsel %vm1069_vm3, %v3200_v39, -inf }
 0x1e1   : > { %v3204_v41 = vpop.f32.mrb[11].mxu0  ;;  %v1179_v13 = vsel %vm1069_vm3, %v3202_v40, -inf }
 0x1e2   : > { %1180 = vmax.xlane.f32.xlu1 %v1179_v13  ;;  %v1173_v43 = vsel %vm1069_vm3, %v3204_v41, -inf  ;;  %v2582_v13 = vld [vmem:[%s3770_s11] ss:$0 sm:$0xff] }
 0x1e3   : > { %1171 = vmax.xlane.f32.xlu0 %v1170_v42 }
 0x1e6   : > { %1174 = vmax.xlane.f32.xlu1 %v1173_v43  ;;  %v1050_v43 = vadd.f32 %v2582_v13, %v1049_v2 }
 0x1e7   : > { %1177 = vmax.xlane.f32.xlu0 %v1176_v44 }
 0x1e8   : > { %v3326_v44 = vpack.c.bf16 %v1050_v43, %v1050_v43 }
 0x1ea   : > { %2736 = vmatprep.subr.msk.bf16.mxu1 %vm1407_vm5, %v3326_v44  ;;  %v1409_v45 = vsel %vm1407_vm5, %v3326_v44, 0 }
 0x1eb   : > { %2692 = vmatpush3.bf16.msra.mxu1 %v1409_v45 }
 0x249   : > { %v3214_v46 = vpop.f32.mrb[12].mxu0 }
 0x24a   : > { %v3216_v47 = vpop.f32.mrb[13].mxu0  ;;  %v1610_v52 = vsel %vm1069_vm3, %v3214_v46, -inf }
 0x24b   : > { %v3218_v48 = vpop.f32.mrb[14].mxu0  ;;  %v1604_v49 = vsel %vm1069_vm3, %v3216_v47, -inf }
 0x24c   : > { %1605 = vmax.xlane.f32.xlu0 %v1604_v49  ;;  %v3222_v50 = vpop.f32.mrb[15].mxu0  ;;  %v1613_v51 = vsel %vm1069_vm3, %v3218_v48, -inf  ;;  %v3335_v49 = vld [vmem:[#allocation3 + $0x40] sm:$0xff] }
 0x24d   : > { %1614 = vmax.xlane.f32.xlu1 %v1613_v51  ;;  %v1607_v53 = vsel %vm1069_vm3, %v3222_v50, -inf  ;;  %v3337_v51 = vld [vmem:[#allocation3 + $0x58] sm:$0xff] }
 0x250   : > { %1611 = vmax.xlane.f32.xlu0 %v1610_v52 }
 0x251   : > { %v3230_v54 = vpop.f32.mrb[16].mxu0  ;;  %1608 = vmax.xlane.f32.xlu1 %v1607_v53 }
 0x252   : > { %v3232_v55 = vpop.f32.mrb[17].mxu0  ;;  %v1622_v60 = vsel %vm1069_vm3, %v3230_v54, -inf }
 0x253   : > { %v3234_v56 = vpop.f32.mrb[18].mxu0  ;;  %v1616_v57 = vsel %vm1069_vm3, %v3232_v55, -inf }
 0x254   : > { %1617 = vmax.xlane.f32.xlu0 %v1616_v57  ;;  %v3238_v58 = vpop.f32.mrb[19].mxu0  ;;  %v1625_v59 = vsel %vm1069_vm3, %v3234_v56, -inf }
 0x255   : > { %1626 = vmax.xlane.f32.xlu1 %v1625_v59  ;;  %v1619_v61 = vsel %vm1069_vm3, %v3238_v58, -inf }
 0x258   : > { %1623 = vmax.xlane.f32.xlu0 %v1622_v60  ;;  %v3345_v60 = vld [vmem:[#allocation3 + $0x50] sm:$0xff] }
 0x259   : > { %1620 = vmax.xlane.f32.xlu1 %v1619_v61 }
 0x266   : > { %v1160_v63 = vpop.xlane.xlu1 %1159 }
 0x267   : > { %v3251_v1 = vmax.f32 %v3246_v62, %v1160_v63  ;;  %v3352_v63 = vld [vmem:[#allocation3 + $0x48] sm:$0xff] }
 0x268   : > { %v1163_v3 = vpop.xlane.xlu0 %1162 }
 0x269   : > { %v1190_v6 = vsub.f32 %v3246_v62, %v3251_v1  ;;  %1492 = vst.msk [vmem:[#allocation3] sm:$0xff] %vm875_vm4, %v3251_v1  ;;  %v3260_v7 = vmax.f32 %v3248_v0, %v1163_v3 }
 0x26a   : > { %v1169_v9 = vpop.xlane.xlu1 %1168 }
 0x26b   : > { %v1191_v12 = vsub.f32 %v3248_v0, %v3260_v7  ;;  %1493 = vst.msk [vmem:[#allocation3 + $0x8] sm:$0xff] %vm875_vm4, %v3260_v7  ;;  %v3269_v14 = vmax.f32 %v3253_v4, %v1169_v9 }
 0x26c   : > { %v1166_v15 = vpop.xlane.xlu0 %1165 }
 0x26d   : > { %v1193_v16 = vsub.f32 %v3253_v4, %v3269_v14  ;;  %1495 = vst.msk [vmem:[#allocation3 + $0x18] sm:$0xff] %vm875_vm4, %v3269_v14  ;;  %v3276_v17 = vmax.f32 %v3262_v10, %v1166_v15  ;;  %v1200_v13 = vmul.f32 1.442695, %v1191_v12 }
 0x26e   : > { %1216 = vperm.xlu0 %2769, %v3251_v1   ;;  %v3390_v1 = vld [vmem:[#allocation3 + $0x70] sm:$0xff] }
 0x26f   : > { %v1192_v20 = vsub.f32 %v3262_v10, %v3276_v17  ;;  %1494 = vst.msk [vmem:[#allocation3 + $0x10] sm:$0xff] %vm875_vm4, %v3276_v17  ;;  %v1181_v21 = vpop.xlane.xlu1 %1180  ;;  %1226 = vperm.xlu1 %2770, %v3276_v17  }
 0x270   : > { %v3289_v22 = vmax.f32 %v3278_v18, %v1181_v21  ;;  %v1172_v23 = vpop.xlane.xlu0 %1171  ;;  %v3371_v21 = vld [vmem:[#allocation3 + $0x78] sm:$0xff] }
 0x271   : > { %v3292_v24 = vmax.f32 %v3281_v19, %v1172_v23  ;;  %v1198_v23 = vmul.f32 1.442695, %v1190_v6  ;;  %v1202_v0 = vmul.f32 1.442695, %v1192_v20 }
 0x272   : > { %v1197_v26 = vsub.f32 %v3278_v18, %v3289_v22  ;;  %1499 = vst.msk [vmem:[#allocation3 + $0x38] sm:$0xff] %vm875_vm4, %v3289_v22 }
 0x273   : > { %v1194_v28 = vsub.f32 %v3281_v19, %v3292_v24  ;;  %1496 = vst.msk [vmem:[#allocation3 + $0x20] sm:$0xff] %vm875_vm4, %v3292_v24  ;;  %1231 = vperm.xlu1 %2770, %v3269_v14   ;;  %v1175_v32 = vpop.xlane.xlu1 %1174  ;;  %2778 = vpow2.f32 %v1198_v23  ;;  %v1204_v19 = vmul.f32 1.442695, %v1193_v16 }
 0x274   : > { %v3308_v34 = vmax.f32 %v3294_v25, %v1175_v32  ;;  %v1178_v35 = vpop.xlane.xlu0 %1177  ;;  %2780 = vpow2.f32 %v1200_v13 }
 0x275   : > { %v3311_v36 = vmax.f32 %v3300_v27, %v1178_v35  ;;  %2782 = vpow2.f32 %v1202_v0 }
 0x276   : > { %v1195_v38 = vsub.f32 %v3294_v25, %v3308_v34  ;;  %1497 = vst.msk [vmem:[#allocation3 + $0x28] sm:$0xff] %vm875_vm4, %v3308_v34 }
 0x277   : > { %v1196_v42 = vsub.f32 %v3300_v27, %v3311_v36  ;;  %1498 = vst.msk [vmem:[#allocation3 + $0x30] sm:$0xff] %vm875_vm4, %v3311_v36  ;;  %1221 = vperm.xlu1 %2770, %v3260_v7  }
 0x279   : > { %v1210_v18 = vmul.f32 1.442695, %v1196_v42 }
 0x27b   : > { %1246 = vperm.xlu1 %2770, %v3311_v36  }
 0x27d   : > { %v3435_v14 = vpop.eup %2778 }
 0x27e   : > { %v3438_v23 = vpop.eup %2780 }
 0x27f   : > { %1236 = vperm.xlu1 %2770, %v3292_v24   ;;  %v1208_v24 = vmul.f32 1.442695, %v1195_v38 }
 0x283   : > { %1241 = vperm.xlu1 %2770, %v3308_v34   ;;  %v3443_v34 = vpop.eup %2782 }
 0x287   : > { %1251 = vperm.xlu1 %2770, %v3289_v22  }
 0x2d9   : > { %v1606_v52 = vpop.xlane.xlu0 %1605 }
 0x2da   : > { %v3340_v53 = vmax.f32 %v3335_v49, %v1606_v52  ;;  %v1615_v57 = vpop.xlane.xlu1 %1614  ;;  %v3397_v52 = vld [vmem:[#allocation3 + $0x68] sm:$0xff] }
 0x2db   : > { %v3343_v59 = vmax.f32 %v3337_v51, %v1615_v57  ;;  %v1206_v57 = vmul.f32 1.442695, %v1194_v28 }
 0x2dc   : > { %v1636_v61 = vsub.f32 %v3335_v49, %v3340_v53  ;;  %1973 = vst.msk [vmem:[#allocation3 + $0x40] sm:$0xff] %vm875_vm4, %v3340_v53  ;;  %1662 = vperm.xlu1 %2770, %v3340_v53  }
 0x2dd   : > { %v1639_v2 = vsub.f32 %v3337_v51, %v3343_v59  ;;  %1976 = vst.msk [vmem:[#allocation3 + $0x58] sm:$0xff] %vm875_vm4, %v3343_v59  ;;  %v1612_v3 = vpop.xlane.xlu0 %1611  ;;  %2784 = vpow2.f32 %v1206_v57 }
 0x2de   : > { %v3359_v5 = vmax.f32 %v3345_v60, %v1612_v3  ;;  %v1609_v8 = vpop.xlane.xlu1 %1608  ;;  %2786 = vpow2.f32 %v1204_v19 }
 0x2df   : > { %v3362_v9 = vmax.f32 %v3352_v63, %v1609_v8  ;;  %2788 = vpow2.f32 %v1208_v24 }
 0x2e0   : > { %v1638_v15 = vsub.f32 %v3345_v60, %v3359_v5  ;;  %1975 = vst.msk [vmem:[#allocation3 + $0x50] sm:$0xff] %vm875_vm4, %v3359_v5  ;;  %1672 = vperm.xlu1 %2770, %v3359_v5  }
 0x2e1   : > { %v1637_v32 = vsub.f32 %v3352_v63, %v3362_v9  ;;  %1974 = vst.msk [vmem:[#allocation3 + $0x48] sm:$0xff] %vm875_vm4, %v3362_v9  ;;  %v1618_v35 = vpop.xlane.xlu0 %1617  ;;  %1667 = vperm.xlu0 %2769, %v3362_v9   ;;  %v1644_v63 = vmul.f32 1.442695, %v1636_v61 }
 0x2e2   : > { %v3385_v43 = vmax.f32 %v3364_v11, %v1618_v35  ;;  %v1627_v45 = vpop.xlane.xlu1 %1626  ;;  %v1648_v27 = vmul.f32 1.442695, %v1638_v15 }
 0x2e3   : > { %v3388_v62 = vmax.f32 %v3371_v21, %v1627_v45 }
 0x2e4   : > { %v1640_v6 = vsub.f32 %v3364_v11, %v3385_v43  ;;  %1977 = vst.msk [vmem:[#allocation3 + $0x60] sm:$0xff] %vm875_vm4, %v3385_v43  ;;  %1682 = vperm.xlu1 %2770, %v3385_v43  }
 0x2e5   : > { %v1643_v7 = vsub.f32 %v3371_v21, %v3388_v62  ;;  %1980 = vst.msk [vmem:[#allocation3 + $0x78] sm:$0xff] %vm875_vm4, %v3388_v62  ;;  %v1624_v12 = vpop.xlane.xlu0 %1623  ;;  %1677 = vperm.xlu0 %2769, %v3343_v59  }
 0x2e6   : > { %v3411_v3 = vmax.f32 %v3390_v1, %v1624_v12  ;;  %v1621_v8 = vpop.xlane.xlu1 %1620  ;;  %v1652_v42 = vmul.f32 1.442695, %v1640_v6  ;;  %v1281_v6 = vld [vmem:[#allocation4 + $0x18] sm:$0xff] }
 0x2e7   : > { %v3414_v10 = vmax.f32 %v3397_v52, %v1621_v8  ;;  %v3446_v13 = vpop.eup %2784  ;;  %v1658_v51 = vmul.f32 1.442695, %v1643_v7 }
 0x2e8   : > { %1979 = vst.msk [vmem:[#allocation3 + $0x70] sm:$0xff] %vm875_vm4, %v3411_v3  ;;  %1692 = vperm.xlu1 %2770, %v3411_v3   ;;  %v3450_v12 = vpop.eup %2786 }
 0x2e9   : > { %v1641_v20 = vsub.f32 %v3397_v52, %v3414_v10  ;;  %1978 = vst.msk [vmem:[#allocation3 + $0x68] sm:$0xff] %vm875_vm4, %v3414_v10  ;;  %1687 = vperm.xlu0 %2769, %v3414_v10   ;;  %v3454_v8 = vpop.eup %2788  ;;  %v1289_v10 = vmul.f32 %v3450_v12, %v1281_v6 }
 0x2eb   : > { %v1654_v22 = vmul.f32 1.442695, %v1641_v20 }
 0x2ec   : > { %1842 = vrot.lane.b32.xlu1 %v3326_v44, %s2916_s0 }
 0x2ed   : > { %1697 = vperm.xlu0 %2769, %v3388_v62   ;;  %v1217_v16 = vpop.permute.xlu0 %1216 }
 0x2ee   : > { %v1227_v4 = vpop.permute.xlu1 %1226  ;;  %v1254_v44 = vsub.f32 %v3136_v30, %v1217_v16 }
 0x2ef   : > { %v1256_v28 = vsub.f32 %v3134_v29, %v1227_v4 }
 0x2f0   : > { %1345 = vperm.xlu1 %2770, %v3435_v14   ;;  %v1262_v45 = vmul.f32 1.442695, %v1254_v44 }
 0x2f1   : > { %1350 = vperm.xlu0 %2769, %v3438_v23   ;;  %v1266_v35 = vmul.f32 1.442695, %v1256_v28 }
 0x2f2   : > { %v1232_v25 = vpop.permute.xlu1 %1231 }
 0x2f3   : > { %v1257_v38 = vsub.f32 %v3138_v31, %v1232_v25  ;;  %2790 = vpow2.f32 %v1266_v35 }
 0x2f4   : > { %1355 = vperm.xlu1 %2770, %v3443_v34  }
 0x2f5   : > { %v1268_v29 = vmul.f32 1.442695, %v1257_v38  ;;  %1365 = vperm.xlu0 %2769, %v3446_v13  }
 0x2f6   : > { %v1222_v0 = vpop.permute.xlu1 %1221 }
 0x2f7   : > { %2792 = vpow2.f32 %v1268_v29  ;;  %v1255_v30 = vsub.f32 %v3142_v33, %v1222_v0 }
 0x2f8   : > { %1360 = vperm.xlu1 %2770, %v3450_v12   ;;  %2794 = vpow2.f32 %v1262_v45 }
 0x2f9   : > { %v1264_v57 = vmul.f32 1.442695, %v1255_v30 }
 0x2fa   : > { %v1247_v31 = vpop.permute.xlu1 %1246 }
 0x2fb   : > { %2796 = vpow2.f32 %v1264_v57  ;;  %v1260_v28 = vsub.f32 %v3196_v37, %v1247_v31 }
 0x2fc   : > { %1370 = vperm.xlu1 %2770, %v3454_v8  }
 0x2fd   : > { %v2791_v4 = vpop.eup %2790  ;;  %v1274_v0 = vmul.f32 1.442695, %v1260_v28 }
 0x2fe   : > { %v1237_v19 = vpop.permute.xlu1 %1236 }
 0x2ff   : > { %v1258_v24 = vsub.f32 %v3200_v39, %v1237_v19 }
 0x301   : > { %v2793_v16 = vpop.eup %2792  ;;  %v1270_v44 = vmul.f32 1.442695, %v1258_v24 }
 0x302   : > { %v1242_v35 = vpop.permute.xlu1 %1241  ;;  %v1392_v33 = vpack.c.bf16 %v2793_v16, %v2791_v4  ;;  %v2795_v38 = vpop.eup %2794 }
 0x303   : > { %v1259_v25 = vsub.f32 %v3204_v41, %v1242_v35  ;;  %2798 = vpow2.f32 %v1270_v44  ;;  %v1294_v19 = vsel %vm1069_vm3, %v2795_v38, 0.0  ;;  %v1300_v35 = vsel %vm1069_vm3, %v2791_v4, 0.0 }
 0x305   : > { %v2797_v29 = vpop.eup %2796  ;;  %v1272_v45 = vmul.f32 1.442695, %v1259_v25 }
 0x306   : > { %v1252_v30 = vpop.permute.xlu1 %1251  ;;  %v1391_v57 = vpack.c.bf16 %v2797_v29, %v2795_v38  ;;  %v1297_v25 = vsel %vm1069_vm3, %v2797_v29, 0.0 }
 0x307   : > { %2800 = vpow2.f32 %v1272_v45  ;;  %v1261_v17 = vsub.f32 %v3202_v40, %v1252_v30  ;;  %v1303_v40 = vsel %vm1069_vm3, %v2793_v16, 0.0 }
 0x308   : > { %2693 = vmatprep.mubr.msk.bf16.mxu1 %vm1069_vm3, %v1391_v57  ;;  %2802 = vpow2.f32 %v1274_v0 }
 0x309   : > { %v1276_v39 = vmul.f32 1.442695, %v1261_v17  ;;  %2694 = vmatmul.mubr.msk.bf16.vlgmr.msra.gmra.mrb[12].mxu1 %vm1069_vm3, %v1392_v33 }
 0x30b   : > { %2804 = vpow2.f32 %v1276_v39 }
 0x30d   : > { %v2799_v37 = vpop.eup %2798 }
 0x30e   : > { %v1306_v16 = vsel %vm1069_vm3, %v2799_v37, 0.0 }
 0x311   : > { %v2801_v31 = vpop.eup %2800 }
 0x312   : > { %v1393_v41 = vpack.c.bf16 %v2801_v31, %v2799_v37  ;;  %v2803_v24 = vpop.eup %2802  ;;  %v1309_v33 = vsel %vm1069_vm3, %v2801_v31, 0.0 }
 0x313   : > { %v1312_v38 = vsel %vm1069_vm3, %v2803_v24, 0.0 }
 0x314   : > { %1295 = vadd.xlane.f32.xlu0 %v1294_v19  ;;  %2697 = vmatprep.mubr.msk.bf16.mxu1 %vm1069_vm3, %v1393_v41 }
 0x315   : > { %v2805_v28 = vpop.eup %2804 }
 0x316   : > { %v1394_v44 = vpack.c.bf16 %v2805_v28, %v2803_v24  ;;  %v1315_v17 = vsel %vm1069_vm3, %v2805_v28, 0.0 }
 0x318   : > { %1304 = vadd.xlane.f32.xlu0 %v1303_v40  ;;  %2698 = vmatmul.mubr.msk.bf16.gmra.mrb[16].mxu1 %vm1069_vm3, %v1394_v44 }
 0x31c   : > { %1316 = vadd.xlane.f32.xlu0 %v1315_v17 }
 0x320   : > { %1301 = vadd.xlane.f32.xlu1 %v1300_v35  ;;  %1310 = vadd.xlane.f32.xlu0 %v1309_v33 }
 0x324   : > { %1298 = vadd.xlane.f32.xlu1 %v1297_v25 }
 0x328   : > { %1313 = vadd.xlane.f32.xlu1 %v1312_v38 }
 0x32c   : > { %1307 = vadd.xlane.f32.xlu1 %v1306_v16 }
 0x35b   : > { %v1663_v45 = vpop.permute.xlu1 %1662 }
 0x35c   : > { %v1700_v0 = vsub.f32 %v3216_v47, %v1663_v45 }
 0x35e   : > { %v1708_v30 = vmul.f32 1.442695, %v1700_v0 }
 0x35f   : > { %v1673_v57 = vpop.permute.xlu1 %1672 }
 0x360   : > { %2806 = vpow2.f32 %v1708_v30  ;;  %v1702_v4 = vsub.f32 %v3214_v46, %v1673_v57  ;;  %v1668_v39 = vpop.permute.xlu0 %1667 }
 0x361   : > { %v1701_v31 = vsub.f32 %v3222_v50, %v1668_v39 }
 0x362   : > { %v1712_v41 = vmul.f32 1.442695, %v1702_v4 }
 0x363   : > { %v1710_v29 = vmul.f32 1.442695, %v1701_v31  ;;  %v1683_v19 = vpop.permute.xlu1 %1682 }
 0x364   : > { %2808 = vpow2.f32 %v1712_v41  ;;  %v1704_v24 = vsub.f32 %v3232_v55, %v1683_v19  ;;  %v1678_v28 = vpop.permute.xlu0 %1677 }
 0x365   : > { %2810 = vpow2.f32 %v1710_v29  ;;  %v1703_v37 = vsub.f32 %v3218_v48, %v1678_v28 }
 0x366   : > { %v1716_v44 = vmul.f32 1.442695, %v1704_v24 }
 0x367   : > { %v1714_v47 = vmul.f32 1.442695, %v1703_v37  ;;  %v1693_v40 = vpop.permute.xlu1 %1692 }
 0x368   : > { %v1706_v17 = vsub.f32 %v3230_v54, %v1693_v40  ;;  %v1688_v35 = vpop.permute.xlu0 %1687 }
 0x369   : > { %2812 = vpow2.f32 %v1714_v47  ;;  %v1705_v46 = vsub.f32 %v3238_v58, %v1688_v35 }
 0x36a   : > { %v2807_v50 = vpop.eup %2806  ;;  %v1720_v33 = vmul.f32 1.442695, %v1706_v17  ;;  %2814 = vpow2.f32 %v1716_v44  ;;  %v1212_v17 = vmul.f32 1.442695, %v1197_v26 }
 0x36b   : > { %v1718_v25 = vmul.f32 1.442695, %v1705_v46  ;;  %v1843_v38 = vpop.permute.xlu1 %1842  ;;  %v1741_v55 = vsel %vm1069_vm3, %v2807_v50, 0.0  ;;  %v1646_v46 = vmul.f32 1.442695, %v1637_v32  ;;  %v1278_v32 = vld [vmem:[#allocation4] sm:$0xff] }
 0x36c   : > { %2816 = vpow2.f32 %v1720_v33  ;;  %v1857_v16 = vsel %vm1407_vm5, %v1843_v38, 0  ;;  %v1698_v48 = vpop.permute.xlu0 %1697  ;;  %1742 = vadd.xlane.f32.xlu0 %v1741_v55  ;;  %2738 = vmatprep.subr.msk.bf16.mxu1 %vm1407_vm5, %v1843_v38  ;;  %v1286_v62 = vmul.f32 %v3435_v14, %v1278_v32  ;;  %v1285_v33 = vld [vmem:[#allocation4 + $0x38] sm:$0xff] }
 0x36d   : > { %2818 = vpow2.f32 %v1718_v25  ;;  %v1707_v54 = vsub.f32 %v3234_v56, %v1698_v48  ;;  %2712 = vmatpush3.bf16.msra.mxu1 %v1857_v16  ;;  %v1283_v48 = vld [vmem:[#allocation4 + $0x28] sm:$0xff]  ;;  %v1338_v32 = vld [vmem:[#allocation5 + $0x18] sm:$0xff] }
 0x36e   : > { %v2809_v45 = vpop.eup %2808  ;;  %v1291_v12 = vmul.f32 %v3454_v8, %v1283_v48 }
 0x36f   : > { %v2811_v58 = vpop.eup %2810  ;;  %v1722_v0 = vmul.f32 1.442695, %v1707_v54  ;;  %v1747_v30 = vsel %vm1069_vm3, %v2809_v45, 0.0  ;;  %v3528_v53 = vpop.permute.xlu1 %1345  ;;  %v1280_v54 = vld [vmem:[#allocation4 + $0x10] sm:$0xff] }
 0x370   : > { %1748 = vadd.xlane.f32.xlu1 %v1747_v30  ;;  %v1837_v57 = vpack.c.bf16 %v2811_v58, %v2807_v50  ;;  %v1744_v24 = vsel %vm1069_vm3, %v2811_v58, 0.0  ;;  %v1650_v50 = vmul.f32 1.442695, %v1639_v2  ;;  %v3530_v61 = vpop.permute.xlu0 %1350  ;;  %v3778_v2 = vsub.f32 %v3390_v1, %v3411_v3 }
 0x371   : > { %2820 = vpow2.f32 %v1722_v0  ;;  %v1288_v58 = vmul.f32 %v3443_v34, %v1280_v54 }
 0x372   : > { %2713 = vmatprep.mubr.msk.bf16.mxu1 %vm1069_vm3, %v1837_v57  ;;  %2822 = vpow2.f32 %v1212_v17  ;;  %v1656_v5 = vmul.f32 1.442695, %v3778_v2  ;;  %v1279_v57 = vld [vmem:[#allocation4 + $0x8] sm:$0xff]  ;;  %v1337_v2 = vld [vmem:[#allocation5 + $0x10] sm:$0xff] }
 0x373   : > { %v2813_v4 = vpop.eup %2812  ;;  %2824 = vpow2.f32 %v1646_v46  ;;  %v3543_v15 = vpop.permute.xlu1 %1355 }
 0x374   : > { %v1838_v39 = vpack.c.bf16 %v2813_v4, %v2809_v45  ;;  %v1750_v31 = vsel %vm1069_vm3, %v2813_v4, 0.0  ;;  %v2815_v41 = vpop.eup %2814  ;;  %2826 = vpow2.f32 %v1650_v50  ;;  %v3545_v21 = vpop.permute.xlu0 %1365 }
 0x375   : > { %1751 = vadd.xlane.f32.xlu0 %v1750_v31  ;;  %v1753_v44 = vsel %vm1069_vm3, %v2815_v41, 0.0  ;;  %2828 = vpow2.f32 %v1210_v18 }
 0x376   : > { %v2817_v29 = vpop.eup %2816  ;;  %2714 = vmatmul.mubr.msk.bf16.vlgmr.msra.gmra.mrb[20].mxu1 %vm1069_vm3, %v1838_v39  ;;  %2830 = vpow2.f32 %v1654_v22 }
 0x377   : > { %v2819_v56 = vpop.eup %2818  ;;  %v1759_v19 = vsel %vm1069_vm3, %v2817_v29, 0.0  ;;  %2832 = vpow2.f32 %v1644_v63  ;;  %v3554_v3 = vpop.permute.xlu1 %1360 }
 0x378   : > { %1760 = vadd.xlane.f32.xlu1 %v1759_v19  ;;  %v1839_v28 = vpack.c.bf16 %v2819_v56, %v2815_v41  ;;  %v1756_v35 = vsel %vm1069_vm3, %v2819_v56, 0.0  ;;  %2834 = vpow2.f32 %v1658_v51  ;;  %v1287_v41 = vmul.f32 %v3438_v23, %v1279_v57  ;;  %v1284_v56 = vld [vmem:[#allocation4 + $0x30] sm:$0xff] }
 0x379   : > { %1745 = vadd.xlane.f32.xlu0 %v1744_v24  ;;  %2836 = vpow2.f32 %v1648_v27  ;;  %v1282_v24 = vld [vmem:[#allocation4 + $0x20] sm:$0xff] }
 0x37a   : > { %2717 = vmatprep.mubr.msk.bf16.mxu1 %vm1069_vm3, %v1839_v28  ;;  %2838 = vpow2.f32 %v1652_v42 }
 0x37b   : > { %v2821_v37 = vpop.eup %2820  ;;  %2840 = vpow2.f32 %v1656_v5  ;;  %v3563_v55 = vpop.permute.xlu1 %1370  ;;  %v1335_v5 = vld [vmem:[#allocation5] sm:$0xff] }
 0x37c   : > { %1754 = vadd.xlane.f32.xlu1 %v1753_v44  ;;  %v1762_v47 = vsel %vm1069_vm3, %v2821_v37, 0.0  ;;  %v1840_v40 = vpack.c.bf16 %v2821_v37, %v2817_v29  ;;  %v2823_v26 = vpop.eup %2822  ;;  %v1290_v44 = vmul.f32 %v3446_v13, %v1282_v24  ;;  %v1383_v6 = vmul.f32 %v3528_v53, %v1335_v5  ;;  %v1339_v53 = vld [vmem:[#allocation5 + $0x20] sm:$0xff]  ;;  %v1731_v24 = vld [vmem:[#allocation4 + $0x70] sm:$0xff] }
 0x37d   : > { %1763 = vadd.xlane.f32.xlu0 %v1762_v47  ;;  %v3516_v59 = vpop.eup %2824  ;;  %v1293_v14 = vmul.f32 %v2823_v26, %v1285_v33 }
 0x37e   : > { %2718 = vmatmul.mubr.msk.bf16.gmra.mrb[24].mxu1 %vm1069_vm3, %v1840_v40  ;;  %v3522_v36 = vpop.eup %2826 }
 0x37f   : > { %v2829_v49 = vpop.eup %2828 }
 0x380   : > { %v3532_v60 = vpop.eup %2830  ;;  %v1292_v8 = vmul.f32 %v2829_v49, %v1284_v56 }
 0x381   : > { %1757 = vadd.xlane.f32.xlu0 %v1756_v35  ;;  %v3538_v9 = vpop.eup %2832 }
 0x382   : > { %v3541_v11 = vpop.eup %2834 }
 0x383   : > { %v3548_v43 = vpop.eup %2836 }
 0x384   : > { %v3552_v52 = vpop.eup %2838 }
 0x385   : > { %v3559_v25 = vpop.eup %2840 }
 0x38d   : > { %1380 = vperm.xlu1 %2770, %v2823_v26  }
 0x391   : > { %1796 = vperm.xlu1 %2770, %v3516_v59  }
 0x395   : > { %1806 = vperm.xlu1 %2770, %v3522_v36  }
 0x397   : > { %1375 = vperm.xlu0 %2769, %v2829_v49  }
 0x399   : > { %1816 = vperm.xlu1 %2770, %v3532_v60  }
 0x39b   : > { %1791 = vperm.xlu0 %2769, %v3538_v9  }
 0x39d   : > { %1826 = vperm.xlu1 %2770, %v3541_v11  }
 0x39f   : > { %1801 = vperm.xlu0 %2769, %v3548_v43  }
 0x3a1   : > { %v1296_v1 = vpop.xlane.xlu0 %1295 }
 0x3a2   : > { %v1318_v7 = vadd.f32 %v1296_v1, %v1286_v62  ;;  %v1336_v62 = vld [vmem:[#allocation5 + $0x8] sm:$0xff]  ;;  %v1385_v1 = vmul.f32 %v3543_v15, %v1337_v2 }
 0x3a3   : > { %1811 = vperm.xlu0 %2769, %v3552_v52   ;;  %v1340_v15 = vld [vmem:[#allocation5 + $0x28] sm:$0xff] }
 0x3a4   : > { %1327 = vst.msk [vmem:[#allocation4] sm:$0xff] %vm875_vm4, %v1318_v7 }
 0x3a5   : > { %v1305_v20 = vpop.xlane.xlu0 %1304 }
 0x3a6   : > { %v1321_v38 = vadd.f32 %v1305_v20, %v1289_v10  ;;  %v1386_v10 = vmul.f32 %v3554_v3, %v1338_v32  ;;  %v1387_v3 = vmul.f32 %v3545_v21, %v1339_v53 }
 0x3a7   : > { %1821 = vperm.xlu0 %2769, %v3559_v25  }
 0x3a8   : > { %1330 = vst.msk [vmem:[#allocation4 + $0x18] sm:$0xff] %vm875_vm4, %v1321_v38  ;;  %v1384_v38 = vmul.f32 %v3530_v61, %v1336_v62 }
 0x3a9   : > { %v1317_v16 = vpop.xlane.xlu0 %1316 }
 0x3aa   : > { %v1325_v45 = vadd.f32 %v1317_v16, %v1293_v14 }
 0x3ab   : > { %v1992_v47 = vld [vmem:[#allocation4] sm:$0xff] }
 0x3ac   : > { %1334 = vst.msk [vmem:[#allocation4 + $0x38] sm:$0xff] %vm875_vm4, %v1325_v45 }
 0x3ad   : > { %v1311_v0 = vpop.xlane.xlu0 %1310  ;;  %v1302_v30 = vpop.xlane.xlu1 %1301 }
 0x3ae   : > { %v1323_v4 = vadd.f32 %v1311_v0, %v1291_v12  ;;  %v1320_v39 = vadd.f32 %v1302_v30, %v1288_v58  ;;  %v1388_v58 = vmul.f32 %v3563_v55, %v1340_v15 }
 0x3af   : > { %v1995_v31 = vld [vmem:[#allocation4 + $0x18] sm:$0xff] }
 0x3b0   : > { %1332 = vst.msk [vmem:[#allocation4 + $0x28] sm:$0xff] %vm875_vm4, %v1323_v4  ;;  %1329 = vst.msk [vmem:[#allocation4 + $0x10] sm:$0xff] %vm875_vm4, %v1320_v39  ;;  %2842 = vrcp.f32 %v1995_v31  ;;  %v1725_v39 = vld [vmem:[#allocation4 + $0x40] sm:$0xff] }
 0x3b1   : > { %v1299_v29 = vpop.xlane.xlu1 %1298  ;;  %v1733_v31 = vmul.f32 %v3538_v9, %v1725_v39  ;;  %v1739_v9 = vmul.f32 %v3559_v25, %v1731_v24 }
 0x3b2   : > { %v1319_v19 = vadd.f32 %v1299_v29, %v1287_v41  ;;  %v1727_v29 = vld [vmem:[#allocation4 + $0x50] sm:$0xff] }
 0x3b3   : > { %v1999_v46 = vld [vmem:[#allocation4 + $0x38] sm:$0xff]  ;;  %v1735_v21 = vmul.f32 %v3548_v43, %v1727_v29 }
 0x3b4   : > { %1328 = vst.msk [vmem:[#allocation4 + $0x8] sm:$0xff] %vm875_vm4, %v1319_v19 }
 0x3b5   : > { %v1314_v34 = vpop.xlane.xlu1 %1313 }
 0x3b6   : > { %v1324_v28 = vadd.f32 %v1314_v34, %v1292_v8  ;;  %v1728_v8 = vld [vmem:[#allocation4 + $0x58] sm:$0xff] }
 0x3b7   : > { %v1994_v37 = vld [vmem:[#allocation4 + $0x10] sm:$0xff]  ;;  %v1997_v18 = vld [vmem:[#allocation4 + $0x28] sm:$0xff]  ;;  %v1736_v34 = vmul.f32 %v3522_v36, %v1728_v8 }
 0x3b8   : > { %1333 = vst.msk [vmem:[#allocation4 + $0x30] sm:$0xff] %vm875_vm4, %v1324_v28  ;;  %2844 = vrcp.f32 %v1994_v37  ;;  %v1726_v37 = vld [vmem:[#allocation4 + $0x48] sm:$0xff] }
 0x3b9   : > { %v1308_v40 = vpop.xlane.xlu1 %1307  ;;  %2846 = vrcp.f32 %v1992_v47 }
 0x3ba   : > { %v2843_v17 = vpop.eup %2842  ;;  %v1322_v23 = vadd.f32 %v1308_v40, %v1290_v44  ;;  %v1734_v40 = vmul.f32 %v3516_v59, %v1726_v37  ;;  %v1730_v59 = vld [vmem:[#allocation4 + $0x68] sm:$0xff] }
 0x3bb   : > { %2025 = vperm.xlu1 %2770, %v2843_v17   ;;  %v1993_v35 = vld [vmem:[#allocation4 + $0x8] sm:$0xff]  ;;  %v1729_v17 = vld [vmem:[#allocation4 + $0x60] sm:$0xff] }
 0x3bc   : > { %1331 = vst.msk [vmem:[#allocation4 + $0x20] sm:$0xff] %vm875_vm4, %v1322_v23  ;;  %2848 = vrcp.f32 %v1993_v35  ;;  %v1732_v35 = vld [vmem:[#allocation4 + $0x78] sm:$0xff]  ;;  %v1737_v36 = vmul.f32 %v3552_v52, %v1729_v17  ;;  %v1738_v52 = vmul.f32 %v3532_v60, %v1730_v59 }
 0x3bd   : > { %2850 = vrcp.f32 %v1999_v46  ;;  %v1740_v25 = vmul.f32 %v3541_v11, %v1732_v35 }
 0x3bf   : > { %v1998_v50 = vld [vmem:[#allocation4 + $0x30] sm:$0xff] }
 0x3c0   : > { %2852 = vrcp.f32 %v1998_v50 }
 0x3c1   : > { %2854 = vrcp.f32 %v1997_v18 }
 0x3c2   : > { %v2845_v22 = vpop.eup %2844 }
 0x3c3   : > { %2020 = vperm.xlu0 %2769, %v2845_v22   ;;  %v1996_v13 = vld [vmem:[#allocation4 + $0x20] sm:$0xff]  ;;  %v2847_v26 = vpop.eup %2846 }
 0x3c4   : > { %2856 = vrcp.f32 %v1996_v13 }
 0x3c6   : > { %v2849_v63 = vpop.eup %2848 }
 0x3c7   : > { %2010 = vperm.xlu0 %2769, %v2847_v26   ;;  %2015 = vperm.xlu1 %2770, %v2849_v63   ;;  %v2851_v51 = vpop.eup %2850 }
 0x3ca   : > { %v2853_v27 = vpop.eup %2852 }
 0x3cb   : > { %2045 = vperm.xlu1 %2770, %v2851_v51   ;;  %2040 = vperm.xlu0 %2769, %v2853_v27   ;;  %v2855_v42 = vpop.eup %2854  ;;  %v1342_v51 = vld [vmem:[#allocation5 + $0x38] sm:$0xff] }
 0x3ce   : > { %v2857_v49 = vpop.eup %2856 }
 0x3cf   : > { %2035 = vperm.xlu1 %2770, %v2855_v42   ;;  %2030 = vperm.xlu0 %2769, %v2857_v49  }
 0x3dc   : > { %v2695_v7 = vpop.f32.mrb[12].mxu1 }
 0x3dd   : > { %v1478_v20 = vadd.f32 %v2695_v7, %v1385_v1  ;;  %v1445_v33 = vpop.f32.mrb[13].mxu1 }
 0x3de   : > { %v1476_v14 = vadd.f32 %v1445_v33, %v1383_v6  ;;  %v2696_v16 = vpop.f32.mrb[14].mxu1  ;;  %v1341_v6 = vld [vmem:[#allocation5 + $0x30] sm:$0xff] }
 0x3df   : > { %1486 = vst.msk [vmem:[#allocation5 + $0x10] sm:$0xff] %vm1069_vm3, %v1478_v20  ;;  %v1479_v48 = vadd.f32 %v2696_v16, %v1386_v10  ;;  %v1448_v54 = vpop.f32.mrb[15].mxu1 }
 0x3e0   : > { %1484 = vst.msk [vmem:[#allocation5] sm:$0xff] %vm1069_vm3, %v1476_v14  ;;  %v1477_v45 = vadd.f32 %v1448_v54, %v1384_v38 }
 0x3e1   : > { %1487 = vst.msk [vmem:[#allocation5 + $0x18] sm:$0xff] %vm1069_vm3, %v1479_v48 }
 0x3e2   : > { %1485 = vst.msk [vmem:[#allocation5 + $0x8] sm:$0xff] %vm1069_vm3, %v1477_v45 }
 0x3e7   : > { %v1781_v59 = vld [vmem:[#allocation5] sm:$0xff] }
 0x3eb   : > { %v3584_v12 = vpop.f32.mrb[16].mxu1 }
 0x3ec   : > { %v1461_v61 = vpop.f32.mrb[17].mxu1 }
 0x3ed   : > { %v1480_v0 = vadd.f32 %v1461_v61, %v1387_v3  ;;  %v2700_v30 = vpop.f32.mrb[18].mxu1 }
 0x3ee   : > { %v1464_v57 = vpop.f32.mrb[19].mxu1 }
 0x3ef   : > { %1488 = vst.msk [vmem:[#allocation5 + $0x20] sm:$0xff] %vm1069_vm3, %v1480_v0  ;;  %v1481_v4 = vadd.f32 %v1464_v57, %v1388_v58 }
 0x3f1   : > { %1489 = vst.msk [vmem:[#allocation5 + $0x28] sm:$0xff] %vm1069_vm3, %v1481_v4 }
 0x3f9   : > { %v1743_v41 = vpop.xlane.xlu0 %1742 }
 0x3fa   : > { %v1765_v56 = vadd.f32 %v1743_v41, %v1733_v31 }
 0x3fc   : > { %1773 = vst.msk [vmem:[#allocation4 + $0x40] sm:$0xff] %vm875_vm4, %v1765_v56 }
 0x3fd   : > { %v1749_v19 = vpop.xlane.xlu1 %1748 }
 0x3fe   : > { %v1767_v55 = vadd.f32 %v1749_v19, %v1735_v21 }
 0x400   : > { %1775 = vst.msk [vmem:[#allocation4 + $0x50] sm:$0xff] %vm875_vm4, %v1767_v55 }
 0x402   : > { %v1752_v28 = vpop.xlane.xlu0 %1751 }
 0x403   : > { %v1768_v44 = vadd.f32 %v1752_v28, %v1736_v34  ;;  %v2056_v22 = vld [vmem:[#allocation4 + $0x40] sm:$0xff] }
 0x405   : > { %1776 = vst.msk [vmem:[#allocation4 + $0x58] sm:$0xff] %vm875_vm4, %v1768_v44  ;;  %v1761_v47 = vpop.xlane.xlu1 %1760 }
 0x406   : > { %v1771_v43 = vadd.f32 %v1761_v47, %v1739_v9  ;;  %v1746_v23 = vpop.xlane.xlu0 %1745 }
 0x407   : > { %v1766_v46 = vadd.f32 %v1746_v23, %v1734_v40  ;;  %v2058_v50 = vld [vmem:[#allocation4 + $0x50] sm:$0xff] }
 0x408   : > { %1779 = vst.msk [vmem:[#allocation4 + $0x70] sm:$0xff] %vm875_vm4, %v1771_v43  ;;  %2858 = vrcp.f32 %v2058_v50  ;;  %v1783_v50 = vld [vmem:[#allocation5 + $0x10] sm:$0xff] }
 0x409   : > { %1774 = vst.msk [vmem:[#allocation4 + $0x48] sm:$0xff] %vm875_vm4, %v1766_v46  ;;  %v1755_v18 = vpop.xlane.xlu1 %1754  ;;  %2860 = vrcp.f32 %v2056_v22 }
 0x40a   : > { %v1769_v13 = vadd.f32 %v1755_v18, %v1737_v36  ;;  %v1764_v26 = vpop.xlane.xlu0 %1763 }
 0x40b   : > { %v1772_v63 = vadd.f32 %v1764_v26, %v1740_v25  ;;  %v1784_v25 = vld [vmem:[#allocation5 + $0x18] sm:$0xff] }
 0x40c   : > { %1777 = vst.msk [vmem:[#allocation4 + $0x60] sm:$0xff] %vm875_vm4, %v1769_v13  ;;  %v2059_v27 = vld [vmem:[#allocation4 + $0x58] sm:$0xff] }
 0x40d   : > { %1780 = vst.msk [vmem:[#allocation4 + $0x78] sm:$0xff] %vm875_vm4, %v1772_v63  ;;  %v1381_v42 = vpop.permute.xlu1 %1380  ;;  %2862 = vrcp.f32 %v2059_v27 }
 0x40e   : > { %v1390_v49 = vmul.f32 %v1381_v42, %v1342_v51  ;;  %v1758_v2 = vpop.xlane.xlu0 %1757  ;;  %v1782_v42 = vld [vmem:[#allocation5 + $0x8] sm:$0xff] }
 0x40f   : > { %v1770_v5 = vadd.f32 %v1758_v2, %v1738_v52  ;;  %v2062_v3 = vld [vmem:[#allocation4 + $0x70] sm:$0xff] }
 0x410   : > { %v1483_v11 = vadd.f32 %v2700_v30, %v1390_v49  ;;  %v2057_v32 = vld [vmem:[#allocation4 + $0x48] sm:$0xff] }
 0x411   : > { %1778 = vst.msk [vmem:[#allocation4 + $0x68] sm:$0xff] %vm875_vm4, %v1770_v5  ;;  %2864 = vrcp.f32 %v2057_v32  ;;  %v1797_v41 = vpop.permute.xlu1 %1796 }
 0x412   : > { %v2859_v62 = vpop.eup %2858  ;;  %1491 = vst.msk [vmem:[#allocation5 + $0x38] sm:$0xff] %vm1069_vm3, %v1483_v11  ;;  %v1830_v49 = vmul.f32 %v1797_v41, %v1782_v42 }
 0x413   : > { %2084 = vperm.xlu0 %2769, %v2859_v62   ;;  %v2060_v1 = vld [vmem:[#allocation4 + $0x60] sm:$0xff]  ;;  %v2861_v7 = vpop.eup %2860 }
 0x414   : > { %2866 = vrcp.f32 %v2060_v1  ;;  %v2063_v61 = vld [vmem:[#allocation4 + $0x78] sm:$0xff] }
 0x415   : > { %v1807_v56 = vpop.permute.xlu1 %1806 }
 0x416   : > { %v1376_v10 = vpop.permute.xlu0 %1375  ;;  %v1832_v13 = vmul.f32 %v1807_v56, %v1784_v25 }
 0x417   : > { %v2863_v20 = vpop.eup %2862  ;;  %v1389_v60 = vmul.f32 %v1376_v10, %v1341_v6  ;;  %2074 = vperm.xlu0 %2769, %v2861_v7  }
 0x418   : > { %2089 = vperm.xlu1 %2770, %v2863_v20   ;;  %v2061_v33 = vld [vmem:[#allocation4 + $0x68] sm:$0xff]  ;;  %v1785_v20 = vld [vmem:[#allocation5 + $0x20] sm:$0xff] }
 0x419   : > { %v1482_v38 = vadd.f32 %v3584_v12, %v1389_v60  ;;  %2868 = vrcp.f32 %v2061_v33  ;;  %v2777_v12 = vld [vmem:[%s3771_s12] sm:$0xff]   ;;  %v1817_v19 = vpop.permute.xlu1 %1816  ;;  %v1788_v1 = vld [vmem:[#allocation5 + $0x38] sm:$0xff] }
 0x41a   : > { %2870 = vrcp.f32 %v2062_v3  ;;  %2721 = vmatprep.subr.bf16.mxu0 %v2777_v12  ;;  %v1792_v31 = vpop.permute.xlu0 %1791 }
 0x41b   : > { %v2865_v14 = vpop.eup %2864  ;;  %1490 = vst.msk [vmem:[#allocation5 + $0x30] sm:$0xff] %vm1069_vm3, %v1482_v38  ;;  %2722 = vmatpush3.bf16.msra.mxu0 %v2777_v12  ;;  %2872 = vrcp.f32 %v2063_v61  ;;  %v1829_v51 = vmul.f32 %v1792_v31, %v1781_v59 }
 0x41c   : > { %2079 = vperm.xlu1 %2770, %v2865_v14   ;;  %v1786_v14 = vld [vmem:[#allocation5 + $0x28] sm:$0xff] }
 0x41d   : > { %v1827_v8 = vpop.permute.xlu1 %1826 }
 0x41e   : > { %v2867_v16 = vpop.eup %2866  ;;  %v1802_v29 = vpop.permute.xlu0 %1801  ;;  %v1836_v7 = vmul.f32 %v1827_v8, %v1788_v1 }
 0x41f   : > { %2094 = vperm.xlu0 %2769, %v2867_v16   ;;  %v1831_v18 = vmul.f32 %v1802_v29, %v1783_v50 }
 0x422   : > { %v1812_v21 = vpop.permute.xlu0 %1811  ;;  %v1787_v5 = vld [vmem:[#allocation5 + $0x30] sm:$0xff] }
 0x423   : > { %v2869_v48 = vpop.eup %2868  ;;  %v1833_v33 = vmul.f32 %v1812_v21, %v1785_v20  ;;  %v2228_v20 = vld [vmem:[%s3653_s20 + $0x18] sm:$0xff] }
 0x424   : > { %2099 = vperm.xlu1 %2770, %v2869_v48   ;;  %v2871_v4 = vpop.eup %2870 }
 0x425   : > { %v2873_v39 = vpop.eup %2872 }
 0x426   : > { %v1822_v55 = vpop.permute.xlu0 %1821 }
 0x427   : > { %v1835_v32 = vmul.f32 %v1822_v55, %v1787_v5 }
 0x43a   : > { %v2026_v24 = vpop.permute.xlu1 %2025 }
 0x442   : > { %v2021_v34 = vpop.permute.xlu0 %2020 }
 0x446   : > { %v2011_v28 = vpop.permute.xlu0 %2010  ;;  %v2016_v37 = vpop.permute.xlu1 %2015 }
 0x449   : > { %v2715_v54 = vpop.f32.mrb[20].mxu1 }
 0x44a   : > { %v1893_v45 = vpop.f32.mrb[21].mxu1  ;;  %1936 = vrot.lane.b32.xlu0 %v2715_v54, %s2919_s30  ;;  %v3611_v44 = vpop.permute.xlu0 %2040  ;;  %v1834_v54 = vmul.f32 %v1817_v19, %v1786_v14 }
 0x44b   : > { %v2716_v53 = vpop.f32.mrb[22].mxu1  ;;  %v3613_v9 = vpop.permute.xlu1 %2045 }
 0x44c   : > { %v1896_v15 = vpop.f32.mrb[23].mxu1  ;;  %1938 = vrot.lane.b32.xlu1 %v2716_v53, %s2919_s30 }
 0x44e   : > { %1932 = vrot.lane.b32.xlu0 %v1893_v45, %s2919_s30  ;;  %v3615_v47 = vpop.permute.xlu0 %2030 }
 0x44f   : > { %v3617_v40 = vpop.permute.xlu1 %2035 }
 0x450   : > { %1934 = vrot.lane.b32.xlu1 %v1896_v15, %s2919_s30 }
 0x451   : > { %v2719_v58 = vpop.f32.mrb[24].mxu1 }
 0x452   : > { %v1909_v0 = vpop.f32.mrb[25].mxu1  ;;  %1944 = vrot.lane.b32.xlu0 %v2719_v58, %s2919_s30 }
 0x453   : > { %v2720_v30 = vpop.f32.mrb[26].mxu1 }
 0x454   : > { %v1912_v57 = vpop.f32.mrb[27].mxu1  ;;  %1946 = vrot.lane.b32.xlu1 %v2720_v30, %s2919_s30 }
 0x456   : > { %1940 = vrot.lane.b32.xlu0 %v1909_v0, %s2919_s30 }
 0x458   : > { %1942 = vrot.lane.b32.xlu1 %v1912_v57, %s2919_s30 }
 0x45a   : > { %2104 = vperm.xlu0 %2769, %v2871_v4  }
 0x45c   : > { %2109 = vperm.xlu1 %2770, %v2873_v39  }
 0x492   : > { %v2085_v17 = vpop.permute.xlu0 %2084 }
 0x496   : > { %v2075_v23 = vpop.permute.xlu0 %2074 }
 0x497   : > { %v2090_v43 = vpop.permute.xlu1 %2089 }
 0x49b   : > { %v2080_v35 = vpop.permute.xlu1 %2079 }
 0x49e   : > { %v3619_v46 = vpop.permute.xlu0 %2094 }
 0x4a3   : > { %v3621_v36 = vpop.permute.xlu1 %2099 }
 0x4bc   : > { %v1937_v22 = vpop.permute.xlu0 %1936 }
 0x4bd   : > { %v1958_v26 = vadd.f32 %v1937_v22, %v1831_v18 }
 0x4be   : > { %v1939_v63 = vpop.permute.xlu1 %1938 }
 0x4bf   : > { %1967 = vst.msk [vmem:[#allocation5 + $0x10] sm:$0xff] %vm1964_vm6, %v1958_v26  ;;  %v1959_v27 = vadd.f32 %v1939_v63, %v1832_v13 }
 0x4c0   : > { %v1933_v52 = vpop.permute.xlu0 %1932 }
 0x4c1   : > { %1968 = vst.msk [vmem:[#allocation5 + $0x18] sm:$0xff] %vm1964_vm6, %v1959_v27  ;;  %v1956_v2 = vadd.f32 %v1933_v52, %v1829_v51  ;;  %v2227_v51 = vld [vmem:[%s3653_s20 + $0x10] sm:$0xff] }
 0x4c2   : > { %v1935_v11 = vpop.permute.xlu1 %1934 }
 0x4c3   : > { %1965 = vst.msk [vmem:[#allocation5] sm:$0xff] %vm1964_vm6, %v1956_v2  ;;  %v1957_v62 = vadd.f32 %v1935_v11, %v1830_v49  ;;  %v2225_v2 = vld [vmem:[%s3653_s20] sm:$0xff]  ;;  %v2226_v11 = vld [vmem:[%s3653_s20 + $0x8] sm:$0xff] }
 0x4c4   : > { %v1945_v6 = vpop.permute.xlu0 %1944 }
 0x4c5   : > { %1966 = vst.msk [vmem:[#allocation5 + $0x8] sm:$0xff] %vm1964_vm6, %v1957_v62  ;;  %v1962_v10 = vadd.f32 %v1945_v6, %v1835_v32 }
 0x4c6   : > { %v1947_v60 = vpop.permute.xlu1 %1946  ;;  %v1986_v53 = vld [vmem:[#allocation5 + $0x10] sm:$0xff] }
 0x4c7   : > { %1971 = vst.msk [vmem:[#allocation5 + $0x30] sm:$0xff] %vm1964_vm6, %v1962_v10  ;;  %v1963_v38 = vadd.f32 %v1947_v60, %v1836_v7  ;;  %v2050_v4 = vmul.f32 %v2021_v34, %v1986_v53  ;;  %v2114_v39 = vmul.f32 %v2085_v17, %v1986_v53 }
 0x4c8   : > { %v1941_v16 = vpop.permute.xlu0 %1940  ;;  %v1987_v48 = vld [vmem:[#allocation5 + $0x18] sm:$0xff] }
 0x4c9   : > { %1972 = vst.msk [vmem:[#allocation5 + $0x38] sm:$0xff] %vm1964_vm6, %v1963_v38  ;;  %v1960_v45 = vadd.f32 %v1941_v16, %v1833_v33  ;;  %v2051_v12 = vmul.f32 %v2026_v24, %v1987_v48  ;;  %v2115_v61 = vmul.f32 %v2090_v43, %v1987_v48  ;;  %v2122_v55 = vsel %vm1069_vm3, %v2050_v4, %v2114_v39 }
 0x4ca   : > { %v1943_v15 = vpop.permute.xlu1 %1942  ;;  %v1984_v3 = vld [vmem:[#allocation5] sm:$0xff] }
 0x4cb   : > { %1969 = vst.msk [vmem:[#allocation5 + $0x20] sm:$0xff] %vm1964_vm6, %v1960_v45  ;;  %v1961_v58 = vadd.f32 %v1943_v15, %v1834_v54  ;;  %v2048_v0 = vmul.f32 %v2011_v28, %v1984_v3  ;;  %v2112_v30 = vmul.f32 %v2075_v23, %v1984_v3  ;;  %v2123_v29 = vsel %vm1069_vm3, %v2051_v12, %v2115_v61  ;;  %v2229_v54 = vld [vmem:[%s3653_s20 + $0x20] sm:$0xff]  ;;  %v2231_v3 = vld [vmem:[%s3653_s20 + $0x30] sm:$0xff]  ;;  %v2230_v61 = vld [vmem:[%s3653_s20 + $0x28] sm:$0xff] }
 0x4cc   : > { %v1985_v57 = vld [vmem:[#allocation5 + $0x8] sm:$0xff]  ;;  %v2129_v8 = vpack.c.bf16 %v2123_v29, %v2122_v55 }
 0x4cd   : > { %1970 = vst.msk [vmem:[#allocation5 + $0x28] sm:$0xff] %vm1964_vm6, %v1961_v58  ;;  %v2049_v31 = vmul.f32 %v2016_v37, %v1985_v57  ;;  %v2113_v41 = vmul.f32 %v2080_v35, %v1985_v57  ;;  %v2120_v56 = vsel %vm1069_vm3, %v2048_v0, %v2112_v30  ;;  %v2232_v57 = vld [vmem:[%s3653_s20 + $0x38] sm:$0xff] }
 0x4ce   : > { %v1990_v18 = vld [vmem:[#allocation5 + $0x30] sm:$0xff] }
 0x4cf   : > { %v2121_v21 = vsel %vm1069_vm3, %v2049_v31, %v2113_v41 }
 0x4d0   : > { %v2128_v19 = vpack.c.bf16 %v2121_v21, %v2120_v56  ;;  %v1991_v22 = vld [vmem:[#allocation5 + $0x38] sm:$0xff] }
 0x4d1   : > { %v2055_v26 = vmul.f32 %v3613_v9, %v1991_v22 }
 0x4d2   : > { %2723 = vmatprep.mubr.msk.bf16.mxu0 %vm866_vm2, %v2128_v19  ;;  %v1988_v24 = vld [vmem:[#allocation5 + $0x20] sm:$0xff] }
 0x4d3   : > { %2724 = vmatmul.mubr.msk.bf16.vlgmr.msra.gmra.mrb[20].mxu0 %vm866_vm2, %v2129_v8  ;;  %v2052_v34 = vmul.f32 %v3615_v47, %v1988_v24  ;;  %v2116_v28 = vmul.f32 %v3619_v46, %v1988_v24  ;;  %v2054_v46 = vmul.f32 %v3611_v44, %v1990_v18  ;;  %v2602_v44 = vld [vmem:[%s3772_s13] ss:$0 sm:$0xff] }
 0x4d4   : > { %v1989_v37 = vld [vmem:[#allocation5 + $0x28] sm:$0xff] }
 0x4d5   : > { %v2053_v17 = vmul.f32 %v3617_v40, %v1989_v37  ;;  %v2117_v43 = vmul.f32 %v3621_v36, %v1989_v37  ;;  %v2124_v23 = vsel %vm1069_vm3, %v2052_v34, %v2116_v28 }
 0x4d7   : > { %v2125_v35 = vsel %vm1069_vm3, %v2053_v17, %v2117_v43 }
 0x4d8   : > { %v2130_v50 = vpack.c.bf16 %v2125_v35, %v2124_v23 }
 0x4d9   : > { %v2105_v25 = vpop.permute.xlu0 %2104 }
 0x4da   : > { %v2118_v13 = vmul.f32 %v2105_v25, %v1990_v18  ;;  %2727 = vmatprep.mubr.msk.bf16.mxu0 %vm866_vm2, %v2130_v50 }
 0x4db   : > { %v2110_v47 = vpop.permute.xlu1 %2109 }
 0x4dc   : > { %v2119_v40 = vmul.f32 %v2110_v47, %v1991_v22  ;;  %v2126_v36 = vsel %vm1069_vm3, %v2054_v46, %v2118_v13 }
 0x4de   : > { %v2127_v59 = vsel %vm1069_vm3, %v2055_v26, %v2119_v40 }
 0x4df   : > { %v2131_v63 = vpack.c.bf16 %v2127_v59, %v2126_v36 }
 0x4e1   : > { %2728 = vmatmul.mubr.msk.bf16.gmra.mrb[24].mxu0 %vm866_vm2, %v2131_v63 }
 0x5a6   : > { %v2725_v9 = vpop.f32.mrb[20].mxu0 }
 0x5a7   : > { %v2203_v27 = vadd.f32 %v2725_v9, %v2602_v44  ;;  %v2194_v42 = vpop.f32.mrb[21].mxu0 }
 0x5a8   : > { %v2195_v52 = vadd.f32 %v2602_v44, %v2194_v42  ;;  %v2726_v49 = vpop.f32.mrb[22].mxu0 }
 0x5a9   : > { %v2197_v5 = vpop.f32.mrb[23].mxu0  ;;  %v2235_v32 = vadd.f32 %v2227_v51, %v2203_v27  ;;  %v2206_v1 = vadd.f32 %v2726_v49, %v2602_v44 }
 0x5aa   : > { %v2198_v62 = vadd.f32 %v2602_v44, %v2197_v5  ;;  %v2233_v7 = vadd.f32 %v2225_v2, %v2195_v52 }
 0x5ab   : > { %v2249_v6 = vsel %vm780_vm0, %v2235_v32, 0.0  ;;  %v2236_v38 = vadd.f32 %v2228_v20, %v2206_v1 }
 0x5ac   : > { %v2234_v10 = vadd.f32 %v2226_v11, %v2198_v62  ;;  %2250 = vadd.xlane.f32.xlu0 %v2249_v6  ;;  %v2243_v33 = vsel %vm780_vm0, %v2233_v7, 0.0 }
 0x5ad   : > { %v2252_v14 = vsel %vm780_vm0, %v2236_v38, 0.0 }
 0x5ae   : > { %v2246_v60 = vsel %vm780_vm0, %v2234_v10, 0.0 }
 0x5af   : > { %2247 = vadd.xlane.f32.xlu1 %v2246_v60 }
 0x5b0   : > { %2244 = vadd.xlane.f32.xlu0 %v2243_v33 }
 0x5b4   : > { %2253 = vadd.xlane.f32.xlu0 %v2252_v14  ;;  %v2729_v16 = vpop.f32.mrb[24].mxu0 }
 0x5b5   : > { %v2210_v48 = vpop.f32.mrb[25].mxu0  ;;  %v2219_v45 = vadd.f32 %v2729_v16, %v2602_v44 }
 0x5b6   : > { %v2211_v53 = vadd.f32 %v2602_v44, %v2210_v48  ;;  %v2730_v15 = vpop.f32.mrb[26].mxu0 }
 0x5b7   : > { %v2213_v12 = vpop.f32.mrb[27].mxu0  ;;  %v2222_v0 = vadd.f32 %v2730_v15, %v2602_v44  ;;  %v2239_v4 = vadd.f32 %v2231_v3, %v2219_v45 }
 0x5b8   : > { %v2237_v58 = vadd.f32 %v2229_v54, %v2211_v53  ;;  %v2214_v30 = vadd.f32 %v2602_v44, %v2213_v12 }
 0x5b9   : > { %v2240_v29 = vadd.f32 %v2232_v57, %v2222_v0  ;;  %v2261_v56 = vsel %vm780_vm0, %v2239_v4, 0.0 }
 0x5ba   : > { %v2255_v39 = vsel %vm780_vm0, %v2237_v58, 0.0  ;;  %v2238_v31 = vadd.f32 %v2230_v61, %v2214_v30  ;;  %v2608_v61 = vld [vmem:[%s3773_s14] ss:$0 sm:$0xff] }
 0x5bb   : > { %2256 = vadd.xlane.f32.xlu1 %v2255_v39  ;;  %v2264_v21 = vsel %vm780_vm0, %v2240_v29, 0.0 }
 0x5bc   : > { %v2258_v41 = vsel %vm780_vm0, %v2238_v31, 0.0 }
 0x5bd   : > { %2259 = vadd.xlane.f32.xlu0 %v2258_v41 }
 0x5bf   : > { %2262 = vadd.xlane.f32.xlu1 %v2261_v56 }
 0x5c1   : > { %2265 = vadd.xlane.f32.xlu0 %v2264_v21 }
 0x639   : > { %v2251_v19 = vpop.xlane.xlu0 %2250 }
 0x63a   : > { %v2270_v55 = vmul.f32 0.03125, %v2251_v19 }
 0x63c   : > { %v3674_v8 = vsub.f32 %v2235_v32, %v2270_v55  ;;  %v2248_v24 = vpop.xlane.xlu1 %2247 }
 0x63d   : > { %v2245_v34 = vpop.xlane.xlu0 %2244  ;;  %v2269_v17 = vmul.f32 0.03125, %v2248_v24 }
 0x63e   : > { %v2268_v28 = vmul.f32 0.03125, %v2245_v34  ;;  %v2286_v37 = vmul.f32 %v3674_v8, %v3674_v8 }
 0x63f   : > { %v3683_v25 = vsub.f32 %v2234_v10, %v2269_v17 }
 0x640   : > { %v3678_v43 = vsub.f32 %v2233_v7, %v2268_v28  ;;  %v2298_v23 = vsel %vm780_vm0, %v2286_v37, 0.0 }
 0x641   : > { %v2254_v35 = vpop.xlane.xlu0 %2253  ;;  %2299 = vadd.xlane.f32.xlu1 %v2298_v23  ;;  %v2285_v40 = vmul.f32 %v3683_v25, %v3683_v25 }
 0x642   : > { %v2271_v50 = vmul.f32 0.03125, %v2254_v35  ;;  %v2284_v18 = vmul.f32 %v3678_v43, %v3678_v43 }
 0x643   : > { %v2295_v51 = vsel %vm780_vm0, %v2285_v40, 0.0 }
 0x644   : > { %v3685_v22 = vsub.f32 %v2236_v38, %v2271_v50  ;;  %v2292_v13 = vsel %vm780_vm0, %v2284_v18, 0.0 }
 0x645   : > { %2293 = vadd.xlane.f32.xlu1 %v2292_v13 }
 0x646   : > { %v2287_v47 = vmul.f32 %v3685_v22, %v3685_v22 }
 0x648   : > { %v2257_v46 = vpop.xlane.xlu1 %2256  ;;  %v2301_v26 = vsel %vm780_vm0, %v2287_v47, 0.0 }
 0x649   : > { %v2272_v36 = vmul.f32 0.03125, %v2257_v46  ;;  %2302 = vadd.xlane.f32.xlu0 %v2301_v26 }
 0x64a   : > { %v2260_v59 = vpop.xlane.xlu0 %2259 }
 0x64b   : > { %v3693_v63 = vsub.f32 %v2237_v58, %v2272_v36  ;;  %v2273_v44 = vmul.f32 0.03125, %v2260_v59 }
 0x64c   : > { %v2263_v9 = vpop.xlane.xlu1 %2262 }
 0x64d   : > { %v3696_v27 = vsub.f32 %v2238_v31, %v2273_v44  ;;  %v2274_v42 = vmul.f32 0.03125, %v2263_v9  ;;  %2296 = vadd.xlane.f32.xlu0 %v2295_v51  ;;  %v2288_v52 = vmul.f32 %v3693_v63, %v3693_v63 }
 0x64e   : > { %v2266_v49 = vpop.xlane.xlu0 %2265 }
 0x64f   : > { %v3700_v2 = vsub.f32 %v2239_v4, %v2274_v42  ;;  %v2275_v5 = vmul.f32 0.03125, %v2266_v49  ;;  %v2304_v11 = vsel %vm780_vm0, %v2288_v52, 0.0  ;;  %v2289_v32 = vmul.f32 %v3696_v27, %v3696_v27  ;;  %v2609_v4 = vld [vmem:[%s3774_s15] ss:$0 sm:$0xff] }
 0x650   : > { %2305 = vadd.xlane.f32.xlu1 %v2304_v11 }
 0x651   : > { %v3705_v62 = vsub.f32 %v2240_v29, %v2275_v5  ;;  %v2307_v1 = vsel %vm780_vm0, %v2289_v32, 0.0  ;;  %v2290_v6 = vmul.f32 %v3700_v2, %v3700_v2 }
 0x652   : > { %2308 = vadd.xlane.f32.xlu0 %v2307_v1 }
 0x653   : > { %v2310_v7 = vsel %vm780_vm0, %v2290_v6, 0.0  ;;  %v2291_v10 = vmul.f32 %v3705_v62, %v3705_v62 }
 0x654   : > { %2311 = vadd.xlane.f32.xlu1 %v2310_v7 }
 0x655   : > { %v2313_v20 = vsel %vm780_vm0, %v2291_v10, 0.0 }
 0x656   : > { %2314 = vadd.xlane.f32.xlu0 %v2313_v20 }
 0x6ce   : > { %v2300_v60 = vpop.xlane.xlu1 %2299 }
 0x6cf   : > { %v2318_v33 = vmul.f32 0.03125, %v2300_v60 }
 0x6d1   : > { %v2326_v38 = vadd.f32 1e-05, %v2318_v33 }
 0x6d2   : > { %v2294_v14 = vpop.xlane.xlu1 %2293 }
 0x6d3   : > { %2874 = vrsqrt.f32 %v2326_v38  ;;  %v2316_v16 = vmul.f32 0.03125, %v2294_v14 }
 0x6d5   : > { %v2324_v48 = vadd.f32 1e-05, %v2316_v16 }
 0x6d6   : > { %v2303_v54 = vpop.xlane.xlu0 %2302 }
 0x6d7   : > { %2876 = vrsqrt.f32 %v2324_v48  ;;  %v2319_v45 = vmul.f32 0.03125, %v2303_v54 }
 0x6d9   : > { %v2327_v53 = vadd.f32 1e-05, %v2319_v45 }
 0x6da   : > { %v2297_v15 = vpop.xlane.xlu0 %2296 }
 0x6db   : > { %2878 = vrsqrt.f32 %v2327_v53  ;;  %v2317_v3 = vmul.f32 0.03125, %v2297_v15 }
 0x6dd   : > { %v2875_v12 = vpop.eup %2874  ;;  %v2325_v58 = vadd.f32 1e-05, %v2317_v3  ;;  %v2306_v0 = vpop.xlane.xlu1 %2305 }
 0x6de   : > { %v2342_v30 = vmul.f32 %v2875_v12, %v3674_v8  ;;  %v2320_v57 = vmul.f32 0.03125, %v2306_v0 }
 0x6df   : > { %2880 = vrsqrt.f32 %v2325_v58  ;;  %v2309_v39 = vpop.xlane.xlu0 %2308 }
 0x6e0   : > { %v2356_v31 = vmul.f32 %v2608_v61, %v2342_v30  ;;  %v2328_v41 = vadd.f32 1e-05, %v2320_v57  ;;  %v2321_v29 = vmul.f32 0.03125, %v2309_v39 }
 0x6e1   : > { %v2877_v56 = vpop.eup %2876  ;;  %v2312_v21 = vpop.xlane.xlu1 %2311 }
 0x6e2   : > { %v2370_v19 = vadd.f32 %v2609_v4, %v2356_v31  ;;  %v2340_v55 = vmul.f32 %v2877_v56, %v3678_v43  ;;  %2882 = vrsqrt.f32 %v2328_v41  ;;  %v2329_v8 = vadd.f32 1e-05, %v2321_v29 }
 0x6e3   : > { %v2322_v24 = vmul.f32 0.03125, %v2312_v21  ;;  %v2315_v34 = vpop.xlane.xlu0 %2314 }
 0x6e4   : > { %2378 = vst.msk [vmem:[%s3725_s19 + $0x10] sm:$0xff] %vm780_vm0, %v2370_v19  ;;  %v2354_v28 = vmul.f32 %v2608_v61, %v2340_v55  ;;  %2884 = vrsqrt.f32 %v2329_v8  ;;  %v2323_v37 = vmul.f32 0.03125, %v2315_v34 }
 0x6e5   : > { %v2879_v17 = vpop.eup %2878  ;;  %v2330_v23 = vadd.f32 1e-05, %v2322_v24 }
 0x6e6   : > { %v2368_v35 = vadd.f32 %v2609_v4, %v2354_v28  ;;  %v2343_v50 = vmul.f32 %v2879_v17, %v3685_v22  ;;  %v2331_v18 = vadd.f32 1e-05, %v2323_v37 }
 0x6e7   : > { %2886 = vrsqrt.f32 %v2330_v23 }
 0x6e8   : > { %2376 = vst.msk [vmem:[%s3725_s19] sm:$0xff] %vm780_vm0, %v2368_v35  ;;  %v2357_v43 = vmul.f32 %v2608_v61, %v2343_v50  ;;  %2888 = vrsqrt.f32 %v2331_v18 }
 0x6e9   : > { %v2881_v13 = vpop.eup %2880 }
 0x6ea   : > { %v2371_v47 = vadd.f32 %v2609_v4, %v2357_v43  ;;  %v2341_v46 = vmul.f32 %v2881_v13, %v3683_v25 }
 0x6ec   : > { %v2883_v26 = vpop.eup %2882  ;;  %2379 = vst.msk [vmem:[%s3725_s19 + $0x18] sm:$0xff] %vm780_vm0, %v2371_v47  ;;  %v2355_v40 = vmul.f32 %v2608_v61, %v2341_v46 }
 0x6ed   : > { %v2344_v36 = vmul.f32 %v2883_v26, %v3693_v63 }
 0x6ee   : > { %v2885_v22 = vpop.eup %2884  ;;  %v2369_v59 = vadd.f32 %v2609_v4, %v2355_v40 }
 0x6ef   : > { %v2358_v44 = vmul.f32 %v2608_v61, %v2344_v36  ;;  %v2345_v9 = vmul.f32 %v2885_v22, %v3696_v27 }
 0x6f0   : > { %2377 = vst.msk [vmem:[%s3725_s19 + $0x8] sm:$0xff] %vm780_vm0, %v2369_v59 }
 0x6f1   : > { %v2887_v51 = vpop.eup %2886  ;;  %v2372_v42 = vadd.f32 %v2609_v4, %v2358_v44  ;;  %v2359_v52 = vmul.f32 %v2608_v61, %v2345_v9 }
 0x6f2   : > { %v2889_v25 = vpop.eup %2888  ;;  %v2346_v49 = vmul.f32 %v2887_v51, %v3700_v2 }
 0x6f3   : > { %2380 = vst.msk [vmem:[%s3725_s19 + $0x20] sm:$0xff] %vm780_vm0, %v2372_v42  ;;  %v2373_v5 = vadd.f32 %v2609_v4, %v2359_v52  ;;  %v2347_v63 = vmul.f32 %v2889_v25, %v3705_v62 }
 0x6f4   : > { %v2360_v11 = vmul.f32 %v2608_v61, %v2346_v49 }
 0x6f5   : > { %2381 = vst.msk [vmem:[%s3725_s19 + $0x28] sm:$0xff] %vm780_vm0, %v2373_v5  ;;  %v2361_v32 = vmul.f32 %v2608_v61, %v2347_v63 }
 0x6f6   : > { %v2374_v1 = vadd.f32 %v2609_v4, %v2360_v11 }
 0x6f7   : > { %v2375_v27 = vadd.f32 %v2609_v4, %v2361_v32 }
 0x6f8   : > { %2382 = vst.msk [vmem:[%s3725_s19 + $0x30] sm:$0xff] %vm780_vm0, %v2374_v1 }
 0x6f9   : > { %2383 = vst.msk [vmem:[%s3725_s19 + $0x38] sm:$0xff] %vm780_vm0, %v2375_v27 }
 0x6fa PF: > { %s26_s23 = sadd.s32 1, %s2912_s23   ;;  %s3779_s21 = smov %s2908_s22 }
 0x6fb   : > { %p23_p5 = scmp.ge.s32.totalorder %s26_s23, 4   ;;  %s3780_s22 = smov %s3782_s24 }
 0x6fd   :  { %25 = sbr.rel (!%p23_p5) target bundleno = 2 (0x2), region = 139 }

// kernel: two_way_transformer.13
= control target key start
LH: loop header
LB: loop body
LE: loop exit
PB: predicated region body
PF: predicated region fallthrough
CT: control target
= control target key end

     0   :  { %s1748_s21 = smov 0   ;;  %s1750_s22 = smov 0   ;;  %s1912_s0 = inlined_call_operand.vmem [shape: f32[2,8,32], index: 0, kind: input, shape index: {}, may-alias: {0,2,4,5}]   ;;  %s1913_s1 = inlined_call_operand.vmem [shape: f32[2,8,32], index: 1, kind: input, shape index: {}, may-alias: {1,3}]   ;;  %s1914_s2 = inlined_call_operand.vmem [shape: f32[2,8,32], index: 2, kind: input, shape index: {}, may-alias: {0,2,4,5}]   ;;  %s1915_s3 = inlined_call_operand.vmem [shape: f32[2,8,32], index: 3, kind: input, shape index: {}, may-alias: {1,3}]   ;;  %s1916_s4 = inlined_call_operand.vmem [shape: f32[2,8,32], index: 4, kind: input, shape index: {}, may-alias: {0,2,4,5}]   ;;  %s1917_s5 = inlined_call_operand.vmem [shape: f32[2,8,32], index: 5, kind: input, shape index: {}, may-alias: {0,2,4,5}]   ;;  %s1918_s6 = inlined_call_operand.vmem [shape: bf16[32,32], index: 6, kind: input, shape index: {}]   ;;  %s1919_s7 = inlined_call_operand.vmem [shape: f32[1,32], index: 7, kind: input, shape index: {}]   ;;  %s1920_s8 = inlined_call_operand.vmem [shape: bf16[32,32], index: 8, kind: input, shape index: {}]   ;;  %s1921_s9 = inlined_call_operand.vmem [shape: f32[1,32], index: 9, kind: input, shape index: {}]   ;;  %s1922_s10 = inlined_call_operand.vmem [shape: bf16[32,32], index: 10, kind: input, shape index: {}]   ;;  %s1923_s11 = inlined_call_operand.vmem [shape: f32[1,32], index: 11, kind: input, shape index: {}]   ;;  %s1924_s12 = inlined_call_operand.vmem [shape: bf16[32,32], index: 12, kind: input, shape index: {}]   ;;  %s1925_s13 = inlined_call_operand.vmem [shape: f32[1,32], index: 13, kind: input, shape index: {}]   ;;  %s1926_s14 = inlined_call_operand.vmem [shape: f32[1,32], index: 14, kind: input, shape index: {}]   ;;  %s1927_s15 = inlined_call_operand.vmem [shape: f32[1,32], index: 15, kind: input, shape index: {}]   ;;  %s1928_s16 = inlined_call_operand.vmem [shape: f32[2,8,32], index: 16, kind: output, shape index: {}]  }
   0x1   :  { %1929 = sst [smem:[#allocation6_spill]] %s1912_s0  ;;  %s1752_s23 = smov 0  }
   0x2   :  { %1930 = sst [smem:[#allocation7_spill]] %s1918_s6 }
   0x3   :  { %1931 = sst [smem:[#allocation8_spill]] %s1920_s8 }
   0x4 LB: > { %s45_s24 = sadd.s32 1, %s1651_s22  ;;  %p1471_p0 = scmp.ge.s32.totalorder %s1655_s23, 1  ;;  %s1655_s23 = sphi %s1752_s23, %s26_s23   ;;  %s1651_s22 = sphi %s1750_s22, %s1936_s22   ;;  %s1647_s21 = sphi %s1748_s21, %s1935_s21  }
   0x5   : > { %p47_p1 = scmp.ge.s32.totalorder %s45_s24, 2  ;;  %p557_p2 = scmp.lt.s32.totalorder %s1655_s23, 3 }
   0x7   : > { %s1938_s24 = smov (%p47_p1, %s45_s24), 0  ;;  %p558_p3 = pnand %p1471_p0, %p557_p2 }
   0x8   : > { %s1932_s6 = sld [smem:[#allocation7_spill]] (!%p558_p3)  ;;  %v1657_v1 = vmov (!%p558_p3), 0.0   ;;  %s1933_s8 = sld [smem:[#allocation8_spill]] (!%p558_p3)  ;;  %vm1658_vm0 = vmmov (!%p558_p3), 0   ;;  %vm727_vm1 = vcmask (!%p558_p3), 261120   ;;  %vm922_vm2 = vcmask (!%p558_p3), 130048  }
   0x9   : > { %561 = sbr.rel (%p558_p3) target bundleno = 1747 (0x6d3), region = 84  ;;  %1523 = vmatprep.subr.bf16.mxu0 (!%p558_p3), %v1657_v1  ;;  %1531 = vmatprep.subr.bf16.mxu1 (!%p558_p3), %v1657_v1  ;;  %p646_p4 = scmp.lt.s32.totalorder (!%p558_p3), %s1647_s21, 1  ;;  %778 = vst.msk [vmem:[#allocation5] sm:$0xff] (!%p558_p3), %vm727_vm1, %v1657_v1  ;;  %v1479_v13 = vld [vmem:[%s1919_s7] ss:$0 sm:$0xff] (!%p558_p3)  ;;  %v1616_v31 = vld [vmem:[%s1922_s10 + $0x8] sm:$0xff] (!%p558_p3)  }
   0xa   : > { %1527 = vmatprep.mubr.msk.bf16.mxu0 (!%p558_p3), %vm1658_vm0, %v1657_v1  ;;  %1535 = vmatprep.mubr.msk.bf16.mxu1 (!%p558_p3), %vm1658_vm0, %v1657_v1  ;;  %s1934_s25 = sld [smem:[#allocation6_spill]] (!%p558_p3)  ;;  %v1483_v14 = vld [vmem:[%s1921_s9] ss:$0 sm:$0xff] (!%p558_p3)  ;;  %vm773_vm3 = vcmask (!%p558_p3), 7168   ;;  %v1660_v37 = vmov (!%p558_p3), -inf   ;;  %vm970_vm4 = vcmask (!%p558_p3), 64512  }
   0xb   : > { %v1615_v30 = vld [vmem:[%s1922_s10] sm:$0xff] (!%p558_p3)   ;;  %774 = vst.msk [vmem:[#allocation3] sm:$0xff] (!%p558_p3), %vm773_vm3, %v1660_v37  ;;  %775 = vst.msk [vmem:[#allocation3 + $0x8] sm:$0xff] (!%p558_p3), %vm773_vm3, %v1660_v37  ;;  %v1661_v43 = vmov (!%p558_p3), 0   ;;  %vm1005_vm5 = vcmask (!%p558_p3), 1043456   ;;  %vm1191_vm6 = vcmask (!%p558_p3), 261248  }
   0xc   : > { %776 = vst.msk [vmem:[#allocation4] sm:$0xff] (!%p558_p3), %vm773_vm3, %v1657_v1  ;;  %777 = vst.msk [vmem:[#allocation4 + $0x8] sm:$0xff] (!%p558_p3), %vm773_vm3, %v1657_v1  ;;  %1609 = vset.pattern.permute.xlu0 (!%p558_p3), %v1661_v43  ;;  %1610 = vset.pattern.permute.xlu1 (!%p558_p3), %v1661_v43  ;;  %v1487_v44 = vld [vmem:[%s1923_s11] ss:$0 sm:$0xff] (!%p558_p3) }
   0xe   : > { %v1611_v0 = vld [vmem:[%s1932_s6] sm:$0xff] (!%p558_p3)   ;;  %v1613_v3 = vld [vmem:[%s1932_s6 + $0x8] sm:$0xff] (!%p558_p3)  }
   0xf   : > { %v1612_v2 = vld [vmem:[%s1933_s8] sm:$0xff] (!%p558_p3)   ;;  %1524 = vmatpush3.bf16.msra.mxu0 (!%p558_p3), %v1611_v0  ;;  %v1614_v4 = vld [vmem:[%s1933_s8 + $0x8] sm:$0xff] (!%p558_p3)  }
  0x10   : > { %1532 = vmatpush3.bf16.msra.mxu1 %v1612_v2  ;;  %1525 = vmatprep.subr.bf16.mxu0 %v1657_v1  ;;  %s1940_s21 = smov (!%p646_p4, %s1647_s21), 1 }
  0x11   : > { %1533 = vmatprep.subr.bf16.mxu1 %v1657_v1  ;;  %s1788_s18 = sshll.u32 %s1940_s21, 3 }
  0x12   : > { %s652_s26 = scalar_lea.vmem %s1934_s25, %s1788_s18  ;;  %s659_s29 = scalar_lea.vmem %s1913_s1, %s1788_s18  ;;  %v969_v57 = vld [vmem:[#allocation3] sm:$0xff]  ;;  %v1105_v61 = vld [vmem:[#allocation3 + $0x8] sm:$0xff] }
  0x13   : > { %1526 = vmatpush3.bf16.msra.mxu0 %v1613_v3  ;;  %v700_v5 = vld [vmem:[%s652_s26] sm:$0xff]  ;;  %s666_s0 = scalar_lea.vmem %s1914_s2, %s1788_s18  ;;  %s673_s8 = scalar_lea.vmem %s1915_s3, %s1788_s18 }
  0x14   : > { %1534 = vmatpush3.bf16.msra.mxu1 %v1614_v4  ;;  %1539 = vmatprep.subr.bf16.mxu0 %v1657_v1  ;;  %v701_v6 = vld [vmem:[%s659_s29] sm:$0xff]  ;;  %s680_s30 = scalar_lea.vmem %s1916_s4, %s1788_s18  ;;  %s1662_s25 = smov 16  }
  0x15   : > { %1547 = vmatprep.subr.bf16.mxu1 %v1657_v1  ;;  %v702_v7 = vadd.f32 %v701_v6, %v700_v5  ;;  %v779_v8 = vld [vmem:[%s666_s0] sm:$0xff]  ;;  %s687_s29 = scalar_lea.vmem %s1917_s5, %s1788_s18 }
  0x16   : > { %v780_v9 = vld [vmem:[%s673_s8] sm:$0xff]  ;;  %s1659_s8 = smov 112  }
  0x17   : > { %v781_v10 = vadd.f32 %v780_v9, %v779_v8  ;;  %v703_v11 = vpack.c.bf16 %v702_v7, %v702_v7  ;;  %v850_v32 = vld [vmem:[%s680_s30] sm:$0xff] }
  0x18   : > { %v851_v33 = vpack.c.bf16 %v850_v32, %v850_v32  ;;  %v1122_v32 = vld [vmem:[#allocation4 + $0x8] sm:$0xff] }
  0x19   : > { %v782_v12 = vpack.c.bf16 %v781_v10, %v781_v10  ;;  %1528 = vmatmul.mubr.msk.bf16.vlgmr.msra.gmra.mrb[0].mxu0 %vm727_vm1, %v703_v11 }
  0x1a   : > { %1543 = vmatprep.mubr.msk.bf16.mxu0 %vm1658_vm0, %v1657_v1  ;;  %1540 = vmatpush3.bf16.msra.mxu0 %v1615_v30 }
  0x1b   : > { %1536 = vmatmul.mubr.msk.bf16.vlgmr.msra.gmra.mrb[0].mxu1 %vm727_vm1, %v782_v12  ;;  %1541 = vmatprep.subr.bf16.mxu0 %v1657_v1 }
  0x1c   : > { %1549 = vmatprep.mubr.msk.bf16.mxu1 %vm1658_vm0, %v1657_v1 }
  0x1e   : > { %1542 = vmatpush3.bf16.msra.mxu0 %v1616_v31 }
  0x1f   : > { %1553 = vmatprep.subr.bf16.mxu0 %v1657_v1 }
  0x21   : > { %1544 = vmatmul.mubr.msk.bf16.vlgmr.msra.gmra.mrb[4].mxu0 %vm727_vm1, %v851_v33 }
  0x22   : > { %1555 = vmatprep.mubr.msk.bf16.mxu0 %vm1658_vm0, %v1657_v1 }
  0xec   : > { %v765_v15 = vpop.f32.mrb[0].mxu0 }
  0xed   : > { %v766_v16 = vadd.f32 %v1479_v13, %v765_v15  ;;  %v1529_v18 = vpop.f32.mrb[1].mxu0 }
  0xee   : > { %v844_v17 = vpop.f32.mrb[0].mxu1  ;;  %v768_v21 = vpop.f32.mrb[2].mxu0 }
  0xef   : > { %v845_v19 = vadd.f32 %v1483_v14, %v844_v17  ;;  %v1537_v20 = vpop.f32.mrb[1].mxu1  ;;  %v771_v22 = vmul.f32 0.25, %v766_v16  ;;  %v1530_v24 = vpop.f32.mrb[3].mxu0 }
  0xf0   : > { %v847_v23 = vpop.f32.mrb[2].mxu1  ;;  %v986_v20 = vld [vmem:[#allocation4] sm:$0xff]  ;;  %v994_v24 = vld [vmem:[#allocation5] sm:$0xff] }
  0xf1   : > { %v920_v25 = vpack.c.bf16 %v845_v19, %v845_v19  ;;  %v1538_v26 = vpop.f32.mrb[3].mxu1  ;;  %772 = vst.msk [vmem:[#allocation2] sm:$0xff] %vm727_vm1, %v771_v22 }
  0xf3   : > { %v927_v27 = vsel %vm922_vm2, %v920_v25, 0  ;;  %1056 = vrot.lane.b32.xlu0 %v920_v25, %s1659_s8 }
  0xf4   : > { %1548 = vmatpush3.bf16.xpose.msra.mxu1 %v927_v27  ;;  %v912_v45 = vpop.f32.mrb[4].mxu0 }
  0xf5   : > { %1559 = vmatprep.subr.bf16.mxu1 %v1657_v1  ;;  %v913_v46 = vadd.f32 %v1487_v44, %v912_v45  ;;  %v1545_v47 = vpop.f32.mrb[5].mxu0  ;;  %v1618_v45 = vld [vmem:[%s1924_s12 + $0x8] sm:$0xff]  }
  0xf6   : > { %v915_v48 = vpop.f32.mrb[6].mxu0 }
  0xf7   : > { %v921_v49 = vpack.c.bf16 %v913_v46, %v913_v46  ;;  %v1546_v50 = vpop.f32.mrb[7].mxu0 }
  0xf8   : > { %v918_v28 = vld [vmem:[#allocation2] sm:$0xff] }
  0xf9   : > { %v919_v29 = vpack.c.bf16 %v918_v28, %v918_v28  ;;  %v1007_v51 = vsel %vm1005_vm5, %v921_v49, 0 }
  0xfa   : > { %1554 = vmatpush3.bf16.msra.mxu0 %v1007_v51 }
  0xfb   : > { %1053 = vrot.lane.b32.xlu0 %v919_v29, %s1659_s8  ;;  %1550 = vmatmul.mubr.msk.bf16.vlgmr.msra.gmra.mrb[4].mxu1 %vm922_vm2, %v919_v29 }
  0xfc   : > { %1561 = vmatprep.mubr.msk.bf16.mxu1 %vm1658_vm0, %v1657_v1  ;;  %1565 = vmatprep.subr.bf16.mxu0 %v1657_v1 }
 0x165   : > { %v1057_v34 = vpop.permute.xlu0 %1056 }
 0x166   : > { %v1062_v35 = vsel %vm922_vm2, %v1057_v34, 0 }
 0x167   : > { %1560 = vmatpush3.bf16.xpose.msra.mxu1 %v1062_v35 }
 0x168   : > { %1571 = vmatprep.subr.bf16.mxu1 %v1657_v1 }
 0x16d   : > { %v1054_v36 = vpop.permute.xlu0 %1053 }
 0x16e   : > { %1562 = vmatmul.mubr.msk.bf16.vlgmr.msra.gmra.mrb[8].mxu1 %vm922_vm2, %v1054_v36 }
 0x16f   : > { %1575 = vmatprep.mubr.msk.bf16.mxu1 %vm1658_vm0, %v1657_v1 }
 0x1ce   : > { %v963_v38 = vpop.f32.mrb[4].mxu1 }
 0x1cf   : > { %v1551_v39 = vpop.f32.mrb[5].mxu1  ;;  %v971_v40 = vsel %vm970_vm4, %v963_v38, -inf }
 0x1d0   : > { %972 = vmax.xlane.f32.xlu1 %v971_v40  ;;  %v966_v41 = vpop.f32.mrb[6].mxu1 }
 0x1d1   : > { %v1552_v42 = vpop.f32.mrb[7].mxu1 }
 0x241   : > { %v1098_v52 = vpop.f32.mrb[8].mxu1 }
 0x242   : > { %v1563_v53 = vpop.f32.mrb[9].mxu1  ;;  %v1106_v54 = vsel %vm970_vm4, %v1098_v52, -inf }
 0x243   : > { %1107 = vmax.xlane.f32.xlu1 %v1106_v54  ;;  %v1101_v55 = vpop.f32.mrb[10].mxu1 }
 0x244   : > { %v1564_v56 = vpop.f32.mrb[11].mxu1 }
 0x25d   : > { %v973_v58 = vpop.xlane.xlu1 %972 }
 0x25e   : > { %v974_v59 = vmax.f32 %v969_v57, %v973_v58 }
 0x260   : > { %v975_v60 = vsub.f32 %v969_v57, %v974_v59  ;;  %1051 = vst.msk [vmem:[#allocation3] sm:$0xff] %vm773_vm3, %v974_v59  ;;  %980 = vperm.xlu0 %1609, %v974_v59   ;;  %v1495_v57 = vld [vmem:[%s1925_s13] ss:$0 sm:$0xff] }
 0x261   : > { %v1282_v59 = vld [vmem:[%s687_s29] sm:$0xff] }
 0x262   : > { %v976_v10 = vmul.f32 1.442695, %v975_v60 }
 0x264   : > { %1138 = vrot.lane.b32.xlu0 %v921_v49, %s1659_s8  ;;  %s694_s8 = scalar_lea.vmem %s1928_s16, %s1788_s18 }
 0x2d0   : > { %v1108_v62 = vpop.xlane.xlu1 %1107 }
 0x2d1   : > { %v1109_v63 = vmax.f32 %v1105_v61, %v1108_v62 }
 0x2d3   : > { %v1110_v0 = vsub.f32 %v1105_v61, %v1109_v63  ;;  %1193 = vst.msk [vmem:[#allocation3 + $0x8] sm:$0xff] %vm773_vm3, %v1109_v63  ;;  %1115 = vperm.xlu1 %1610, %v1109_v63  }
 0x2d5   : > { %v1111_v18 = vmul.f32 1.442695, %v1110_v0 }
 0x2df   : > { %v981_v2 = vpop.permute.xlu0 %980 }
 0x2e0   : > { %v983_v3 = vsub.f32 %v963_v38, %v981_v2  ;;  %v1617_v38 = vld [vmem:[%s1924_s12] sm:$0xff]  }
 0x2e1   : > { %1572 = vmatpush3.bf16.msra.mxu1 %v1617_v38 }
 0x2e2   : > { %v984_v4 = vmul.f32 1.442695, %v983_v3  ;;  %1573 = vmatprep.subr.bf16.mxu1 %v1657_v1 }
 0x2e3   : > { %v1139_v5 = vpop.permute.xlu0 %1138 }
 0x2e4   : > { %1619 = vpow2.f32 %v984_v4  ;;  %v1144_v9 = vsel %vm1005_vm5, %v1139_v5, 0 }
 0x2e5   : > { %1621 = vpow2.f32 %v976_v10  ;;  %1574 = vmatpush3.bf16.msra.mxu1 %v1618_v45 }
 0x2ee   : > { %v1620_v6 = vpop.eup %1619 }
 0x2ef   : > { %v988_v7 = vsel %vm970_vm4, %v1620_v6, 0.0  ;;  %v1001_v8 = vpack.c.bf16 %v1620_v6, %v1620_v6  ;;  %v1622_v11 = vpop.eup %1621 }
 0x2f0   : > { %989 = vadd.xlane.f32.xlu0 %v988_v7  ;;  %v987_v21 = vmul.f32 %v1622_v11, %v986_v20 }
 0x2f1   : > { %1556 = vmatmul.mubr.msk.bf16.vlgmr.msra.gmra.mrb[8].mxu0 %vm970_vm4, %v1001_v8 }
 0x2f2   : > { %1566 = vmatpush3.bf16.msra.mxu0 %v1144_v9  ;;  %1567 = vmatprep.mubr.msk.bf16.mxu0 %vm1658_vm0, %v1657_v1 }
 0x306   : > { %997 = vperm.xlu0 %1609, %v1622_v11  }
 0x352   : > { %v1116_v12 = vpop.permute.xlu1 %1115 }
 0x353   : > { %v1118_v13 = vsub.f32 %v1098_v52, %v1116_v12  ;;  %v1499_v12 = vld [vmem:[%s1926_s14] ss:$0 sm:$0xff] }
 0x355   : > { %v1119_v14 = vmul.f32 1.442695, %v1118_v13 }
 0x357   : > { %1623 = vpow2.f32 %v1119_v14  ;;  %v1500_v14 = vld [vmem:[%s1927_s15] ss:$0 sm:$0xff] }
 0x358   : > { %1625 = vpow2.f32 %v1111_v18 }
 0x361   : > { %v1624_v15 = vpop.eup %1623 }
 0x362   : > { %v1124_v16 = vsel %vm970_vm4, %v1624_v15, 0.0  ;;  %v1136_v17 = vpack.c.bf16 %v1624_v15, %v1624_v15  ;;  %v1626_v19 = vpop.eup %1625 }
 0x363   : > { %1125 = vadd.xlane.f32.xlu1 %v1124_v16  ;;  %v1123_v33 = vmul.f32 %v1626_v19, %v1122_v32 }
 0x364   : > { %1568 = vmatmul.mubr.msk.bf16.vlgmr.msra.gmra.mrb[12].mxu0 %vm970_vm4, %v1136_v17 }
 0x374   : > { %1132 = vperm.xlu1 %1610, %v1626_v19  }
 0x37d   : > { %v990_v22 = vpop.xlane.xlu0 %989 }
 0x37e   : > { %v991_v23 = vadd.f32 %v990_v22, %v987_v21 }
 0x380   : > { %993 = vst.msk [vmem:[#allocation4] sm:$0xff] %vm773_vm3, %v991_v23 }
 0x385   : > { %v998_v25 = vpop.permute.xlu0 %997 }
 0x386   : > { %v1000_v26 = vmul.f32 %v998_v25, %v994_v24 }
 0x387   : > { %v1198_v39 = vld [vmem:[#allocation4] sm:$0xff] }
 0x3c4   : > { %v1043_v27 = vpop.f32.mrb[8].mxu0 }
 0x3c5   : > { %v1049_v28 = vadd.f32 %v1043_v27, %v1000_v26  ;;  %v1557_v29 = vpop.f32.mrb[9].mxu0 }
 0x3c6   : > { %v1046_v30 = vpop.f32.mrb[10].mxu0 }
 0x3c7   : > { %1050 = vst.msk [vmem:[#allocation5] sm:$0xff] %vm922_vm2, %v1049_v28  ;;  %v1558_v31 = vpop.f32.mrb[11].mxu0 }
 0x3ce   : > { %v1129_v47 = vld [vmem:[#allocation5] sm:$0xff] }
 0x3f0   : > { %v1126_v34 = vpop.xlane.xlu1 %1125 }
 0x3f1   : > { %v1127_v35 = vadd.f32 %v1126_v34, %v1123_v33 }
 0x3f3   : > { %1128 = vst.msk [vmem:[#allocation4 + $0x8] sm:$0xff] %vm773_vm3, %v1127_v35 }
 0x3f4   : > { %v1133_v46 = vpop.permute.xlu1 %1132 }
 0x3f5   : > { %v1135_v48 = vmul.f32 %v1133_v46, %v1129_v47 }
 0x3fa   : > { %v1206_v36 = vld [vmem:[#allocation4 + $0x8] sm:$0xff] }
 0x3fb   : > { %1627 = vrcp.f32 %v1206_v36 }
 0x3fc   : > { %1629 = vrcp.f32 %v1198_v39 }
 0x405   : > { %v1628_v37 = vpop.eup %1627 }
 0x406   : > { %1210 = vperm.xlu1 %1610, %v1628_v37   ;;  %v1630_v44 = vpop.eup %1629 }
 0x437   : > { %v1180_v40 = vpop.f32.mrb[12].mxu0 }
 0x438   : > { %1187 = vrot.lane.b32.xlu0 %v1180_v40, %s1662_s25  ;;  %v1569_v41 = vpop.f32.mrb[13].mxu0 }
 0x439   : > { %v1183_v42 = vpop.f32.mrb[14].mxu0 }
 0x43a   : > { %v1570_v43 = vpop.f32.mrb[15].mxu0 }
 0x43c   : > { %1202 = vperm.xlu0 %1609, %v1630_v44  }
 0x485   : > { %v1211_v51 = vpop.permute.xlu1 %1210 }
 0x4aa   : > { %v1188_v1 = vpop.permute.xlu0 %1187 }
 0x4ab   : > { %v1190_v49 = vadd.f32 %v1188_v1, %v1135_v48 }
 0x4ad   : > { %1192 = vst.msk [vmem:[#allocation5] sm:$0xff] %vm1191_vm6, %v1190_v49 }
 0x4b4   : > { %v1197_v50 = vld [vmem:[#allocation5] sm:$0xff] }
 0x4b5   : > { %v1213_v53 = vmul.f32 %v1211_v51, %v1197_v50 }
 0x4bb   : > { %v1203_v52 = vpop.permute.xlu0 %1202 }
 0x4bc   : > { %v1205_v54 = vmul.f32 %v1203_v52, %v1197_v50 }
 0x4be   : > { %v1214_v55 = vsel %vm922_vm2, %v1205_v54, %v1213_v53 }
 0x4bf   : > { %v1215_v56 = vpack.c.bf16 %v1214_v55, %v1214_v55 }
 0x4c1   : > { %1576 = vmatmul.mubr.msk.bf16.vlgmr.msra.gmra.mrb[12].mxu1 %vm727_vm1, %v1215_v56 }
 0x594   : > { %v1276_v58 = vpop.f32.mrb[12].mxu1 }
 0x595   : > { %v1277_v60 = vadd.f32 %v1495_v57, %v1276_v58  ;;  %v1577_v61 = vpop.f32.mrb[13].mxu1 }
 0x596   : > { %v1279_v62 = vpop.f32.mrb[14].mxu1 }
 0x597   : > { %v1578_v63 = vpop.f32.mrb[15].mxu1  ;;  %v1283_v0 = vadd.f32 %v1282_v59, %v1277_v60 }
 0x599   : > { %v1286_v2 = vsel %vm727_vm1, %v1283_v0, 0.0 }
 0x59a   : > { %1287 = vadd.xlane.f32.xlu0 %v1286_v2 }
 0x627   : > { %v1288_v3 = vpop.xlane.xlu0 %1287 }
 0x628   : > { %v1290_v4 = vmul.f32 0.03125, %v1288_v3 }
 0x62a   : > { %v1291_v5 = vsub.f32 %v1283_v0, %v1290_v4 }
 0x62c   : > { %v1292_v6 = vmul.f32 %v1291_v5, %v1291_v5 }
 0x62e   : > { %v1293_v7 = vsel %vm727_vm1, %v1292_v6, 0.0 }
 0x62f   : > { %1294 = vadd.xlane.f32.xlu1 %v1293_v7 }
 0x6bc   : > { %v1295_v8 = vpop.xlane.xlu1 %1294 }
 0x6bd   : > { %v1296_v9 = vmul.f32 0.03125, %v1295_v8 }
 0x6bf   : > { %v1297_v10 = vadd.f32 1e-05, %v1296_v9 }
 0x6c1   : > { %1631 = vrsqrt.f32 %v1297_v10 }
 0x6cb   : > { %v1632_v11 = vpop.eup %1631 }
 0x6cc   : > { %v1299_v13 = vmul.f32 %v1632_v11, %v1291_v5 }
 0x6ce   : > { %v1306_v15 = vmul.f32 %v1499_v12, %v1299_v13 }
 0x6d0   : > { %v1313_v16 = vadd.f32 %v1500_v14, %v1306_v15 }
 0x6d2   : > { %1314 = vst.msk [vmem:[%s694_s8] sm:$0xff] %vm727_vm1, %v1313_v16 }
 0x6d3 PF: > { %s26_s23 = sadd.s32 1, %s1655_s23   ;;  %s1935_s21 = smov %s1651_s22 }
 0x6d4   : > { %p23_p5 = scmp.ge.s32.totalorder %s26_s23, 4   ;;  %s1936_s22 = smov %s1938_s24 }
 0x6d6   :  { %25 = sbr.rel (!%p23_p5) target bundleno = 4 (0x4), region = 139 }

// kernel: two_way_transformer.17
= control target key start
LH: loop header
LB: loop body
LE: loop exit
PB: predicated region body
PF: predicated region fallthrough
CT: control target
= control target key end

     0   :  { %s2347_s0 = inlined_call_operand.vmem [shape: f32[2,8,32], index: 0, kind: input, shape index: {}, may-alias: {0,5}]   ;;  %s2348_s1 = inlined_call_operand.vmem [shape: f32[2,8,32], index: 1, kind: input, shape index: {}]   ;;  %s2349_s2 = inlined_call_operand.vmem [shape: f32[2,64,32], index: 2, kind: input, shape index: {}, may-alias: {2,4}]   ;;  %s2350_s3 = inlined_call_operand.vmem [shape: f32[2,64,32], index: 3, kind: input, shape index: {}]   ;;  %s2351_s4 = inlined_call_operand.vmem [shape: f32[2,64,32], index: 4, kind: input, shape index: {}, may-alias: {2,4}]   ;;  %s2352_s5 = inlined_call_operand.vmem [shape: f32[2,8,32], index: 5, kind: input, shape index: {}, may-alias: {0,5}]   ;;  %s2353_s6 = inlined_call_operand.vmem [shape: bf16[32,16], index: 6, kind: input, shape index: {}]   ;;  %s2354_s7 = inlined_call_operand.vmem [shape: f32[1,16], index: 7, kind: input, shape index: {}]   ;;  %s2355_s8 = inlined_call_operand.vmem [shape: bf16[32,16], index: 8, kind: input, shape index: {}]   ;;  %s2356_s9 = inlined_call_operand.vmem [shape: f32[1,16], index: 9, kind: input, shape index: {}]   ;;  %s2357_s10 = inlined_call_operand.vmem [shape: bf16[32,16], index: 10, kind: input, shape index: {}]   ;;  %s2358_s11 = inlined_call_operand.vmem [shape: f32[1,16], index: 11, kind: input, shape index: {}]   ;;  %s2359_s12 = inlined_call_operand.vmem [shape: bf16[16,32], index: 12, kind: input, shape index: {}]   ;;  %s2360_s13 = inlined_call_operand.vmem [shape: f32[1,32], index: 13, kind: input, shape index: {}]   ;;  %s2361_s14 = inlined_call_operand.vmem [shape: f32[1,32], index: 14, kind: input, shape index: {}]   ;;  %s2362_s15 = inlined_call_operand.vmem [shape: f32[1,32], index: 15, kind: input, shape index: {}]   ;;  %s2363_s16 = inlined_call_operand.hbm [shape: f32[2,8,32], index: 16, kind: output, shape index: {}]  }
   0x1   :  { %2368 = sst [smem:[#allocation14_spill]] %s2347_s0 }
   0x2   :  { %2369 = sst [smem:[#allocation15_spill]] %s2348_s1 }
   0x3   :  { %2370 = sst [smem:[#allocation16_spill]] %s2355_s8 }
   0x4   :  { %21 = vsyncpa [#allocation7], 0 }
   0x5   :  { %23 = vsyncpa [#allocation7 + $0x1], 0  ;;  %s2069_s21 = smov 0   ;;  %s2071_s22 = smov 0  }
   0x6   :  { %s2073_s23 = smov 0   ;;  %s2075_s24 = smov 0  }
   0x7   :  { %s2077_s25 = smov 0   ;;  %s2079_s26 = smov 0  }
   0x8 LB: > { %2371 = sst [smem:[#allocation9_spill]] %s1963_s23  ;;  %s1641_s27 = sadd.s32 4294967295, %s1975_s26   ;;  %s1975_s26 = sphi %s2079_s26, %s29_s26   ;;  %s1971_s25 = sphi %s2077_s25, %s2385_s25   ;;  %s1967_s24 = sphi %s2075_s24, %s2384_s24   ;;  %s1963_s23 = sphi %s2073_s23, %s2383_s23   ;;  %s1959_s22 = sphi %s2071_s22, %s2387_s22   ;;  %s1955_s21 = sphi %s2069_s21, %s2386_s21  }
   0x9   : > { %2372 = sst [smem:[#allocation10_spill]] %s1971_s25  ;;  %s1642_s28 = sadd.s32 4294967294, %s1975_s26  }
   0xa   : > { %s48_s29 = sadd.s32 1, %s1971_s25  ;;  %s435_s30 = sadd.s32 1, %s1963_s23 }
   0xb   : > { %p50_p0 = scmp.ge.s32.totalorder %s48_s29, 2  ;;  %p445_p1 = scmp.ne.s32.totalorder %s1963_s23, %s1959_s22 }
   0xc   : > { %p446_p2 = scmp.eq.s32.totalorder %s1641_s27, 1  ;;  %p451_p3 = scmp.ne.s32.totalorder %s1959_s22, %s1955_s21 }
   0xd   : > { %s2389_s29 = smov (%p50_p0, %s48_s29), 0  ;;  %p452_p5 = scmp.eq.s32.totalorder %s1642_s28, 1 }
   0xe   : > { %2373 = sst [smem:[#allocation11_spill]] %s2389_s29  ;;  %p2109_p4 = por %p446_p2, %p445_p1 }
   0xf   : > { %s430_s17 = ssub.s32 %s1971_s25, %s2389_s29  ;;  %p1645_p6 = scmp.ge.s32.totalorder %s1975_s26, 1 }
  0x10   : > { %p433_p7 = scmp.eq.s32.totalorder %s430_s17, 0  ;;  %p2116_p8 = por %p452_p5, %p451_p3 }
  0x11   : > { %p569_p9 = scmp.lt.s32.totalorder %s1975_s26, 3 }
  0x12   : > { %s2375_s18 = scalar_select %p2116_p8, 1, 0 }
  0x13   : > { %s2122_s19 = scalar_select %p433_p7, %s1963_s23, %s435_s30  }
  0x14   : > { %2376 = sst [smem:[#allocation12_spill]] %s2375_s18  ;;  %p570_p10 = pnand %p1645_p6, %p569_p9 }
  0x15   : > { %2377 = sst [smem:[#allocation13_spill]] %s2122_s19  ;;  %s2378_s8 = sld [smem:[#allocation16_spill]] (!%p570_p10)  ;;  %v1977_v2 = vmov (!%p570_p10), 0.0   ;;  %v1878_v3 = vld [vmem:[%s2353_s6] sm:$0xff] (!%p570_p10)   ;;  %v1879_v4 = vld [vmem:[%s2353_s6 + $0x8] sm:$0xff] (!%p570_p10)   ;;  %vm1978_vm0 = vmmov (!%p570_p10), 0  }
  0x16   : > { %573 = sbr.rel (%p570_p10) target bundleno = 2221 (0x8ad), region = 84  ;;  %p662_p11 = scmp.lt.s32.totalorder (!%p570_p10), %s1967_s24, 1  ;;  %1727 = vmatprep.subr.bf16.mxu0 (!%p570_p10), %v1977_v2  ;;  %1731 = vmatprep.mubr.msk.bf16.mxu0 (!%p570_p10), %vm1978_vm0, %v1977_v2  ;;  %vm745_vm1 = vcmask (!%p570_p10), 261120   ;;  %vm790_vm2 = vcmask (!%p570_p10), 130048   ;;  %v1660_v38 = vld [vmem:[%s2356_s9] ss:$0 sm:$0xff] (!%p570_p10) }
  0x17   : > { %1728 = vmatpush3.bf16.msra.mxu0 (!%p570_p10), %v1878_v3  ;;  %s2379_s19 = sld [smem:[#allocation14_spill]] (!%p570_p10)  ;;  %s2380_s1 = sld [smem:[#allocation15_spill]] (!%p570_p10)  ;;  %797 = vst.msk [vmem:[#allocation5] sm:$0xff] (!%p570_p10), %vm790_vm2, %v1977_v2  ;;  %v1656_v40 = vld [vmem:[%s2354_s7] ss:$0 sm:$0xff] (!%p570_p10)  ;;  %vm1049_vm3 = vcmask (!%p570_p10), 64512  }
  0x18   : > { %1729 = vmatprep.subr.bf16.mxu0 (!%p570_p10), %v1977_v2  ;;  %vm792_vm4 = vcmask (!%p570_p10), 7168   ;;  %vm1106_vm5 = vcmask (!%p570_p10), 523264   ;;  %s1982_s27 = smov (!%p570_p10), 8   ;;  %vm1351_vm6 = vcmask (!%p570_p10), 130112   ;;  %s1684_s28 = sshll.u32 (!%p570_p10), %s1967_s24, 7 }
  0x19   : > { %795 = vst.msk [vmem:[#allocation4] sm:$0xff] (!%p570_p10), %vm792_vm4, %v1977_v2  ;;  %796 = vst.msk [vmem:[#allocation4 + $0x8] sm:$0xff] (!%p570_p10), %vm792_vm4, %v1977_v2 }
  0x1b   : > { %v1876_v0 = vld [vmem:[%s2378_s8] sm:$0xff] (!%p570_p10)   ;;  %v1877_v1 = vld [vmem:[%s2378_s8 + $0x8] sm:$0xff] (!%p570_p10)   ;;  %1730 = vmatpush3.bf16.msra.mxu0 (!%p570_p10), %v1879_v4 }
  0x1c   : > { %1735 = vmatprep.subr.bf16.mxu1 (!%p570_p10), %v1876_v0 }
  0x1d   : > { %s663_s17 = scalar_select %p662_p11, %s1967_s24, 1  ;;  %1736 = vmatpush3.bf16.msra.mxu1 %v1876_v0 }
  0x1e   : > { %1737 = vmatprep.subr.bf16.mxu1 %v1877_v1  ;;  %s1983_s24 = smov [#allocation6]  }
  0x1f   : > { %s2136_s20 = sshll.u32 %s663_s17, 6  ;;  %s2143_s29 = sshll.u32 %s663_s17, 3 }
  0x20   : > { %s684_s25 = scalar_lea.vmem %s2349_s2, %s2136_s20  ;;  %s2153_s18 = scalar_lea.vmem %s2350_s3, %s2136_s20 }
  0x21   : > { %v798_v5 = vld [vmem:[%s684_s25] sm:$0xff]  ;;  %v799_v6 = vld [vmem:[%s684_s25 + $0x8] sm:$0xff]  ;;  %1738 = vmatpush3.bf16.msra.mxu1 %v1877_v1  ;;  %v800_v10 = vld [vmem:[%s684_s25 + $0x10] sm:$0xff]  ;;  %s668_s17 = scalar_lea.vmem %s2379_s19, %s2143_s29  ;;  %s675_s30 = scalar_lea.vmem %s2380_s1, %s2143_s29 }
  0x22   : > { %v806_v7 = vld [vmem:[%s2153_s18] sm:$0xff]  ;;  %v807_v8 = vld [vmem:[%s2153_s18 + $0x8] sm:$0xff]  ;;  %v801_v11 = vld [vmem:[%s684_s25 + $0x18] sm:$0xff]  ;;  %1759 = vmatprep.subr.bf16.mxu1 %v1977_v2  ;;  %s1979_s19 = smov 120   ;;  %s704_s8 = scalar_lea.vmem %s2351_s4, %s2136_s20 }
  0x23   : > { %v814_v9 = vadd.f32 %v806_v7, %v798_v5  ;;  %v815_v12 = vadd.f32 %v807_v8, %v799_v6  ;;  %v808_v13 = vld [vmem:[%s2153_s18 + $0x10] sm:$0xff]  ;;  %v809_v14 = vld [vmem:[%s2153_s18 + $0x18] sm:$0xff]  ;;  %v802_v15 = vld [vmem:[%s684_s25 + $0x20] sm:$0xff]  ;;  %s2299_s1 = scalar_lea.hbm %s2363_s16, %s1684_s28 }
  0x24   : > { %v816_v16 = vadd.f32 %v808_v13, %v800_v10  ;;  %v817_v17 = vadd.f32 %v809_v14, %v801_v11  ;;  %v803_v18 = vld [vmem:[%s684_s25 + $0x28] sm:$0xff]  ;;  %v810_v19 = vld [vmem:[%s2153_s18 + $0x20] sm:$0xff]  ;;  %v804_v24 = vld [vmem:[%s684_s25 + $0x30] sm:$0xff] }
  0x25   : > { %v811_v20 = vld [vmem:[%s2153_s18 + $0x28] sm:$0xff]  ;;  %v822_v21 = vpack.c.bf16 %v815_v12, %v814_v9  ;;  %v818_v22 = vadd.f32 %v810_v19, %v802_v15  ;;  %v805_v25 = vld [vmem:[%s684_s25 + $0x38] sm:$0xff]  ;;  %v812_v26 = vld [vmem:[%s2153_s18 + $0x30] sm:$0xff]  ;;  %v1980_v12 = vmov -inf  }
  0x26   : > { %v819_v23 = vadd.f32 %v811_v20, %v803_v18  ;;  %v823_v27 = vpack.c.bf16 %v817_v17, %v816_v16  ;;  %v813_v28 = vld [vmem:[%s2153_s18 + $0x38] sm:$0xff]  ;;  %v718_v29 = vld [vmem:[%s668_s17] sm:$0xff]  ;;  %v820_v33 = vadd.f32 %v812_v26, %v804_v24  ;;  %v1881_v9 = vld [vmem:[%s2357_s10 + $0x8] sm:$0xff]   ;;  %793 = vst.msk [vmem:[#allocation3] sm:$0xff] %vm792_vm4, %v1980_v12  ;;  %s712_s18 = scalar_lea.vmem %s2352_s5, %s2143_s29  ;;  %s659_s29 = sand.u32 1, %s1959_s22  }
  0x27   : > { %v719_v30 = vld [vmem:[%s675_s30] sm:$0xff]  ;;  %1739 = vmatprep.mubr.msk.bf16.mxu1 %vm745_vm1, %v822_v21  ;;  %v821_v34 = vadd.f32 %v813_v28, %v805_v25  ;;  %v928_v11 = vld [vmem:[%s704_s8 + $0x8] sm:$0xff]  ;;  %794 = vst.msk [vmem:[#allocation3 + $0x8] sm:$0xff] %vm792_vm4, %v1980_v12  ;;  %v929_v14 = vld [vmem:[%s704_s8 + $0x10] sm:$0xff]  ;;  %v1981_v28 = vmov 0   ;;  %s1646_s20 = sshll.u32 %s659_s29, 3 }
  0x28   : > { %v824_v31 = vpack.c.bf16 %v819_v23, %v818_v22  ;;  %v720_v32 = vadd.f32 %v719_v30, %v718_v29  ;;  %1740 = vmatmul.mubr.msk.bf16.vlgmr.msra.gmra.mrb[0].mxu1 %vm745_vm1, %v823_v27  ;;  %v1880_v8 = vld [vmem:[%s2357_s10] sm:$0xff]   ;;  %v930_v15 = vld [vmem:[%s704_s8 + $0x18] sm:$0xff]  ;;  %v932_v17 = vld [vmem:[%s704_s8 + $0x28] sm:$0xff]  ;;  %1874 = vset.pattern.permute.xlu0 %v1981_v28  ;;  %s661_s30 = scalar_lea.vmem [#allocation6], %s1646_s20  ;;  %s1469_s23 = scalar_lea.sflag [#allocation7], %s659_s29 }
  0x29   : > { %v825_v36 = vpack.c.bf16 %v821_v34, %v820_v33  ;;  %v927_v10 = vld [vmem:[%s704_s8] sm:$0xff]  ;;  %1747 = vmatprep.subr.bf16.mxu0 %v1880_v8  ;;  %v936_v18 = vpack.c.bf16 %v930_v15, %v929_v14  ;;  %v933_v20 = vld [vmem:[%s704_s8 + $0x30] sm:$0xff]  ;;  %v934_v21 = vld [vmem:[%s704_s8 + $0x38] sm:$0xff]  ;;  %1875 = vset.pattern.permute.xlu1 %v1981_v28  ;;  %s1901_s20 = sshll.u32 %s1983_s24, 4  ;;  %s1902_s20 = int_to_ptr.vmem [resolvable:$false] %s1901_s20 }
  0x2a   : > { %1743 = vmatprep.mubr.msk.bf16.mxu1 %vm745_vm1, %v824_v31  ;;  %v721_v35 = vpack.c.bf16 %v720_v32, %v720_v32  ;;  %v935_v13 = vpack.c.bf16 %v928_v11, %v927_v10  ;;  %v931_v16 = vld [vmem:[%s704_s8 + $0x20] sm:$0xff]  ;;  %v938_v22 = vpack.c.bf16 %v934_v21, %v933_v20  ;;  %s1903_s17 = scalar_lea.vmem %s1902_s20, 256 }
  0x2b   : > { %v937_v19 = vpack.c.bf16 %v932_v17, %v931_v16  ;;  %v1667_v29 = vld [vmem:[%s2358_s11] ss:$0 sm:$0xff] }
  0x2c   : > { %1732 = vmatmul.mubr.msk.bf16.vlgmr.msra.gmra.mrb[0].mxu0 %vm745_vm1, %v721_v35 }
  0x2d   : > { %1748 = vmatpush3.bf16.msra.mxu0 %v1880_v8  ;;  %1751 = vmatprep.mubr.msk.bf16.mxu0 %vm745_vm1, %v935_v13 }
  0x2e   : > { %1749 = vmatprep.subr.bf16.mxu0 %v1881_v9  ;;  %v1255_v14 = vld [vmem:[#allocation3 + $0x8] sm:$0xff] }
  0x30   : > { %1744 = vmatmul.mubr.msk.bf16.gmra.mrb[4].mxu1 %vm745_vm1, %v825_v36 }
  0x31   : > { %1767 = vmatprep.mubr.msk.bf16.mxu1 %vm1978_vm0, %v1977_v2  ;;  %1750 = vmatpush3.bf16.msra.mxu0 %v1881_v9 }
  0x32   : > { %1771 = vmatprep.subr.bf16.mxu0 %v1977_v2 }
  0x34   : > { %1752 = vmatmul.mubr.msk.bf16.vlgmr.msra.gmra.mrb[4].mxu0 %vm745_vm1, %v936_v18 }
  0x35   : > { %1755 = vmatprep.mubr.msk.bf16.mxu0 %vm745_vm1, %v937_v19 }
  0x3c   : > { %1756 = vmatmul.mubr.msk.bf16.gmra.mrb[8].mxu0 %vm745_vm1, %v938_v22 }
  0x3d   : > { %1779 = vmatprep.mubr.msk.bf16.mxu0 %vm1978_vm0, %v1977_v2 }
  0xfb   : > { %v1741_v37 = vpop.f32.mrb[0].mxu1 }
  0xfc   : > { %v896_v39 = vpop.f32.mrb[1].mxu1  ;;  %v905_v42 = vadd.f32 %v1741_v37, %v1660_v38 }
  0xfd   : > { %v1742_v41 = vpop.f32.mrb[2].mxu1  ;;  %v897_v46 = vadd.f32 %v1660_v38, %v896_v39 }
  0xfe   : > { %v908_v43 = vadd.f32 %v1742_v41, %v1660_v38  ;;  %v899_v44 = vpop.f32.mrb[3].mxu1 }
  0xff   : > { %v783_v45 = vpop.f32.mrb[0].mxu0  ;;  %v900_v47 = vadd.f32 %v1660_v38, %v899_v44 }
 0x100   : > { %v784_v48 = vadd.f32 %v1656_v40, %v783_v45  ;;  %v1733_v49 = vpop.f32.mrb[1].mxu0  ;;  %v1042_v50 = vpack.c.bf16 %v908_v43, %v905_v42 }
 0x101   : > { %v786_v51 = vpop.f32.mrb[2].mxu0  ;;  %v1041_v52 = vpack.c.bf16 %v900_v47, %v897_v46 }
 0x102   : > { %v789_v53 = vmul.f32 0.35355338, %v784_v48  ;;  %v1734_v54 = vpop.f32.mrb[3].mxu0  ;;  %v1057_v3 = vsel %vm1049_vm3, %v1042_v50, 0 }
 0x103   : > { %1191 = vrot.lane.b32.xlu1 %v1041_v52, %s1979_s19  ;;  %v1745_v55 = vpop.f32.mrb[4].mxu1  ;;  %v1054_v56 = vsel %vm1049_vm3, %v1041_v52, 0 }
 0x104   : > { %791 = vst.msk [vmem:[#allocation2] sm:$0xff] %vm790_vm2, %v789_v53  ;;  %v921_v57 = vadd.f32 %v1745_v55, %v1660_v38  ;;  %1760 = vmatpush3.bf16.xpose.msra.mxu1 %v1054_v56  ;;  %v912_v58 = vpop.f32.mrb[5].mxu1 }
 0x105   : > { %v913_v59 = vadd.f32 %v1660_v38, %v912_v58  ;;  %v1746_v60 = vpop.f32.mrb[6].mxu1  ;;  %1761 = vmatprep.subr.bf16.mxu1 %v1977_v2 }
 0x106   : > { %v924_v61 = vadd.f32 %v1746_v60, %v1660_v38  ;;  %v915_v62 = vpop.f32.mrb[7].mxu1 }
 0x107   : > { %v916_v63 = vadd.f32 %v1660_v38, %v915_v62  ;;  %1193 = vrot.lane.b32.xlu1 %v1042_v50, %s1979_s19  ;;  %v1753_v30 = vpop.f32.mrb[4].mxu0  ;;  %v1105_v50 = vld [vmem:[#allocation3] sm:$0xff] }
 0x108   : > { %v1044_v0 = vpack.c.bf16 %v924_v61, %v921_v57  ;;  %v1017_v31 = vadd.f32 %v1753_v30, %v1667_v29  ;;  %v1008_v32 = vpop.f32.mrb[5].mxu0 }
 0x109   : > { %v1043_v1 = vpack.c.bf16 %v916_v63, %v913_v59  ;;  %v1009_v33 = vadd.f32 %v1667_v29, %v1008_v32  ;;  %v1754_v34 = vpop.f32.mrb[6].mxu0 }
 0x10a   : > { %v1063_v7 = vsel %vm1049_vm3, %v1044_v0, 0  ;;  %v1020_v35 = vadd.f32 %v1754_v34, %v1667_v29  ;;  %v1011_v36 = vpop.f32.mrb[7].mxu0 }
 0x10b   : > { %1195 = vrot.lane.b32.xlu1 %v1043_v1, %s1979_s19  ;;  %v1039_v4 = vld [vmem:[#allocation2] sm:$0xff]  ;;  %v1060_v6 = vsel %vm1049_vm3, %v1043_v1, 0  ;;  %v1012_v37 = vadd.f32 %v1667_v29, %v1011_v36 }
 0x10c   : > { %1762 = vmatpush3.bf16.xpose.msra.mxu1 %v1057_v3  ;;  %v1040_v5 = vpack.c.bf16 %v1039_v4, %v1039_v4  ;;  %v2232_v38 = vpack.c.bf16 %v1020_v35, %v1017_v31 }
 0x10d   : > { %1763 = vmatprep.subr.bf16.mxu1 %v1977_v2  ;;  %v2234_v39 = vpack.c.bf16 %v1012_v37, %v1009_v33  ;;  %v1122_v33 = vld [vmem:[#allocation4] sm:$0xff]  ;;  %v1130_v37 = vld [vmem:[#allocation5] sm:$0xff] }
 0x10f   : > { %1197 = vrot.lane.b32.xlu1 %v1044_v0, %s1979_s19  ;;  %v1757_v40 = vpop.f32.mrb[8].mxu0  ;;  %1772 = vmatpush3.bf16.msra.mxu0 %v2234_v39 }
 0x110   : > { %v1033_v41 = vadd.f32 %v1757_v40, %v1667_v29  ;;  %v1024_v42 = vpop.f32.mrb[9].mxu0  ;;  %1773 = vmatprep.subr.bf16.mxu0 %v1977_v2 }
 0x111   : > { %v1025_v43 = vadd.f32 %v1667_v29, %v1024_v42  ;;  %v1758_v44 = vpop.f32.mrb[10].mxu0 }
 0x112   : > { %v1036_v45 = vadd.f32 %v1758_v44, %v1667_v29  ;;  %v1027_v46 = vpop.f32.mrb[11].mxu0 }
 0x113   : > { %1185 = vrot.lane.b32.xlu1 %v1040_v5, %s1979_s19  ;;  %v1028_v47 = vadd.f32 %v1667_v29, %v1027_v46  ;;  %1774 = vmatpush3.bf16.msra.mxu0 %v2232_v38  ;;  %v1882_v46 = vld [vmem:[%s2359_s12] sm:$0xff]  }
 0x114   : > { %1764 = vmatpush3.bf16.xpose.msra.mxu1 %v1060_v6  ;;  %v1048_v48 = vpack.c.bf16 %v1036_v45, %v1033_v41  ;;  %1775 = vmatprep.subr.bf16.mxu0 %v1977_v2 }
 0x115   : > { %1765 = vmatprep.subr.bf16.mxu1 %v1977_v2  ;;  %v1047_v49 = vpack.c.bf16 %v1028_v47, %v1025_v43 }
 0x117   : > { %1776 = vmatpush3.bf16.msra.mxu0 %v1047_v49 }
 0x118   : > { %1777 = vmatprep.subr.bf16.mxu0 %v1977_v2 }
 0x11b   : > { %1778 = vmatpush3.bf16.msra.mxu0 %v1048_v48 }
 0x11c   : > { %1766 = vmatpush3.bf16.xpose.msra.mxu1 %v1063_v7  ;;  %1783 = vmatprep.subr.bf16.mxu0 %v1977_v2 }
 0x11d   : > { %1795 = vmatprep.subr.bf16.mxu1 %v1977_v2 }
 0x123   : > { %1768 = vmatmul.mubr.msk.bf16.vlgmr.msra.gmra.mrb[8].mxu1 %vm1049_vm3, %v1040_v5 }
 0x124   : > { %1803 = vmatprep.mubr.msk.bf16.mxu1 %vm1978_vm0, %v1977_v2 }
 0x175   : > { %v1192_v58 = vpop.permute.xlu1 %1191 }
 0x176   : > { %v1203_v60 = vsel %vm1049_vm3, %v1192_v58, 0 }
 0x179   : > { %v1194_v61 = vpop.permute.xlu1 %1193 }
 0x17a   : > { %v1206_v62 = vsel %vm1049_vm3, %v1194_v61, 0 }
 0x17d   : > { %v1196_v63 = vpop.permute.xlu1 %1195 }
 0x17e   : > { %v1209_v0 = vsel %vm1049_vm3, %v1196_v63, 0 }
 0x181   : > { %v1198_v1 = vpop.permute.xlu1 %1197 }
 0x182   : > { %v1212_v3 = vsel %vm1049_vm3, %v1198_v1, 0  ;;  %v1678_v1 = vld [vmem:[%s2360_s13] ss:$0 sm:$0xff] }
 0x185   : > { %v1186_v4 = vpop.permute.xlu1 %1185 }
 0x1f6   : > { %v1099_v23 = vpop.f32.mrb[8].mxu1 }
 0x1f7   : > { %v1769_v24 = vpop.f32.mrb[9].mxu1  ;;  %v1107_v25 = vsel %vm1106_vm5, %v1099_v23, -inf }
 0x1f8   : > { %1108 = vmax.xlane.f32.xlu0 %v1107_v25  ;;  %v1102_v26 = vpop.f32.mrb[10].mxu1 }
 0x1f9   : > { %v1770_v27 = vpop.f32.mrb[11].mxu1 }
 0x285   : > { %v1109_v51 = vpop.xlane.xlu0 %1108 }
 0x286   : > { %v1110_v52 = vmax.f32 %v1105_v50, %v1109_v51 }
 0x288   : > { %v1111_v53 = vsub.f32 %v1105_v50, %v1110_v52  ;;  %1183 = vst.msk [vmem:[#allocation3] sm:$0xff] %vm792_vm4, %v1110_v52  ;;  %1116 = vperm.xlu0 %1874, %v1110_v52  }
 0x28a   : > { %v1112_v19 = vmul.f32 1.442695, %v1111_v53 }
 0x307   : > { %v1117_v54 = vpop.permute.xlu0 %1116 }
 0x308   : > { %v1119_v55 = vsub.f32 %v1099_v23, %v1117_v54 }
 0x30a   : > { %v1120_v56 = vmul.f32 1.442695, %v1119_v55 }
 0x30c   : > { %1883 = vpow2.f32 %v1120_v56 }
 0x30d   : > { %1885 = vpow2.f32 %v1112_v19 }
 0x316   : > { %v1884_v57 = vpop.eup %1883 }
 0x317   : > { %v1137_v59 = vpack.c.bf16 %v1884_v57, %v1884_v57  ;;  %v1124_v18 = vsel %vm1106_vm5, %v1884_v57, 0.0  ;;  %v1886_v20 = vpop.eup %1885 }
 0x318   : > { %v1123_v34 = vmul.f32 %v1886_v20, %v1122_v33 }
 0x319   : > { %1780 = vmatmul.mubr.msk.bf16.vlgmr.msra.gmra.mrb[12].mxu0 %vm1106_vm5, %v1137_v59 }
 0x31a   : > { %1784 = vmatpush3.bf16.xpose.msra.mxu0 %v1203_v60  ;;  %1791 = vmatprep.mubr.msk.bf16.mxu0 %vm1978_vm0, %v1977_v2 }
 0x31b   : > { %1785 = vmatprep.subr.bf16.mxu0 %v1977_v2 }
 0x322   : > { %1786 = vmatpush3.bf16.xpose.msra.mxu0 %v1206_v62 }
 0x323   : > { %1787 = vmatprep.subr.bf16.mxu0 %v1977_v2 }
 0x32a   : > { %1788 = vmatpush3.bf16.xpose.msra.mxu0 %v1209_v0 }
 0x32b   : > { %1789 = vmatprep.subr.bf16.mxu0 %v1977_v2 }
 0x332   : > { %1790 = vmatpush3.bf16.xpose.msra.mxu0 %v1212_v3 }
 0x339   : > { %1792 = vmatmul.mubr.msk.bf16.vlgmr.msra.gmra.mrb[16].mxu0 %vm1049_vm3, %v1186_v4  ;;  %v1435_v4 = vld [vmem:[%s712_s18] sm:$0xff]  ;;  %s1483_s18 = sshll.u32 %s661_s30, 4  ;;  %s2301_s18 = int_to_ptr.vmem [resolvable:$true] %s1483_s18 }
 0x33a   : > { %p1904_p1 = scmp.lt.s32.totalorder %s2301_s18, %s1902_s20 }
 0x3ec   : > { %v1175_v5 = vpop.f32.mrb[12].mxu0 }
 0x3ed   : > { %v1781_v6 = vpop.f32.mrb[13].mxu0 }
 0x3ee   : > { %v1178_v7 = vpop.f32.mrb[14].mxu0 }
 0x3ef   : > { %v1782_v8 = vpop.f32.mrb[15].mxu0 }
 0x40c   : > { %v1248_v9 = vpop.f32.mrb[16].mxu0 }
 0x40d   : > { %v1793_v10 = vpop.f32.mrb[17].mxu0  ;;  %v1256_v11 = vsel %vm1106_vm5, %v1248_v9, -inf }
 0x40e   : > { %1257 = vmax.xlane.f32.xlu1 %v1256_v11  ;;  %v1251_v12 = vpop.f32.mrb[18].mxu0 }
 0x40f   : > { %v1794_v13 = vpop.f32.mrb[19].mxu0 }
 0x41f   : > { %1295 = vrot.lane.b32.xlu1 %v1047_v49, %s1979_s19 }
 0x49b   : > { %v1258_v15 = vpop.xlane.xlu1 %1257 }
 0x49c   : > { %v1259_v16 = vmax.f32 %v1255_v14, %v1258_v15 }
 0x49e   : > { %v1260_v17 = vsub.f32 %v1255_v14, %v1259_v16  ;;  %1353 = vst.msk [vmem:[#allocation3 + $0x8] sm:$0xff] %vm792_vm4, %v1259_v16  ;;  %1265 = vperm.xlu0 %1874, %v1259_v16  }
 0x49f   : > { %v1296_v26 = vpop.permute.xlu1 %1295 }
 0x4a0   : > { %v1261_v31 = vmul.f32 1.442695, %v1260_v17 }
 0x4a2   : > { %1291 = vrot.lane.b32.xlu0 %v2234_v39, %s1979_s19 }
 0x4a6   : > { %1293 = vrot.lane.b32.xlu0 %v2232_v38, %s1979_s19 }
 0x4aa   : > { %1297 = vrot.lane.b32.xlu0 %v1048_v48, %s1979_s19  ;;  %s1897_s19 = scalar_lea.vmem %s2301_s18, 128 }
 0x4ab   : > { %p1898_p12 = scmp.ne.s32.totalorder %s2301_s18, %s1897_s19  ;;  %p1905_p2 = scmp.lt.s32.totalorder %s1903_s17, %s1897_s19 }
 0x4ad   : > { %p1899_p13 = pnand %p1898_p12, %p2109_p4  ;;  %p1906_p3 = por %p1905_p2, %p1904_p1 }
 0x4af   : > { %p1900_p0 = pneg %p1899_p13 }
 0x4b1   : > { %p1907_p5 = pnand %p1906_p3, %p1900_p0 }
 0x4c9   : > { %1125 = vadd.xlane.f32.xlu0 %v1124_v18 }
 0x4df   : > { %1133 = vperm.xlu0 %1874, %v1886_v20   ;;  %v1681_v20 = vld [vmem:[%s2361_s14] ss:$0 sm:$0xff] }
 0x51d   : > { %v1266_v21 = vpop.permute.xlu0 %1265 }
 0x51e   : > { %v1268_v22 = vsub.f32 %v1248_v9, %v1266_v21 }
 0x520   : > { %v1269_v23 = vmul.f32 1.442695, %v1268_v22  ;;  %v1682_v22 = vld [vmem:[%s2362_s15] ss:$0 sm:$0xff] }
 0x521   : > { %v1292_v24 = vpop.permute.xlu0 %1291 }
 0x522   : > { %1887 = vpow2.f32 %v1269_v23  ;;  %1796 = vmatpush3.bf16.msra.mxu1 %v1292_v24 }
 0x523   : > { %1797 = vmatprep.subr.bf16.mxu1 %v1977_v2  ;;  %1889 = vpow2.f32 %v1261_v31 }
 0x525   : > { %v1294_v25 = vpop.permute.xlu0 %1293 }
 0x526   : > { %1798 = vmatpush3.bf16.msra.mxu1 %v1294_v25 }
 0x527   : > { %1799 = vmatprep.subr.bf16.mxu1 %v1977_v2 }
 0x529   : > { %v1298_v28 = vpop.permute.xlu0 %1297 }
 0x52a   : > { %1800 = vmatpush3.bf16.msra.mxu1 %v1296_v26 }
 0x52b   : > { %1801 = vmatprep.subr.bf16.mxu1 %v1977_v2 }
 0x52c   : > { %v1888_v27 = vpop.eup %1887 }
 0x52d   : > { %v1274_v29 = vsel %vm1106_vm5, %v1888_v27, 0.0  ;;  %v1286_v30 = vpack.c.bf16 %v1888_v27, %v1888_v27  ;;  %v1890_v32 = vpop.eup %1889 }
 0x52e   : > { %1275 = vadd.xlane.f32.xlu1 %v1274_v29  ;;  %1802 = vmatpush3.bf16.msra.mxu1 %v1298_v28 }
 0x52f   : > { %1807 = vmatprep.subr.bf16.mxu1 %v1977_v2 }
 0x531   : > { %1804 = vmatmul.mubr.msk.bf16.vlgmr.msra.gmra.mrb[12].mxu1 %vm1106_vm5, %v1286_v30 }
 0x532   : > { %1809 = vmatprep.mubr.msk.bf16.mxu1 %vm1978_vm0, %v1977_v2  ;;  %v1272_v2 = vld [vmem:[#allocation4 + $0x8] sm:$0xff]  ;;  %1808 = vmatpush3.bf16.msra.mxu1 %v1882_v46 }
 0x533   : > { %v1273_v43 = vmul.f32 %v1890_v32, %v1272_v2 }
 0x53f   : > { %1282 = vperm.xlu1 %1875, %v1890_v32  }
 0x556   : > { %v1126_v35 = vpop.xlane.xlu0 %1125 }
 0x557   : > { %v1127_v36 = vadd.f32 %v1126_v35, %v1123_v34 }
 0x559   : > { %1129 = vst.msk [vmem:[#allocation4] sm:$0xff] %vm792_vm4, %v1127_v36 }
 0x55e   : > { %v1134_v38 = vpop.permute.xlu0 %1133 }
 0x55f   : > { %v1136_v39 = vmul.f32 %v1134_v38, %v1130_v37 }
 0x560   : > { %v1358_v40 = vld [vmem:[#allocation4] sm:$0xff] }
 0x561   : > { %v1181_v41 = vadd.f32 %v1175_v5, %v1136_v39  ;;  %1891 = vrcp.f32 %v1358_v40 }
 0x563   : > { %1182 = vst.msk [vmem:[#allocation5] sm:$0xff] %vm1049_vm3, %v1181_v41 }
 0x56a   : > { %v1279_v55 = vld [vmem:[#allocation5] sm:$0xff] }
 0x56b   : > { %v1892_v42 = vpop.eup %1891 }
 0x56c   : > { %1362 = vperm.xlu0 %1874, %v1892_v42  }
 0x5bb   : > { %v1276_v44 = vpop.xlane.xlu1 %1275 }
 0x5bc   : > { %v1277_v45 = vadd.f32 %v1276_v44, %v1273_v43 }
 0x5be   : > { %1278 = vst.msk [vmem:[#allocation4 + $0x8] sm:$0xff] %vm792_vm4, %v1277_v45 }
 0x5bf   : > { %v1283_v53 = vpop.permute.xlu1 %1282 }
 0x5c0   : > { %v1285_v56 = vmul.f32 %v1283_v53, %v1279_v55 }
 0x5c5   : > { %v1366_v47 = vld [vmem:[#allocation4 + $0x8] sm:$0xff] }
 0x5c6   : > { %1893 = vrcp.f32 %v1366_v47 }
 0x5d0   : > { %v1894_v52 = vpop.eup %1893 }
 0x5eb   : > { %v1363_v54 = vpop.permute.xlu0 %1362 }
 0x604   : > { %v1340_v48 = vpop.f32.mrb[12].mxu1 }
 0x605   : > { %1347 = vrot.lane.b32.xlu0 %v1340_v48, %s1982_s27  ;;  %v1805_v49 = vpop.f32.mrb[13].mxu1 }
 0x606   : > { %v1343_v50 = vpop.f32.mrb[14].mxu1 }
 0x607   : > { %v1806_v51 = vpop.f32.mrb[15].mxu1 }
 0x609   : > { %1370 = vperm.xlu0 %1874, %v1894_v52  }
 0x677   : > { %v1348_v57 = vpop.permute.xlu0 %1347 }
 0x678   : > { %v1350_v58 = vadd.f32 %v1348_v57, %v1285_v56 }
 0x67a   : > { %1352 = vst.msk [vmem:[#allocation5] sm:$0xff] %vm1351_vm6, %v1350_v58 }
 0x681   : > { %v1357_v59 = vld [vmem:[#allocation5] sm:$0xff] }
 0x682   : > { %v1365_v61 = vmul.f32 %v1363_v54, %v1357_v59 }
 0x688   : > { %v1371_v60 = vpop.permute.xlu0 %1370 }
 0x689   : > { %v1373_v62 = vmul.f32 %v1371_v60, %v1357_v59 }
 0x68b   : > { %v1374_v63 = vsel %vm1049_vm3, %v1365_v61, %v1373_v62 }
 0x68c   : > { %v1375_v0 = vpack.c.bf16 %v1374_v63, %v1374_v63 }
 0x68e   : > { %1810 = vmatmul.mubr.msk.bf16.vlgmr.msra.gmra.mrb[16].mxu1 %vm790_vm2, %v1375_v0 }
 0x761   : > { %v1429_v3 = vpop.f32.mrb[16].mxu1 }
 0x762   : > { %v1430_v5 = vadd.f32 %v1678_v1, %v1429_v3  ;;  %v1811_v6 = vpop.f32.mrb[17].mxu1 }
 0x763   : > { %v1432_v7 = vpop.f32.mrb[18].mxu1 }
 0x764   : > { %v1812_v8 = vpop.f32.mrb[19].mxu1  ;;  %v1436_v9 = vadd.f32 %v1435_v4, %v1430_v5 }
 0x766   : > { %v1439_v10 = vsel %vm745_vm1, %v1436_v9, 0.0 }
 0x767   : > { %1440 = vadd.xlane.f32.xlu1 %v1439_v10 }
 0x7f4   : > { %v1441_v11 = vpop.xlane.xlu1 %1440 }
 0x7f5   : > { %v1443_v12 = vmul.f32 0.03125, %v1441_v11 }
 0x7f7   : > { %v1444_v13 = vsub.f32 %v1436_v9, %v1443_v12 }
 0x7f9   : > { %v1445_v14 = vmul.f32 %v1444_v13, %v1444_v13 }
 0x7fb   : > { %v1446_v15 = vsel %vm745_vm1, %v1445_v14, 0.0 }
 0x7fc   : > { %1447 = vadd.xlane.f32.xlu0 %v1446_v15 }
 0x889   : > { %v1448_v16 = vpop.xlane.xlu0 %1447 }
 0x88a   : > { %v1449_v17 = vmul.f32 0.03125, %v1448_v16 }
 0x88c   : > { %v1450_v18 = vadd.f32 1e-05, %v1449_v17 }
 0x88e   : > { %1895 = vrsqrt.f32 %v1450_v18 }
 0x898   : > { %v1896_v19 = vpop.eup %1895 }
 0x899   : > { %v1452_v21 = vmul.f32 %v1896_v19, %v1444_v13 }
 0x89b   : > { %v1459_v23 = vmul.f32 %v1681_v20, %v1452_v21 }
 0x89d   : > { %v1466_v24 = vadd.f32 %v1682_v22, %v1459_v23 }
 0x89f   : > { %1467 = vst.msk [vmem:[%s661_s30] sm:$0xff] %vm745_vm1, %v1466_v24 }
 0x8a0   : > { %1910 = shalt.err (!%p1907_p5)
}
 0x8a1   : > { %s1911_s29 = scalar_lea.hbm %s2299_s1, 128  ;;  %s1915_s30 = scalar_lea.hbm %s2363_s16, 256 }
 0x8a2   : > { %p1912_p6 = scmp.ne.s32.totalorder %s2299_s1, %s1911_s29  ;;  %p1916_p10 = scmp.lt.u32.totalorder %s2299_s1, %s2363_s16 }
 0x8a3   : > { %p1917_p11 = scmp.lt.u32.totalorder %s1915_s30, %s1911_s29  ;;  %p1919_p13 = scmp.lt.u32.totalorder %s1911_s29, %s2299_s1 }
 0x8a4   : > { %p1913_p7 = pnand %p1912_p6, %p2109_p4 }
 0x8a5   : > { %p1918_p12 = por %p1917_p11, %p1916_p10 }
 0x8a6   : > { %p1914_p9 = pneg %p1913_p7 }
 0x8a7   : > { %p1920_p0 = por %p1919_p13, %p1918_p12 }
 0x8a9   : > { %p1921_p1 = pnand %p1920_p0, %p1914_p9 }
 0x8ab   : > { %1924 = shalt.err (!%p1921_p1)
}
 0x8ac   : > { %1813 = dma.vmem_to_hbm [thread:$0]  (%p2109_p4), %s2301_s18, 128, %s2299_s1, %s1469_s23  }
 0x8ad PF: > { %p1819_p2 = scmp.ge.s32.totalorder %s1975_s26, 2  ;;  %s1495_s24 = sand.u32 1, %s1955_s21  }
 0x8ae   : > { %s1496_s20 = scalar_lea.sflag [#allocation7], %s1495_s24 }
 0x8af   : > { %p1816_p3 = pnand %p1819_p2, %p2116_p8 }
 0x8b1   : > { %1950 = dma.done.wait (!%p1816_p3), %s1496_s20, 128  }
 0x8b2   : > { %1952 = vsyncadd (!%p1816_p3), %s1496_s20, 4294967168  ;;  %s29_s26 = sadd.s32 1, %s1975_s26   ;;  %s2382_s17 = sld [smem:[#allocation9_spill]] }
 0x8b3   : > { %p26_p5 = scmp.ge.s32.totalorder %s29_s26, 4   ;;  %s2383_s23 = sld [smem:[#allocation13_spill]] }
 0x8b4   : > { %s2384_s24 = sld [smem:[#allocation10_spill]]  ;;  %s2385_s25 = sld [smem:[#allocation11_spill]] }
 0x8b5   : > { %s2386_s21 = smov %s1959_s22  ;;  %28 = sbr.rel (!%p26_p5) target bundleno = 8 (0x8), region = 144 }
 0x8b8   : > { %s2387_s22 = smov %s2382_s17 }
 0x8bc   :  { %1501 = vsyncpa [#allocation7], 1 }
 0x8bd   :  { %1503 = vsyncpa [#allocation7 + $0x1], 1 }

</bundles_post_ra>
